<compile_context>
chip_gen: v7x
topology: tpu7x:2x2x1
jax: 0.10.0
libtpu: 0.0.40
codegen_flags: <defaults>
</compile_context>

<pallas_src>
import functools

import jax
import jax.numpy as jnp
from jax import lax
from jax.experimental import pallas as pl
from jax.experimental.pallas import tpu as pltpu


# ----------------------------------------------------------------------------
# Helpers
# ----------------------------------------------------------------------------

def _pick_tile(n, max_tile, lane_mult=8):
    """Largest divisor of n that is <= max_tile and a multiple of lane_mult."""
    if n <= max_tile:
        return n
    for t in range(max_tile, 0, -1):
        if n % t == 0 and t % lane_mult == 0:
            return t
    # TODO(synk): awkward (e.g. prime) point counts have no aligned divisor;
    # fall back to the full dimension (always layout-legal) at the cost of a
    # larger VMEM footprint.  Pad num_points to a multiple of 8 upstream.
    return n


def _dot(a, b):
    """Plain MXU matmul with f32 accumulation."""
    return jnp.dot(a, b, preferred_element_type=jnp.float32)


def _dot_t(a, b):
    """a (m,k) @ b(n,k).T -> (m,n), f32 accumulation (native transposed-rhs)."""
    return lax.dot_general(a, b, (((1,), (1,)), ((), ())),
                           preferred_element_type=jnp.float32)


# ----------------------------------------------------------------------------
# Kernel 1: fused T-Net trunk  (Cin -> 64 -> 128 -> 1024, max over all points)
# ----------------------------------------------------------------------------

def _tnet_trunk_kernel(x_ref, w1_ref, c1_ref, w2_ref, c2_ref, w3_ref, c3_ref,
                       o_ref):
    lt = pl.program_id(1)

    @pl.when(lt == 0)
    def _init():
        o_ref[...] = jnp.full(o_ref.shape, -jnp.inf, dtype=o_ref.dtype)

    x = x_ref[0]                                                  # (tl, Cin)
    h = jnp.maximum(_dot(x.astype(w1_ref.dtype), w1_ref[...]) + c1_ref[...], 0.0)
    h = jnp.maximum(_dot(h.astype(w2_ref.dtype), w2_ref[...]) + c2_ref[...], 0.0)
    z = _dot(h.astype(w3_ref.dtype), w3_ref[...])                 # bias deferred
    o_ref[0] = jnp.maximum(o_ref[0], jnp.max(z, axis=0, keepdims=True))

    @pl.when(lt == pl.num_programs(1) - 1)
    def _final():
        # max_i(z_i) + c == max_i(z_i + c); ReLU is monotone so it commutes
        # with the running max -> apply bias + ReLU once, at the very end.
        o_ref[...] = jnp.maximum(o_ref[...] + c3_ref[...], 0.0)


def tnet_trunk(x, p, *, max_tile=512):
    """x: (B, L, Cin) channels-last -> pooled (B, 1024) T-Net feature."""
    B, L, c_in = x.shape
    c_out = p["block3"]["w"].shape[1]
    tl = _pick_tile(L, max_tile)
    out = pl.pallas_call(
        _tnet_trunk_kernel,
        out_shape=jax.ShapeDtypeStruct((B, 1, c_out), jnp.float32),
        grid=(B, L // tl),
        in_specs=[
            pl.BlockSpec((1, tl, c_in), lambda b, l: (b, l, 0)),
            pl.BlockSpec(p["block1"]["w"].shape, lambda b, l: (0, 0)),
            pl.BlockSpec(p["block1"]["c"].shape, lambda b, l: (0, 0)),
            pl.BlockSpec(p["block2"]["w"].shape, lambda b, l: (0, 0)),
            pl.BlockSpec(p["block2"]["c"].shape, lambda b, l: (0, 0)),
            pl.BlockSpec(p["block3"]["w"].shape, lambda b, l: (0, 0)),
            pl.BlockSpec(p["block3"]["c"].shape, lambda b, l: (0, 0)),
        ],
        out_specs=pl.BlockSpec((1, 1, c_out), lambda b, l: (b, 0, 0)),
        compiler_params=pltpu.CompilerParams(
            dimension_semantics=("parallel", "arbitrary")),
    )(x, p["block1"]["w"], p["block1"]["c"], p["block2"]["w"], p["block2"]["c"],
      p["block3"]["w"], p["block3"]["c"])
    return out[:, 0, :]


# ----------------------------------------------------------------------------
# Kernel 2: fused T-Net head MLP  1024 -> 512 -> 256 -> K*K (+identity in bias)
# ----------------------------------------------------------------------------

def _head_mlp_kernel(g_ref, w1_ref, c1_ref, w2_ref, c2_ref, w3_ref, c3_ref,
                     o_ref):
    h = jnp.maximum(_dot(g_ref[...].astype(w1_ref.dtype), w1_ref[...]) + c1_ref[...], 0.0)
    h = jnp.maximum(_dot(h.astype(w2_ref.dtype), w2_ref[...]) + c2_ref[...], 0.0)
    o_ref[...] = (_dot(h.astype(w3_ref.dtype), w3_ref[...]) + c3_ref[...]
                  ).astype(o_ref.dtype)


def head_mlp(g, p):
    B = g.shape[0]
    kk = p["fc"]["w"].shape[1]
    return pl.pallas_call(
        _head_mlp_kernel,
        out_shape=jax.ShapeDtypeStruct((B, kk), jnp.float32),
    )(g, p["mlp1"]["w"], p["mlp1"]["c"], p["mlp2"]["w"], p["mlp2"]["c"],
      p["fc"]["w"], p["fc"]["c"])


def transformer_forward(p, x, K):
    """PointNet T-Net.  x: (B, L, Cin) channels-last -> (B, K, K)."""
    g = tnet_trunk(x, p)          # fused block1/2/3 + global max
    t = head_mlp(g, p)            # fused 1024->512->256->K*K (+ identity)
    return t.reshape(-1, K, K)


# ----------------------------------------------------------------------------
# Kernel 3: bmm(T1, x) fused with mlp1[0] (K->64) and mlp1[1] (64->64)
# ----------------------------------------------------------------------------

def _trunk1_kernel(x_ref, tT_ref, w1_ref, c1_ref, w2_ref, c2_ref, o_ref):
    # bmm(T1, x) in channels-last form: xt = x_tile @ T1^T (T1 pre-transposed).
    xt = _dot(x_ref[0], tT_ref[0])                                # (tl, K) f32
    h = jnp.maximum(_dot(xt.astype(w1_ref.dtype), w1_ref[...]) + c1_ref[...], 0.0)
    h = jnp.maximum(_dot(h.astype(w2_ref.dtype), w2_ref[...]) + c2_ref[...], 0.0)
    o_ref[0] = h.astype(o_ref.dtype)


def trunk1(x, tT, p0, p1, *, max_tile=512, out_dtype=jnp.bfloat16):
    B, L, K = x.shape
    c_out = p1["w"].shape[1]
    tl = _pick_tile(L, max_tile)
    return pl.pallas_call(
        _trunk1_kernel,
        out_shape=jax.ShapeDtypeStruct((B, L, c_out), out_dtype),
        grid=(B, L // tl),
        in_specs=[
            pl.BlockSpec((1, tl, K), lambda b, l: (b, l, 0)),
            pl.BlockSpec((1, K, K), lambda b, l: (b, 0, 0)),
            pl.BlockSpec(p0["w"].shape, lambda b, l: (0, 0)),
            pl.BlockSpec(p0["c"].shape, lambda b, l: (0, 0)),
            pl.BlockSpec(p1["w"].shape, lambda b, l: (0, 0)),
            pl.BlockSpec(p1["c"].shape, lambda b, l: (0, 0)),
        ],
        out_specs=pl.BlockSpec((1, tl, c_out), lambda b, l: (b, l, 0)),
        compiler_params=pltpu.CompilerParams(
            dimension_semantics=("parallel", "parallel")),
    )(x, tT, p0["w"], p0["c"], p1["w"], p1["c"])


# ----------------------------------------------------------------------------
# Kernel 4: bmm(T2, h) + mlp2[0..2] + F.max_pool1d(., 2), producing
#           local_embedding (pair-merged channels-last) and the global
#           feature DIRECTLY in torch NCL layout (B, 1024, L/2).
# ----------------------------------------------------------------------------

def _trunk2_kernel(hp_ref, tT_ref, w0_ref, c0_ref, w1_ref, c1_ref,
                   w2_ref, c2_ref, le_ref, gf_ref):
    c_mid = w0_ref.shape[0]                       # 64
    hp = hp_ref[0]                                # (tlh, 128): [even pt | odd pt]
    t2 = tT_ref[0].astype(hp.dtype)               # bf16 bmm, f32 accumulation

    xt_e = _dot(hp[:, :c_mid], t2)                # (tlh, 64) = bmm(T2, h) even pts
    xt_o = _dot(hp[:, c_mid:], t2)                # (tlh, 64)              odd pts

    # Local embedding, pair-merged channels-last (un-merged in the wrapper).
    le_ref[0, :, :c_mid] = xt_e.astype(le_ref.dtype)
    le_ref[0, :, c_mid:] = xt_o.astype(le_ref.dtype)

    def mlp2_head(xt):                            # mlp2[0] 64->64, mlp2[1] 64->128
        g = jnp.maximum(_dot(xt.astype(w0_ref.dtype), w0_ref[...]) + c0_ref[...], 0.0)
        g = jnp.maximum(_dot(g.astype(w1_ref.dtype), w1_ref[...]) + c1_ref[...], 0.0)
        return g                                  # (tlh, 128)

    g_e = mlp2_head(xt_e)
    g_o = mlp2_head(xt_o)

    # mlp2[2] (128->1024) emitted channels-first via a@b.T (native MXU
    # transposed-rhs), so the global feature needs no transpose anywhere.
    # The point-pair max pool is an elementwise max of the even/odd streams;
    # bias + ReLU are applied once after the max (they commute).
    z = jnp.maximum(_dot_t(w2_ref[...], g_e.astype(w2_ref.dtype)),
                    _dot_t(w2_ref[...], g_o.astype(w2_ref.dtype)))   # (1024, tlh)
    gf_ref[0] = jnp.maximum(z + c2_ref[...], 0.0).astype(gf_ref.dtype)


def trunk2(h, t2T, p0, p1, p2, *, max_pair_tile=256):
    """h: (B, L, 64) bf16 channels-last -> (le_pairs (B,L/2,128), gf (B,1024,L/2))."""
    B, L, c_in = h.shape
    assert L % 2 == 0, "F.max_pool1d(kernel=stride=2); keep num_points even"
    lh = L // 2
    c_out = p2["w"].shape[0]                      # 1024
    hp = h.reshape(B, lh, 2 * c_in)               # free contiguous pair merge
    tlh = _pick_tile(lh, max_pair_tile, lane_mult=128)
    le_pairs, gf = pl.pallas_call(
        _trunk2_kernel,
        out_shape=(jax.ShapeDtypeStruct((B, lh, 2 * c_in), jnp.float32),
                   jax.ShapeDtypeStruct((B, c_out, lh), jnp.float32)),
        grid=(B, lh // tlh),
        in_specs=[
            pl.BlockSpec((1, tlh, 2 * c_in), lambda b, l: (b, l, 0)),
            pl.BlockSpec((1, c_in, c_in), lambda b, l: (b, 0, 0)),
            pl.BlockSpec(p0["w"].shape, lambda b, l: (0, 0)),
            pl.BlockSpec(p0["c"].shape, lambda b, l: (0, 0)),
            pl.BlockSpec(p1["w"].shape, lambda b, l: (0, 0)),
            pl.BlockSpec(p1["c"].shape, lambda b, l: (0, 0)),
            pl.BlockSpec(p2["w"].shape, lambda b, l: (0, 0)),
            pl.BlockSpec(p2["c"].shape, lambda b, l: (0, 0)),
        ],
        out_specs=(pl.BlockSpec((1, tlh, 2 * c_in), lambda b, l: (b, l, 0)),
                   pl.BlockSpec((1, c_out, tlh), lambda b, l: (b, 0, l))),
        compiler_params=pltpu.CompilerParams(
            dimension_semantics=("parallel", "parallel")),
    )(hp, t2T, p0["w"], p0["c"], p1["w"], p1["c"], p2["w"], p2["c"])
    return le_pairs, gf


# ----------------------------------------------------------------------------
# Deterministic parameter construction (synthetic weights, BN fully folded)
# ----------------------------------------------------------------------------

_BN_EPS = 1e-5


def _fold_bn(key, c_in, c_out):
    k1, k2, k3, k4, k5, k6 = jax.random.split(key, 6)
    w = 0.1 * jax.random.normal(k1, (c_out, c_in), jnp.float32)   # torch (out, in)
    bias = 0.05 * jax.random.normal(k2, (c_out,), jnp.float32)
    gamma = 1.0 + 0.1 * jax.random.normal(k3, (c_out,), jnp.float32)
    beta = 0.05 * jax.random.normal(k4, (c_out,), jnp.float32)
    mean = 0.05 * jax.random.normal(k5, (c_out,), jnp.float32)
    var = 1.0 + 0.5 * jax.random.uniform(k6, (c_out,), jnp.float32)
    a = gamma / jnp.sqrt(var + _BN_EPS)
    return a[:, None] * w, a * (bias - mean) + beta               # (out,in), (out,)


def _conv_cl(key, c_in, c_out, w_dtype=jnp.bfloat16):
    """Conv1d(.,.,1)+BN folded, channels-last: W (c_in,c_out), bias (1,c_out)."""
    wf, cf = _fold_bn(key, c_in, c_out)
    return dict(w=wf.T.astype(w_dtype), c=cf[None, :].astype(jnp.float32))


def _conv_cf(key, c_in, c_out, w_dtype=jnp.bfloat16):
    """Conv1d(.,.,1)+BN folded, channels-first: W (c_out,c_in), bias (c_out,1)."""
    wf, cf = _fold_bn(key, c_in, c_out)
    return dict(w=wf.astype(w_dtype), c=cf[:, None].astype(jnp.float32))


def _linear_cl(key, c_in, c_out, with_bn=True, w_dtype=jnp.bfloat16):
    if with_bn:
        return _conv_cl(key, c_in, c_out, w_dtype)
    k1, k2 = jax.random.split(key, 2)
    w = 0.1 * jax.random.normal(k1, (c_out, c_in), jnp.float32)
    b = 0.05 * jax.random.normal(k2, (c_out,), jnp.float32)
    return dict(w=w.T.astype(w_dtype), c=b[None, :].astype(jnp.float32))


def _make_transformer_params(key, K):
    keys = jax.random.split(key, 6)
    fc = _linear_cl(keys[5], 256, K * K, with_bn=False)
    # Fold the T-Net "+ identity" directly into the fc bias.
    fc["c"] = fc["c"] + jnp.eye(K, dtype=jnp.float32).reshape(1, K * K)
    return dict(
        block1=_conv_cl(keys[0], K, 64),
        block2=_conv_cl(keys[1], 64, 128),
        block3=_conv_cl(keys[2], 128, 1024),
        mlp1=_linear_cl(keys[3], 1024, 512),
        mlp2=_linear_cl(keys[4], 512, 256),
        fc=fc,
    )


def init_params(key, K=3):
    keys = jax.random.split(key, 7)
    return dict(
        input_transformer=_make_transformer_params(keys[0], K),
        embedding_transformer=_make_transformer_params(keys[1], 64),
        mlp1_0=_conv_cl(keys[2], K, 64),
        mlp1_1=_conv_cl(keys[3], 64, 64),
        mlp2_0=_conv_cl(keys[4], 64, 64),
        mlp2_1=_conv_cl(keys[5], 64, 128),
        mlp2_2=_conv_cf(keys[6], 128, 1024),   # channels-first for the NCL output
    )


# ----------------------------------------------------------------------------
# Forward pass (6 fused pallas_calls total)
# ----------------------------------------------------------------------------

def pointnet_base_forward(params, x_ncl, K=3):
    # x_ncl: (B, K, num_points) in PyTorch Conv1d NCL layout.
    B, _, L = x_ncl.shape
    x = jnp.transpose(x_ncl, (0, 2, 1))                        # (B, L, K) channels-last

    # ---- input transformer, then bmm(T1, x) fused with mlp1 -------------------
    T1 = transformer_forward(params["input_transformer"], x, K)
    # TODO(synk): torch upcasts T1/T2/x to float64 for torch.bmm; TPU has no f64
    # MXU, so bmm(T1,.) is f32 and bmm(T2,.) is bf16-in / f32-accum here.
    h = trunk1(x, jnp.swapaxes(T1, 1, 2),
               params["mlp1_0"], params["mlp1_1"])             # (B, L, 64) bf16

    # ---- embedding transformer, then bmm(T2, h) + mlp2 + pair max-pool --------
    T2 = transformer_forward(params["embedding_transformer"], h, 64)
    le_pairs, global_feature = trunk2(h, jnp.swapaxes(T2, 1, 2),
                                      params["mlp2_0"], params["mlp2_1"],
                                      params["mlp2_2"])
    # global_feature leaves the kernel already in torch NCL layout (B,1024,L//2);
    # no XLA transpose pass over the largest tensor.
    if global_feature.shape[2] == 1:                           # torch .squeeze(2)
        global_feature = global_feature[:, :, 0]

    # local embedding: un-merge the point pairs (free reshape) + one small
    # transpose over the (8x smaller) (B, L, 64) tensor.
    local_embedding = jnp.transpose(le_pairs.reshape(B, L, 64), (0, 2, 1))
    return global_feature, local_embedding, T2


# ----------------------------------------------------------------------------

if __name__ == "__main__":
    B, K, P = 2, 3, 32   # batch=2, K=3 coords, num_points=32 (module default)
    root = jax.random.PRNGKey(0)
    pkey, xkey = jax.random.split(root)
    x = jax.random.normal(xkey, (B, K, P), dtype=jnp.float32)
    params = init_params(pkey, K=K)

    fwd = jax.jit(functools.partial(pointnet_base_forward, K=K))
    global_feature, local_embedding, T2 = jax.block_until_ready(fwd(params, x))

    assert global_feature.shape == (B, 1024, P // 2)
    assert local_embedding.shape == (B, 64, P)
    assert T2.shape == (B, 64, 64)
    assert all(bool(jnp.all(jnp.isfinite(t)))
               for t in (global_feature, local_embedding, T2))
    print("KERNEL_OK")
</pallas_src>

<mosaic_0001>
module attributes {stable_mosaic.version = 11 : i64} {
  func.func @_head_mlp_kernel(%arg0: memref<2x1024xf32, #tpu.memory_space<vmem>>, %arg1: memref<1024x512xbf16, #tpu.memory_space<vmem>>, %arg2: memref<1x512xf32, #tpu.memory_space<vmem>>, %arg3: memref<512x256xbf16, #tpu.memory_space<vmem>>, %arg4: memref<1x256xf32, #tpu.memory_space<vmem>>, %arg5: memref<256x9xbf16, #tpu.memory_space<vmem>>, %arg6: memref<1x9xf32, #tpu.memory_space<vmem>>, %arg7: memref<2x9xf32, #tpu.memory_space<vmem>>) attributes {dimension_semantics = [], scalar_prefetch = 0 : i64, scratch_operands = 0 : i64, tpu.core_type = #tpu.core_type<tc>} {
    %c0 = arith.constant 0 : index
    %c0_0 = arith.constant 0 : index
    %0 = vector.load %arg0[%c0, %c0_0] : memref<2x1024xf32, #tpu.memory_space<vmem>>, vector<2x1024xf32>
    %1 = arith.truncf %0 : vector<2x1024xf32> to vector<2x1024xbf16>
    %c0_1 = arith.constant 0 : index
    %c0_2 = arith.constant 0 : index
    %2 = vector.load %arg1[%c0_1, %c0_2] : memref<1024x512xbf16, #tpu.memory_space<vmem>>, vector<1024x512xbf16>
    %cst = arith.constant dense<0.000000e+00> : vector<2x512xf32>
    %3 = tpu.matmul %1, %2, %cst {dimension_numbers = #tpu.dot_dimension_numbers<[1], [0], [0], [1], [0, 0, 1, 1], [], []>} : vector<2x1024xbf16>, vector<1024x512xbf16>, vector<2x512xf32> -> vector<2x512xf32>
    %c0_3 = arith.constant 0 : index
    %c0_4 = arith.constant 0 : index
    %4 = vector.load %arg2[%c0_3, %c0_4] : memref<1x512xf32, #tpu.memory_space<vmem>>, vector<1x512xf32>
    %5 = vector.broadcast %4 : vector<1x512xf32> to vector<2x512xf32>
    %6 = arith.addf %3, %5 : vector<2x512xf32>
    %cst_5 = arith.constant 0.000000e+00 : f32
    %7 = vector.broadcast %cst_5 : f32 to vector<2x512xf32>
    %8 = arith.maximumf %6, %7 : vector<2x512xf32>
    %9 = arith.truncf %8 : vector<2x512xf32> to vector<2x512xbf16>
    %c0_6 = arith.constant 0 : index
    %c0_7 = arith.constant 0 : index
    %10 = vector.load %arg3[%c0_6, %c0_7] : memref<512x256xbf16, #tpu.memory_space<vmem>>, vector<512x256xbf16>
    %cst_8 = arith.constant dense<0.000000e+00> : vector<2x256xf32>
    %11 = tpu.matmul %9, %10, %cst_8 {dimension_numbers = #tpu.dot_dimension_numbers<[1], [0], [0], [1], [0, 0, 1, 1], [], []>} : vector<2x512xbf16>, vector<512x256xbf16>, vector<2x256xf32> -> vector<2x256xf32>
    %c0_9 = arith.constant 0 : index
    %c0_10 = arith.constant 0 : index
    %12 = vector.load %arg4[%c0_9, %c0_10] : memref<1x256xf32, #tpu.memory_space<vmem>>, vector<1x256xf32>
    %13 = vector.broadcast %12 : vector<1x256xf32> to vector<2x256xf32>
    %14 = arith.addf %11, %13 : vector<2x256xf32>
    %cst_11 = arith.constant 0.000000e+00 : f32
    %15 = vector.broadcast %cst_11 : f32 to vector<2x256xf32>
    %16 = arith.maximumf %14, %15 : vector<2x256xf32>
    %17 = arith.truncf %16 : vector<2x256xf32> to vector<2x256xbf16>
    %c0_12 = arith.constant 0 : index
    %c0_13 = arith.constant 0 : index
    %18 = vector.load %arg5[%c0_12, %c0_13] : memref<256x9xbf16, #tpu.memory_space<vmem>>, vector<256x9xbf16>
    %cst_14 = arith.constant dense<0.000000e+00> : vector<2x9xf32>
    %19 = tpu.matmul %17, %18, %cst_14 {dimension_numbers = #tpu.dot_dimension_numbers<[1], [0], [0], [1], [0, 0, 1, 1], [], []>} : vector<2x256xbf16>, vector<256x9xbf16>, vector<2x9xf32> -> vector<2x9xf32>
    %c0_15 = arith.constant 0 : index
    %c0_16 = arith.constant 0 : index
    %20 = vector.load %arg6[%c0_15, %c0_16] : memref<1x9xf32, #tpu.memory_space<vmem>>, vector<1x9xf32>
    %21 = vector.broadcast %20 : vector<1x9xf32> to vector<2x9xf32>
    %22 = arith.addf %19, %21 : vector<2x9xf32>
    %c0_17 = arith.constant 0 : index
    %c0_18 = arith.constant 0 : index
    %23 = vector.load %arg7[%c0_17, %c0_18] : memref<2x9xf32, #tpu.memory_space<vmem>>, vector<2x9xf32>
    tpu.vector_store %arg7[%c0_17, %c0_18], %22 {strides = array<i32>} : memref<2x9xf32, #tpu.memory_space<vmem>>, vector<2x9xf32>,
    return
  }
}

module attributes {stable_mosaic.version = 11 : i64} {
  func.func @_trunk1_kernel(%arg0: i32, %arg1: i32, %arg2: memref<1x32x3xf32, #tpu.memory_space<vmem>>, %arg3: memref<1x3x3xf32, #tpu.memory_space<vmem>>, %arg4: memref<3x64xbf16, #tpu.memory_space<vmem>>, %arg5: memref<1x64xf32, #tpu.memory_space<vmem>>, %arg6: memref<64x64xbf16, #tpu.memory_space<vmem>>, %arg7: memref<1x64xf32, #tpu.memory_space<vmem>>, %arg8: memref<1x32x64xbf16, #tpu.memory_space<vmem>>) attributes {dimension_semantics = [#tpu.dimension_semantics<parallel>, #tpu.dimension_semantics<parallel>], iteration_bounds = array<i64: 2, 1>, scalar_prefetch = 0 : i64, scratch_operands = 0 : i64, tpu.core_type = #tpu.core_type<tc>, window_params = [{transform_indices = @transform_0, window_bounds = array<i64: 1, 32, 3>}, {transform_indices = @transform_1, window_bounds = array<i64: 1, 3, 3>}, {pipeline_mode = #tpu.pipeline_mode<synchronous>, transform_indices = @transform_2, window_bounds = array<i64: 3, 64>}, {pipeline_mode = #tpu.pipeline_mode<synchronous>, transform_indices = @transform_3, window_bounds = array<i64: 1, 64>}, {pipeline_mode = #tpu.pipeline_mode<synchronous>, transform_indices = @transform_4, window_bounds = array<i64: 64, 64>}, {pipeline_mode = #tpu.pipeline_mode<synchronous>, transform_indices = @transform_5, window_bounds = array<i64: 1, 64>}, {transform_indices = @transform_6, window_bounds = array<i64: 1, 32, 64>}]} {
    %c0 = arith.constant 0 : index
    %c0_0 = arith.constant 0 : index
    %c0_1 = arith.constant 0 : index
    %0 = vector.load %arg2[%c0, %c0_0, %c0_1] : memref<1x32x3xf32, #tpu.memory_space<vmem>>, vector<1x32x3xf32>
    %1 = vector.shape_cast %0 : vector<1x32x3xf32> to vector<32x3xf32>
    %c0_2 = arith.constant 0 : index
    %c0_3 = arith.constant 0 : index
    %c0_4 = arith.constant 0 : index
    %2 = vector.load %arg3[%c0_2, %c0_3, %c0_4] : memref<1x3x3xf32, #tpu.memory_space<vmem>>, vector<1x3x3xf32>
    %3 = vector.shape_cast %2 : vector<1x3x3xf32> to vector<3x3xf32>
    %cst = arith.constant dense<0.000000e+00> : vector<32x3xf32>
    %4 = tpu.matmul %1, %3, %cst {dimension_numbers = #tpu.dot_dimension_numbers<[1], [0], [0], [1], [0, 0, 1, 1], [], []>} : vector<32x3xf32>, vector<3x3xf32>, vector<32x3xf32> -> vector<32x3xf32>
    %5 = arith.truncf %4 : vector<32x3xf32> to vector<32x3xbf16>
    %c0_5 = arith.constant 0 : index
    %c0_6 = arith.constant 0 : index
    %6 = vector.load %arg4[%c0_5, %c0_6] : memref<3x64xbf16, #tpu.memory_space<vmem>>, vector<3x64xbf16>
    %cst_7 = arith.constant dense<0.000000e+00> : vector<32x64xf32>
    %7 = tpu.matmul %5, %6, %cst_7 {dimension_numbers = #tpu.dot_dimension_numbers<[1], [0], [0], [1], [0, 0, 1, 1], [], []>} : vector<32x3xbf16>, vector<3x64xbf16>, vector<32x64xf32> -> vector<32x64xf32>
    %c0_8 = arith.constant 0 : index
    %c0_9 = arith.constant 0 : index
    %8 = vector.load %arg5[%c0_8, %c0_9] : memref<1x64xf32, #tpu.memory_space<vmem>>, vector<1x64xf32>
    %9 = vector.broadcast %8 : vector<1x64xf32> to vector<32x64xf32>
    %10 = arith.addf %7, %9 : vector<32x64xf32>
    %cst_10 = arith.constant 0.000000e+00 : f32
    %11 = vector.broadcast %cst_10 : f32 to vector<32x64xf32>
    %12 = arith.maximumf %10, %11 : vector<32x64xf32>
    %13 = arith.truncf %12 : vector<32x64xf32> to vector<32x64xbf16>
    %c0_11 = arith.constant 0 : index
    %c0_12 = arith.constant 0 : index
    %14 = vector.load %arg6[%c0_11, %c0_12] : memref<64x64xbf16, #tpu.memory_space<vmem>>, vector<64x64xbf16>
    %cst_13 = arith.constant dense<0.000000e+00> : vector<32x64xf32>
    %15 = tpu.matmul %13, %14, %cst_13 {dimension_numbers = #tpu.dot_dimension_numbers<[1], [0], [0], [1], [0, 0, 1, 1], [], []>} : vector<32x64xbf16>, vector<64x64xbf16>, vector<32x64xf32> -> vector<32x64xf32>
    %c0_14 = arith.constant 0 : index
    %c0_15 = arith.constant 0 : index
    %16 = vector.load %arg7[%c0_14, %c0_15] : memref<1x64xf32, #tpu.memory_space<vmem>>, vector<1x64xf32>
    %17 = vector.broadcast %16 : vector<1x64xf32> to vector<32x64xf32>
    %18 = arith.addf %15, %17 : vector<32x64xf32>
    %cst_16 = arith.constant 0.000000e+00 : f32
    %19 = vector.broadcast %cst_16 : f32 to vector<32x64xf32>
    %20 = arith.maximumf %18, %19 : vector<32x64xf32>
    %21 = arith.truncf %20 : vector<32x64xf32> to vector<32x64xbf16>
    %c0_17 = arith.constant 0 : index
    %c0_18 = arith.constant 0 : index
    %c0_19 = arith.constant 0 : index
    %22 = vector.load %arg8[%c0_17, %c0_18, %c0_19] : memref<1x32x64xbf16, #tpu.memory_space<vmem>>, vector<1x32x64xbf16>
    %23 = vector.shape_cast %22 : vector<1x32x64xbf16> to vector<32x64xbf16>
    %24 = vector.shape_cast %21 : vector<32x64xbf16> to vector<1x32x64xbf16>
    tpu.vector_store %arg8[%c0_17, %c0_18, %c0_19], %24 {strides = array<i32>} : memref<1x32x64xbf16, #tpu.memory_space<vmem>>, vector<1x32x64xbf16>,
    return
  }
  func.func @transform_0(%arg0: i32, %arg1: i32) -> (i32, i32, i32) {
    %c0_i32 = arith.constant 0 : i32
    %c0_i32_0 = arith.constant 0 : i32
    return %arg0, %arg1, %c0_i32 : i32, i32, i32
  }
  func.func @transform_1(%arg0: i32, %arg1: i32) -> (i32, i32, i32) {
    %c0_i32 = arith.constant 0 : i32
    %c0_i32_0 = arith.constant 0 : i32
    %c0_i32_1 = arith.constant 0 : i32
    return %arg0, %c0_i32, %c0_i32_0 : i32, i32, i32
  }
  func.func @transform_2(%arg0: i32, %arg1: i32) -> (i32, i32) {
    %c0_i32 = arith.constant 0 : i32
    %c0_i32_0 = arith.constant 0 : i32
    %c0_i32_1 = arith.constant 0 : i32
    return %c0_i32, %c0_i32_0 : i32, i32
  }
  func.func @transform_3(%arg0: i32, %arg1: i32) -> (i32, i32) {
    %c0_i32 = arith.constant 0 : i32
    %c0_i32_0 = arith.constant 0 : i32
    %c0_i32_1 = arith.constant 0 : i32
    return %c0_i32, %c0_i32_0 : i32, i32
  }
  func.func @transform_4(%arg0: i32, %arg1: i32) -> (i32, i32) {
    %c0_i32 = arith.constant 0 : i32
    %c0_i32_0 = arith.constant 0 : i32
    %c0_i32_1 = arith.constant 0 : i32
    return %c0_i32, %c0_i32_0 : i32, i32
  }
  func.func @transform_5(%arg0: i32, %arg1: i32) -> (i32, i32) {
    %c0_i32 = arith.constant 0 : i32
    %c0_i32_0 = arith.constant 0 : i32
    %c0_i32_1 = arith.constant 0 : i32
    return %c0_i32, %c0_i32_0 : i32, i32
  }
  func.func @transform_6(%arg0: i32, %arg1: i32) -> (i32, i32, i32) {
    %c0_i32 = arith.constant 0 : i32
    %c0_i32_0 = arith.constant 0 : i32
    return %arg0, %arg1, %c0_i32 : i32, i32, i32
  }
}

module attributes {stable_mosaic.version = 11 : i64} {
  func.func @_tnet_trunk_kernel(%arg0: i32, %arg1: i32, %arg2: memref<1x32x3xf32, #tpu.memory_space<vmem>>, %arg3: memref<3x64xbf16, #tpu.memory_space<vmem>>, %arg4: memref<1x64xf32, #tpu.memory_space<vmem>>, %arg5: memref<64x128xbf16, #tpu.memory_space<vmem>>, %arg6: memref<1x128xf32, #tpu.memory_space<vmem>>, %arg7: memref<128x1024xbf16, #tpu.memory_space<vmem>>, %arg8: memref<1x1024xf32, #tpu.memory_space<vmem>>, %arg9: memref<1x1x1024xf32, #tpu.memory_space<vmem>>) attributes {dimension_semantics = [#tpu.dimension_semantics<parallel>, #tpu.dimension_semantics<arbitrary>], iteration_bounds = array<i64: 2, 1>, scalar_prefetch = 0 : i64, scratch_operands = 0 : i64, tpu.core_type = #tpu.core_type<tc>, window_params = [{transform_indices = @transform_0, window_bounds = array<i64: 1, 32, 3>}, {pipeline_mode = #tpu.pipeline_mode<synchronous>, transform_indices = @transform_1, window_bounds = array<i64: 3, 64>}, {pipeline_mode = #tpu.pipeline_mode<synchronous>, transform_indices = @transform_2, window_bounds = array<i64: 1, 64>}, {pipeline_mode = #tpu.pipeline_mode<synchronous>, transform_indices = @transform_3, window_bounds = array<i64: 64, 128>}, {pipeline_mode = #tpu.pipeline_mode<synchronous>, transform_indices = @transform_4, window_bounds = array<i64: 1, 128>}, {pipeline_mode = #tpu.pipeline_mode<synchronous>, transform_indices = @transform_5, window_bounds = array<i64: 128, 1024>}, {pipeline_mode = #tpu.pipeline_mode<synchronous>, transform_indices = @transform_6, window_bounds = array<i64: 1, 1024>}, {transform_indices = @transform_7, window_bounds = array<i64: 1, 1, 1024>}]} {
    %c0_i32 = arith.constant 0 : i32
    %0 = arith.cmpi eq, %arg1, %c0_i32 : i32
    %1 = arith.extui %0 : i1 to i32
    %c0_i32_0 = arith.constant 0 : i32
    %2 = arith.cmpi ne, %1, %c0_i32_0 : i32
    scf.if %2 {
      %cst_26 = arith.constant 0xFF800000 : f32
      %35 = vector.broadcast %cst_26 : f32 to vector<1x1x1024xf32>
      %c0_27 = arith.constant 0 : index
      %c0_28 = arith.constant 0 : index
      %c0_29 = arith.constant 0 : index
      %36 = vector.load %arg9[%c0_27, %c0_28, %c0_29] : memref<1x1x1024xf32, #tpu.memory_space<vmem>>, vector<1x1x1024xf32>
      tpu.vector_store %arg9[%c0_27, %c0_28, %c0_29], %35 {strides = array<i32>} : memref<1x1x1024xf32, #tpu.memory_space<vmem>>, vector<1x1x1024xf32>,
    } else {
    }
    %c0 = arith.constant 0 : index
    %c0_1 = arith.constant 0 : index
    %c0_2 = arith.constant 0 : index
    %3 = vector.load %arg2[%c0, %c0_1, %c0_2] : memref<1x32x3xf32, #tpu.memory_space<vmem>>, vector<1x32x3xf32>
    %4 = vector.shape_cast %3 : vector<1x32x3xf32> to vector<32x3xf32>
    %5 = arith.truncf %4 : vector<32x3xf32> to vector<32x3xbf16>
    %c0_3 = arith.constant 0 : index
    %c0_4 = arith.constant 0 : index
    %6 = vector.load %arg3[%c0_3, %c0_4] : memref<3x64xbf16, #tpu.memory_space<vmem>>, vector<3x64xbf16>
    %cst = arith.constant dense<0.000000e+00> : vector<32x64xf32>
    %7 = tpu.matmul %5, %6, %cst {dimension_numbers = #tpu.dot_dimension_numbers<[1], [0], [0], [1], [0, 0, 1, 1], [], []>} : vector<32x3xbf16>, vector<3x64xbf16>, vector<32x64xf32> -> vector<32x64xf32>
    %c0_5 = arith.constant 0 : index
    %c0_6 = arith.constant 0 : index
    %8 = vector.load %arg4[%c0_5, %c0_6] : memref<1x64xf32, #tpu.memory_space<vmem>>, vector<1x64xf32>
    %9 = vector.broadcast %8 : vector<1x64xf32> to vector<32x64xf32>
    %10 = arith.addf %7, %9 : vector<32x64xf32>
    %cst_7 = arith.constant 0.000000e+00 : f32
    %11 = vector.broadcast %cst_7 : f32 to vector<32x64xf32>
    %12 = arith.maximumf %10, %11 : vector<32x64xf32>
    %13 = arith.truncf %12 : vector<32x64xf32> to vector<32x64xbf16>
    %c0_8 = arith.constant 0 : index
    %c0_9 = arith.constant 0 : index
    %14 = vector.load %arg5[%c0_8, %c0_9] : memref<64x128xbf16, #tpu.memory_space<vmem>>, vector<64x128xbf16>
    %cst_10 = arith.constant dense<0.000000e+00> : vector<32x128xf32>
    %15 = tpu.matmul %13, %14, %cst_10 {dimension_numbers = #tpu.dot_dimension_numbers<[1], [0], [0], [1], [0, 0, 1, 1], [], []>} : vector<32x64xbf16>, vector<64x128xbf16>, vector<32x128xf32> -> vector<32x128xf32>
    %c0_11 = arith.constant 0 : index
    %c0_12 = arith.constant 0 : index
    %16 = vector.load %arg6[%c0_11, %c0_12] : memref<1x128xf32, #tpu.memory_space<vmem>>, vector<1x128xf32>
    %17 = vector.broadcast %16 : vector<1x128xf32> to vector<32x128xf32>
    %18 = arith.addf %15, %17 : vector<32x128xf32>
    %cst_13 = arith.constant 0.000000e+00 : f32
    %19 = vector.broadcast %cst_13 : f32 to vector<32x128xf32>
    %20 = arith.maximumf %18, %19 : vector<32x128xf32>
    %21 = arith.truncf %20 : vector<32x128xf32> to vector<32x128xbf16>
    %c0_14 = arith.constant 0 : index
    %c0_15 = arith.constant 0 : index
    %22 = vector.load %arg7[%c0_14, %c0_15] : memref<128x1024xbf16, #tpu.memory_space<vmem>>, vector<128x1024xbf16>
    %cst_16 = arith.constant dense<0.000000e+00> : vector<32x1024xf32>
    %23 = tpu.matmul %21, %22, %cst_16 {dimension_numbers = #tpu.dot_dimension_numbers<[1], [0], [0], [1], [0, 0, 1, 1], [], []>} : vector<32x128xbf16>, vector<128x1024xbf16>, vector<32x1024xf32> -> vector<32x1024xf32>
    %c0_17 = arith.constant 0 : index
    %c0_18 = arith.constant 0 : index
    %c0_19 = arith.constant 0 : index
    %24 = vector.load %arg9[%c0_17, %c0_18, %c0_19] : memref<1x1x1024xf32, #tpu.memory_space<vmem>>, vector<1x1x1024xf32>
    %25 = vector.shape_cast %24 : vector<1x1x1024xf32> to vector<1x1024xf32>
    %cst_20 = arith.constant dense<0xFF800000> : vector<1024xf32>
    %26 = vector.multi_reduction <maximumf>, %23, %cst_20 [0] : vector<32x1024xf32> to vector<1024xf32>
    %27 = vector.shape_cast %26 : vector<1024xf32> to vector<1x1024xf32>
    %28 = arith.maximumf %25, %27 : vector<1x1024xf32>
    %c0_21 = arith.constant 0 : index
    %c0_22 = arith.constant 0 : index
    %c0_23 = arith.constant 0 : index
    %29 = vector.load %arg9[%c0_21, %c0_22, %c0_23] : memref<1x1x1024xf32, #tpu.memory_space<vmem>>, vector<1x1x1024xf32>
    %30 = vector.shape_cast %29 : vector<1x1x1024xf32> to vector<1x1024xf32>
    %31 = vector.shape_cast %28 : vector<1x1024xf32> to vector<1x1x1024xf32>
    tpu.vector_store %arg9[%c0_21, %c0_22, %c0_23], %31 {strides = array<i32>} : memref<1x1x1024xf32, #tpu.memory_space<vmem>>, vector<1x1x1024xf32>,
    %c0_i32_24 = arith.constant 0 : i32
    %32 = arith.cmpi eq, %arg1, %c0_i32_24 : i32
    %33 = arith.extui %32 : i1 to i32
    %c0_i32_25 = arith.constant 0 : i32
    %34 = arith.cmpi ne, %33, %c0_i32_25 : i32
    scf.if %34 {
      %c0_26 = arith.constant 0 : index
      %c0_27 = arith.constant 0 : index
      %c0_28 = arith.constant 0 : index
      %35 = vector.load %arg9[%c0_26, %c0_27, %c0_28] : memref<1x1x1024xf32, #tpu.memory_space<vmem>>, vector<1x1x1024xf32>
      %c0_29 = arith.constant 0 : index
      %c0_30 = arith.constant 0 : index
      %36 = vector.load %arg8[%c0_29, %c0_30] : memref<1x1024xf32, #tpu.memory_space<vmem>>, vector<1x1024xf32>
      %37 = vector.shape_cast %36 : vector<1x1024xf32> to vector<1x1x1024xf32>
      %38 = arith.addf %35, %37 : vector<1x1x1024xf32>
      %cst_31 = arith.constant 0.000000e+00 : f32
      %39 = vector.broadcast %cst_31 : f32 to vector<1x1x1024xf32>
      %40 = arith.maximumf %38, %39 : vector<1x1x1024xf32>
      %c0_32 = arith.constant 0 : index
      %c0_33 = arith.constant 0 : index
      %c0_34 = arith.constant 0 : index
      %41 = vector.load %arg9[%c0_32, %c0_33, %c0_34] : memref<1x1x1024xf32, #tpu.memory_space<vmem>>, vector<1x1x1024xf32>
      tpu.vector_store %arg9[%c0_32, %c0_33, %c0_34], %40 {strides = array<i32>} : memref<1x1x1024xf32, #tpu.memory_space<vmem>>, vector<1x1x1024xf32>,
    } else {
    }
    return
  }
  func.func @transform_0(%arg0: i32, %arg1: i32) -> (i32, i32, i32) {
    %c0_i32 = arith.constant 0 : i32
    %c0_i32_0 = arith.constant 0 : i32
    return %arg0, %arg1, %c0_i32 : i32, i32, i32
  }
  func.func @transform_1(%arg0: i32, %arg1: i32) -> (i32, i32) {
    %c0_i32 = arith.constant 0 : i32
    %c0_i32_0 = arith.constant 0 : i32
    %c0_i32_1 = arith.constant 0 : i32
    return %c0_i32, %c0_i32_0 : i32, i32
  }
  func.func @transform_2(%arg0: i32, %arg1: i32) -> (i32, i32) {
    %c0_i32 = arith.constant 0 : i32
    %c0_i32_0 = arith.constant 0 : i32
    %c0_i32_1 = arith.constant 0 : i32
    return %c0_i32, %c0_i32_0 : i32, i32
  }
  func.func @transform_3(%arg0: i32, %arg1: i32) -> (i32, i32) {
    %c0_i32 = arith.constant 0 : i32
    %c0_i32_0 = arith.constant 0 : i32
    %c0_i32_1 = arith.constant 0 : i32
    return %c0_i32, %c0_i32_0 : i32, i32
  }
  func.func @transform_4(%arg0: i32, %arg1: i32) -> (i32, i32) {
    %c0_i32 = arith.constant 0 : i32
    %c0_i32_0 = arith.constant 0 : i32
    %c0_i32_1 = arith.constant 0 : i32
    return %c0_i32, %c0_i32_0 : i32, i32
  }
  func.func @transform_5(%arg0: i32, %arg1: i32) -> (i32, i32) {
    %c0_i32 = arith.constant 0 : i32
    %c0_i32_0 = arith.constant 0 : i32
    %c0_i32_1 = arith.constant 0 : i32
    return %c0_i32, %c0_i32_0 : i32, i32
  }
  func.func @transform_6(%arg0: i32, %arg1: i32) -> (i32, i32) {
    %c0_i32 = arith.constant 0 : i32
    %c0_i32_0 = arith.constant 0 : i32
    %c0_i32_1 = arith.constant 0 : i32
    return %c0_i32, %c0_i32_0 : i32, i32
  }
  func.func @transform_7(%arg0: i32, %arg1: i32) -> (i32, i32, i32) {
    %c0_i32 = arith.constant 0 : i32
    %c0_i32_0 = arith.constant 0 : i32
    %c0_i32_1 = arith.constant 0 : i32
    return %arg0, %c0_i32, %c0_i32_0 : i32, i32, i32
  }
}

module attributes {stable_mosaic.version = 11 : i64} {
  func.func @_tnet_trunk_kernel(%arg0: i32, %arg1: i32, %arg2: memref<1x32x64xbf16, #tpu.memory_space<vmem>>, %arg3: memref<64x64xbf16, #tpu.memory_space<vmem>>, %arg4: memref<1x64xf32, #tpu.memory_space<vmem>>, %arg5: memref<64x128xbf16, #tpu.memory_space<vmem>>, %arg6: memref<1x128xf32, #tpu.memory_space<vmem>>, %arg7: memref<128x1024xbf16, #tpu.memory_space<vmem>>, %arg8: memref<1x1024xf32, #tpu.memory_space<vmem>>, %arg9: memref<1x1x1024xf32, #tpu.memory_space<vmem>>) attributes {dimension_semantics = [#tpu.dimension_semantics<parallel>, #tpu.dimension_semantics<arbitrary>], iteration_bounds = array<i64: 2, 1>, scalar_prefetch = 0 : i64, scratch_operands = 0 : i64, tpu.core_type = #tpu.core_type<tc>, window_params = [{transform_indices = @transform_0, window_bounds = array<i64: 1, 32, 64>}, {pipeline_mode = #tpu.pipeline_mode<synchronous>, transform_indices = @transform_1, window_bounds = array<i64: 64, 64>}, {pipeline_mode = #tpu.pipeline_mode<synchronous>, transform_indices = @transform_2, window_bounds = array<i64: 1, 64>}, {pipeline_mode = #tpu.pipeline_mode<synchronous>, transform_indices = @transform_3, window_bounds = array<i64: 64, 128>}, {pipeline_mode = #tpu.pipeline_mode<synchronous>, transform_indices = @transform_4, window_bounds = array<i64: 1, 128>}, {pipeline_mode = #tpu.pipeline_mode<synchronous>, transform_indices = @transform_5, window_bounds = array<i64: 128, 1024>}, {pipeline_mode = #tpu.pipeline_mode<synchronous>, transform_indices = @transform_6, window_bounds = array<i64: 1, 1024>}, {transform_indices = @transform_7, window_bounds = array<i64: 1, 1, 1024>}]} {
    %c0_i32 = arith.constant 0 : i32
    %0 = arith.cmpi eq, %arg1, %c0_i32 : i32
    %1 = arith.extui %0 : i1 to i32
    %c0_i32_0 = arith.constant 0 : i32
    %2 = arith.cmpi ne, %1, %c0_i32_0 : i32
    scf.if %2 {
      %cst_26 = arith.constant 0xFF800000 : f32
      %34 = vector.broadcast %cst_26 : f32 to vector<1x1x1024xf32>
      %c0_27 = arith.constant 0 : index
      %c0_28 = arith.constant 0 : index
      %c0_29 = arith.constant 0 : index
      %35 = vector.load %arg9[%c0_27, %c0_28, %c0_29] : memref<1x1x1024xf32, #tpu.memory_space<vmem>>, vector<1x1x1024xf32>
      tpu.vector_store %arg9[%c0_27, %c0_28, %c0_29], %34 {strides = array<i32>} : memref<1x1x1024xf32, #tpu.memory_space<vmem>>, vector<1x1x1024xf32>,
    } else {
    }
    %c0 = arith.constant 0 : index
    %c0_1 = arith.constant 0 : index
    %c0_2 = arith.constant 0 : index
    %3 = vector.load %arg2[%c0, %c0_1, %c0_2] : memref<1x32x64xbf16, #tpu.memory_space<vmem>>, vector<1x32x64xbf16>
    %4 = vector.shape_cast %3 : vector<1x32x64xbf16> to vector<32x64xbf16>
    %c0_3 = arith.constant 0 : index
    %c0_4 = arith.constant 0 : index
    %5 = vector.load %arg3[%c0_3, %c0_4] : memref<64x64xbf16, #tpu.memory_space<vmem>>, vector<64x64xbf16>
    %cst = arith.constant dense<0.000000e+00> : vector<32x64xf32>
    %6 = tpu.matmul %4, %5, %cst {dimension_numbers = #tpu.dot_dimension_numbers<[1], [0], [0], [1], [0, 0, 1, 1], [], []>} : vector<32x64xbf16>, vector<64x64xbf16>, vector<32x64xf32> -> vector<32x64xf32>
    %c0_5 = arith.constant 0 : index
    %c0_6 = arith.constant 0 : index
    %7 = vector.load %arg4[%c0_5, %c0_6] : memref<1x64xf32, #tpu.memory_space<vmem>>, vector<1x64xf32>
    %8 = vector.broadcast %7 : vector<1x64xf32> to vector<32x64xf32>
    %9 = arith.addf %6, %8 : vector<32x64xf32>
    %cst_7 = arith.constant 0.000000e+00 : f32
    %10 = vector.broadcast %cst_7 : f32 to vector<32x64xf32>
    %11 = arith.maximumf %9, %10 : vector<32x64xf32>
    %12 = arith.truncf %11 : vector<32x64xf32> to vector<32x64xbf16>
    %c0_8 = arith.constant 0 : index
    %c0_9 = arith.constant 0 : index
    %13 = vector.load %arg5[%c0_8, %c0_9] : memref<64x128xbf16, #tpu.memory_space<vmem>>, vector<64x128xbf16>
    %cst_10 = arith.constant dense<0.000000e+00> : vector<32x128xf32>
    %14 = tpu.matmul %12, %13, %cst_10 {dimension_numbers = #tpu.dot_dimension_numbers<[1], [0], [0], [1], [0, 0, 1, 1], [], []>} : vector<32x64xbf16>, vector<64x128xbf16>, vector<32x128xf32> -> vector<32x128xf32>
    %c0_11 = arith.constant 0 : index
    %c0_12 = arith.constant 0 : index
    %15 = vector.load %arg6[%c0_11, %c0_12] : memref<1x128xf32, #tpu.memory_space<vmem>>, vector<1x128xf32>
    %16 = vector.broadcast %15 : vector<1x128xf32> to vector<32x128xf32>
    %17 = arith.addf %14, %16 : vector<32x128xf32>
    %cst_13 = arith.constant 0.000000e+00 : f32
    %18 = vector.broadcast %cst_13 : f32 to vector<32x128xf32>
    %19 = arith.maximumf %17, %18 : vector<32x128xf32>
    %20 = arith.truncf %19 : vector<32x128xf32> to vector<32x128xbf16>
    %c0_14 = arith.constant 0 : index
    %c0_15 = arith.constant 0 : index
    %21 = vector.load %arg7[%c0_14, %c0_15] : memref<128x1024xbf16, #tpu.memory_space<vmem>>, vector<128x1024xbf16>
    %cst_16 = arith.constant dense<0.000000e+00> : vector<32x1024xf32>
    %22 = tpu.matmul %20, %21, %cst_16 {dimension_numbers = #tpu.dot_dimension_numbers<[1], [0], [0], [1], [0, 0, 1, 1], [], []>} : vector<32x128xbf16>, vector<128x1024xbf16>, vector<32x1024xf32> -> vector<32x1024xf32>
    %c0_17 = arith.constant 0 : index
    %c0_18 = arith.constant 0 : index
    %c0_19 = arith.constant 0 : index
    %23 = vector.load %arg9[%c0_17, %c0_18, %c0_19] : memref<1x1x1024xf32, #tpu.memory_space<vmem>>, vector<1x1x1024xf32>
    %24 = vector.shape_cast %23 : vector<1x1x1024xf32> to vector<1x1024xf32>
    %cst_20 = arith.constant dense<0xFF800000> : vector<1024xf32>
    %25 = vector.multi_reduction <maximumf>, %22, %cst_20 [0] : vector<32x1024xf32> to vector<1024xf32>
    %26 = vector.shape_cast %25 : vector<1024xf32> to vector<1x1024xf32>
    %27 = arith.maximumf %24, %26 : vector<1x1024xf32>
    %c0_21 = arith.constant 0 : index
    %c0_22 = arith.constant 0 : index
    %c0_23 = arith.constant 0 : index
    %28 = vector.load %arg9[%c0_21, %c0_22, %c0_23] : memref<1x1x1024xf32, #tpu.memory_space<vmem>>, vector<1x1x1024xf32>
    %29 = vector.shape_cast %28 : vector<1x1x1024xf32> to vector<1x1024xf32>
    %30 = vector.shape_cast %27 : vector<1x1024xf32> to vector<1x1x1024xf32>
    tpu.vector_store %arg9[%c0_21, %c0_22, %c0_23], %30 {strides = array<i32>} : memref<1x1x1024xf32, #tpu.memory_space<vmem>>, vector<1x1x1024xf32>,
    %c0_i32_24 = arith.constant 0 : i32
    %31 = arith.cmpi eq, %arg1, %c0_i32_24 : i32
    %32 = arith.extui %31 : i1 to i32
    %c0_i32_25 = arith.constant 0 : i32
    %33 = arith.cmpi ne, %32, %c0_i32_25 : i32
    scf.if %33 {
      %c0_26 = arith.constant 0 : index
      %c0_27 = arith.constant 0 : index
      %c0_28 = arith.constant 0 : index
      %34 = vector.load %arg9[%c0_26, %c0_27, %c0_28] : memref<1x1x1024xf32, #tpu.memory_space<vmem>>, vector<1x1x1024xf32>
      %c0_29 = arith.constant 0 : index
      %c0_30 = arith.constant 0 : index
      %35 = vector.load %arg8[%c0_29, %c0_30] : memref<1x1024xf32, #tpu.memory_space<vmem>>, vector<1x1024xf32>
      %36 = vector.shape_cast %35 : vector<1x1024xf32> to vector<1x1x1024xf32>
      %37 = arith.addf %34, %36 : vector<1x1x1024xf32>
      %cst_31 = arith.constant 0.000000e+00 : f32
      %38 = vector.broadcast %cst_31 : f32 to vector<1x1x1024xf32>
      %39 = arith.maximumf %37, %38 : vector<1x1x1024xf32>
      %c0_32 = arith.constant 0 : index
      %c0_33 = arith.constant 0 : index
      %c0_34 = arith.constant 0 : index
      %40 = vector.load %arg9[%c0_32, %c0_33, %c0_34] : memref<1x1x1024xf32, #tpu.memory_space<vmem>>, vector<1x1x1024xf32>
      tpu.vector_store %arg9[%c0_32, %c0_33, %c0_34], %39 {strides = array<i32>} : memref<1x1x1024xf32, #tpu.memory_space<vmem>>, vector<1x1x1024xf32>,
    } else {
    }
    return
  }
  func.func @transform_0(%arg0: i32, %arg1: i32) -> (i32, i32, i32) {
    %c0_i32 = arith.constant 0 : i32
    %c0_i32_0 = arith.constant 0 : i32
    return %arg0, %arg1, %c0_i32 : i32, i32, i32
  }
  func.func @transform_1(%arg0: i32, %arg1: i32) -> (i32, i32) {
    %c0_i32 = arith.constant 0 : i32
    %c0_i32_0 = arith.constant 0 : i32
    %c0_i32_1 = arith.constant 0 : i32
    return %c0_i32, %c0_i32_0 : i32, i32
  }
  func.func @transform_2(%arg0: i32, %arg1: i32) -> (i32, i32) {
    %c0_i32 = arith.constant 0 : i32
    %c0_i32_0 = arith.constant 0 : i32
    %c0_i32_1 = arith.constant 0 : i32
    return %c0_i32, %c0_i32_0 : i32, i32
  }
  func.func @transform_3(%arg0: i32, %arg1: i32) -> (i32, i32) {
    %c0_i32 = arith.constant 0 : i32
    %c0_i32_0 = arith.constant 0 : i32
    %c0_i32_1 = arith.constant 0 : i32
    return %c0_i32, %c0_i32_0 : i32, i32
  }
  func.func @transform_4(%arg0: i32, %arg1: i32) -> (i32, i32) {
    %c0_i32 = arith.constant 0 : i32
    %c0_i32_0 = arith.constant 0 : i32
    %c0_i32_1 = arith.constant 0 : i32
    return %c0_i32, %c0_i32_0 : i32, i32
  }
  func.func @transform_5(%arg0: i32, %arg1: i32) -> (i32, i32) {
    %c0_i32 = arith.constant 0 : i32
    %c0_i32_0 = arith.constant 0 : i32
    %c0_i32_1 = arith.constant 0 : i32
    return %c0_i32, %c0_i32_0 : i32, i32
  }
  func.func @transform_6(%arg0: i32, %arg1: i32) -> (i32, i32) {
    %c0_i32 = arith.constant 0 : i32
    %c0_i32_0 = arith.constant 0 : i32
    %c0_i32_1 = arith.constant 0 : i32
    return %c0_i32, %c0_i32_0 : i32, i32
  }
  func.func @transform_7(%arg0: i32, %arg1: i32) -> (i32, i32, i32) {
    %c0_i32 = arith.constant 0 : i32
    %c0_i32_0 = arith.constant 0 : i32
    %c0_i32_1 = arith.constant 0 : i32
    return %arg0, %c0_i32, %c0_i32_0 : i32, i32, i32
  }
}

module attributes {stable_mosaic.version = 11 : i64} {
  func.func @_head_mlp_kernel(%arg0: memref<2x1024xf32, #tpu.memory_space<vmem>>, %arg1: memref<1024x512xbf16, #tpu.memory_space<vmem>>, %arg2: memref<1x512xf32, #tpu.memory_space<vmem>>, %arg3: memref<512x256xbf16, #tpu.memory_space<vmem>>, %arg4: memref<1x256xf32, #tpu.memory_space<vmem>>, %arg5: memref<256x4096xbf16, #tpu.memory_space<vmem>>, %arg6: memref<1x4096xf32, #tpu.memory_space<vmem>>, %arg7: memref<2x4096xf32, #tpu.memory_space<vmem>>) attributes {dimension_semantics = [], scalar_prefetch = 0 : i64, scratch_operands = 0 : i64, tpu.core_type = #tpu.core_type<tc>} {
    %c0 = arith.constant 0 : index
    %c0_0 = arith.constant 0 : index
    %0 = vector.load %arg0[%c0, %c0_0] : memref<2x1024xf32, #tpu.memory_space<vmem>>, vector<2x1024xf32>
    %1 = arith.truncf %0 : vector<2x1024xf32> to vector<2x1024xbf16>
    %c0_1 = arith.constant 0 : index
    %c0_2 = arith.constant 0 : index
    %2 = vector.load %arg1[%c0_1, %c0_2] : memref<1024x512xbf16, #tpu.memory_space<vmem>>, vector<1024x512xbf16>
    %cst = arith.constant dense<0.000000e+00> : vector<2x512xf32>
    %3 = tpu.matmul %1, %2, %cst {dimension_numbers = #tpu.dot_dimension_numbers<[1], [0], [0], [1], [0, 0, 1, 1], [], []>} : vector<2x1024xbf16>, vector<1024x512xbf16>, vector<2x512xf32> -> vector<2x512xf32>
    %c0_3 = arith.constant 0 : index
    %c0_4 = arith.constant 0 : index
    %4 = vector.load %arg2[%c0_3, %c0_4] : memref<1x512xf32, #tpu.memory_space<vmem>>, vector<1x512xf32>
    %5 = vector.broadcast %4 : vector<1x512xf32> to vector<2x512xf32>
    %6 = arith.addf %3, %5 : vector<2x512xf32>
    %cst_5 = arith.constant 0.000000e+00 : f32
    %7 = vector.broadcast %cst_5 : f32 to vector<2x512xf32>
    %8 = arith.maximumf %6, %7 : vector<2x512xf32>
    %9 = arith.truncf %8 : vector<2x512xf32> to vector<2x512xbf16>
    %c0_6 = arith.constant 0 : index
    %c0_7 = arith.constant 0 : index
    %10 = vector.load %arg3[%c0_6, %c0_7] : memref<512x256xbf16, #tpu.memory_space<vmem>>, vector<512x256xbf16>
    %cst_8 = arith.constant dense<0.000000e+00> : vector<2x256xf32>
    %11 = tpu.matmul %9, %10, %cst_8 {dimension_numbers = #tpu.dot_dimension_numbers<[1], [0], [0], [1], [0, 0, 1, 1], [], []>} : vector<2x512xbf16>, vector<512x256xbf16>, vector<2x256xf32> -> vector<2x256xf32>
    %c0_9 = arith.constant 0 : index
    %c0_10 = arith.constant 0 : index
    %12 = vector.load %arg4[%c0_9, %c0_10] : memref<1x256xf32, #tpu.memory_space<vmem>>, vector<1x256xf32>
    %13 = vector.broadcast %12 : vector<1x256xf32> to vector<2x256xf32>
    %14 = arith.addf %11, %13 : vector<2x256xf32>
    %cst_11 = arith.constant 0.000000e+00 : f32
    %15 = vector.broadcast %cst_11 : f32 to vector<2x256xf32>
    %16 = arith.maximumf %14, %15 : vector<2x256xf32>
    %17 = arith.truncf %16 : vector<2x256xf32> to vector<2x256xbf16>
    %c0_12 = arith.constant 0 : index
    %c0_13 = arith.constant 0 : index
    %18 = vector.load %arg5[%c0_12, %c0_13] : memref<256x4096xbf16, #tpu.memory_space<vmem>>, vector<256x4096xbf16>
    %cst_14 = arith.constant dense<0.000000e+00> : vector<2x4096xf32>
    %19 = tpu.matmul %17, %18, %cst_14 {dimension_numbers = #tpu.dot_dimension_numbers<[1], [0], [0], [1], [0, 0, 1, 1], [], []>} : vector<2x256xbf16>, vector<256x4096xbf16>, vector<2x4096xf32> -> vector<2x4096xf32>
    %c0_15 = arith.constant 0 : index
    %c0_16 = arith.constant 0 : index
    %20 = vector.load %arg6[%c0_15, %c0_16] : memref<1x4096xf32, #tpu.memory_space<vmem>>, vector<1x4096xf32>
    %21 = vector.broadcast %20 : vector<1x4096xf32> to vector<2x4096xf32>
    %22 = arith.addf %19, %21 : vector<2x4096xf32>
    %c0_17 = arith.constant 0 : index
    %c0_18 = arith.constant 0 : index
    %23 = vector.load %arg7[%c0_17, %c0_18] : memref<2x4096xf32, #tpu.memory_space<vmem>>, vector<2x4096xf32>
    tpu.vector_store %arg7[%c0_17, %c0_18], %22 {strides = array<i32>} : memref<2x4096xf32, #tpu.memory_space<vmem>>, vector<2x4096xf32>,
    return
  }
}

module attributes {stable_mosaic.version = 11 : i64} {
  func.func @_trunk2_kernel(%arg0: i32, %arg1: i32, %arg2: memref<1x16x128xbf16, #tpu.memory_space<vmem>>, %arg3: memref<1x64x64xf32, #tpu.memory_space<vmem>>, %arg4: memref<64x64xbf16, #tpu.memory_space<vmem>>, %arg5: memref<1x64xf32, #tpu.memory_space<vmem>>, %arg6: memref<64x128xbf16, #tpu.memory_space<vmem>>, %arg7: memref<1x128xf32, #tpu.memory_space<vmem>>, %arg8: memref<1024x128xbf16, #tpu.memory_space<vmem>>, %arg9: memref<1024x1xf32, #tpu.memory_space<vmem>>, %arg10: memref<1x16x128xf32, #tpu.memory_space<vmem>>, %arg11: memref<1x1024x16xf32, #tpu.memory_space<vmem>>) attributes {dimension_semantics = [#tpu.dimension_semantics<parallel>, #tpu.dimension_semantics<parallel>], iteration_bounds = array<i64: 2, 1>, scalar_prefetch = 0 : i64, scratch_operands = 0 : i64, tpu.core_type = #tpu.core_type<tc>, window_params = [{transform_indices = @transform_0, window_bounds = array<i64: 1, 16, 128>}, {transform_indices = @transform_1, window_bounds = array<i64: 1, 64, 64>}, {pipeline_mode = #tpu.pipeline_mode<synchronous>, transform_indices = @transform_2, window_bounds = array<i64: 64, 64>}, {pipeline_mode = #tpu.pipeline_mode<synchronous>, transform_indices = @transform_3, window_bounds = array<i64: 1, 64>}, {pipeline_mode = #tpu.pipeline_mode<synchronous>, transform_indices = @transform_4, window_bounds = array<i64: 64, 128>}, {pipeline_mode = #tpu.pipeline_mode<synchronous>, transform_indices = @transform_5, window_bounds = array<i64: 1, 128>}, {pipeline_mode = #tpu.pipeline_mode<synchronous>, transform_indices = @transform_6, window_bounds = array<i64: 1024, 128>}, {pipeline_mode = #tpu.pipeline_mode<synchronous>, transform_indices = @transform_7, window_bounds = array<i64: 1024, 1>}, {transform_indices = @transform_8, window_bounds = array<i64: 1, 16, 128>}, {transform_indices = @transform_9, window_bounds = array<i64: 1, 1024, 16>}]} {
    %c0 = arith.constant 0 : index
    %c0_0 = arith.constant 0 : index
    %c0_1 = arith.constant 0 : index
    %0 = vector.load %arg2[%c0, %c0_0, %c0_1] : memref<1x16x128xbf16, #tpu.memory_space<vmem>>, vector<1x16x128xbf16>
    %1 = vector.shape_cast %0 : vector<1x16x128xbf16> to vector<16x128xbf16>
    %c0_2 = arith.constant 0 : index
    %c0_3 = arith.constant 0 : index
    %c0_4 = arith.constant 0 : index
    %2 = vector.load %arg3[%c0_2, %c0_3, %c0_4] : memref<1x64x64xf32, #tpu.memory_space<vmem>>, vector<1x64x64xf32>
    %3 = vector.shape_cast %2 : vector<1x64x64xf32> to vector<64x64xf32>
    %4 = arith.truncf %3 : vector<64x64xf32> to vector<64x64xbf16>
    %5 = vector.extract_strided_slice %1 {offsets = [0, 0], sizes = [16, 64], strides = [1, 1]} : vector<16x128xbf16> to vector<16x64xbf16>
    %cst = arith.constant dense<0.000000e+00> : vector<16x64xf32>
    %6 = tpu.matmul %5, %4, %cst {dimension_numbers = #tpu.dot_dimension_numbers<[1], [0], [0], [1], [0, 0, 1, 1], [], []>} : vector<16x64xbf16>, vector<64x64xbf16>, vector<16x64xf32> -> vector<16x64xf32>
    %7 = vector.extract_strided_slice %1 {offsets = [0, 64], sizes = [16, 64], strides = [1, 1]} : vector<16x128xbf16> to vector<16x64xbf16>
    %cst_5 = arith.constant dense<0.000000e+00> : vector<16x64xf32>
    %8 = tpu.matmul %7, %4, %cst_5 {dimension_numbers = #tpu.dot_dimension_numbers<[1], [0], [0], [1], [0, 0, 1, 1], [], []>} : vector<16x64xbf16>, vector<64x64xbf16>, vector<16x64xf32> -> vector<16x64xf32>
    %c0_6 = arith.constant 0 : index
    %c0_7 = arith.constant 0 : index
    %c0_8 = arith.constant 0 : index
    %9 = vector.load %arg10[%c0_6, %c0_7, %c0_8] : memref<1x16x128xf32, #tpu.memory_space<vmem>>, vector<1x16x64xf32>
    %10 = vector.shape_cast %9 : vector<1x16x64xf32> to vector<16x64xf32>
    %11 = vector.shape_cast %6 : vector<16x64xf32> to vector<1x16x64xf32>
    tpu.vector_store %arg10[%c0_6, %c0_7, %c0_8], %11 {strides = array<i32>} : memref<1x16x128xf32, #tpu.memory_space<vmem>>, vector<1x16x64xf32>,
    %c0_9 = arith.constant 0 : index
    %c0_10 = arith.constant 0 : index
    %c64 = arith.constant 64 : index
    %12 = vector.load %arg10[%c0_9, %c0_10, %c64] : memref<1x16x128xf32, #tpu.memory_space<vmem>>, vector<1x16x64xf32>
    %13 = vector.shape_cast %12 : vector<1x16x64xf32> to vector<16x64xf32>
    %14 = vector.shape_cast %8 : vector<16x64xf32> to vector<1x16x64xf32>
    tpu.vector_store %arg10[%c0_9, %c0_10, %c64], %14 {strides = array<i32>} : memref<1x16x128xf32, #tpu.memory_space<vmem>>, vector<1x16x64xf32>,
    %15 = arith.truncf %6 : vector<16x64xf32> to vector<16x64xbf16>
    %c0_11 = arith.constant 0 : index
    %c0_12 = arith.constant 0 : index
    %16 = vector.load %arg4[%c0_11, %c0_12] : memref<64x64xbf16, #tpu.memory_space<vmem>>, vector<64x64xbf16>
    %cst_13 = arith.constant dense<0.000000e+00> : vector<16x64xf32>
    %17 = tpu.matmul %15, %16, %cst_13 {dimension_numbers = #tpu.dot_dimension_numbers<[1], [0], [0], [1], [0, 0, 1, 1], [], []>} : vector<16x64xbf16>, vector<64x64xbf16>, vector<16x64xf32> -> vector<16x64xf32>
    %c0_14 = arith.constant 0 : index
    %c0_15 = arith.constant 0 : index
    %18 = vector.load %arg5[%c0_14, %c0_15] : memref<1x64xf32, #tpu.memory_space<vmem>>, vector<1x64xf32>
    %19 = vector.broadcast %18 : vector<1x64xf32> to vector<16x64xf32>
    %20 = arith.addf %17, %19 : vector<16x64xf32>
    %cst_16 = arith.constant 0.000000e+00 : f32
    %21 = vector.broadcast %cst_16 : f32 to vector<16x64xf32>
    %22 = arith.maximumf %20, %21 : vector<16x64xf32>
    %23 = arith.truncf %22 : vector<16x64xf32> to vector<16x64xbf16>
    %c0_17 = arith.constant 0 : index
    %c0_18 = arith.constant 0 : index
    %24 = vector.load %arg6[%c0_17, %c0_18] : memref<64x128xbf16, #tpu.memory_space<vmem>>, vector<64x128xbf16>
    %cst_19 = arith.constant dense<0.000000e+00> : vector<16x128xf32>
    %25 = tpu.matmul %23, %24, %cst_19 {dimension_numbers = #tpu.dot_dimension_numbers<[1], [0], [0], [1], [0, 0, 1, 1], [], []>} : vector<16x64xbf16>, vector<64x128xbf16>, vector<16x128xf32> -> vector<16x128xf32>
    %c0_20 = arith.constant 0 : index
    %c0_21 = arith.constant 0 : index
    %26 = vector.load %arg7[%c0_20, %c0_21] : memref<1x128xf32, #tpu.memory_space<vmem>>, vector<1x128xf32>
    %27 = vector.broadcast %26 : vector<1x128xf32> to vector<16x128xf32>
    %28 = arith.addf %25, %27 : vector<16x128xf32>
    %cst_22 = arith.constant 0.000000e+00 : f32
    %29 = vector.broadcast %cst_22 : f32 to vector<16x128xf32>
    %30 = arith.maximumf %28, %29 : vector<16x128xf32>
    %31 = arith.truncf %8 : vector<16x64xf32> to vector<16x64xbf16>
    %c0_23 = arith.constant 0 : index
    %c0_24 = arith.constant 0 : index
    %32 = vector.load %arg4[%c0_23, %c0_24] : memref<64x64xbf16, #tpu.memory_space<vmem>>, vector<64x64xbf16>
    %cst_25 = arith.constant dense<0.000000e+00> : vector<16x64xf32>
    %33 = tpu.matmul %31, %32, %cst_25 {dimension_numbers = #tpu.dot_dimension_numbers<[1], [0], [0], [1], [0, 0, 1, 1], [], []>} : vector<16x64xbf16>, vector<64x64xbf16>, vector<16x64xf32> -> vector<16x64xf32>
    %c0_26 = arith.constant 0 : index
    %c0_27 = arith.constant 0 : index
    %34 = vector.load %arg5[%c0_26, %c0_27] : memref<1x64xf32, #tpu.memory_space<vmem>>, vector<1x64xf32>
    %35 = vector.broadcast %34 : vector<1x64xf32> to vector<16x64xf32>
    %36 = arith.addf %33, %35 : vector<16x64xf32>
    %cst_28 = arith.constant 0.000000e+00 : f32
    %37 = vector.broadcast %cst_28 : f32 to vector<16x64xf32>
    %38 = arith.maximumf %36, %37 : vector<16x64xf32>
    %39 = arith.truncf %38 : vector<16x64xf32> to vector<16x64xbf16>
    %c0_29 = arith.constant 0 : index
    %c0_30 = arith.constant 0 : index
    %40 = vector.load %arg6[%c0_29, %c0_30] : memref<64x128xbf16, #tpu.memory_space<vmem>>, vector<64x128xbf16>
    %cst_31 = arith.constant dense<0.000000e+00> : vector<16x128xf32>
    %41 = tpu.matmul %39, %40, %cst_31 {dimension_numbers = #tpu.dot_dimension_numbers<[1], [0], [0], [1], [0, 0, 1, 1], [], []>} : vector<16x64xbf16>, vector<64x128xbf16>, vector<16x128xf32> -> vector<16x128xf32>
    %c0_32 = arith.constant 0 : index
    %c0_33 = arith.constant 0 : index
    %42 = vector.load %arg7[%c0_32, %c0_33] : memref<1x128xf32, #tpu.memory_space<vmem>>, vector<1x128xf32>
    %43 = vector.broadcast %42 : vector<1x128xf32> to vector<16x128xf32>
    %44 = arith.addf %41, %43 : vector<16x128xf32>
    %cst_34 = arith.constant 0.000000e+00 : f32
    %45 = vector.broadcast %cst_34 : f32 to vector<16x128xf32>
    %46 = arith.maximumf %44, %45 : vector<16x128xf32>
    %c0_35 = arith.constant 0 : index
    %c0_36 = arith.constant 0 : index
    %47 = vector.load %arg8[%c0_35, %c0_36] : memref<1024x128xbf16, #tpu.memory_space<vmem>>, vector<1024x128xbf16>
    %48 = arith.truncf %30 : vector<16x128xf32> to vector<16x128xbf16>
    %cst_37 = arith.constant dense<0.000000e+00> : vector<1024x16xf32>
    %49 = tpu.matmul %47, %48, %cst_37 {dimension_numbers = #tpu.dot_dimension_numbers<[1], [1], [0], [0], [0, 0, 1, 0], [], []>} : vector<1024x128xbf16>, vector<16x128xbf16>, vector<1024x16xf32> -> vector<1024x16xf32>
    %c0_38 = arith.constant 0 : index
    %c0_39 = arith.constant 0 : index
    %50 = vector.load %arg8[%c0_38, %c0_39] : memref<1024x128xbf16, #tpu.memory_space<vmem>>, vector<1024x128xbf16>
    %51 = arith.truncf %46 : vector<16x128xf32> to vector<16x128xbf16>
    %cst_40 = arith.constant dense<0.000000e+00> : vector<1024x16xf32>
    %52 = tpu.matmul %50, %51, %cst_40 {dimension_numbers = #tpu.dot_dimension_numbers<[1], [1], [0], [0], [0, 0, 1, 0], [], []>} : vector<1024x128xbf16>, vector<16x128xbf16>, vector<1024x16xf32> -> vector<1024x16xf32>
    %53 = arith.maximumf %49, %52 : vector<1024x16xf32>
    %c0_41 = arith.constant 0 : index
    %c0_42 = arith.constant 0 : index
    %54 = vector.load %arg9[%c0_41, %c0_42] : memref<1024x1xf32, #tpu.memory_space<vmem>>, vector<1024x1xf32>
    %55 = vector.broadcast %54 : vector<1024x1xf32> to vector<1024x16xf32>
    %56 = arith.addf %53, %55 : vector<1024x16xf32>
    %cst_43 = arith.constant 0.000000e+00 : f32
    %57 = vector.broadcast %cst_43 : f32 to vector<1024x16xf32>
    %58 = arith.maximumf %56, %57 : vector<1024x16xf32>
    %c0_44 = arith.constant 0 : index
    %c0_45 = arith.constant 0 : index
    %c0_46 = arith.constant 0 : index
    %59 = vector.load %arg11[%c0_44, %c0_45, %c0_46] : memref<1x1024x16xf32, #tpu.memory_space<vmem>>, vector<1x1024x16xf32>
    %60 = vector.shape_cast %59 : vector<1x1024x16xf32> to vector<1024x16xf32>
    %61 = vector.shape_cast %58 : vector<1024x16xf32> to vector<1x1024x16xf32>
    tpu.vector_store %arg11[%c0_44, %c0_45, %c0_46], %61 {strides = array<i32>} : memref<1x1024x16xf32, #tpu.memory_space<vmem>>, vector<1x1024x16xf32>,
    return
  }
  func.func @transform_0(%arg0: i32, %arg1: i32) -> (i32, i32, i32) {
    %c0_i32 = arith.constant 0 : i32
    %c0_i32_0 = arith.constant 0 : i32
    return %arg0, %arg1, %c0_i32 : i32, i32, i32
  }
  func.func @transform_1(%arg0: i32, %arg1: i32) -> (i32, i32, i32) {
    %c0_i32 = arith.constant 0 : i32
    %c0_i32_0 = arith.constant 0 : i32
    %c0_i32_1 = arith.constant 0 : i32
    return %arg0, %c0_i32, %c0_i32_0 : i32, i32, i32
  }
  func.func @transform_2(%arg0: i32, %arg1: i32) -> (i32, i32) {
    %c0_i32 = arith.constant 0 : i32
    %c0_i32_0 = arith.constant 0 : i32
    %c0_i32_1 = arith.constant 0 : i32
    return %c0_i32, %c0_i32_0 : i32, i32
  }
  func.func @transform_3(%arg0: i32, %arg1: i32) -> (i32, i32) {
    %c0_i32 = arith.constant 0 : i32
    %c0_i32_0 = arith.constant 0 : i32
    %c0_i32_1 = arith.constant 0 : i32
    return %c0_i32, %c0_i32_0 : i32, i32
  }
  func.func @transform_4(%arg0: i32, %arg1: i32) -> (i32, i32) {
    %c0_i32 = arith.constant 0 : i32
    %c0_i32_0 = arith.constant 0 : i32
    %c0_i32_1 = arith.constant 0 : i32
    return %c0_i32, %c0_i32_0 : i32, i32
  }
  func.func @transform_5(%arg0: i32, %arg1: i32) -> (i32, i32) {
    %c0_i32 = arith.constant 0 : i32
    %c0_i32_0 = arith.constant 0 : i32
    %c0_i32_1 = arith.constant 0 : i32
    return %c0_i32, %c0_i32_0 : i32, i32
  }
  func.func @transform_6(%arg0: i32, %arg1: i32) -> (i32, i32) {
    %c0_i32 = arith.constant 0 : i32
    %c0_i32_0 = arith.constant 0 : i32
    %c0_i32_1 = arith.constant 0 : i32
    return %c0_i32, %c0_i32_0 : i32, i32
  }
  func.func @transform_7(%arg0: i32, %arg1: i32) -> (i32, i32) {
    %c0_i32 = arith.constant 0 : i32
    %c0_i32_0 = arith.constant 0 : i32
    %c0_i32_1 = arith.constant 0 : i32
    return %c0_i32, %c0_i32_0 : i32, i32
  }
  func.func @transform_8(%arg0: i32, %arg1: i32) -> (i32, i32, i32) {
    %c0_i32 = arith.constant 0 : i32
    %c0_i32_0 = arith.constant 0 : i32
    return %arg0, %arg1, %c0_i32 : i32, i32, i32
  }
  func.func @transform_9(%arg0: i32, %arg1: i32) -> (i32, i32, i32) {
    %c0_i32 = arith.constant 0 : i32
    %c0_i32_0 = arith.constant 0 : i32
    return %arg0, %c0_i32, %arg1 : i32, i32, i32
  }
}

</mosaic_0001>

<bundles_post_ra>
// kernel: pointnet_base_forward.8
= control target key start
LH: loop header
LB: loop body
LE: loop exit
PB: predicated region body
PF: predicated region fallthrough
CT: control target
= control target key end

     0   :  { %11 = vsyncpa [#allocation3], 0  ;;  %s1327_s0 = inlined_call_operand.vmem [shape: f32[2,32,3], index: 0, kind: input, shape index: {}]   ;;  %s1328_s1 = inlined_call_operand.vmem [shape: f32[2,3,3], index: 1, kind: input, shape index: {}]   ;;  %s1329_s2 = inlined_call_operand.hbm [shape: bf16[3,64], index: 2, kind: input, shape index: {}]   ;;  %s1330_s3 = inlined_call_operand.hbm [shape: f32[1,64], index: 3, kind: input, shape index: {}]   ;;  %s1331_s4 = inlined_call_operand.hbm [shape: bf16[64,64], index: 4, kind: input, shape index: {}]   ;;  %s1332_s5 = inlined_call_operand.hbm [shape: f32[1,64], index: 5, kind: input, shape index: {}]   ;;  %s1333_s6 = inlined_call_operand.vmem [shape: bf16[2,32,64], index: 6, kind: output, shape index: {}]  }
   0x1   :  { %12 = vsyncpa [#allocation5], 0 }
   0x2   :  { %13 = vsyncpa [#allocation8], 0  ;;  %s1154_s21 = smov 0   ;;  %s1156_s22 = smov 0  }
   0x3   :  { %s1158_s23 = smov 0  }
   0x4 LB: > { %s1112_s24 = smov [#allocation4]   ;;  %s807_s26 = sadd.s32 4294967295, %s1110_s23   ;;  %s1110_s23 = sphi %s1158_s23, %s19_s23   ;;  %s1106_s22 = sphi %s1156_s22, %s1346_s22   ;;  %s1102_s21 = sphi %s1154_s21, %s1345_s21  }
   0x5   : > { %s226_s25 = sshll.u32 %s1112_s24, 4  ;;  %p809_p0 = scmp.ge.s32.totalorder %s1110_s23, 1  ;;  %s227_s25 = int_to_ptr.vmem [resolvable:$true] %s226_s25 }
   0x6   : > { %p202_p1 = scmp.lt.s32.totalorder %s1110_s23, 3  ;;  %p1172_p2 = scmp.eq.s32.totalorder %s807_s26, 0 }
   0x7   : > { %s31_s29 = sadd.s32 1, %s1106_s22  ;;  %s1113_s8 = smov [#allocation2]  }
   0x8   : > { %s1337_s27 = scalar_select %p1172_p2, 1, 0 }
   0x9   : > { %p1176_p3 = pnand %p809_p0, %p202_p1  ;;  %p1189_p6 = scmp.ge.s32.totalorder %s31_s29, 2 }
   0xa   : > { %s215_s9 = sshll.u32 %s1113_s8, 4  ;;  %s964_s12 = scalar_lea.hbm %s1330_s3, 16  ;;  %s1193_s9 = int_to_ptr.vmem [resolvable:$true] %s215_s9 }
   0xb   : > { %s1338_s28 = scalar_select %p1176_p3, 1, 0 }
   0xc   : > { %p908_p4 = pneg %p1176_p3  ;;  %p965_p7 = scmp.ne.s32.totalorder %s1330_s3, %s964_s12 }
   0xd   : > { %s1340_s7 = scalar_select %p1189_p6, 1, 0 }
   0xe   : > { %p1185_p5 = pnand %p1172_p2, %p908_p4  ;;  %p971_p11 = scmp.lt.u32.totalorder %s964_s12, %s1330_s3 }
  0x10   : > { %p1203_p8 = pneg %p1185_p5 }
  0x12   : > { %p967_p9 = pnand %p1203_p8, %p965_p7 }
  0x14   : > { %p968_p10 = pneg %p967_p9 }
  0x16   : > { %p973_p12 = pnand %p971_p11, %p968_p10 }
  0x18   : > { %976 = shalt.err (!%p973_p12)
}
  0x19   : > { %s977_s18 = scalar_lea.vmem %s227_s25, 16  ;;  %s984_s19 = scalar_lea.vmem %s227_s25, 32 }
  0x1a   : > { %p978_p13 = scmp.ne.s32.totalorder %s227_s25, %s977_s18  ;;  %p985_p4 = scmp.lt.s32.totalorder %s227_s25, %s227_s25 }
  0x1b   : > { %p986_p2 = scmp.lt.s32.totalorder %s984_s19, %s977_s18 }
  0x1c   : > { %p980_p0 = pnand %p978_p13, %p1203_p8 }
  0x1d   : > { %p987_p3 = por %p986_p2, %p985_p4 }
  0x1e   : > { %p981_p1 = pneg %p980_p0 }
  0x20   : > { %p988_p6 = pnand %p987_p3, %p981_p1 }
  0x22   : > { %991 = shalt.err (!%p988_p6)
}
  0x23   : > { %914 = dma.hbm_to_vmem [thread:$0]  (!%p1185_p5), %s1330_s3, 16, %s227_s25, [#allocation5]  }
  0x24   : > { %p1342_p7 = scmp.ne.s32.totalorder %s1340_s7, 0  ;;  %s992_s10 = scalar_lea.hbm %s1329_s2, 32 }
  0x25   : > { %p993_p2 = scmp.ne.s32.totalorder %s1329_s2, %s992_s10  ;;  %p999_p9 = scmp.lt.u32.totalorder %s992_s10, %s1329_s2 }
  0x26   : > { %s1348_s29 = smov (%p1342_p7, %s31_s29), 0 }
  0x27   : > { %p995_p3 = pnand %p993_p2, %p1203_p8 }
  0x29   : > { %p996_p6 = pneg %p995_p3 }
  0x2b   : > { %p1001_p10 = pnand %p999_p9, %p996_p6 }
  0x2d   : > { %1004 = shalt.err (!%p1001_p10)
}
  0x2e   : > { %s1005_s25 = scalar_lea.vmem %s1193_s9, 32  ;;  %p1013_p0 = scmp.lt.s32.totalorder %s1193_s9, %s1193_s9 }
  0x2f   : > { %p1006_p11 = scmp.ne.s32.totalorder %s1193_s9, %s1005_s25  ;;  %p1014_p1 = scmp.lt.s32.totalorder %s1005_s25, %s1005_s25 }
  0x31   : > { %p1008_p12 = pnand %p1006_p11, %p1203_p8  ;;  %p1015_p4 = por %p1014_p1, %p1013_p0 }
  0x33   : > { %p1009_p13 = pneg %p1008_p12 }
  0x35   : > { %p1016_p7 = pnand %p1015_p4, %p1009_p13 }
  0x37   : > { %1019 = shalt.err (!%p1016_p7)
}
  0x38   : > { %911 = dma.hbm_to_vmem [thread:$0]  (!%p1185_p5), %s1329_s2, 32, %s1193_s9, [#allocation3]  }
  0x39   : > { %s1114_s17 = smov [#allocation6]   ;;  %s1020_s24 = scalar_lea.hbm %s1331_s4, 512 }
  0x3a   : > { %s236_s18 = sshll.u32 %s1114_s17, 4  ;;  %p1021_p2 = scmp.ne.s32.totalorder %s1331_s4, %s1020_s24  ;;  %s237_s18 = int_to_ptr.vmem [resolvable:$true] %s236_s18 }
  0x3b   : > { %p1027_p9 = scmp.lt.u32.totalorder %s1020_s24, %s1331_s4 }
  0x3c   : > { %p1023_p3 = pnand %p1021_p2, %p1203_p8 }
  0x3e   : > { %p1024_p6 = pneg %p1023_p3 }
  0x40   : > { %p1029_p10 = pnand %p1027_p9, %p1024_p6 }
  0x42   : > { %1032 = shalt.err (!%p1029_p10)
}
  0x43   : > { %s1033_s9 = scalar_lea.vmem %s237_s18, 512  ;;  %p1041_p0 = scmp.lt.s32.totalorder %s237_s18, %s237_s18 }
  0x44   : > { %p1034_p11 = scmp.ne.s32.totalorder %s237_s18, %s1033_s9  ;;  %p1042_p1 = scmp.lt.s32.totalorder %s1033_s9, %s1033_s9 }
  0x46   : > { %p1036_p12 = pnand %p1034_p11, %p1203_p8  ;;  %p1043_p4 = por %p1042_p1, %p1041_p0 }
  0x48   : > { %p1037_p13 = pneg %p1036_p12 }
  0x4a   : > { %p1044_p7 = pnand %p1043_p4, %p1037_p13 }
  0x4c   : > { %1047 = shalt.err (!%p1044_p7)
}
  0x4d   : > { %s1115_s12 = smov 64   ;;  %s1116_s13 = smov 4  }
  0x4e   : > { %917 = dma.hbm_to_vmem [thread:$0]  (!%p1185_p5), %s1331_s4, 512, %s237_s18, [#allocation5], %s1115_s12, %s1115_s12, %s1116_s13  }
  0x4f   : > { %s1117_s7 = smov [#allocation7]   ;;  %s1048_s20 = scalar_lea.hbm %s1332_s5, 16 }
  0x50   : > { %s250_s16 = sshll.u32 %s1117_s7, 4  ;;  %p1049_p2 = scmp.ne.s32.totalorder %s1332_s5, %s1048_s20  ;;  %s251_s16 = int_to_ptr.vmem [resolvable:$true] %s250_s16 }
  0x51   : > { %p1055_p9 = scmp.lt.u32.totalorder %s1048_s20, %s1332_s5 }
  0x52   : > { %p1051_p3 = pnand %p1049_p2, %p1203_p8 }
  0x54   : > { %p1052_p6 = pneg %p1051_p3 }
  0x56   : > { %p1057_p10 = pnand %p1055_p9, %p1052_p6 }
  0x58   : > { %1060 = shalt.err (!%p1057_p10)
}
  0x59   : > { %s1061_s18 = scalar_lea.vmem %s251_s16, 16  ;;  %s1068_s11 = scalar_lea.vmem %s251_s16, 32 }
  0x5a   : > { %p1062_p11 = scmp.ne.s32.totalorder %s251_s16, %s1061_s18  ;;  %p1069_p0 = scmp.lt.s32.totalorder %s251_s16, %s251_s16 }
  0x5b   : > { %p1070_p1 = scmp.lt.s32.totalorder %s1068_s11, %s1061_s18 }
  0x5c   : > { %p1064_p12 = pnand %p1062_p11, %p1203_p8 }
  0x5d   : > { %p1071_p4 = por %p1070_p1, %p1069_p0 }
  0x5e   : > { %p1065_p13 = pneg %p1064_p12 }
  0x60   : > { %p1072_p7 = pnand %p1071_p4, %p1065_p13 }
  0x62   : > { %1075 = shalt.err (!%p1072_p7)
}
  0x63   : > { %920 = dma.hbm_to_vmem [thread:$0]  (!%p1185_p5), %s1332_s5, 16, %s251_s16, [#allocation8]  }
  0x64   : > { %p1343_p2 = scmp.ne.s32.totalorder %s1338_s28, 0 }
  0x65   : > { %p1344_p3 = scmp.ne.s32.totalorder (!%p1343_p2), %s1337_s27, 0 }
  0x66   : > { %283 = sbr.rel (%p1343_p2) target bundleno = 785 (0x311), region = 44 }
  0x6d   : > { %1089 = dma.done.wait (%p1344_p3), [#allocation3], 32  }
  0x6e   : > { %1091 = vsyncadd (%p1344_p3), [#allocation3], 4294967264 }
  0x6f   : > { %1093 = dma.done.wait (%p1344_p3), [#allocation5], 528  }
  0x70   : > { %1095 = vsyncadd (%p1344_p3), [#allocation5], 4294966768 }
  0x71   : > { %1097 = dma.done.wait (%p1344_p3), [#allocation8], 16  }
  0x72   : > { %1099 = vsyncadd (%p1344_p3), [#allocation8], 4294967280  ;;  %p338_p5 = scmp.lt.s32.totalorder %s1102_s21, 1  ;;  %vm485_vm0 = vcmask 1040384   ;;  %vm486_vm1 = vcmask 1041408   ;;  %v1118_v0 = vmov 65535  }
  0x73   : > { %v487_v1 = vsel %vm485_vm0, 4294967295, %v1118_v0  ;;  %vm380_vm2 = vcmask 1042432   ;;  %vm367_vm3 = vcmask 23552   ;;  %v471_v4 = vld [vmem:[#allocation2] sm:$0x3]  ;;  %v960_v10 = vld [vmem:[#allocation6] sm:$0xff]  }
  0x74   : > { %s1350_s21 = smov (!%p338_p5, %s1102_s21), 1  ;;  %v488_v2 = vsel %vm486_vm1, %v487_v1, 0  ;;  %v961_v11 = vld [vmem:[#allocation6 + $0x8] sm:$0xff]   ;;  %880 = vmatprep.subr.bf16.mxu0 %v960_v10  ;;  %v962_v18 = vld [vmem:[#allocation6 + $0x10] sm:$0xff]   ;;  %v963_v19 = vld [vmem:[#allocation6 + $0x18] sm:$0xff]   ;;  %vm586_vm4 = vcmask 523264  }
  0x75   : > { %s822_s28 = sshll.u32 %s1350_s21, 2  ;;  %s846_s27 = sshll.u32 %s1350_s21, 5  ;;  %v490_v8 = vand.u32 %v488_v2, %v471_v4  ;;  %881 = vmatpush3.bf16.msra.mxu0 %v960_v10  ;;  %v830_v20 = vld [vmem:[#allocation4] ss:$0 sm:$0xff]  ;;  %v833_v35 = vld [vmem:[#allocation7] ss:$0 sm:$0xff] }
  0x76   : > { %s350_s13 = scalar_lea.vmem %s1328_s1, %s822_s28  ;;  %s345_s7 = scalar_lea.vmem %s1327_s0, %s846_s27  ;;  %882 = vmatprep.subr.bf16.mxu0 %v961_v11  ;;  %vm662_vm5 = vcmask 519168  }
  0x77   : > { %v366_v3 = vld [vmem:[%s350_s13] sm:$0x7]  ;;  %v363_v6 = vld [vmem:[%s345_s7 + $0x8] sm:$0xff]  ;;  %v364_v7 = vld [vmem:[%s345_s7 + $0x10] sm:$0xff]  ;;  %s847_s16 = sshll.u32 %s1350_s21, 4 }
  0x78   : > { %866 = vmatprep.subr.msk.mxu1 %vm380_vm2, %v366_v3  ;;  %v362_v5 = vld [vmem:[%s345_s7] sm:$0xff]  ;;  %v365_v9 = vld [vmem:[%s345_s7 + $0x18] sm:$0xff]  ;;  %s359_s20 = scalar_lea.vmem %s1333_s6, %s847_s16 }
  0x79   : > { %867 = vmatpush3.msk.msra.mxu1 %vm380_vm2, %v366_v3  ;;  %868 = vmatprep.mubr.msk.f32.mxu1 %vm367_vm3, %v362_v5 }
  0x7a   : > { %869 = vmatmul.mubr.msk.f32.vlgmr.msra.gmra.mrb[0].mxu1 %vm367_vm3, %v363_v6  ;;  %874 = vmatprep.subr.bf16.mxu1 %v490_v8 }
  0x7b   : > { %871 = vmatprep.mubr.msk.f32.mxu1 %vm367_vm3, %v364_v7  ;;  %875 = vmatpush3.bf16.msra.mxu1 %v490_v8 }
  0x7c   : > { %883 = vmatpush3.bf16.msra.mxu0 %v961_v11 }
  0x7d   : > { %884 = vmatprep.subr.bf16.mxu0 %v962_v18 }
  0x7e   : > { %872 = vmatmul.mubr.msk.f32.gmra.mrb[2].mxu1 %vm367_vm3, %v365_v9 }
  0x80   : > { %885 = vmatpush3.bf16.msra.mxu0 %v962_v18 }
  0x81   : > { %886 = vmatprep.subr.bf16.mxu0 %v963_v19 }
  0x84   : > { %887 = vmatpush3.bf16.msra.mxu0 %v963_v19 }
 0x14d   : > { %v870_v12 = vpop.f32.mrb[0].mxu1 }
 0x14e   : > { %v450_v13 = vpop.f32.mrb[1].mxu1 }
 0x14f   : > { %v469_v14 = vpack.c.bf16 %v870_v12, %v450_v13 }
 0x151   : > { %v873_v15 = vpop.f32.mrb[2].mxu1  ;;  %876 = vmatprep.mubr.msk.bf16.mxu1 %vm367_vm3, %v469_v14 }
 0x152   : > { %v460_v16 = vpop.f32.mrb[3].mxu1 }
 0x153   : > { %v470_v17 = vpack.c.bf16 %v873_v15, %v460_v16 }
 0x155   : > { %877 = vmatmul.mubr.msk.bf16.vlgmr.msra.gmra.mrb[4].mxu1 %vm367_vm3, %v470_v17 }
 0x228   : > { %v878_v21 = vpop.f32.mrb[4].mxu1 }
 0x229   : > { %v535_v22 = vadd.f32 %v878_v21, %v830_v20  ;;  %v526_v23 = vpop.f32.mrb[5].mxu1 }
 0x22a   : > { %v527_v24 = vadd.f32 %v830_v20, %v526_v23  ;;  %v879_v25 = vpop.f32.mrb[6].mxu1 }
 0x22b   : > { %v538_v26 = vadd.f32 %v879_v25, %v830_v20  ;;  %v529_v27 = vpop.f32.mrb[7].mxu1  ;;  %v543_v29 = vmax.f32 %v535_v22, 0.0 }
 0x22c   : > { %v530_v28 = vadd.f32 %v830_v20, %v529_v27  ;;  %v541_v31 = vmax.f32 %v527_v24, 0.0 }
 0x22d   : > { %v544_v30 = vmax.f32 %v538_v26, 0.0 }
 0x22e   : > { %v542_v32 = vmax.f32 %v530_v28, 0.0 }
 0x22f   : > { %v546_v33 = vpack.c.bf16 %v544_v30, %v543_v29 }
 0x230   : > { %v545_v34 = vpack.c.bf16 %v542_v32, %v541_v31 }
 0x232   : > { %888 = vmatprep.mubr.msk.bf16.mxu0 %vm586_vm4, %v545_v34 }
 0x233   : > { %889 = vmatmul.mubr.msk.bf16.vlgmr.msra.gmra.mrb[0].mxu0 %vm586_vm4, %v546_v33 }
 0x306   : > { %v890_v36 = vpop.f32.mrb[0].mxu0 }
 0x307   : > { %v636_v37 = vadd.f32 %v890_v36, %v833_v35  ;;  %v627_v38 = vpop.f32.mrb[1].mxu0 }
 0x308   : > { %v628_v39 = vadd.f32 %v833_v35, %v627_v38  ;;  %v891_v40 = vpop.f32.mrb[2].mxu0 }
 0x309   : > { %v644_v41 = vmax.f32 %v636_v37, 0.0  ;;  %v639_v42 = vadd.f32 %v891_v40, %v833_v35  ;;  %v630_v43 = vpop.f32.mrb[3].mxu0 }
 0x30a   : > { %v642_v44 = vmax.f32 %v628_v39, 0.0  ;;  %v631_v45 = vadd.f32 %v833_v35, %v630_v43 }
 0x30b   : > { %v850_v46 = vpack.c.bf16 %v644_v41, %v644_v41  ;;  %v645_v47 = vmax.f32 %v639_v42, 0.0 }
 0x30c   : > { %v848_v48 = vpack.c.bf16 %v642_v44, %v642_v44  ;;  %v643_v49 = vmax.f32 %v631_v45, 0.0 }
 0x30d   : > { %665 = vst.msk [vmem:[%s359_s20 + $0x8] sm:$0xf] %vm662_vm5, %v850_v46  ;;  %v851_v50 = vpack.c.bf16 %v645_v47, %v645_v47 }
 0x30e   : > { %663 = vst.msk [vmem:[%s359_s20] sm:$0xf] %vm662_vm5, %v848_v48  ;;  %v849_v51 = vpack.c.bf16 %v643_v49, %v643_v49 }
 0x30f   : > { %666 = vst.msk [vmem:[%s359_s20 + $0xc] sm:$0xf] %vm662_vm5, %v851_v50 }
 0x310   : > { %664 = vst.msk [vmem:[%s359_s20 + $0x4] sm:$0xf] %vm662_vm5, %v849_v51 }
 0x311 PF: > { %s19_s23 = sadd.s32 1, %s1110_s23   ;;  %s1345_s21 = smov %s1106_s22 }
 0x312   : > { %p16_p8 = scmp.ge.s32.totalorder %s19_s23, 4   ;;  %s1346_s22 = smov %s1348_s29 }
 0x314   :  { %18 = sbr.rel (!%p16_p8) target bundleno = 4 (0x4), region = 94 }
 0x31b   :  { %697 = vsyncpa [#allocation3], 1 }
 0x31c   :  { %699 = vsyncpa [#allocation3 + $0x1], 1 }
 0x31d   :  { %700 = vsyncpa [#allocation5], 1 }
 0x31e   :  { %701 = vsyncpa [#allocation8], 1 }

// kernel: pointnet_base_forward.6
= control target key start
LH: loop header
LB: loop body
LE: loop exit
PB: predicated region body
PF: predicated region fallthrough
CT: control target
= control target key end

     0   :  { %12 = vsyncpa [#allocation3], 0  ;;  %s2158_s0 = inlined_call_operand.vmem [shape: f32[2,32,3], index: 0, kind: input, shape index: {}]   ;;  %s2159_s1 = inlined_call_operand.hbm [shape: bf16[3,64], index: 1, kind: input, shape index: {}]   ;;  %s2160_s2 = inlined_call_operand.hbm [shape: f32[1,64], index: 2, kind: input, shape index: {}]   ;;  %s2161_s3 = inlined_call_operand.hbm [shape: bf16[64,128], index: 3, kind: input, shape index: {}]   ;;  %s2162_s4 = inlined_call_operand.hbm [shape: f32[1,128], index: 4, kind: input, shape index: {}]   ;;  %s2163_s5 = inlined_call_operand.hbm [shape: bf16[128,1024], index: 5, kind: input, shape index: {}]   ;;  %s2164_s6 = inlined_call_operand.hbm [shape: f32[1,1024], index: 6, kind: input, shape index: {}]   ;;  %s2165_s7 = inlined_call_operand.vmem [shape: f32[2,1,1024], index: 7, kind: output, shape index: {}]  }
   0x1   :  { %13 = vsyncpa [#allocation5], 0 }
   0x2   :  { %14 = vsyncpa [#allocation8], 0 }
   0x3   :  { %15 = vsyncpa [#allocation11], 0  ;;  %s1922_s24 = smov 0   ;;  %s1924_s25 = smov 0  }
   0x4   :  { %s1926_s26 = smov 0  }
   0x5 LB: > { %s1869_s27 = smov [#allocation4]   ;;  %s1440_s29 = sadd.s32 4294967295, %s1867_s26   ;;  %s1867_s26 = sphi %s1926_s26, %s21_s26   ;;  %s1863_s25 = sphi %s1924_s25, %s2178_s25   ;;  %s1859_s24 = sphi %s1922_s24, %s2177_s24  }
   0x6   : > { %s242_s28 = sshll.u32 %s1869_s27, 4  ;;  %p1442_p0 = scmp.ge.s32.totalorder %s1867_s26, 1  ;;  %s243_s28 = int_to_ptr.vmem [resolvable:$true] %s242_s28 }
   0x7   : > { %p218_p1 = scmp.lt.s32.totalorder %s1867_s26, 3  ;;  %p1940_p2 = scmp.eq.s32.totalorder %s1440_s29, 0 }
   0x8   : > { %s1870_s9 = smov [#allocation7]   ;;  %s33_s12 = sadd.s32 1, %s1863_s25 }
   0x9   : > { %s2169_s30 = scalar_select %p1940_p2, 1, 0 }
   0xa   : > { %p1944_p3 = pnand %p1442_p0, %p218_p1  ;;  %s266_s10 = sshll.u32 %s1870_s9, 4  ;;  %s1950_s10 = int_to_ptr.vmem [resolvable:$true] %s266_s10 }
   0xb   : > { %p1961_p6 = scmp.ge.s32.totalorder %s33_s12, 2  ;;  %s1661_s16 = scalar_lea.hbm %s2160_s2, 16 }
   0xc   : > { %s2170_s8 = scalar_select %p1944_p3, 1, 0 }
   0xd   : > { %p1588_p4 = pneg %p1944_p3  ;;  %p1662_p7 = scmp.ne.s32.totalorder %s2160_s2, %s1661_s16 }
   0xe   : > { %s2172_s13 = scalar_select %p1961_p6, 1, 0 }
   0xf   : > { %p1954_p5 = pnand %p1940_p2, %p1588_p4  ;;  %p1668_p11 = scmp.lt.u32.totalorder %s1661_s16, %s2160_s2 }
  0x11   : > { %p1973_p8 = pneg %p1954_p5 }
  0x13   : > { %p1664_p9 = pnand %p1973_p8, %p1662_p7 }
  0x15   : > { %p1665_p10 = pneg %p1664_p9 }
  0x17   : > { %p1670_p12 = pnand %p1668_p11, %p1665_p10 }
  0x19   : > { %1673 = shalt.err (!%p1670_p12)
}
  0x1a   : > { %s1674_s22 = scalar_lea.vmem %s243_s28, 16  ;;  %s1681_s23 = scalar_lea.vmem %s243_s28, 32 }
  0x1b   : > { %p1675_p13 = scmp.ne.s32.totalorder %s243_s28, %s1674_s22  ;;  %p1682_p4 = scmp.lt.s32.totalorder %s243_s28, %s243_s28 }
  0x1c   : > { %p1683_p2 = scmp.lt.s32.totalorder %s1681_s23, %s1674_s22 }
  0x1d   : > { %p1677_p0 = pnand %p1675_p13, %p1973_p8 }
  0x1e   : > { %p1684_p3 = por %p1683_p2, %p1682_p4 }
  0x1f   : > { %p1678_p1 = pneg %p1677_p0 }
  0x21   : > { %p1685_p6 = pnand %p1684_p3, %p1678_p1 }
  0x23   : > { %1688 = shalt.err (!%p1685_p6)
}
  0x24   : > { %1594 = dma.hbm_to_vmem [thread:$0]  (!%p1954_p5), %s2160_s2, 16, %s243_s28, [#allocation5]  }
  0x25   : > { %s1689_s15 = scalar_lea.hbm %s2162_s4, 16 }
  0x26   : > { %p1690_p7 = scmp.ne.s32.totalorder %s2162_s4, %s1689_s15  ;;  %p1696_p3 = scmp.lt.u32.totalorder %s1689_s15, %s2162_s4 }
  0x28   : > { %p1692_p9 = pnand %p1690_p7, %p1973_p8 }
  0x2a   : > { %p1693_p2 = pneg %p1692_p9 }
  0x2c   : > { %p1698_p6 = pnand %p1696_p3, %p1693_p2 }
  0x2e   : > { %1701 = shalt.err (!%p1698_p6)
}
  0x2f   : > { %s1702_s28 = scalar_lea.vmem %s1950_s10, 16  ;;  %s1709_s21 = scalar_lea.vmem %s1950_s10, 32 }
  0x30   : > { %p1703_p10 = scmp.ne.s32.totalorder %s1950_s10, %s1702_s28  ;;  %p1710_p13 = scmp.lt.s32.totalorder %s1950_s10, %s1950_s10 }
  0x31   : > { %p1711_p0 = scmp.lt.s32.totalorder %s1709_s21, %s1702_s28 }
  0x32   : > { %p1705_p11 = pnand %p1703_p10, %p1973_p8 }
  0x33   : > { %p1712_p1 = por %p1711_p0, %p1710_p13 }
  0x34   : > { %p1706_p12 = pneg %p1705_p11 }
  0x36   : > { %p1713_p4 = pnand %p1712_p1, %p1706_p12 }
  0x38   : > { %1716 = shalt.err (!%p1713_p4)
}
  0x39   : > { %1600 = dma.hbm_to_vmem [thread:$0]  (!%p1954_p5), %s2162_s4, 16, %s1950_s10, [#allocation8]  }
  0x3a   : > { %p2174_p7 = scmp.ne.s32.totalorder %s2172_s13, 0  ;;  %s1871_s27 = smov [#allocation2]  }
  0x3b   : > { %s231_s29 = sshll.u32 %s1871_s27, 4  ;;  %s1872_s9 = smov [#allocation6]   ;;  %s232_s29 = int_to_ptr.vmem [resolvable:$true] %s231_s29 }
  0x3c   : > { %s2180_s12 = smov (%p2174_p7, %s33_s12), 0  ;;  %s252_s14 = sshll.u32 %s1872_s9, 4  ;;  %s253_s14 = int_to_ptr.vmem [resolvable:$true] %s252_s14 }
  0x3d   : > { %s1717_s17 = scalar_lea.hbm %s2159_s1, 32 }
  0x3e   : > { %p1718_p9 = scmp.ne.s32.totalorder %s2159_s1, %s1717_s17  ;;  %p1724_p6 = scmp.lt.u32.totalorder %s1717_s17, %s2159_s1 }
  0x40   : > { %p1720_p2 = pnand %p1718_p9, %p1973_p8 }
  0x42   : > { %p1721_p3 = pneg %p1720_p2 }
  0x44   : > { %p1726_p10 = pnand %p1724_p6, %p1721_p3 }
  0x46   : > { %1729 = shalt.err (!%p1726_p10)
}
  0x47   : > { %s1730_s28 = scalar_lea.vmem %s232_s29, 32  ;;  %p1738_p0 = scmp.lt.s32.totalorder %s232_s29, %s232_s29 }
  0x48   : > { %p1731_p11 = scmp.ne.s32.totalorder %s232_s29, %s1730_s28  ;;  %p1739_p1 = scmp.lt.s32.totalorder %s1730_s28, %s1730_s28 }
  0x4a   : > { %p1733_p12 = pnand %p1731_p11, %p1973_p8  ;;  %p1740_p4 = por %p1739_p1, %p1738_p0 }
  0x4c   : > { %p1734_p13 = pneg %p1733_p12 }
  0x4e   : > { %p1741_p7 = pnand %p1740_p4, %p1734_p13 }
  0x50   : > { %1744 = shalt.err (!%p1741_p7)
}
  0x51   : > { %1591 = dma.hbm_to_vmem [thread:$0]  (!%p1954_p5), %s2159_s1, 32, %s232_s29, [#allocation3]  }
  0x52   : > { %s1745_s9 = scalar_lea.hbm %s2161_s3, 512 }
  0x53   : > { %p1746_p9 = scmp.ne.s32.totalorder %s2161_s3, %s1745_s9  ;;  %p1752_p6 = scmp.lt.u32.totalorder %s1745_s9, %s2161_s3 }
  0x55   : > { %p1748_p2 = pnand %p1746_p9, %p1973_p8 }
  0x57   : > { %p1749_p3 = pneg %p1748_p2 }
  0x59   : > { %p1754_p10 = pnand %p1752_p6, %p1749_p3 }
  0x5b   : > { %1757 = shalt.err (!%p1754_p10)
}
  0x5c   : > { %s1758_s20 = scalar_lea.vmem %s253_s14, 512  ;;  %p1766_p0 = scmp.lt.s32.totalorder %s253_s14, %s253_s14 }
  0x5d   : > { %p1759_p11 = scmp.ne.s32.totalorder %s253_s14, %s1758_s20  ;;  %p1767_p1 = scmp.lt.s32.totalorder %s1758_s20, %s1758_s20 }
  0x5f   : > { %p1761_p12 = pnand %p1759_p11, %p1973_p8  ;;  %p1768_p4 = por %p1767_p1, %p1766_p0 }
  0x61   : > { %p1762_p13 = pneg %p1761_p12 }
  0x63   : > { %p1769_p7 = pnand %p1768_p4, %p1762_p13 }
  0x65   : > { %1772 = shalt.err (!%p1769_p7)
}
  0x66   : > { %s1873_s29 = smov 64   ;;  %s1874_s10 = smov 4  }
  0x67   : > { %1597 = dma.hbm_to_vmem [thread:$0]  (!%p1954_p5), %s2161_s3, 512, %s253_s14, [#allocation5], %s1873_s29, %s1873_s29, %s1874_s10  }
  0x68   : > { %s1875_s21 = smov [#allocation9]   ;;  %s1773_s9 = scalar_lea.hbm %s2163_s5, 8192 }
  0x69   : > { %s276_s22 = sshll.u32 %s1875_s21, 4  ;;  %p1774_p9 = scmp.ne.s32.totalorder %s2163_s5, %s1773_s9  ;;  %s277_s22 = int_to_ptr.vmem [resolvable:$true] %s276_s22 }
  0x6a   : > { %p1780_p6 = scmp.lt.u32.totalorder %s1773_s9, %s2163_s5 }
  0x6b   : > { %p1776_p2 = pnand %p1774_p9, %p1973_p8 }
  0x6d   : > { %p1777_p3 = pneg %p1776_p2 }
  0x6f   : > { %p1782_p10 = pnand %p1780_p6, %p1777_p3 }
  0x71   : > { %1785 = shalt.err (!%p1782_p10)
}
  0x72   : > { %s1786_s14 = scalar_lea.vmem %s277_s22, 8192  ;;  %p1794_p0 = scmp.lt.s32.totalorder %s277_s22, %s277_s22 }
  0x73   : > { %p1787_p11 = scmp.ne.s32.totalorder %s277_s22, %s1786_s14  ;;  %p1795_p1 = scmp.lt.s32.totalorder %s1786_s14, %s1786_s14 }
  0x75   : > { %p1789_p12 = pnand %p1787_p11, %p1973_p8  ;;  %p1796_p4 = por %p1795_p1, %p1794_p0 }
  0x77   : > { %p1790_p13 = pneg %p1789_p12 }
  0x79   : > { %p1797_p7 = pnand %p1796_p4, %p1790_p13 }
  0x7b   : > { %1800 = shalt.err (!%p1797_p7)
}
  0x7c   : > { %s1876_s20 = smov 512   ;;  %s1877_s29 = smov 32  }
  0x7d   : > { %1603 = dma.hbm_to_vmem [thread:$0]  (!%p1954_p5), %s2163_s5, 8192, %s277_s22, [#allocation8], %s1876_s20, %s1876_s20, %s1877_s29  }
  0x7e   : > { %s1878_s28 = smov [#allocation10]   ;;  %s1801_s9 = scalar_lea.hbm %s2164_s6, 128 }
  0x7f   : > { %s290_s21 = sshll.u32 %s1878_s28, 4  ;;  %p1802_p9 = scmp.ne.s32.totalorder %s2164_s6, %s1801_s9  ;;  %s291_s21 = int_to_ptr.vmem [resolvable:$true] %s290_s21 }
  0x80   : > { %p1808_p6 = scmp.lt.u32.totalorder %s1801_s9, %s2164_s6 }
  0x81   : > { %p1804_p2 = pnand %p1802_p9, %p1973_p8 }
  0x83   : > { %p1805_p3 = pneg %p1804_p2 }
  0x85   : > { %p1810_p10 = pnand %p1808_p6, %p1805_p3 }
  0x87   : > { %1813 = shalt.err (!%p1810_p10)
}
  0x88   : > { %s1814_s22 = scalar_lea.vmem %s291_s21, 128  ;;  %p1822_p0 = scmp.lt.s32.totalorder %s291_s21, %s291_s21 }
  0x89   : > { %p1815_p11 = scmp.ne.s32.totalorder %s291_s21, %s1814_s22  ;;  %p1823_p1 = scmp.lt.s32.totalorder %s1814_s22, %s1814_s22 }
  0x8b   : > { %p1817_p12 = pnand %p1815_p11, %p1973_p8  ;;  %p1824_p4 = por %p1823_p1, %p1822_p0 }
  0x8d   : > { %p1818_p13 = pneg %p1817_p12 }
  0x8f   : > { %p1825_p7 = pnand %p1824_p4, %p1818_p13 }
  0x91   : > { %1828 = shalt.err (!%p1825_p7)
}
  0x92   : > { %1606 = dma.hbm_to_vmem [thread:$0]  (!%p1954_p5), %s2164_s6, 128, %s291_s21, [#allocation11]  }
  0x93   : > { %p2175_p9 = scmp.ne.s32.totalorder %s2170_s8, 0 }
  0x94   : > { %p2176_p2 = scmp.ne.s32.totalorder (!%p2175_p9), %s2169_s30, 0 }
  0x95   : > { %316 = sbr.rel (%p2175_p9) target bundleno = 899 (0x383), region = 48 }
  0x9c   : > { %1842 = dma.done.wait (%p2176_p2), [#allocation3], 32  }
  0x9d   : > { %1844 = vsyncadd (%p2176_p2), [#allocation3], 4294967264 }
  0x9e   : > { %1846 = dma.done.wait (%p2176_p2), [#allocation5], 528  }
  0x9f   : > { %1848 = vsyncadd (%p2176_p2), [#allocation5], 4294966768 }
  0xa0   : > { %1850 = dma.done.wait (%p2176_p2), [#allocation8], 8208  }
  0xa1   : > { %1852 = vsyncadd (%p2176_p2), [#allocation8], 4294959088 }
  0xa2   : > { %1854 = dma.done.wait (%p2176_p2), [#allocation11], 128  }
  0xa3   : > { %1856 = vsyncadd (%p2176_p2), [#allocation11], 4294967168  ;;  %vm412_vm0 = vcmask 1040384   ;;  %p372_p5 = scmp.lt.s32.totalorder %s1859_s24, 1  ;;  %vm413_vm1 = vcmask 1041408   ;;  %v1879_v0 = vmov 65535  }
  0xa4   : > { %v414_v1 = vsel %vm412_vm0, 4294967295, %v1879_v0  ;;  %v397_v3 = vld [vmem:[#allocation2] sm:$0x3]  ;;  %vm405_vm2 = vcmask 23552   ;;  %v1657_v10 = vld [vmem:[#allocation6] sm:$0xff]   ;;  %v1658_v12 = vld [vmem:[#allocation6 + $0x8] sm:$0xff]  }
  0xa5   : > { %s2182_s24 = smov (!%p372_p5, %s1859_s24), 1  ;;  %v415_v2 = vsel %vm413_vm1, %v414_v1, 0  ;;  %1552 = vmatprep.subr.bf16.mxu1 %v1657_v10  ;;  %v1659_v13 = vld [vmem:[#allocation6 + $0x10] sm:$0xff]   ;;  %v1660_v14 = vld [vmem:[#allocation6 + $0x18] sm:$0xff]   ;;  %v575_v15 = vld [vmem:[#allocation9] sm:$0xff]  ;;  %vm513_vm3 = vcmask 523264  }
  0xa6   : > { %s1536_s8 = sshll.u32 %s2182_s24, 5  ;;  %v417_v6 = vand.u32 %v415_v2, %v397_v3  ;;  %1553 = vmatpush3.bf16.msra.mxu1 %v1657_v10  ;;  %v579_v16 = vld [vmem:[#allocation9 + $0x20] sm:$0xff]  ;;  %v576_v17 = vld [vmem:[#allocation9 + $0x8] sm:$0xff]  ;;  %v1460_v43 = vld [vmem:[#allocation4] ss:$0 sm:$0xff]  ;;  %s1459_s30 = sshll.u32 %s2182_s24, 3 }
  0xa7   : > { %s379_s29 = scalar_lea.vmem %s2158_s0, %s1536_s8  ;;  %1554 = vmatprep.subr.bf16.mxu1 %v1658_v12  ;;  %v1470_v18 = vcombine.low %v575_v15, %v579_v16  ;;  %v1471_v19 = vcombine.high %v575_v15, %v579_v16  ;;  %v580_v20 = vld [vmem:[#allocation9 + $0x28] sm:$0xff]  ;;  %v583_v21 = vld [vmem:[#allocation9 + $0x40] sm:$0xff]  ;;  %s384_s28 = scalar_lea.vmem %s2165_s7, %s1459_s30 }
  0xa8   : > { %v391_v4 = vld [vmem:[%s379_s29] sm:$0xff]  ;;  %v392_v5 = vld [vmem:[%s379_s29 + $0x8] sm:$0xff]  ;;  %v393_v8 = vld [vmem:[%s379_s29 + $0x10] sm:$0xff]  ;;  %1546 = vmatprep.subr.bf16.mxu0 %v417_v6  ;;  %v1472_v23 = vcombine.low %v576_v17, %v580_v20  ;;  %v1473_v24 = vcombine.high %v576_v17, %v580_v20 }
  0xa9   : > { %v395_v7 = vpack.c.bf16 %v392_v5, %v391_v4  ;;  %v394_v9 = vld [vmem:[%s379_s29 + $0x18] sm:$0xff]  ;;  %1547 = vmatpush3.bf16.msra.mxu0 %v417_v6  ;;  %v587_v22 = vld [vmem:[#allocation9 + $0x60] sm:$0xff]  ;;  %v584_v56 = vld [vmem:[#allocation9 + $0x48] sm:$0xff] }
  0xaa   : > { %v396_v11 = vpack.c.bf16 %v394_v9, %v393_v8  ;;  %1555 = vmatpush3.bf16.msra.mxu1 %v1658_v12  ;;  %v1479_v25 = vcombine.high %v583_v21, %v587_v22  ;;  %959 = vmatprep.subr.bf16.mxu0 %v1471_v19  ;;  %v1478_v26 = vcombine.low %v583_v21, %v587_v22  ;;  %v591_v27 = vld [vmem:[#allocation9 + $0x80] sm:$0xff]  ;;  %v588_v57 = vld [vmem:[#allocation9 + $0x68] sm:$0xff] }
  0xab   : > { %1548 = vmatprep.mubr.msk.bf16.mxu0 %vm405_vm2, %v395_v7  ;;  %1556 = vmatprep.subr.bf16.mxu1 %v1659_v13  ;;  %v595_v28 = vld [vmem:[#allocation9 + $0xa0] sm:$0xff]  ;;  %v1481_v60 = vcombine.high %v584_v56, %v588_v57  ;;  %v592_v61 = vld [vmem:[#allocation9 + $0x88] sm:$0xff]  ;;  %v1480_v63 = vcombine.low %v584_v56, %v588_v57 }
  0xac   : > { %1549 = vmatmul.mubr.msk.bf16.vlgmr.msra.gmra.mrb[0].mxu0 %vm405_vm2, %v396_v11  ;;  %v1487_v29 = vcombine.high %v591_v27, %v595_v28  ;;  %v1486_v30 = vcombine.low %v591_v27, %v595_v28  ;;  %v599_v31 = vld [vmem:[#allocation9 + $0xc0] sm:$0xff]  ;;  %v596_v62 = vld [vmem:[#allocation9 + $0xa8] sm:$0xff] }
  0xad   : > { %960 = vmatpush1.bf16.msra.mxu0 %v1470_v18  ;;  %v603_v32 = vld [vmem:[#allocation9 + $0xe0] sm:$0xff]  ;;  %v1489_v0 = vcombine.high %v592_v61, %v596_v62  ;;  %v600_v1 = vld [vmem:[#allocation9 + $0xc8] sm:$0xff]  ;;  %v1488_v3 = vcombine.low %v592_v61, %v596_v62  ;;  %v597_v61 = vld [vmem:[#allocation9 + $0xb0] sm:$0xff] }
  0xae   : > { %1557 = vmatpush3.bf16.msra.mxu1 %v1659_v13  ;;  %961 = vmatprep.subr.bf16.mxu0 %v1479_v25  ;;  %v1495_v33 = vcombine.high %v599_v31, %v603_v32  ;;  %v1494_v34 = vcombine.low %v599_v31, %v603_v32  ;;  %v607_v35 = vld [vmem:[#allocation9 + $0x100] sm:$0xff]  ;;  %v604_v2 = vld [vmem:[#allocation9 + $0xe8] sm:$0xff]  ;;  %v581_v31 = vld [vmem:[#allocation9 + $0x30] sm:$0xff] }
  0xaf   : > { %1558 = vmatprep.subr.bf16.mxu1 %v1660_v14  ;;  %v611_v36 = vld [vmem:[#allocation9 + $0x120] sm:$0xff]  ;;  %v1497_v4 = vcombine.high %v600_v1, %v604_v2  ;;  %v608_v5 = vld [vmem:[#allocation9 + $0x108] sm:$0xff]  ;;  %v1496_v7 = vcombine.low %v600_v1, %v604_v2  ;;  %v578_v32 = vld [vmem:[#allocation9 + $0x18] sm:$0xff] }
  0xb0   : > { %v1503_v37 = vcombine.high %v607_v35, %v611_v36  ;;  %v1502_v38 = vcombine.low %v607_v35, %v611_v36  ;;  %v615_v39 = vld [vmem:[#allocation9 + $0x140] sm:$0xff]  ;;  %v612_v6 = vld [vmem:[#allocation9 + $0x128] sm:$0xff]  ;;  %v594_v62 = vld [vmem:[#allocation9 + $0x98] sm:$0xff] }
  0xb1   : > { %962 = vmatpush1.bf16.msra.mxu0 %v1478_v26  ;;  %v619_v40 = vld [vmem:[#allocation9 + $0x160] sm:$0xff]  ;;  %v1505_v8 = vcombine.high %v608_v5, %v612_v6  ;;  %v616_v9 = vld [vmem:[#allocation9 + $0x148] sm:$0xff]  ;;  %v1504_v11 = vcombine.low %v608_v5, %v612_v6  ;;  %v605_v5 = vld [vmem:[#allocation9 + $0xf0] sm:$0xff] }
  0xb2   : > { %1559 = vmatpush3.bf16.msra.mxu1 %v1660_v14  ;;  %963 = vmatprep.subr.bf16.mxu0 %v1487_v29  ;;  %v1511_v41 = vcombine.high %v615_v39, %v619_v40  ;;  %v1510_v42 = vcombine.low %v615_v39, %v619_v40  ;;  %v620_v10 = vld [vmem:[#allocation9 + $0x168] sm:$0xff]  ;;  %v623_v14 = vld [vmem:[#allocation9 + $0x180] sm:$0xff]  ;;  %v1463_v39 = vld [vmem:[#allocation7] ss:$0 sm:$0xff] }
  0xb3   : > { %1012 = vmatprep.subr.bf16.mxu1 %v1473_v24  ;;  %v1513_v12 = vcombine.high %v616_v9, %v620_v10  ;;  %v1512_v13 = vcombine.low %v616_v9, %v620_v10  ;;  %v627_v15 = vld [vmem:[#allocation9 + $0x1a0] sm:$0xff]  ;;  %v624_v16 = vld [vmem:[#allocation9 + $0x188] sm:$0xff]  ;;  %v602_v6 = vld [vmem:[#allocation9 + $0xd8] sm:$0xff] }
  0xb4   : > { %v1519_v17 = vcombine.high %v623_v14, %v627_v15  ;;  %v628_v18 = vld [vmem:[#allocation9 + $0x1a8] sm:$0xff]  ;;  %v1518_v19 = vcombine.low %v623_v14, %v627_v15  ;;  %v631_v22 = vld [vmem:[#allocation9 + $0x1c0] sm:$0xff]  ;;  %v610_v14 = vld [vmem:[#allocation9 + $0x118] sm:$0xff] }
  0xb5   : > { %964 = vmatpush1.bf16.msra.mxu0 %v1486_v30  ;;  %v1520_v20 = vcombine.low %v624_v16, %v628_v18  ;;  %v1521_v21 = vcombine.high %v624_v16, %v628_v18  ;;  %v632_v24 = vld [vmem:[#allocation9 + $0x1c8] sm:$0xff]  ;;  %v577_v30 = vld [vmem:[#allocation9 + $0x10] sm:$0xff]  ;;  %v614_v15 = vld [vmem:[#allocation9 + $0x138] sm:$0xff] }
  0xb6   : > { %965 = vmatprep.subr.bf16.mxu0 %v1495_v33  ;;  %v636_v26 = vld [vmem:[#allocation9 + $0x1e8] sm:$0xff]  ;;  %v1475_v33 = vcombine.high %v577_v30, %v581_v31  ;;  %v1474_v35 = vcombine.low %v577_v30, %v581_v31  ;;  %v626_v30 = vld [vmem:[#allocation9 + $0x198] sm:$0xff] }
  0xb7   : > { %v1528_v28 = vcombine.low %v632_v24, %v636_v26  ;;  %v1529_v29 = vcombine.high %v632_v24, %v636_v26  ;;  %v630_v31 = vld [vmem:[#allocation9 + $0x1b8] sm:$0xff] }
  0xb9   : > { %966 = vmatpush1.bf16.msra.mxu0 %v1494_v34  ;;  %v582_v34 = vld [vmem:[#allocation9 + $0x38] sm:$0xff] }
  0xba   : > { %967 = vmatprep.subr.bf16.mxu0 %v1503_v37  ;;  %v1476_v36 = vcombine.low %v578_v32, %v582_v34  ;;  %v1477_v37 = vcombine.high %v578_v32, %v582_v34 }
  0xbd   : > { %968 = vmatpush1.bf16.msra.mxu0 %v1502_v38  ;;  %v1880_v38 = vmov 0  }
  0xbe   : > { %969 = vmatprep.subr.bf16.mxu0 %v1511_v41  ;;  %991 = vmatprep.mubr.bf16.mxu0 %v1880_v38 }
  0xc1   : > { %970 = vmatpush1.bf16.msra.mxu0 %v1510_v42 }
  0xc2   : > { %971 = vmatprep.subr.bf16.mxu0 %v1519_v17 }
  0xc5   : > { %972 = vmatpush1.bf16.msra.mxu0 %v1518_v19  ;;  %v1509_v19 = vcombine.high %v610_v14, %v614_v15 }
 0x17f   : > { %v1550_v44 = vpop.f32.mrb[0].mxu0 }
 0x180   : > { %v462_v45 = vadd.f32 %v1550_v44, %v1460_v43  ;;  %v453_v46 = vpop.f32.mrb[1].mxu0 }
 0x181   : > { %v454_v47 = vadd.f32 %v1460_v43, %v453_v46  ;;  %v1551_v48 = vpop.f32.mrb[2].mxu0 }
 0x182   : > { %v465_v49 = vadd.f32 %v1551_v48, %v1460_v43  ;;  %v456_v50 = vpop.f32.mrb[3].mxu0  ;;  %v470_v52 = vmax.f32 %v462_v45, 0.0  ;;  %v585_v48 = vld [vmem:[#allocation9 + $0x50] sm:$0xff] }
 0x183   : > { %v457_v51 = vadd.f32 %v1460_v43, %v456_v50  ;;  %v468_v54 = vmax.f32 %v454_v47, 0.0 }
 0x184   : > { %v471_v53 = vmax.f32 %v465_v49, 0.0 }
 0x185   : > { %v469_v55 = vmax.f32 %v457_v51, 0.0  ;;  %v589_v51 = vld [vmem:[#allocation9 + $0x70] sm:$0xff] }
 0x186   : > { %v473_v58 = vpack.c.bf16 %v471_v53, %v470_v52  ;;  %v586_v52 = vld [vmem:[#allocation9 + $0x58] sm:$0xff] }
 0x187   : > { %v472_v59 = vpack.c.bf16 %v469_v55, %v468_v54  ;;  %v590_v53 = vld [vmem:[#allocation9 + $0x78] sm:$0xff] }
 0x188   : > { %v1484_v1 = vcombine.low %v586_v52, %v590_v53 }
 0x189   : > { %1560 = vmatprep.mubr.msk.bf16.mxu1 %vm513_vm3, %v472_v59  ;;  %v1485_v59 = vcombine.high %v586_v52, %v590_v53 }
 0x18a   : > { %1561 = vmatmul.mubr.msk.bf16.vlgmr.msra.gmra.mrb[0].mxu1 %vm513_vm3, %v473_v58  ;;  %v1483_v58 = vcombine.high %v585_v48, %v589_v51 }
 0x18b   : > { %1013 = vmatpush1.bf16.msra.mxu1 %v1472_v23  ;;  %v635_v23 = vld [vmem:[#allocation9 + $0x1e0] sm:$0xff]  ;;  %1044 = vmatprep.mubr.bf16.mxu1 %v1880_v38 }
 0x18c   : > { %1014 = vmatprep.subr.bf16.mxu1 %v1481_v60  ;;  %v1527_v25 = vcombine.high %v631_v22, %v635_v23  ;;  %v1526_v27 = vcombine.low %v631_v22, %v635_v23  ;;  %v593_v60 = vld [vmem:[#allocation9 + $0x90] sm:$0xff]  ;;  %v618_v22 = vld [vmem:[#allocation9 + $0x158] sm:$0xff] }
 0x18d   : > { %v1491_v2 = vcombine.high %v593_v60, %v597_v61  ;;  %v622_v23 = vld [vmem:[#allocation9 + $0x178] sm:$0xff] }
 0x18e   : > { %973 = vmatprep.subr.bf16.mxu0 %v1527_v25  ;;  %v1508_v25 = vcombine.low %v610_v14, %v614_v15 }
 0x18f   : > { %1015 = vmatpush1.bf16.msra.mxu1 %v1480_v63  ;;  %974 = vmatpush1.bf16.msra.mxu0 %v1526_v27  ;;  %v598_v63 = vld [vmem:[#allocation9 + $0xb8] sm:$0xff]  ;;  %v1517_v27 = vcombine.high %v618_v22, %v622_v23 }
 0x190   : > { %1016 = vmatprep.subr.bf16.mxu1 %v1489_v0  ;;  %1065 = vmatprep.subr.bf16.mxu0 %v1475_v33  ;;  %v1482_v0 = vcombine.low %v585_v48, %v589_v51  ;;  %v1492_v9 = vcombine.low %v594_v62, %v598_v63  ;;  %v1516_v33 = vcombine.low %v618_v22, %v622_v23 }
 0x193   : > { %1017 = vmatpush1.bf16.msra.mxu1 %v1488_v3  ;;  %v1493_v3 = vcombine.high %v594_v62, %v598_v63 }
 0x194   : > { %1018 = vmatprep.subr.bf16.mxu1 %v1497_v4  ;;  %v601_v4 = vld [vmem:[#allocation9 + $0xd0] sm:$0xff] }
 0x195   : > { %v1499_v10 = vcombine.high %v601_v4, %v605_v5  ;;  %v1498_v16 = vcombine.low %v601_v4, %v605_v5 }
 0x197   : > { %1019 = vmatpush1.bf16.msra.mxu1 %v1496_v7  ;;  %v606_v7 = vld [vmem:[#allocation9 + $0xf8] sm:$0xff] }
 0x198   : > { %1020 = vmatprep.subr.bf16.mxu1 %v1505_v8  ;;  %v1490_v8 = vcombine.low %v593_v60, %v597_v61  ;;  %v1500_v17 = vcombine.low %v602_v6, %v606_v7 }
 0x19b   : > { %1021 = vmatpush1.bf16.msra.mxu1 %v1504_v11  ;;  %v1501_v11 = vcombine.high %v602_v6, %v606_v7 }
 0x19c   : > { %1022 = vmatprep.subr.bf16.mxu1 %v1513_v12  ;;  %v609_v12 = vld [vmem:[#allocation9 + $0x110] sm:$0xff] }
 0x19f   : > { %1023 = vmatpush1.bf16.msra.mxu1 %v1512_v13  ;;  %v613_v13 = vld [vmem:[#allocation9 + $0x130] sm:$0xff] }
 0x1a0   : > { %1024 = vmatprep.subr.bf16.mxu1 %v1521_v21  ;;  %v1507_v18 = vcombine.high %v609_v12, %v613_v13  ;;  %v621_v21 = vld [vmem:[#allocation9 + $0x170] sm:$0xff]  ;;  %v1506_v24 = vcombine.low %v609_v12, %v613_v13 }
 0x1a3   : > { %1025 = vmatpush1.bf16.msra.mxu1 %v1520_v20  ;;  %v617_v20 = vld [vmem:[#allocation9 + $0x150] sm:$0xff] }
 0x1a4   : > { %1026 = vmatprep.subr.bf16.mxu1 %v1529_v29  ;;  %v1515_v26 = vcombine.high %v617_v20, %v621_v21  ;;  %v629_v29 = vld [vmem:[#allocation9 + $0x1b0] sm:$0xff]  ;;  %v1514_v32 = vcombine.low %v617_v20, %v621_v21 }
 0x1a7   : > { %1027 = vmatpush1.bf16.msra.mxu1 %v1528_v28  ;;  %v625_v28 = vld [vmem:[#allocation9 + $0x190] sm:$0xff] }
 0x1a8   : > { %1118 = vmatprep.subr.bf16.mxu1 %v1477_v37  ;;  %v1523_v34 = vcombine.high %v625_v28, %v629_v29  ;;  %v637_v37 = vld [vmem:[#allocation9 + $0x1f0] sm:$0xff] }
 0x25d   : > { %v1562_v40 = vpop.f32.mrb[0].mxu1 }
 0x25e   : > { %v563_v41 = vadd.f32 %v1562_v40, %v1463_v39  ;;  %v554_v42 = vpop.f32.mrb[1].mxu1  ;;  %v638_v40 = vld [vmem:[#allocation9 + $0x1f8] sm:$0xff] }
 0x25f   : > { %v555_v43 = vadd.f32 %v1463_v39, %v554_v42  ;;  %v1563_v44 = vpop.f32.mrb[2].mxu1  ;;  %v1524_v42 = vcombine.low %v626_v30, %v630_v31 }
 0x260   : > { %v566_v45 = vadd.f32 %v1563_v44, %v1463_v39  ;;  %v557_v46 = vpop.f32.mrb[3].mxu1  ;;  %v571_v49 = vmax.f32 %v563_v41, 0.0  ;;  %v1522_v41 = vcombine.low %v625_v28, %v629_v29 }
 0x261   : > { %v558_v47 = vadd.f32 %v1463_v39, %v557_v46  ;;  %v569_v54 = vmax.f32 %v555_v43, 0.0  ;;  %v634_v39 = vld [vmem:[#allocation9 + $0x1d8] sm:$0xff] }
 0x262   : > { %v572_v50 = vmax.f32 %v566_v45, 0.0  ;;  %v1533_v44 = vcombine.high %v634_v39, %v638_v40  ;;  %v1532_v46 = vcombine.low %v634_v39, %v638_v40 }
 0x263   : > { %v570_v55 = vmax.f32 %v558_v47, 0.0 }
 0x264   : > { %v2119_v56 = vpack.c.bf16 %v572_v50, %v571_v49 }
 0x265   : > { %v2121_v57 = vpack.c.bf16 %v570_v55, %v569_v54 }
 0x267   : > { %992 = vmatmul.mubr.bf16.vlgmr.msra.gmra.mrb[4].mxu0 %v2121_v57  ;;  %1045 = vmatmul.mubr.bf16.vlgmr.msra.gmra.mrb[4].mxu1 %v2121_v57 }
 0x268   : > { %1066 = vmatpush1.bf16.msra.mxu0 %v1474_v35  ;;  %1119 = vmatpush1.bf16.msra.mxu1 %v1476_v36  ;;  %v1525_v35 = vcombine.high %v626_v30, %v630_v31  ;;  %v633_v36 = vld [vmem:[#allocation9 + $0x1d0] sm:$0xff] }
 0x269   : > { %1067 = vmatprep.subr.bf16.mxu0 %v1483_v58  ;;  %1120 = vmatprep.subr.bf16.mxu1 %v1485_v59  ;;  %v1531_v43 = vcombine.high %v633_v36, %v637_v37  ;;  %v1530_v45 = vcombine.low %v633_v36, %v637_v37 }
 0x26a   : > { %1001 = vmatprep.mubr.bf16.mxu0 %v1880_v38  ;;  %1054 = vmatprep.mubr.bf16.mxu1 %v1880_v38 }
 0x26c   : > { %1068 = vmatpush1.bf16.msra.mxu0 %v1482_v0  ;;  %1121 = vmatpush1.bf16.msra.mxu1 %v1484_v1 }
 0x26d   : > { %1069 = vmatprep.subr.bf16.mxu0 %v1491_v2  ;;  %1122 = vmatprep.subr.bf16.mxu1 %v1493_v3 }
 0x26f   : > { %1002 = vmatmul.mubr.bf16.gmra.mrb[8].mxu0 %v2119_v56  ;;  %1055 = vmatmul.mubr.bf16.gmra.mrb[8].mxu1 %v2119_v56 }
 0x270   : > { %1070 = vmatpush1.bf16.msra.mxu0 %v1490_v8  ;;  %1123 = vmatpush1.bf16.msra.mxu1 %v1492_v9 }
 0x271   : > { %1071 = vmatprep.subr.bf16.mxu0 %v1499_v10  ;;  %1124 = vmatprep.subr.bf16.mxu1 %v1501_v11 }
 0x272   : > { %1097 = vmatprep.mubr.bf16.mxu0 %v1880_v38  ;;  %1150 = vmatprep.mubr.bf16.mxu1 %v1880_v38 }
 0x274   : > { %1072 = vmatpush1.bf16.msra.mxu0 %v1498_v16  ;;  %1125 = vmatpush1.bf16.msra.mxu1 %v1500_v17  ;;  %v1881_v17 = vmov 1966171168  }
 0x275   : > { %1073 = vmatprep.subr.bf16.mxu0 %v1507_v18  ;;  %1126 = vmatprep.subr.bf16.mxu1 %v1509_v19  ;;  %v1257_v18 = vunpack.c.l.s4 %v1881_v17  ;;  %v1259_v19 = vlaneseq }
 0x277   : > { %v1258_v28 = vunpack.c.0.s8 %v1257_v18  ;;  %v1260_v29 = vshrl.u32 %v1259_v19, 7 }
 0x278   : > { %1074 = vmatpush1.bf16.msra.mxu0 %v1506_v24  ;;  %1127 = vmatpush1.bf16.msra.mxu1 %v1508_v25 }
 0x279   : > { %1075 = vmatprep.subr.bf16.mxu0 %v1515_v26  ;;  %1128 = vmatprep.subr.bf16.mxu1 %v1517_v27  ;;  %v2137_v39 = vsub.s32 %v1258_v28, %v1260_v29 }
 0x27c   : > { %1076 = vmatpush1.bf16.msra.mxu0 %v1514_v32  ;;  %1129 = vmatpush1.bf16.msra.mxu1 %v1516_v33 }
 0x27d   : > { %1077 = vmatprep.subr.bf16.mxu0 %v1523_v34  ;;  %1130 = vmatprep.subr.bf16.mxu1 %v1525_v35 }
 0x280   : > { %1078 = vmatpush1.bf16.msra.mxu0 %v1522_v41  ;;  %1131 = vmatpush1.bf16.msra.mxu1 %v1524_v42 }
 0x281   : > { %1079 = vmatprep.subr.bf16.mxu0 %v1531_v43  ;;  %1132 = vmatprep.subr.bf16.mxu1 %v1533_v44 }
 0x284   : > { %1080 = vmatpush1.bf16.msra.mxu0 %v1530_v45  ;;  %1133 = vmatpush1.bf16.msra.mxu1 %v1532_v46 }
 0x287   : > { %1098 = vmatmul.mubr.bf16.vlgmr.msra.gmra.mrb[12].mxu0 %v2121_v57  ;;  %1151 = vmatmul.mubr.bf16.vlgmr.msra.gmra.mrb[12].mxu1 %v2121_v57 }
 0x288   : > { %1107 = vmatprep.mubr.bf16.mxu0 %v1880_v38  ;;  %1160 = vmatprep.mubr.bf16.mxu1 %v1880_v38 }
 0x28f   : > { %1108 = vmatmul.mubr.bf16.gmra.mrb[16].mxu0 %v2119_v56  ;;  %1161 = vmatmul.mubr.bf16.gmra.mrb[16].mxu1 %v2119_v56 }
 0x33a   : > { %v993_v47 = vpop.f32.mrb[4].mxu0  ;;  %v1046_v48 = vpop.f32.mrb[4].mxu1 }
 0x33b   : > { %v995_v49 = vpop.f32.mrb[5].mxu0  ;;  %v1048_v50 = vpop.f32.mrb[5].mxu1 }
 0x33c   : > { %v997_v51 = vpop.f32.mrb[6].mxu0  ;;  %v1050_v52 = vpop.f32.mrb[6].mxu1 }
 0x33d   : > { %v1172_v53 = vmax.f32 %v993_v47, %v997_v51  ;;  %v1190_v54 = vmax.f32 %v1046_v48, %v1050_v52  ;;  %v999_v55 = vpop.f32.mrb[7].mxu0  ;;  %v1052_v58 = vpop.f32.mrb[7].mxu1 }
 0x33e   : > { %v1181_v59 = vmax.f32 %v995_v49, %v999_v55  ;;  %v1199_v57 = vmax.f32 %v1048_v50, %v1052_v58 }
 0x342   : > { %v1003_v60 = vpop.f32.mrb[8].mxu0  ;;  %v1056_v61 = vpop.f32.mrb[8].mxu1 }
 0x343   : > { %v1173_v62 = vmax.f32 %v1172_v53, %v1003_v60  ;;  %v1191_v38 = vmax.f32 %v1190_v54, %v1056_v61  ;;  %v1005_v63 = vpop.f32.mrb[9].mxu0  ;;  %v1058_v0 = vpop.f32.mrb[9].mxu1 }
 0x344   : > { %v1182_v1 = vmax.f32 %v1181_v59, %v1005_v63  ;;  %v1200_v56 = vmax.f32 %v1199_v57, %v1058_v0  ;;  %v1007_v2 = vpop.f32.mrb[10].mxu0  ;;  %v1060_v3 = vpop.f32.mrb[10].mxu1 }
 0x345   : > { %v1174_v4 = vmax.f32 %v1173_v62, %v1007_v2  ;;  %v1192_v5 = vmax.f32 %v1191_v38, %v1060_v3  ;;  %v1009_v6 = vpop.f32.mrb[11].mxu0  ;;  %v1062_v7 = vpop.f32.mrb[11].mxu1 }
 0x346   : > { %v1183_v8 = vmax.f32 %v1182_v1, %v1009_v6  ;;  %v1201_v9 = vmax.f32 %v1200_v56, %v1062_v7 }
 0x347   : > { %v1175_v10 = vrot.slane %v1174_v4, 4  ;;  %v1193_v11 = vrot.slane %v1192_v5, 4 }
 0x348   : > { %v1184_v12 = vrot.slane %v1183_v8, 4  ;;  %v1202_v13 = vrot.slane %v1201_v9, 4 }
 0x349   : > { %v1176_v14 = vmax.f32 %v1174_v4, %v1175_v10  ;;  %v1194_v15 = vmax.f32 %v1192_v5, %v1193_v11 }
 0x34a   : > { %v1185_v16 = vmax.f32 %v1183_v8, %v1184_v12  ;;  %v1203_v20 = vmax.f32 %v1201_v9, %v1202_v13 }
 0x34b   : > { %v1177_v21 = vrot.slane %v1176_v14, 2  ;;  %v1195_v22 = vrot.slane %v1194_v15, 2 }
 0x34c   : > { %v1186_v23 = vrot.slane %v1185_v16, 2  ;;  %v1204_v24 = vrot.slane %v1203_v20, 2 }
 0x34d   : > { %v1178_v25 = vmax.f32 %v1176_v14, %v1177_v21  ;;  %v1196_v26 = vmax.f32 %v1194_v15, %v1195_v22 }
 0x34e   : > { %v1187_v27 = vmax.f32 %v1185_v16, %v1186_v23  ;;  %v1205_v30 = vmax.f32 %v1203_v20, %v1204_v24 }
 0x34f   : > { %v1179_v31 = vrot.slane %v1178_v25, 1  ;;  %v1197_v32 = vrot.slane %v1196_v26, 1 }
 0x350   : > { %v1188_v33 = vrot.slane %v1187_v27, 1  ;;  %v1206_v34 = vrot.slane %v1205_v30, 1 }
 0x351   : > { %v1180_v35 = vmax.f32 %v1178_v25, %v1179_v31  ;;  %v1198_v36 = vmax.f32 %v1196_v26, %v1197_v32 }
 0x352   : > { %v1189_v37 = vmax.f32 %v1187_v27, %v1188_v33  ;;  %v1207_v40 = vmax.f32 %v1205_v30, %v1206_v34 }
 0x354   : > { %v1252_v41 = vcombine.low %v1180_v35, %v1189_v37  ;;  %v1253_v42 = vcombine.low %v1198_v36, %v1207_v40 }
 0x356   : > { %v1262_v43 = vrot.slane %v1252_v41, %v2137_v39  ;;  %v1269_v44 = vrot.slane %v1253_v42, %v2137_v39 }
 0x358   : > { %v1284_v45 = vcombine.low %v1262_v43, %v1269_v44  ;;  %v1308_v43 = vld [vmem:[#allocation10] sm:$0xff] }
 0x35a   : > { %v1099_v46 = vpop.f32.mrb[12].mxu0  ;;  %v1152_v47 = vpop.f32.mrb[12].mxu1  ;;  %v1292_v40 = vrot.slane %v1284_v45, %v2137_v39 }
 0x35b   : > { %v1101_v48 = vpop.f32.mrb[13].mxu0  ;;  %v1154_v49 = vpop.f32.mrb[13].mxu1 }
 0x35c   : > { %v1103_v50 = vpop.f32.mrb[14].mxu0  ;;  %v1156_v51 = vpop.f32.mrb[14].mxu1 }
 0x35d   : > { %v1208_v52 = vmax.f32 %v1099_v46, %v1103_v50  ;;  %v1226_v53 = vmax.f32 %v1152_v47, %v1156_v51  ;;  %v1105_v54 = vpop.f32.mrb[15].mxu0  ;;  %v1158_v55 = vpop.f32.mrb[15].mxu1 }
 0x35e   : > { %v1217_v58 = vmax.f32 %v1101_v48, %v1105_v54  ;;  %v1235_v59 = vmax.f32 %v1154_v49, %v1158_v55 }
 0x362   : > { %v1109_v57 = vpop.f32.mrb[16].mxu0  ;;  %v1162_v60 = vpop.f32.mrb[16].mxu1 }
 0x363   : > { %v1209_v61 = vmax.f32 %v1208_v52, %v1109_v57  ;;  %v1227_v62 = vmax.f32 %v1226_v53, %v1162_v60  ;;  %v1111_v38 = vpop.f32.mrb[17].mxu0  ;;  %v1164_v63 = vpop.f32.mrb[17].mxu1 }
 0x364   : > { %v1218_v0 = vmax.f32 %v1217_v58, %v1111_v38  ;;  %v1236_v1 = vmax.f32 %v1235_v59, %v1164_v63  ;;  %v1113_v56 = vpop.f32.mrb[18].mxu0  ;;  %v1166_v2 = vpop.f32.mrb[18].mxu1 }
 0x365   : > { %v1210_v3 = vmax.f32 %v1209_v61, %v1113_v56  ;;  %v1228_v4 = vmax.f32 %v1227_v62, %v1166_v2  ;;  %v1115_v5 = vpop.f32.mrb[19].mxu0  ;;  %v1168_v6 = vpop.f32.mrb[19].mxu1 }
 0x366   : > { %v1219_v7 = vmax.f32 %v1218_v0, %v1115_v5  ;;  %v1237_v8 = vmax.f32 %v1236_v1, %v1168_v6 }
 0x367   : > { %v1211_v9 = vrot.slane %v1210_v3, 4  ;;  %v1229_v10 = vrot.slane %v1228_v4, 4 }
 0x368   : > { %v1220_v11 = vrot.slane %v1219_v7, 4  ;;  %v1238_v12 = vrot.slane %v1237_v8, 4 }
 0x369   : > { %v1212_v13 = vmax.f32 %v1210_v3, %v1211_v9  ;;  %v1230_v14 = vmax.f32 %v1228_v4, %v1229_v10 }
 0x36a   : > { %v1221_v15 = vmax.f32 %v1219_v7, %v1220_v11  ;;  %v1239_v16 = vmax.f32 %v1237_v8, %v1238_v12 }
 0x36b   : > { %v1213_v17 = vrot.slane %v1212_v13, 2  ;;  %v1231_v18 = vrot.slane %v1230_v14, 2 }
 0x36c   : > { %v1222_v19 = vrot.slane %v1221_v15, 2  ;;  %v1240_v20 = vrot.slane %v1239_v16, 2 }
 0x36d   : > { %v1214_v21 = vmax.f32 %v1212_v13, %v1213_v17  ;;  %v1232_v22 = vmax.f32 %v1230_v14, %v1231_v18 }
 0x36e   : > { %v1223_v23 = vmax.f32 %v1221_v15, %v1222_v19  ;;  %v1241_v24 = vmax.f32 %v1239_v16, %v1240_v20 }
 0x36f   : > { %v1215_v25 = vrot.slane %v1214_v21, 1  ;;  %v1233_v26 = vrot.slane %v1232_v22, 1 }
 0x370   : > { %v1224_v27 = vrot.slane %v1223_v23, 1  ;;  %v1242_v28 = vrot.slane %v1241_v24, 1 }
 0x371   : > { %v1216_v29 = vmax.f32 %v1214_v21, %v1215_v25  ;;  %v1234_v30 = vmax.f32 %v1232_v22, %v1233_v26 }
 0x372   : > { %v1225_v31 = vmax.f32 %v1223_v23, %v1224_v27  ;;  %v1243_v32 = vmax.f32 %v1241_v24, %v1242_v28 }
 0x374   : > { %v1254_v33 = vcombine.low %v1216_v29, %v1225_v31  ;;  %v1255_v34 = vcombine.low %v1234_v30, %v1243_v32 }
 0x376   : > { %v1276_v35 = vrot.slane %v1254_v33, %v2137_v39  ;;  %v1283_v36 = vrot.slane %v1255_v34, %v2137_v39 }
 0x378   : > { %v1285_v37 = vcombine.low %v1276_v35, %v1283_v36 }
 0x37a   : > { %v1299_v41 = vrot.slane %v1285_v37, %v2137_v39 }
 0x37c   : > { %v1300_v42 = vcombine.low %v1292_v40, %v1299_v41 }
 0x37e   : > { %v1309_v44 = vadd.f32 %v1308_v43, %v1300_v42 }
 0x380   : > { %v1310_v46 = vmax.f32 %v1309_v44, 0.0 }
 0x382   : > { %1311 = vst [vmem:[%s384_s28] sm:$0xff] %v1310_v46 }
 0x383 PF: > { %s21_s26 = sadd.s32 1, %s1867_s26   ;;  %s2177_s24 = smov %s1863_s25 }
 0x384   : > { %p18_p8 = scmp.ge.s32.totalorder %s21_s26, 4   ;;  %s2178_s25 = smov %s2180_s12 }
 0x386   :  { %20 = sbr.rel (!%p18_p8) target bundleno = 5 (0x5), region = 111 }
 0x38d   :  { %1331 = vsyncpa [#allocation3], 1 }
 0x38e   :  { %1333 = vsyncpa [#allocation3 + $0x1], 1 }
 0x38f   :  { %1334 = vsyncpa [#allocation5], 1 }
 0x390   :  { %1335 = vsyncpa [#allocation8], 1 }
 0x391   :  { %1336 = vsyncpa [#allocation11], 1 }

// kernel: pointnet_base_forward.9
= control target key start
LH: loop header
LB: loop body
LE: loop exit
PB: predicated region body
PF: predicated region fallthrough
CT: control target
= control target key end

     0   :  { %12 = vsyncpa [#allocation3], 0  ;;  %s2221_s0 = inlined_call_operand.vmem [shape: bf16[2,32,64], index: 0, kind: input, shape index: {}]   ;;  %s2222_s1 = inlined_call_operand.hbm [shape: bf16[64,64], index: 1, kind: input, shape index: {}]   ;;  %s2223_s2 = inlined_call_operand.hbm [shape: f32[1,64], index: 2, kind: input, shape index: {}]   ;;  %s2224_s3 = inlined_call_operand.hbm [shape: bf16[64,128], index: 3, kind: input, shape index: {}]   ;;  %s2225_s4 = inlined_call_operand.hbm [shape: f32[1,128], index: 4, kind: input, shape index: {}]   ;;  %s2226_s5 = inlined_call_operand.hbm [shape: bf16[128,1024], index: 5, kind: input, shape index: {}]   ;;  %s2227_s6 = inlined_call_operand.hbm [shape: f32[1,1024], index: 6, kind: input, shape index: {}]   ;;  %s2228_s7 = inlined_call_operand.vmem [shape: f32[2,1,1024], index: 7, kind: output, shape index: {}]  }
   0x1   :  { %13 = vsyncpa [#allocation5], 0 }
   0x2   :  { %14 = vsyncpa [#allocation8], 0 }
   0x3   :  { %15 = vsyncpa [#allocation11], 0  ;;  %s1974_s24 = smov 0   ;;  %s1976_s25 = smov 0  }
   0x4   :  { %s1978_s26 = smov 0  }
   0x5 LB: > { %s1922_s27 = smov [#allocation4]   ;;  %s1473_s29 = sadd.s32 4294967295, %s1920_s26   ;;  %s1920_s26 = sphi %s1978_s26, %s21_s26   ;;  %s1916_s25 = sphi %s1976_s25, %s2241_s25   ;;  %s1912_s24 = sphi %s1974_s24, %s2240_s24  }
   0x6   : > { %s244_s28 = sshll.u32 %s1922_s27, 4  ;;  %p1475_p0 = scmp.ge.s32.totalorder %s1920_s26, 1  ;;  %s245_s28 = int_to_ptr.vmem [resolvable:$true] %s244_s28 }
   0x7   : > { %p218_p1 = scmp.lt.s32.totalorder %s1920_s26, 3  ;;  %p1992_p2 = scmp.eq.s32.totalorder %s1473_s29, 0 }
   0x8   : > { %s1923_s9 = smov [#allocation7]   ;;  %s33_s12 = sadd.s32 1, %s1916_s25 }
   0x9   : > { %s2232_s30 = scalar_select %p1992_p2, 1, 0 }
   0xa   : > { %p1996_p3 = pnand %p1475_p0, %p218_p1  ;;  %s268_s10 = sshll.u32 %s1923_s9, 4  ;;  %s2002_s10 = int_to_ptr.vmem [resolvable:$true] %s268_s10 }
   0xb   : > { %p2013_p6 = scmp.ge.s32.totalorder %s33_s12, 2  ;;  %s1714_s16 = scalar_lea.hbm %s2223_s2, 16 }
   0xc   : > { %s2233_s8 = scalar_select %p1996_p3, 1, 0 }
   0xd   : > { %p1636_p4 = pneg %p1996_p3  ;;  %p1715_p7 = scmp.ne.s32.totalorder %s2223_s2, %s1714_s16 }
   0xe   : > { %s2235_s13 = scalar_select %p2013_p6, 1, 0 }
   0xf   : > { %p2006_p5 = pnand %p1992_p2, %p1636_p4  ;;  %p1721_p11 = scmp.lt.u32.totalorder %s1714_s16, %s2223_s2 }
  0x11   : > { %p2025_p8 = pneg %p2006_p5 }
  0x13   : > { %p1717_p9 = pnand %p2025_p8, %p1715_p7 }
  0x15   : > { %p1718_p10 = pneg %p1717_p9 }
  0x17   : > { %p1723_p12 = pnand %p1721_p11, %p1718_p10 }
  0x19   : > { %1726 = shalt.err (!%p1723_p12)
}
  0x1a   : > { %s1727_s22 = scalar_lea.vmem %s245_s28, 16  ;;  %s1734_s23 = scalar_lea.vmem %s245_s28, 32 }
  0x1b   : > { %p1728_p13 = scmp.ne.s32.totalorder %s245_s28, %s1727_s22  ;;  %p1735_p4 = scmp.lt.s32.totalorder %s245_s28, %s245_s28 }
  0x1c   : > { %p1736_p2 = scmp.lt.s32.totalorder %s1734_s23, %s1727_s22 }
  0x1d   : > { %p1730_p0 = pnand %p1728_p13, %p2025_p8 }
  0x1e   : > { %p1737_p3 = por %p1736_p2, %p1735_p4 }
  0x1f   : > { %p1731_p1 = pneg %p1730_p0 }
  0x21   : > { %p1738_p6 = pnand %p1737_p3, %p1731_p1 }
  0x23   : > { %1741 = shalt.err (!%p1738_p6)
}
  0x24   : > { %1642 = dma.hbm_to_vmem [thread:$0]  (!%p2006_p5), %s2223_s2, 16, %s245_s28, [#allocation5]  }
  0x25   : > { %s1742_s15 = scalar_lea.hbm %s2225_s4, 16 }
  0x26   : > { %p1743_p7 = scmp.ne.s32.totalorder %s2225_s4, %s1742_s15  ;;  %p1749_p3 = scmp.lt.u32.totalorder %s1742_s15, %s2225_s4 }
  0x28   : > { %p1745_p9 = pnand %p1743_p7, %p2025_p8 }
  0x2a   : > { %p1746_p2 = pneg %p1745_p9 }
  0x2c   : > { %p1751_p6 = pnand %p1749_p3, %p1746_p2 }
  0x2e   : > { %1754 = shalt.err (!%p1751_p6)
}
  0x2f   : > { %s1755_s28 = scalar_lea.vmem %s2002_s10, 16  ;;  %s1762_s21 = scalar_lea.vmem %s2002_s10, 32 }
  0x30   : > { %p1756_p10 = scmp.ne.s32.totalorder %s2002_s10, %s1755_s28  ;;  %p1763_p13 = scmp.lt.s32.totalorder %s2002_s10, %s2002_s10 }
  0x31   : > { %p1764_p0 = scmp.lt.s32.totalorder %s1762_s21, %s1755_s28 }
  0x32   : > { %p1758_p11 = pnand %p1756_p10, %p2025_p8 }
  0x33   : > { %p1765_p1 = por %p1764_p0, %p1763_p13 }
  0x34   : > { %p1759_p12 = pneg %p1758_p11 }
  0x36   : > { %p1766_p4 = pnand %p1765_p1, %p1759_p12 }
  0x38   : > { %1769 = shalt.err (!%p1766_p4)
}
  0x39   : > { %1648 = dma.hbm_to_vmem [thread:$0]  (!%p2006_p5), %s2225_s4, 16, %s2002_s10, [#allocation8]  }
  0x3a   : > { %p2237_p7 = scmp.ne.s32.totalorder %s2235_s13, 0  ;;  %s1924_s27 = smov [#allocation2]  }
  0x3b   : > { %s230_s29 = sshll.u32 %s1924_s27, 4  ;;  %s1770_s15 = scalar_lea.hbm %s2222_s1, 512  ;;  %s231_s29 = int_to_ptr.vmem [resolvable:$true] %s230_s29 }
  0x3c   : > { %s2243_s12 = smov (%p2237_p7, %s33_s12), 0  ;;  %p1771_p9 = scmp.ne.s32.totalorder %s2222_s1, %s1770_s15 }
  0x3d   : > { %p1777_p6 = scmp.lt.u32.totalorder %s1770_s15, %s2222_s1 }
  0x3e   : > { %p1773_p2 = pnand %p1771_p9, %p2025_p8 }
  0x40   : > { %p1774_p3 = pneg %p1773_p2 }
  0x42   : > { %p1779_p10 = pnand %p1777_p6, %p1774_p3 }
  0x44   : > { %1782 = shalt.err (!%p1779_p10)
}
  0x45   : > { %s1783_s13 = scalar_lea.vmem %s231_s29, 512  ;;  %p1791_p0 = scmp.lt.s32.totalorder %s231_s29, %s231_s29 }
  0x46   : > { %p1784_p11 = scmp.ne.s32.totalorder %s231_s29, %s1783_s13  ;;  %p1792_p1 = scmp.lt.s32.totalorder %s1783_s13, %s1783_s13 }
  0x48   : > { %p1786_p12 = pnand %p1784_p11, %p2025_p8  ;;  %p1793_p4 = por %p1792_p1, %p1791_p0 }
  0x4a   : > { %p1787_p13 = pneg %p1786_p12 }
  0x4c   : > { %p1794_p7 = pnand %p1793_p4, %p1787_p13 }
  0x4e   : > { %1797 = shalt.err (!%p1794_p7)
}
  0x4f   : > { %s1925_s20 = smov 64   ;;  %s1926_s28 = smov 4  }
  0x50   : > { %1639 = dma.hbm_to_vmem [thread:$0]  (!%p2006_p5), %s2222_s1, 512, %s231_s29, [#allocation3], %s1925_s20, %s1925_s20, %s1926_s28  }
  0x51   : > { %s1927_s23 = smov [#allocation6]   ;;  %s1928_s9 = smov [#allocation9]  }
  0x52   : > { %s254_s27 = sshll.u32 %s1927_s23, 4  ;;  %s278_s14 = sshll.u32 %s1928_s9, 4  ;;  %s255_s27 = int_to_ptr.vmem [resolvable:$true] %s254_s27  ;;  %s2089_s14 = int_to_ptr.vmem [resolvable:$true] %s278_s14 }
  0x53   : > { %s1798_s17 = scalar_lea.hbm %s2224_s3, 512 }
  0x54   : > { %p1799_p9 = scmp.ne.s32.totalorder %s2224_s3, %s1798_s17  ;;  %p1805_p6 = scmp.lt.u32.totalorder %s1798_s17, %s2224_s3 }
  0x56   : > { %p1801_p2 = pnand %p1799_p9, %p2025_p8 }
  0x58   : > { %p1802_p3 = pneg %p1801_p2 }
  0x5a   : > { %p1807_p10 = pnand %p1805_p6, %p1802_p3 }
  0x5c   : > { %1810 = shalt.err (!%p1807_p10)
}
  0x5d   : > { %s1811_s21 = scalar_lea.vmem %s255_s27, 512  ;;  %p1819_p0 = scmp.lt.s32.totalorder %s255_s27, %s255_s27 }
  0x5e   : > { %p1812_p11 = scmp.ne.s32.totalorder %s255_s27, %s1811_s21  ;;  %p1820_p1 = scmp.lt.s32.totalorder %s1811_s21, %s1811_s21 }
  0x60   : > { %p1814_p12 = pnand %p1812_p11, %p2025_p8  ;;  %p1821_p4 = por %p1820_p1, %p1819_p0 }
  0x62   : > { %p1815_p13 = pneg %p1814_p12 }
  0x64   : > { %p1822_p7 = pnand %p1821_p4, %p1815_p13 }
  0x66   : > { %1825 = shalt.err (!%p1822_p7)
}
  0x67   : > { %1645 = dma.hbm_to_vmem [thread:$0]  (!%p2006_p5), %s2224_s3, 512, %s255_s27, [#allocation5], %s1925_s20, %s1925_s20, %s1926_s28  }
  0x68   : > { %s1826_s16 = scalar_lea.hbm %s2226_s5, 8192 }
  0x69   : > { %p1827_p9 = scmp.ne.s32.totalorder %s2226_s5, %s1826_s16  ;;  %p1833_p6 = scmp.lt.u32.totalorder %s1826_s16, %s2226_s5 }
  0x6b   : > { %p1829_p2 = pnand %p1827_p9, %p2025_p8 }
  0x6d   : > { %p1830_p3 = pneg %p1829_p2 }
  0x6f   : > { %p1835_p10 = pnand %p1833_p6, %p1830_p3 }
  0x71   : > { %1838 = shalt.err (!%p1835_p10)
}
  0x72   : > { %s1839_s20 = scalar_lea.vmem %s2089_s14, 8192  ;;  %p1847_p0 = scmp.lt.s32.totalorder %s2089_s14, %s2089_s14 }
  0x73   : > { %p1840_p11 = scmp.ne.s32.totalorder %s2089_s14, %s1839_s20  ;;  %p1848_p1 = scmp.lt.s32.totalorder %s1839_s20, %s1839_s20 }
  0x75   : > { %p1842_p12 = pnand %p1840_p11, %p2025_p8  ;;  %p1849_p4 = por %p1848_p1, %p1847_p0 }
  0x77   : > { %p1843_p13 = pneg %p1842_p12 }
  0x79   : > { %p1850_p7 = pnand %p1849_p4, %p1843_p13 }
  0x7b   : > { %1853 = shalt.err (!%p1850_p7)
}
  0x7c   : > { %s1929_s28 = smov 512   ;;  %s1930_s27 = smov 32  }
  0x7d   : > { %1651 = dma.hbm_to_vmem [thread:$0]  (!%p2006_p5), %s2226_s5, 8192, %s2089_s14, [#allocation8], %s1929_s28, %s1929_s28, %s1930_s27  }
  0x7e   : > { %s1931_s22 = smov [#allocation10]   ;;  %s1854_s16 = scalar_lea.hbm %s2227_s6, 128 }
  0x7f   : > { %s292_s23 = sshll.u32 %s1931_s22, 4  ;;  %p1855_p9 = scmp.ne.s32.totalorder %s2227_s6, %s1854_s16  ;;  %s293_s23 = int_to_ptr.vmem [resolvable:$true] %s292_s23 }
  0x80   : > { %p1861_p6 = scmp.lt.u32.totalorder %s1854_s16, %s2227_s6 }
  0x81   : > { %p1857_p2 = pnand %p1855_p9, %p2025_p8 }
  0x83   : > { %p1858_p3 = pneg %p1857_p2 }
  0x85   : > { %p1863_p10 = pnand %p1861_p6, %p1858_p3 }
  0x87   : > { %1866 = shalt.err (!%p1863_p10)
}
  0x88   : > { %s1867_s14 = scalar_lea.vmem %s293_s23, 128  ;;  %p1875_p0 = scmp.lt.s32.totalorder %s293_s23, %s293_s23 }
  0x89   : > { %p1868_p11 = scmp.ne.s32.totalorder %s293_s23, %s1867_s14  ;;  %p1876_p1 = scmp.lt.s32.totalorder %s1867_s14, %s1867_s14 }
  0x8b   : > { %p1870_p12 = pnand %p1868_p11, %p2025_p8  ;;  %p1877_p4 = por %p1876_p1, %p1875_p0 }
  0x8d   : > { %p1871_p13 = pneg %p1870_p12 }
  0x8f   : > { %p1878_p7 = pnand %p1877_p4, %p1871_p13 }
  0x91   : > { %1881 = shalt.err (!%p1878_p7)
}
  0x92   : > { %1654 = dma.hbm_to_vmem [thread:$0]  (!%p2006_p5), %s2227_s6, 128, %s293_s23, [#allocation11]  }
  0x93   : > { %p2238_p9 = scmp.ne.s32.totalorder %s2233_s8, 0 }
  0x94   : > { %p2239_p2 = scmp.ne.s32.totalorder (!%p2238_p9), %s2232_s30, 0 }
  0x95   : > { %318 = sbr.rel (%p2238_p9) target bundleno = 907 (0x38b), region = 48 }
  0x9c   : > { %1895 = dma.done.wait (%p2239_p2), [#allocation3], 512  }
  0x9d   : > { %1897 = vsyncadd (%p2239_p2), [#allocation3], 4294966784 }
  0x9e   : > { %1899 = dma.done.wait (%p2239_p2), [#allocation5], 528  }
  0x9f   : > { %1901 = vsyncadd (%p2239_p2), [#allocation5], 4294966768 }
  0xa0   : > { %1903 = dma.done.wait (%p2239_p2), [#allocation8], 8208  }
  0xa1   : > { %1905 = vsyncadd (%p2239_p2), [#allocation8], 4294959088 }
  0xa2   : > { %1907 = dma.done.wait (%p2239_p2), [#allocation11], 128  }
  0xa3   : > { %1909 = vsyncadd (%p2239_p2), [#allocation11], 4294967168  ;;  %p374_p5 = scmp.lt.s32.totalorder %s1912_s24, 1  ;;  %v1704_v0 = vld [vmem:[#allocation2] sm:$0xff]   ;;  %v1705_v1 = vld [vmem:[#allocation2 + $0x8] sm:$0xff]   ;;  %vm446_vm0 = vcmask 523264  }
  0xa4   : > { %1588 = vmatprep.subr.bf16.mxu0 %v1704_v0  ;;  %v1706_v2 = vld [vmem:[#allocation2 + $0x10] sm:$0xff]   ;;  %v1707_v4 = vld [vmem:[#allocation2 + $0x18] sm:$0xff]   ;;  %v1710_v5 = vld [vmem:[#allocation6] sm:$0xff]  }
  0xa5   : > { %s2245_s24 = smov (!%p374_p5, %s1912_s24), 1  ;;  %1589 = vmatpush3.bf16.msra.mxu0 %v1704_v0  ;;  %v1711_v6 = vld [vmem:[#allocation6 + $0x8] sm:$0xff]   ;;  %1600 = vmatprep.subr.bf16.mxu1 %v1710_v5  ;;  %v1712_v8 = vld [vmem:[#allocation6 + $0x10] sm:$0xff]   ;;  %v1713_v9 = vld [vmem:[#allocation6 + $0x18] sm:$0xff]  }
  0xa6   : > { %s1575_s8 = sshll.u32 %s2245_s24, 4  ;;  %1590 = vmatprep.subr.bf16.mxu0 %v1705_v1  ;;  %1601 = vmatpush3.bf16.msra.mxu1 %v1710_v5  ;;  %v608_v10 = vld [vmem:[#allocation9] sm:$0xff]  ;;  %v609_v12 = vld [vmem:[#allocation9 + $0x8] sm:$0xff]  ;;  %v1493_v38 = vld [vmem:[#allocation4] ss:$0 sm:$0xff]  ;;  %s1492_s30 = sshll.u32 %s2245_s24, 3 }
  0xa7   : > { %s381_s27 = scalar_lea.vmem %s2221_s0, %s1575_s8  ;;  %1602 = vmatprep.subr.bf16.mxu1 %v1711_v6  ;;  %v612_v11 = vld [vmem:[#allocation9 + $0x20] sm:$0xff]  ;;  %v613_v15 = vld [vmem:[#allocation9 + $0x28] sm:$0xff]  ;;  %s386_s22 = scalar_lea.vmem %s2228_s7, %s1492_s30 }
  0xa8   : > { %v1708_v3 = vld [vmem:[%s381_s27] sm:$0xff]   ;;  %v1709_v7 = vld [vmem:[%s381_s27 + $0x8] sm:$0xff]   ;;  %v1509_v13 = vcombine.low %v608_v10, %v612_v11  ;;  %v1510_v14 = vcombine.high %v608_v10, %v612_v11  ;;  %v1511_v18 = vcombine.low %v609_v12, %v613_v15  ;;  %v1512_v19 = vcombine.high %v609_v12, %v613_v15 }
  0xa9   : > { %1596 = vmatprep.mubr.msk.bf16.mxu0 %vm446_vm0, %v1708_v3  ;;  %1591 = vmatpush3.bf16.msra.mxu0 %v1705_v1  ;;  %v616_v16 = vld [vmem:[#allocation9 + $0x40] sm:$0xff]  ;;  %v617_v51 = vld [vmem:[#allocation9 + $0x48] sm:$0xff] }
  0xaa   : > { %1592 = vmatprep.subr.bf16.mxu0 %v1706_v2  ;;  %1603 = vmatpush3.bf16.msra.mxu1 %v1711_v6  ;;  %v620_v17 = vld [vmem:[#allocation9 + $0x60] sm:$0xff]  ;;  %v621_v52 = vld [vmem:[#allocation9 + $0x68] sm:$0xff] }
  0xab   : > { %1604 = vmatprep.subr.bf16.mxu1 %v1712_v8  ;;  %v1518_v20 = vcombine.high %v616_v16, %v620_v17  ;;  %v1517_v21 = vcombine.low %v616_v16, %v620_v17  ;;  %v624_v22 = vld [vmem:[#allocation9 + $0x80] sm:$0xff]  ;;  %v1520_v55 = vcombine.high %v617_v51, %v621_v52  ;;  %v625_v56 = vld [vmem:[#allocation9 + $0x88] sm:$0xff]  ;;  %v1519_v58 = vcombine.low %v617_v51, %v621_v52 }
  0xac   : > { %v628_v23 = vld [vmem:[#allocation9 + $0xa0] sm:$0xff]  ;;  %v629_v57 = vld [vmem:[#allocation9 + $0xa8] sm:$0xff] }
  0xad   : > { %1593 = vmatpush3.bf16.msra.mxu0 %v1706_v2  ;;  %v1526_v24 = vcombine.high %v624_v22, %v628_v23  ;;  %v1525_v25 = vcombine.low %v624_v22, %v628_v23  ;;  %v632_v26 = vld [vmem:[#allocation9 + $0xc0] sm:$0xff]  ;;  %v1528_v59 = vcombine.high %v625_v56, %v629_v57  ;;  %v633_v60 = vld [vmem:[#allocation9 + $0xc8] sm:$0xff]  ;;  %v1527_v62 = vcombine.low %v625_v56, %v629_v57  ;;  %v630_v56 = vld [vmem:[#allocation9 + $0xb0] sm:$0xff] }
  0xae   : > { %1594 = vmatprep.subr.bf16.mxu0 %v1707_v4  ;;  %1605 = vmatpush3.bf16.msra.mxu1 %v1712_v8  ;;  %v636_v27 = vld [vmem:[#allocation9 + $0xe0] sm:$0xff]  ;;  %v637_v61 = vld [vmem:[#allocation9 + $0xe8] sm:$0xff]  ;;  %v627_v57 = vld [vmem:[#allocation9 + $0x98] sm:$0xff] }
  0xaf   : > { %1606 = vmatprep.subr.bf16.mxu1 %v1713_v9  ;;  %v1534_v28 = vcombine.high %v632_v26, %v636_v27  ;;  %v1533_v29 = vcombine.low %v632_v26, %v636_v27  ;;  %v640_v30 = vld [vmem:[#allocation9 + $0x100] sm:$0xff]  ;;  %v1536_v63 = vcombine.high %v633_v60, %v637_v61  ;;  %v641_v0 = vld [vmem:[#allocation9 + $0x108] sm:$0xff]  ;;  %v1535_v2 = vcombine.low %v633_v60, %v637_v61  ;;  %v614_v26 = vld [vmem:[#allocation9 + $0x30] sm:$0xff] }
  0xb0   : > { %v644_v31 = vld [vmem:[#allocation9 + $0x120] sm:$0xff]  ;;  %v645_v1 = vld [vmem:[#allocation9 + $0x128] sm:$0xff]  ;;  %v611_v27 = vld [vmem:[#allocation9 + $0x18] sm:$0xff] }
  0xb1   : > { %1595 = vmatpush3.bf16.msra.mxu0 %v1707_v4  ;;  %v1542_v32 = vcombine.high %v640_v30, %v644_v31  ;;  %v1541_v33 = vcombine.low %v640_v30, %v644_v31  ;;  %v648_v34 = vld [vmem:[#allocation9 + $0x140] sm:$0xff]  ;;  %v1544_v3 = vcombine.high %v641_v0, %v645_v1  ;;  %v649_v4 = vld [vmem:[#allocation9 + $0x148] sm:$0xff]  ;;  %v1543_v6 = vcombine.low %v641_v0, %v645_v1  ;;  %v638_v0 = vld [vmem:[#allocation9 + $0xf0] sm:$0xff] }
  0xb2   : > { %1607 = vmatpush3.bf16.msra.mxu1 %v1713_v9  ;;  %992 = vmatprep.subr.bf16.mxu0 %v1510_v14  ;;  %v652_v35 = vld [vmem:[#allocation9 + $0x160] sm:$0xff]  ;;  %v653_v5 = vld [vmem:[#allocation9 + $0x168] sm:$0xff]  ;;  %v635_v1 = vld [vmem:[#allocation9 + $0xd8] sm:$0xff] }
  0xb3   : > { %1045 = vmatprep.subr.bf16.mxu1 %v1512_v19  ;;  %v1550_v36 = vcombine.high %v648_v34, %v652_v35  ;;  %v1549_v37 = vcombine.low %v648_v34, %v652_v35  ;;  %v1551_v8 = vcombine.low %v649_v4, %v653_v5  ;;  %v656_v9 = vld [vmem:[#allocation9 + $0x180] sm:$0xff]  ;;  %v657_v11 = vld [vmem:[#allocation9 + $0x188] sm:$0xff]  ;;  %v1502_v34 = vld [vmem:[#allocation7] ss:$0 sm:$0xff] }
  0xb4   : > { %1597 = vmatmul.mubr.msk.bf16.vlgmr.msra.gmra.mrb[0].mxu0 %vm446_vm0, %v1709_v7  ;;  %v1552_v7 = vcombine.high %v649_v4, %v653_v5  ;;  %v660_v10 = vld [vmem:[#allocation9 + $0x1a0] sm:$0xff]  ;;  %v665_v19 = vld [vmem:[#allocation9 + $0x1c8] sm:$0xff] }
  0xb5   : > { %993 = vmatpush1.bf16.msra.mxu0 %v1509_v13  ;;  %v1558_v12 = vcombine.high %v656_v9, %v660_v10  ;;  %v661_v13 = vld [vmem:[#allocation9 + $0x1a8] sm:$0xff]  ;;  %v1557_v14 = vcombine.low %v656_v9, %v660_v10  ;;  %v664_v17 = vld [vmem:[#allocation9 + $0x1c0] sm:$0xff]  ;;  %v643_v9 = vld [vmem:[#allocation9 + $0x118] sm:$0xff] }
  0xb6   : > { %994 = vmatprep.subr.bf16.mxu0 %v1518_v20  ;;  %v1559_v15 = vcombine.low %v657_v11, %v661_v13  ;;  %v1560_v16 = vcombine.high %v657_v11, %v661_v13  ;;  %v647_v10 = vld [vmem:[#allocation9 + $0x138] sm:$0xff] }
  0xb9   : > { %995 = vmatpush1.bf16.msra.mxu0 %v1517_v21  ;;  %v669_v21 = vld [vmem:[#allocation9 + $0x1e8] sm:$0xff] }
  0xba   : > { %996 = vmatprep.subr.bf16.mxu0 %v1526_v24  ;;  %v1567_v23 = vcombine.low %v665_v19, %v669_v21  ;;  %v1568_v24 = vcombine.high %v665_v19, %v669_v21 }
  0xbd   : > { %997 = vmatpush1.bf16.msra.mxu0 %v1525_v25  ;;  %v610_v25 = vld [vmem:[#allocation9 + $0x10] sm:$0xff] }
  0xbe   : > { %998 = vmatprep.subr.bf16.mxu0 %v1534_v28  ;;  %v1514_v28 = vcombine.high %v610_v25, %v614_v26  ;;  %v1513_v30 = vcombine.low %v610_v25, %v614_v26  ;;  %v659_v25 = vld [vmem:[#allocation9 + $0x198] sm:$0xff] }
  0xbf   : > { %v663_v26 = vld [vmem:[#allocation9 + $0x1b8] sm:$0xff] }
  0xc1   : > { %999 = vmatpush1.bf16.msra.mxu0 %v1533_v29  ;;  %v615_v29 = vld [vmem:[#allocation9 + $0x38] sm:$0xff] }
  0xc2   : > { %1000 = vmatprep.subr.bf16.mxu0 %v1542_v32  ;;  %v1515_v31 = vcombine.low %v611_v27, %v615_v29  ;;  %v1516_v32 = vcombine.high %v611_v27, %v615_v29 }
  0xc5   : > { %1001 = vmatpush1.bf16.msra.mxu0 %v1541_v33  ;;  %v1932_v33 = vmov 0  }
  0xc6   : > { %1002 = vmatprep.subr.bf16.mxu0 %v1550_v36  ;;  %1024 = vmatprep.mubr.bf16.mxu0 %v1932_v33 }
  0xc9   : > { %1003 = vmatpush1.bf16.msra.mxu0 %v1549_v37 }
  0xca   : > { %1004 = vmatprep.subr.bf16.mxu0 %v1558_v12 }
  0xcd   : > { %1005 = vmatpush1.bf16.msra.mxu0 %v1557_v14  ;;  %v1548_v14 = vcombine.high %v643_v9, %v647_v10 }
 0x187   : > { %v1598_v39 = vpop.f32.mrb[0].mxu0 }
 0x188   : > { %v496_v40 = vadd.f32 %v1598_v39, %v1493_v38  ;;  %v487_v41 = vpop.f32.mrb[1].mxu0 }
 0x189   : > { %v488_v42 = vadd.f32 %v1493_v38, %v487_v41  ;;  %v1599_v43 = vpop.f32.mrb[2].mxu0 }
 0x18a   : > { %v499_v44 = vadd.f32 %v1599_v43, %v1493_v38  ;;  %v490_v45 = vpop.f32.mrb[3].mxu0  ;;  %v504_v47 = vmax.f32 %v496_v40, 0.0  ;;  %v618_v43 = vld [vmem:[#allocation9 + $0x50] sm:$0xff] }
 0x18b   : > { %v491_v46 = vadd.f32 %v1493_v38, %v490_v45  ;;  %v502_v49 = vmax.f32 %v488_v42, 0.0 }
 0x18c   : > { %v505_v48 = vmax.f32 %v499_v44, 0.0 }
 0x18d   : > { %v503_v50 = vmax.f32 %v491_v46, 0.0  ;;  %v622_v46 = vld [vmem:[#allocation9 + $0x70] sm:$0xff] }
 0x18e   : > { %v507_v53 = vpack.c.bf16 %v505_v48, %v504_v47  ;;  %v619_v47 = vld [vmem:[#allocation9 + $0x58] sm:$0xff] }
 0x18f   : > { %v506_v54 = vpack.c.bf16 %v503_v50, %v502_v49  ;;  %v623_v48 = vld [vmem:[#allocation9 + $0x78] sm:$0xff] }
 0x190   : > { %v1523_v60 = vcombine.low %v619_v47, %v623_v48 }
 0x191   : > { %1608 = vmatprep.mubr.msk.bf16.mxu1 %vm446_vm0, %v506_v54  ;;  %v1524_v54 = vcombine.high %v619_v47, %v623_v48 }
 0x192   : > { %1609 = vmatmul.mubr.msk.bf16.vlgmr.msra.gmra.mrb[0].mxu1 %vm446_vm0, %v507_v53  ;;  %v1522_v53 = vcombine.high %v618_v43, %v622_v46 }
 0x193   : > { %1046 = vmatpush1.bf16.msra.mxu1 %v1511_v18  ;;  %v668_v18 = vld [vmem:[#allocation9 + $0x1e0] sm:$0xff]  ;;  %1077 = vmatprep.mubr.bf16.mxu1 %v1932_v33 }
 0x194   : > { %1047 = vmatprep.subr.bf16.mxu1 %v1520_v55  ;;  %v1566_v20 = vcombine.high %v664_v17, %v668_v18  ;;  %v1565_v22 = vcombine.low %v664_v17, %v668_v18  ;;  %v626_v55 = vld [vmem:[#allocation9 + $0x90] sm:$0xff]  ;;  %v651_v17 = vld [vmem:[#allocation9 + $0x158] sm:$0xff] }
 0x195   : > { %v1530_v61 = vcombine.high %v626_v55, %v630_v56  ;;  %v655_v18 = vld [vmem:[#allocation9 + $0x178] sm:$0xff] }
 0x196   : > { %1006 = vmatprep.subr.bf16.mxu0 %v1566_v20  ;;  %v1547_v20 = vcombine.low %v643_v9, %v647_v10 }
 0x197   : > { %1048 = vmatpush1.bf16.msra.mxu1 %v1519_v58  ;;  %1007 = vmatpush1.bf16.msra.mxu0 %v1565_v22  ;;  %v631_v58 = vld [vmem:[#allocation9 + $0xb8] sm:$0xff]  ;;  %v1556_v22 = vcombine.high %v651_v17, %v655_v18 }
 0x198   : > { %1049 = vmatprep.subr.bf16.mxu1 %v1528_v59  ;;  %1098 = vmatprep.subr.bf16.mxu0 %v1514_v28  ;;  %v1521_v59 = vcombine.low %v618_v43, %v622_v46  ;;  %v1531_v4 = vcombine.low %v627_v57, %v631_v58  ;;  %v1555_v28 = vcombine.low %v651_v17, %v655_v18 }
 0x19b   : > { %1050 = vmatpush1.bf16.msra.mxu1 %v1527_v62  ;;  %v1532_v62 = vcombine.high %v627_v57, %v631_v58 }
 0x19c   : > { %1051 = vmatprep.subr.bf16.mxu1 %v1536_v63  ;;  %v634_v63 = vld [vmem:[#allocation9 + $0xd0] sm:$0xff] }
 0x19d   : > { %v1538_v5 = vcombine.high %v634_v63, %v638_v0  ;;  %v1537_v11 = vcombine.low %v634_v63, %v638_v0 }
 0x19f   : > { %1052 = vmatpush1.bf16.msra.mxu1 %v1535_v2  ;;  %v639_v2 = vld [vmem:[#allocation9 + $0xf8] sm:$0xff] }
 0x1a0   : > { %1053 = vmatprep.subr.bf16.mxu1 %v1544_v3  ;;  %v1529_v3 = vcombine.low %v626_v55, %v630_v56  ;;  %v1539_v12 = vcombine.low %v635_v1, %v639_v2 }
 0x1a3   : > { %1054 = vmatpush1.bf16.msra.mxu1 %v1543_v6  ;;  %v1540_v6 = vcombine.high %v635_v1, %v639_v2 }
 0x1a4   : > { %1055 = vmatprep.subr.bf16.mxu1 %v1552_v7  ;;  %v642_v7 = vld [vmem:[#allocation9 + $0x110] sm:$0xff] }
 0x1a7   : > { %1056 = vmatpush1.bf16.msra.mxu1 %v1551_v8  ;;  %v646_v8 = vld [vmem:[#allocation9 + $0x130] sm:$0xff] }
 0x1a8   : > { %1057 = vmatprep.subr.bf16.mxu1 %v1560_v16  ;;  %v1546_v13 = vcombine.high %v642_v7, %v646_v8  ;;  %v654_v16 = vld [vmem:[#allocation9 + $0x170] sm:$0xff]  ;;  %v1545_v19 = vcombine.low %v642_v7, %v646_v8 }
 0x1ab   : > { %1058 = vmatpush1.bf16.msra.mxu1 %v1559_v15  ;;  %v650_v15 = vld [vmem:[#allocation9 + $0x150] sm:$0xff] }
 0x1ac   : > { %1059 = vmatprep.subr.bf16.mxu1 %v1568_v24  ;;  %v1554_v21 = vcombine.high %v650_v15, %v654_v16  ;;  %v662_v24 = vld [vmem:[#allocation9 + $0x1b0] sm:$0xff]  ;;  %v1553_v27 = vcombine.low %v650_v15, %v654_v16 }
 0x1af   : > { %1060 = vmatpush1.bf16.msra.mxu1 %v1567_v23  ;;  %v658_v23 = vld [vmem:[#allocation9 + $0x190] sm:$0xff] }
 0x1b0   : > { %1151 = vmatprep.subr.bf16.mxu1 %v1516_v32  ;;  %v1562_v29 = vcombine.high %v658_v23, %v662_v24  ;;  %v670_v32 = vld [vmem:[#allocation9 + $0x1f0] sm:$0xff] }
 0x265   : > { %v1610_v35 = vpop.f32.mrb[0].mxu1 }
 0x266   : > { %v596_v36 = vadd.f32 %v1610_v35, %v1502_v34  ;;  %v587_v37 = vpop.f32.mrb[1].mxu1  ;;  %v671_v35 = vld [vmem:[#allocation9 + $0x1f8] sm:$0xff] }
 0x267   : > { %v588_v38 = vadd.f32 %v1502_v34, %v587_v37  ;;  %v1611_v39 = vpop.f32.mrb[2].mxu1  ;;  %v1563_v37 = vcombine.low %v659_v25, %v663_v26 }
 0x268   : > { %v599_v40 = vadd.f32 %v1611_v39, %v1502_v34  ;;  %v590_v41 = vpop.f32.mrb[3].mxu1  ;;  %v604_v44 = vmax.f32 %v596_v36, 0.0  ;;  %v1561_v36 = vcombine.low %v658_v23, %v662_v24 }
 0x269   : > { %v591_v42 = vadd.f32 %v1502_v34, %v590_v41  ;;  %v602_v49 = vmax.f32 %v588_v38, 0.0  ;;  %v667_v34 = vld [vmem:[#allocation9 + $0x1d8] sm:$0xff] }
 0x26a   : > { %v605_v45 = vmax.f32 %v599_v40, 0.0  ;;  %v1572_v39 = vcombine.high %v667_v34, %v671_v35  ;;  %v1571_v41 = vcombine.low %v667_v34, %v671_v35 }
 0x26b   : > { %v603_v50 = vmax.f32 %v591_v42, 0.0 }
 0x26c   : > { %v2182_v51 = vpack.c.bf16 %v605_v45, %v604_v44 }
 0x26d   : > { %v2184_v52 = vpack.c.bf16 %v603_v50, %v602_v49 }
 0x26f   : > { %1025 = vmatmul.mubr.bf16.vlgmr.msra.gmra.mrb[4].mxu0 %v2184_v52  ;;  %1078 = vmatmul.mubr.bf16.vlgmr.msra.gmra.mrb[4].mxu1 %v2184_v52 }
 0x270   : > { %1099 = vmatpush1.bf16.msra.mxu0 %v1513_v30  ;;  %1152 = vmatpush1.bf16.msra.mxu1 %v1515_v31  ;;  %v1564_v30 = vcombine.high %v659_v25, %v663_v26  ;;  %v666_v31 = vld [vmem:[#allocation9 + $0x1d0] sm:$0xff] }
 0x271   : > { %1100 = vmatprep.subr.bf16.mxu0 %v1522_v53  ;;  %1153 = vmatprep.subr.bf16.mxu1 %v1524_v54  ;;  %v1570_v38 = vcombine.high %v666_v31, %v670_v32  ;;  %v1569_v40 = vcombine.low %v666_v31, %v670_v32 }
 0x272   : > { %1034 = vmatprep.mubr.bf16.mxu0 %v1932_v33  ;;  %1087 = vmatprep.mubr.bf16.mxu1 %v1932_v33 }
 0x274   : > { %1101 = vmatpush1.bf16.msra.mxu0 %v1521_v59  ;;  %1154 = vmatpush1.bf16.msra.mxu1 %v1523_v60 }
 0x275   : > { %1102 = vmatprep.subr.bf16.mxu0 %v1530_v61  ;;  %1155 = vmatprep.subr.bf16.mxu1 %v1532_v62 }
 0x277   : > { %1035 = vmatmul.mubr.bf16.gmra.mrb[8].mxu0 %v2182_v51  ;;  %1088 = vmatmul.mubr.bf16.gmra.mrb[8].mxu1 %v2182_v51 }
 0x278   : > { %1103 = vmatpush1.bf16.msra.mxu0 %v1529_v3  ;;  %1156 = vmatpush1.bf16.msra.mxu1 %v1531_v4 }
 0x279   : > { %1104 = vmatprep.subr.bf16.mxu0 %v1538_v5  ;;  %1157 = vmatprep.subr.bf16.mxu1 %v1540_v6 }
 0x27a   : > { %1130 = vmatprep.mubr.bf16.mxu0 %v1932_v33  ;;  %1183 = vmatprep.mubr.bf16.mxu1 %v1932_v33 }
 0x27c   : > { %1105 = vmatpush1.bf16.msra.mxu0 %v1537_v11  ;;  %1158 = vmatpush1.bf16.msra.mxu1 %v1539_v12  ;;  %v1933_v12 = vmov 1966171168  }
 0x27d   : > { %1106 = vmatprep.subr.bf16.mxu0 %v1546_v13  ;;  %1159 = vmatprep.subr.bf16.mxu1 %v1548_v14  ;;  %v1290_v13 = vunpack.c.l.s4 %v1933_v12  ;;  %v1292_v14 = vlaneseq }
 0x27f   : > { %v1291_v23 = vunpack.c.0.s8 %v1290_v13  ;;  %v1293_v24 = vshrl.u32 %v1292_v14, 7 }
 0x280   : > { %1107 = vmatpush1.bf16.msra.mxu0 %v1545_v19  ;;  %1160 = vmatpush1.bf16.msra.mxu1 %v1547_v20 }
 0x281   : > { %1108 = vmatprep.subr.bf16.mxu0 %v1554_v21  ;;  %1161 = vmatprep.subr.bf16.mxu1 %v1556_v22  ;;  %v2200_v34 = vsub.s32 %v1291_v23, %v1293_v24 }
 0x284   : > { %1109 = vmatpush1.bf16.msra.mxu0 %v1553_v27  ;;  %1162 = vmatpush1.bf16.msra.mxu1 %v1555_v28 }
 0x285   : > { %1110 = vmatprep.subr.bf16.mxu0 %v1562_v29  ;;  %1163 = vmatprep.subr.bf16.mxu1 %v1564_v30 }
 0x288   : > { %1111 = vmatpush1.bf16.msra.mxu0 %v1561_v36  ;;  %1164 = vmatpush1.bf16.msra.mxu1 %v1563_v37 }
 0x289   : > { %1112 = vmatprep.subr.bf16.mxu0 %v1570_v38  ;;  %1165 = vmatprep.subr.bf16.mxu1 %v1572_v39 }
 0x28c   : > { %1113 = vmatpush1.bf16.msra.mxu0 %v1569_v40  ;;  %1166 = vmatpush1.bf16.msra.mxu1 %v1571_v41 }
 0x28f   : > { %1131 = vmatmul.mubr.bf16.vlgmr.msra.gmra.mrb[12].mxu0 %v2184_v52  ;;  %1184 = vmatmul.mubr.bf16.vlgmr.msra.gmra.mrb[12].mxu1 %v2184_v52 }
 0x290   : > { %1140 = vmatprep.mubr.bf16.mxu0 %v1932_v33  ;;  %1193 = vmatprep.mubr.bf16.mxu1 %v1932_v33 }
 0x297   : > { %1141 = vmatmul.mubr.bf16.gmra.mrb[16].mxu0 %v2182_v51  ;;  %1194 = vmatmul.mubr.bf16.gmra.mrb[16].mxu1 %v2182_v51 }
 0x342   : > { %v1026_v42 = vpop.f32.mrb[4].mxu0  ;;  %v1079_v43 = vpop.f32.mrb[4].mxu1 }
 0x343   : > { %v1028_v44 = vpop.f32.mrb[5].mxu0  ;;  %v1081_v45 = vpop.f32.mrb[5].mxu1 }
 0x344   : > { %v1030_v46 = vpop.f32.mrb[6].mxu0  ;;  %v1083_v47 = vpop.f32.mrb[6].mxu1 }
 0x345   : > { %v1205_v48 = vmax.f32 %v1026_v42, %v1030_v46  ;;  %v1223_v49 = vmax.f32 %v1079_v43, %v1083_v47  ;;  %v1032_v50 = vpop.f32.mrb[7].mxu0  ;;  %v1085_v53 = vpop.f32.mrb[7].mxu1 }
 0x346   : > { %v1214_v54 = vmax.f32 %v1028_v44, %v1032_v50  ;;  %v1232_v52 = vmax.f32 %v1081_v45, %v1085_v53 }
 0x34a   : > { %v1036_v55 = vpop.f32.mrb[8].mxu0  ;;  %v1089_v56 = vpop.f32.mrb[8].mxu1 }
 0x34b   : > { %v1206_v57 = vmax.f32 %v1205_v48, %v1036_v55  ;;  %v1224_v33 = vmax.f32 %v1223_v49, %v1089_v56  ;;  %v1038_v58 = vpop.f32.mrb[9].mxu0  ;;  %v1091_v59 = vpop.f32.mrb[9].mxu1 }
 0x34c   : > { %v1215_v60 = vmax.f32 %v1214_v54, %v1038_v58  ;;  %v1233_v51 = vmax.f32 %v1232_v52, %v1091_v59  ;;  %v1040_v61 = vpop.f32.mrb[10].mxu0  ;;  %v1093_v62 = vpop.f32.mrb[10].mxu1 }
 0x34d   : > { %v1207_v63 = vmax.f32 %v1206_v57, %v1040_v61  ;;  %v1225_v0 = vmax.f32 %v1224_v33, %v1093_v62  ;;  %v1042_v1 = vpop.f32.mrb[11].mxu0  ;;  %v1095_v2 = vpop.f32.mrb[11].mxu1 }
 0x34e   : > { %v1216_v3 = vmax.f32 %v1215_v60, %v1042_v1  ;;  %v1234_v4 = vmax.f32 %v1233_v51, %v1095_v2 }
 0x34f   : > { %v1208_v5 = vrot.slane %v1207_v63, 4  ;;  %v1226_v6 = vrot.slane %v1225_v0, 4 }
 0x350   : > { %v1217_v7 = vrot.slane %v1216_v3, 4  ;;  %v1235_v8 = vrot.slane %v1234_v4, 4 }
 0x351   : > { %v1209_v9 = vmax.f32 %v1207_v63, %v1208_v5  ;;  %v1227_v10 = vmax.f32 %v1225_v0, %v1226_v6 }
 0x352   : > { %v1218_v11 = vmax.f32 %v1216_v3, %v1217_v7  ;;  %v1236_v15 = vmax.f32 %v1234_v4, %v1235_v8 }
 0x353   : > { %v1210_v16 = vrot.slane %v1209_v9, 2  ;;  %v1228_v17 = vrot.slane %v1227_v10, 2 }
 0x354   : > { %v1219_v18 = vrot.slane %v1218_v11, 2  ;;  %v1237_v19 = vrot.slane %v1236_v15, 2 }
 0x355   : > { %v1211_v20 = vmax.f32 %v1209_v9, %v1210_v16  ;;  %v1229_v21 = vmax.f32 %v1227_v10, %v1228_v17 }
 0x356   : > { %v1220_v22 = vmax.f32 %v1218_v11, %v1219_v18  ;;  %v1238_v25 = vmax.f32 %v1236_v15, %v1237_v19 }
 0x357   : > { %v1212_v26 = vrot.slane %v1211_v20, 1  ;;  %v1230_v27 = vrot.slane %v1229_v21, 1 }
 0x358   : > { %v1221_v28 = vrot.slane %v1220_v22, 1  ;;  %v1239_v29 = vrot.slane %v1238_v25, 1 }
 0x359   : > { %v1213_v30 = vmax.f32 %v1211_v20, %v1212_v26  ;;  %v1231_v31 = vmax.f32 %v1229_v21, %v1230_v27 }
 0x35a   : > { %v1222_v32 = vmax.f32 %v1220_v22, %v1221_v28  ;;  %v1240_v35 = vmax.f32 %v1238_v25, %v1239_v29 }
 0x35c   : > { %v1285_v36 = vcombine.low %v1213_v30, %v1222_v32  ;;  %v1286_v37 = vcombine.low %v1231_v31, %v1240_v35 }
 0x35e   : > { %v1295_v38 = vrot.slane %v1285_v36, %v2200_v34  ;;  %v1302_v39 = vrot.slane %v1286_v37, %v2200_v34 }
 0x360   : > { %v1317_v40 = vcombine.low %v1295_v38, %v1302_v39  ;;  %v1341_v38 = vld [vmem:[#allocation10] sm:$0xff] }
 0x362   : > { %v1132_v41 = vpop.f32.mrb[12].mxu0  ;;  %v1185_v42 = vpop.f32.mrb[12].mxu1  ;;  %v1325_v35 = vrot.slane %v1317_v40, %v2200_v34 }
 0x363   : > { %v1134_v43 = vpop.f32.mrb[13].mxu0  ;;  %v1187_v44 = vpop.f32.mrb[13].mxu1 }
 0x364   : > { %v1136_v45 = vpop.f32.mrb[14].mxu0  ;;  %v1189_v46 = vpop.f32.mrb[14].mxu1 }
 0x365   : > { %v1241_v47 = vmax.f32 %v1132_v41, %v1136_v45  ;;  %v1259_v48 = vmax.f32 %v1185_v42, %v1189_v46  ;;  %v1138_v49 = vpop.f32.mrb[15].mxu0  ;;  %v1191_v50 = vpop.f32.mrb[15].mxu1 }
 0x366   : > { %v1250_v53 = vmax.f32 %v1134_v43, %v1138_v49  ;;  %v1268_v54 = vmax.f32 %v1187_v44, %v1191_v50 }
 0x36a   : > { %v1142_v52 = vpop.f32.mrb[16].mxu0  ;;  %v1195_v55 = vpop.f32.mrb[16].mxu1 }
 0x36b   : > { %v1242_v56 = vmax.f32 %v1241_v47, %v1142_v52  ;;  %v1260_v57 = vmax.f32 %v1259_v48, %v1195_v55  ;;  %v1144_v33 = vpop.f32.mrb[17].mxu0  ;;  %v1197_v58 = vpop.f32.mrb[17].mxu1 }
 0x36c   : > { %v1251_v59 = vmax.f32 %v1250_v53, %v1144_v33  ;;  %v1269_v60 = vmax.f32 %v1268_v54, %v1197_v58  ;;  %v1146_v51 = vpop.f32.mrb[18].mxu0  ;;  %v1199_v61 = vpop.f32.mrb[18].mxu1 }
 0x36d   : > { %v1243_v62 = vmax.f32 %v1242_v56, %v1146_v51  ;;  %v1261_v63 = vmax.f32 %v1260_v57, %v1199_v61  ;;  %v1148_v0 = vpop.f32.mrb[19].mxu0  ;;  %v1201_v1 = vpop.f32.mrb[19].mxu1 }
 0x36e   : > { %v1252_v2 = vmax.f32 %v1251_v59, %v1148_v0  ;;  %v1270_v3 = vmax.f32 %v1269_v60, %v1201_v1 }
 0x36f   : > { %v1244_v4 = vrot.slane %v1243_v62, 4  ;;  %v1262_v5 = vrot.slane %v1261_v63, 4 }
 0x370   : > { %v1253_v6 = vrot.slane %v1252_v2, 4  ;;  %v1271_v7 = vrot.slane %v1270_v3, 4 }
 0x371   : > { %v1245_v8 = vmax.f32 %v1243_v62, %v1244_v4  ;;  %v1263_v9 = vmax.f32 %v1261_v63, %v1262_v5 }
 0x372   : > { %v1254_v10 = vmax.f32 %v1252_v2, %v1253_v6  ;;  %v1272_v11 = vmax.f32 %v1270_v3, %v1271_v7 }
 0x373   : > { %v1246_v12 = vrot.slane %v1245_v8, 2  ;;  %v1264_v13 = vrot.slane %v1263_v9, 2 }
 0x374   : > { %v1255_v14 = vrot.slane %v1254_v10, 2  ;;  %v1273_v15 = vrot.slane %v1272_v11, 2 }
 0x375   : > { %v1247_v16 = vmax.f32 %v1245_v8, %v1246_v12  ;;  %v1265_v17 = vmax.f32 %v1263_v9, %v1264_v13 }
 0x376   : > { %v1256_v18 = vmax.f32 %v1254_v10, %v1255_v14  ;;  %v1274_v19 = vmax.f32 %v1272_v11, %v1273_v15 }
 0x377   : > { %v1248_v20 = vrot.slane %v1247_v16, 1  ;;  %v1266_v21 = vrot.slane %v1265_v17, 1 }
 0x378   : > { %v1257_v22 = vrot.slane %v1256_v18, 1  ;;  %v1275_v23 = vrot.slane %v1274_v19, 1 }
 0x379   : > { %v1249_v24 = vmax.f32 %v1247_v16, %v1248_v20  ;;  %v1267_v25 = vmax.f32 %v1265_v17, %v1266_v21 }
 0x37a   : > { %v1258_v26 = vmax.f32 %v1256_v18, %v1257_v22  ;;  %v1276_v27 = vmax.f32 %v1274_v19, %v1275_v23 }
 0x37c   : > { %v1287_v28 = vcombine.low %v1249_v24, %v1258_v26  ;;  %v1288_v29 = vcombine.low %v1267_v25, %v1276_v27 }
 0x37e   : > { %v1309_v30 = vrot.slane %v1287_v28, %v2200_v34  ;;  %v1316_v31 = vrot.slane %v1288_v29, %v2200_v34 }
 0x380   : > { %v1318_v32 = vcombine.low %v1309_v30, %v1316_v31 }
 0x382   : > { %v1332_v36 = vrot.slane %v1318_v32, %v2200_v34 }
 0x384   : > { %v1333_v37 = vcombine.low %v1325_v35, %v1332_v36 }
 0x386   : > { %v1342_v39 = vadd.f32 %v1341_v38, %v1333_v37 }
 0x388   : > { %v1343_v41 = vmax.f32 %v1342_v39, 0.0 }
 0x38a   : > { %1344 = vst [vmem:[%s386_s22] sm:$0xff] %v1343_v41 }
 0x38b PF: > { %s21_s26 = sadd.s32 1, %s1920_s26   ;;  %s2240_s24 = smov %s1916_s25 }
 0x38c   : > { %p18_p8 = scmp.ge.s32.totalorder %s21_s26, 4   ;;  %s2241_s25 = smov %s2243_s12 }
 0x38e   :  { %20 = sbr.rel (!%p18_p8) target bundleno = 5 (0x5), region = 111 }
 0x395   :  { %1364 = vsyncpa [#allocation3], 1 }
 0x396   :  { %1366 = vsyncpa [#allocation3 + $0x1], 1 }
 0x397   :  { %1367 = vsyncpa [#allocation5], 1 }
 0x398   :  { %1368 = vsyncpa [#allocation8], 1 }
 0x399   :  { %1369 = vsyncpa [#allocation11], 1 }

// kernel: pointnet_base_forward.7
= control target key start
LH: loop header
LB: loop body
LE: loop exit
PB: predicated region body
PF: predicated region fallthrough
CT: control target
= control target key end

     0   :  { %12 = vsyncpa [#allocation3], 0  ;;  %s3957_s0 = inlined_call_operand.vmem [shape: f32[2,1024], index: 0, kind: input, shape index: {}]   ;;  %s3958_s1 = inlined_call_operand.hbm [shape: bf16[1024,512], index: 1, kind: input, shape index: {}]   ;;  %s3959_s2 = inlined_call_operand.hbm [shape: f32[1,512], index: 2, kind: input, shape index: {}]   ;;  %s3960_s3 = inlined_call_operand.hbm [shape: bf16[512,256], index: 3, kind: input, shape index: {}]   ;;  %s3961_s4 = inlined_call_operand.hbm [shape: f32[1,256], index: 4, kind: input, shape index: {}]   ;;  %s3962_s5 = inlined_call_operand.vmem [shape: bf16[256,9], index: 5, kind: input, shape index: {}]   ;;  %s3963_s6 = inlined_call_operand.hbm [shape: f32[1,9], index: 6, kind: input, shape index: {}]   ;;  %s3964_s7 = inlined_call_operand.vmem [shape: f32[2,9], index: 7, kind: output, shape index: {}]  }
   0x1   :  { %13 = vsyncpa [#allocation5], 0 }
   0x2   :  { %14 = vsyncpa [#allocation8], 0  ;;  %s3718_s24 = smov [#allocation4]   ;;  %s3719_s26 = smov [#allocation7]  }
   0x3   :  { %s35_s25 = sshll.u32 %s3718_s24, 4  ;;  %s57_s27 = sshll.u32 %s3719_s26, 4  ;;  %s36_s25 = int_to_ptr.vmem [resolvable:$true] %s35_s25  ;;  %s58_s27 = int_to_ptr.vmem [resolvable:$true] %s57_s27 }
   0x4   :  { %s3602_s30 = scalar_lea.hbm %s3959_s2, 64 }
   0x5   :  { %p3603_p0 = scmp.ne.s32.totalorder %s3959_s2, %s3602_s30  ;;  %p3606_p1 = scmp.lt.u32.totalorder %s3602_s30, %s3959_s2 }
   0x7   :  { %p3608_p2 = pnand %p3606_p1, %p3603_p0 }
   0x9   :  { %3611 = shalt.err (!%p3608_p2)
}
   0xa   :  { %s3612_s12 = scalar_lea.vmem %s36_s25, 64  ;;  %p3617_p4 = scmp.lt.s32.totalorder %s36_s25, %s36_s25 }
   0xb   :  { %p3613_p3 = scmp.ne.s32.totalorder %s36_s25, %s3612_s12  ;;  %p3618_p5 = scmp.lt.s32.totalorder %s3612_s12, %s3612_s12 }
   0xd   :  { %p3619_p6 = por %p3618_p5, %p3617_p4 }
   0xf   :  { %p3620_p7 = pnand %p3619_p6, %p3613_p3 }
  0x11   :  { %3623 = shalt.err (!%p3620_p7)
}
  0x12   :  { %38 = dma.hbm_to_vmem [thread:$0]  %s3959_s2, 64, %s36_s25, [#allocation5]  }
  0x13   :  { %s3624_s17 = scalar_lea.hbm %s3961_s4, 32 }
  0x14   :  { %p3625_p8 = scmp.ne.s32.totalorder %s3961_s4, %s3624_s17  ;;  %p3628_p9 = scmp.lt.u32.totalorder %s3624_s17, %s3961_s4 }
  0x16   :  { %p3630_p10 = pnand %p3628_p9, %p3625_p8 }
  0x18   :  { %3633 = shalt.err (!%p3630_p10)
}
  0x19   :  { %s3634_s22 = scalar_lea.vmem %s58_s27, 32  ;;  %p3639_p12 = scmp.lt.s32.totalorder %s58_s27, %s58_s27 }
  0x1a   :  { %p3635_p11 = scmp.ne.s32.totalorder %s58_s27, %s3634_s22  ;;  %p3640_p13 = scmp.lt.s32.totalorder %s3634_s22, %s3634_s22 }
  0x1c   :  { %p3641_p0 = por %p3640_p13, %p3639_p12 }
  0x1e   :  { %p3642_p1 = pnand %p3641_p0, %p3635_p11 }
  0x20   :  { %3645 = shalt.err (!%p3642_p1)
}
  0x21   :  { %60 = dma.hbm_to_vmem [thread:$0]  %s3961_s4, 32, %s58_s27, [#allocation8]  }
  0x22   :  { %s3720_s24 = smov [#allocation2]   ;;  %s3646_s29 = scalar_lea.hbm %s3958_s1, 32768 }
  0x23   :  { %s22_s25 = sshll.u32 %s3720_s24, 4  ;;  %p3647_p2 = scmp.ne.s32.totalorder %s3958_s1, %s3646_s29  ;;  %s23_s25 = int_to_ptr.vmem [resolvable:$true] %s22_s25 }
  0x24   :  { %p3650_p3 = scmp.lt.u32.totalorder %s3646_s29, %s3958_s1 }
  0x26   :  { %p3652_p4 = pnand %p3650_p3, %p3647_p2 }
  0x28   :  { %3655 = shalt.err (!%p3652_p4)
}
  0x29   :  { %s3656_s11 = scalar_lea.vmem %s23_s25, 32768  ;;  %p3661_p6 = scmp.lt.s32.totalorder %s23_s25, %s23_s25 }
  0x2a   :  { %p3657_p5 = scmp.ne.s32.totalorder %s23_s25, %s3656_s11  ;;  %p3662_p7 = scmp.lt.s32.totalorder %s3656_s11, %s3656_s11 }
  0x2c   :  { %p3663_p8 = por %p3662_p7, %p3661_p6 }
  0x2e   :  { %p3664_p9 = pnand %p3663_p8, %p3657_p5 }
  0x30   :  { %3667 = shalt.err (!%p3664_p9)
}
  0x31   :  { %s3721_s4 = smov 256   ;;  %s3722_s27 = smov 16  }
  0x32   :  { %28 = dma.hbm_to_vmem [thread:$0]  %s3958_s1, 32768, %s23_s25, [#allocation3], %s3721_s4, %s3721_s4, %s3722_s27  }
  0x33   :  { %s3723_s14 = smov [#allocation6]   ;;  %s3668_s18 = scalar_lea.hbm %s3960_s3, 8192 }
  0x34   :  { %s44_s15 = sshll.u32 %s3723_s14, 4  ;;  %p3669_p10 = scmp.ne.s32.totalorder %s3960_s3, %s3668_s18  ;;  %s45_s15 = int_to_ptr.vmem [resolvable:$true] %s44_s15 }
  0x35   :  { %p3672_p11 = scmp.lt.u32.totalorder %s3668_s18, %s3960_s3 }
  0x37   :  { %p3674_p12 = pnand %p3672_p11, %p3669_p10 }
  0x39   :  { %3677 = shalt.err (!%p3674_p12)
}
  0x3a   :  { %s3678_s2 = scalar_lea.vmem %s45_s15, 8192  ;;  %p3683_p0 = scmp.lt.s32.totalorder %s45_s15, %s45_s15 }
  0x3b   :  { %p3679_p13 = scmp.ne.s32.totalorder %s45_s15, %s3678_s2  ;;  %p3684_p1 = scmp.lt.s32.totalorder %s3678_s2, %s3678_s2 }
  0x3d   :  { %p3685_p2 = por %p3684_p1, %p3683_p0 }
  0x3f   :  { %p3686_p3 = pnand %p3685_p2, %p3679_p13 }
  0x41   :  { %3689 = shalt.err (!%p3686_p3)
}
  0x42   :  { %s3724_s1 = smov 128   ;;  %s3725_s23 = smov 8  }
  0x43   :  { %50 = dma.hbm_to_vmem [thread:$0]  %s3960_s3, 8192, %s45_s15, [#allocation5], %s3724_s1, %s3724_s1, %s3725_s23  }
  0x44   :  { %s3726_s26 = smov [#allocation9]   ;;  %s3690_s8 = scalar_lea.hbm %s3963_s6, 16 }
  0x45   :  { %s69_s28 = sshll.u32 %s3726_s26, 4  ;;  %p3691_p4 = scmp.ne.s32.totalorder %s3963_s6, %s3690_s8  ;;  %s70_s28 = int_to_ptr.vmem [resolvable:$true] %s69_s28 }
  0x46   :  { %p3694_p5 = scmp.lt.u32.totalorder %s3690_s8, %s3963_s6 }
  0x48   :  { %p3696_p6 = pnand %p3694_p5, %p3691_p4 }
  0x4a   :  { %3699 = shalt.err (!%p3696_p6)
}
  0x4b   :  { %s3700_s27 = scalar_lea.vmem %s70_s28, 16  ;;  %s3704_s3 = scalar_lea.vmem %s70_s28, 32 }
  0x4c   :  { %p3701_p7 = scmp.ne.s32.totalorder %s70_s28, %s3700_s27  ;;  %p3705_p8 = scmp.lt.s32.totalorder %s70_s28, %s70_s28 }
  0x4d   :  { %p3706_p9 = scmp.lt.s32.totalorder %s3704_s3, %s3700_s27 }
  0x4f   :  { %p3707_p10 = por %p3706_p9, %p3705_p8 }
  0x51   :  { %p3708_p11 = pnand %p3707_p10, %p3701_p7 }
  0x53   :  { %3711 = shalt.err (!%p3708_p11)
}
  0x54   :  { %72 = dma.hbm_to_vmem [thread:$0]  %s3963_s6, 16, %s70_s28, [#allocation8]  }
  0x55   :  { %3712 = dma.done.wait [#allocation3], 32768  }
  0x56   :  { %3713 = vsyncadd [#allocation3], 4294934528 }
  0x57   :  { %3714 = dma.done.wait [#allocation5], 8256  }
  0x58   :  { %3715 = vsyncadd [#allocation5], 4294959040 }
  0x59   :  { %3716 = dma.done.wait [#allocation8], 48  }
  0x5a   :  { %3717 = vsyncadd [#allocation8], 4294967248  ;;  %v3104_v0 = vld [vmem:[#allocation2 + $0x4] ss:$16 sps:$4 sm:$0xff]   ;;  %v3108_v2 = vld [vmem:[#allocation2] ss:$16 sps:$4 sm:$0xff]   ;;  %v97_v38 = vlaneseq }
  0x5b   :  { %v3106_v1 = vld [vmem:[#allocation2 + $0x204] ss:$16 sps:$4 sm:$0xff]   ;;  %1701 = vmatprep.subr.bf16.mxu1 %v3104_v0  ;;  %v3109_v3 = vld [vmem:[#allocation2 + $0x200] ss:$16 sps:$4 sm:$0xff]   ;;  %v3727_v36 = vmov 1983009808  }
  0x5c   :  { %1742 = vmatprep.subr.bf16.mxu0 %v3106_v1  ;;  %v3110_v4 = vld [vmem:[#allocation2 + $0x24] ss:$16 sps:$4 sm:$0xff]   ;;  %1702 = vmatpush1.bf16.msra.mxu1 %v3108_v2  ;;  %v3114_v6 = vld [vmem:[#allocation2 + $0x20] ss:$16 sps:$4 sm:$0xff]   ;;  %v95_v37 = vunpack.c.l.s4 %v3727_v36  ;;  %v3828_v43 = vshrl.u32 %v97_v38, 7  ;;  %vm2694_vm0 = vcmask 66560  }
  0x5d   :  { %1743 = vmatpush1.bf16.msra.mxu0 %v3109_v3  ;;  %v3112_v5 = vld [vmem:[#allocation2 + $0x224] ss:$16 sps:$4 sm:$0xff]   ;;  %1703 = vmatprep.subr.bf16.mxu1 %v3110_v4  ;;  %v3115_v7 = vld [vmem:[#allocation2 + $0x220] ss:$16 sps:$4 sm:$0xff]  }
  0x5e   :  { %1744 = vmatprep.subr.bf16.mxu0 %v3112_v5  ;;  %v3116_v8 = vld [vmem:[#allocation2 + $0x44] ss:$16 sps:$4 sm:$0xff]   ;;  %v3120_v10 = vld [vmem:[#allocation2 + $0x40] ss:$16 sps:$4 sm:$0xff]   ;;  %v96_v42 = vunpack.c.0.s8 %v95_v37  ;;  %v3236_v37 = vld [vmem:[#allocation2 + $0xac] ss:$16 sps:$4 sm:$0xff]  }
  0x5f   :  { %v3118_v9 = vld [vmem:[#allocation2 + $0x244] ss:$16 sps:$4 sm:$0xff]   ;;  %v3121_v11 = vld [vmem:[#allocation2 + $0x240] ss:$16 sps:$4 sm:$0xff]  }
  0x60   :  { %1704 = vmatpush1.bf16.msra.mxu1 %v3114_v6  ;;  %v3122_v12 = vld [vmem:[#allocation2 + $0x64] ss:$16 sps:$4 sm:$0xff]   ;;  %v3126_v14 = vld [vmem:[#allocation2 + $0x60] ss:$16 sps:$4 sm:$0xff]   ;;  %v3831_v49 = vsub.s32 %v96_v42, %v3828_v43  ;;  %v3850_v42 = vld [vmem:[%s3957_s0 + $0x8] sm:$0xff] }
  0x61   :  { %1745 = vmatpush1.bf16.msra.mxu0 %v3115_v7  ;;  %1705 = vmatprep.subr.bf16.mxu1 %v3116_v8  ;;  %v3124_v13 = vld [vmem:[#allocation2 + $0x264] ss:$16 sps:$4 sm:$0xff]   ;;  %v3127_v15 = vld [vmem:[#allocation2 + $0x260] ss:$16 sps:$4 sm:$0xff]  }
  0x62   :  { %1746 = vmatprep.subr.bf16.mxu0 %v3118_v9  ;;  %v3128_v16 = vld [vmem:[#allocation2 + $0x84] ss:$16 sps:$4 sm:$0xff]   ;;  %v3132_v18 = vld [vmem:[#allocation2 + $0x80] ss:$16 sps:$4 sm:$0xff]  }
  0x63   :  { %v3130_v17 = vld [vmem:[#allocation2 + $0x284] ss:$16 sps:$4 sm:$0xff]   ;;  %v3133_v19 = vld [vmem:[#allocation2 + $0x280] ss:$16 sps:$4 sm:$0xff]  }
  0x64   :  { %1706 = vmatpush1.bf16.msra.mxu1 %v3120_v10  ;;  %v3134_v20 = vld [vmem:[#allocation2 + $0xa4] ss:$16 sps:$4 sm:$0xff]   ;;  %v3138_v22 = vld [vmem:[#allocation2 + $0xa0] ss:$16 sps:$4 sm:$0xff]  }
  0x65   :  { %1747 = vmatpush1.bf16.msra.mxu0 %v3121_v11  ;;  %1707 = vmatprep.subr.bf16.mxu1 %v3122_v12  ;;  %v3136_v21 = vld [vmem:[#allocation2 + $0x2a4] ss:$16 sps:$4 sm:$0xff]   ;;  %v3139_v23 = vld [vmem:[#allocation2 + $0x2a0] ss:$16 sps:$4 sm:$0xff]  }
  0x66   :  { %1748 = vmatprep.subr.bf16.mxu0 %v3124_v13  ;;  %v3140_v24 = vld [vmem:[#allocation2 + $0xc4] ss:$16 sps:$4 sm:$0xff]   ;;  %v3144_v26 = vld [vmem:[#allocation2 + $0xc0] ss:$16 sps:$4 sm:$0xff]  }
  0x67   :  { %v3142_v25 = vld [vmem:[#allocation2 + $0x2c4] ss:$16 sps:$4 sm:$0xff]   ;;  %v3145_v27 = vld [vmem:[#allocation2 + $0x2c0] ss:$16 sps:$4 sm:$0xff]  }
  0x68   :  { %1708 = vmatpush1.bf16.msra.mxu1 %v3126_v14  ;;  %v3146_v28 = vld [vmem:[#allocation2 + $0xe4] ss:$16 sps:$4 sm:$0xff]   ;;  %v3150_v30 = vld [vmem:[#allocation2 + $0xe0] ss:$16 sps:$4 sm:$0xff]  }
  0x69   :  { %1749 = vmatpush1.bf16.msra.mxu0 %v3127_v15  ;;  %1709 = vmatprep.subr.bf16.mxu1 %v3128_v16  ;;  %v3148_v29 = vld [vmem:[#allocation2 + $0x2e4] ss:$16 sps:$4 sm:$0xff]   ;;  %v3151_v31 = vld [vmem:[#allocation2 + $0x2e0] ss:$16 sps:$4 sm:$0xff]   ;;  %v3206_v15 = vld [vmem:[#allocation2 + $0xc] ss:$16 sps:$4 sm:$0xff]  }
  0x6a   :  { %1750 = vmatprep.subr.bf16.mxu0 %v3130_v17  ;;  %v3152_v32 = vld [vmem:[#allocation2 + $0x104] ss:$16 sps:$4 sm:$0xff]   ;;  %v3156_v34 = vld [vmem:[#allocation2 + $0x100] ss:$16 sps:$4 sm:$0xff]  }
  0x6b   :  { %v3154_v33 = vld [vmem:[#allocation2 + $0x304] ss:$16 sps:$4 sm:$0xff]   ;;  %v3157_v35 = vld [vmem:[#allocation2 + $0x300] ss:$16 sps:$4 sm:$0xff]  }
  0x6c   :  { %1710 = vmatpush1.bf16.msra.mxu1 %v3132_v18  ;;  %v3158_v39 = vld [vmem:[#allocation2 + $0x124] ss:$16 sps:$4 sm:$0xff]   ;;  %v3162_v41 = vld [vmem:[#allocation2 + $0x120] ss:$16 sps:$4 sm:$0xff]  }
  0x6d   :  { %1751 = vmatpush1.bf16.msra.mxu0 %v3133_v19  ;;  %1711 = vmatprep.subr.bf16.mxu1 %v3134_v20  ;;  %v3160_v40 = vld [vmem:[#allocation2 + $0x324] ss:$16 sps:$4 sm:$0xff]   ;;  %v3163_v44 = vld [vmem:[#allocation2 + $0x320] ss:$16 sps:$4 sm:$0xff]   ;;  %v3204_v19 = vld [vmem:[#allocation2 + $0x8] ss:$16 sps:$4 sm:$0xff]  }
  0x6e   :  { %1752 = vmatprep.subr.bf16.mxu0 %v3136_v21  ;;  %v3164_v45 = vld [vmem:[#allocation2 + $0x144] ss:$16 sps:$4 sm:$0xff]   ;;  %v3168_v47 = vld [vmem:[#allocation2 + $0x140] ss:$16 sps:$4 sm:$0xff]   ;;  %v3212_v21 = vld [vmem:[#allocation2 + $0x2c] ss:$16 sps:$4 sm:$0xff]  }
  0x6f   :  { %v3166_v46 = vld [vmem:[#allocation2 + $0x344] ss:$16 sps:$4 sm:$0xff]   ;;  %v3169_v48 = vld [vmem:[#allocation2 + $0x340] ss:$16 sps:$4 sm:$0xff]  }
  0x70   :  { %1712 = vmatpush1.bf16.msra.mxu1 %v3138_v22  ;;  %v3170_v50 = vld [vmem:[#allocation2 + $0x164] ss:$16 sps:$4 sm:$0xff]   ;;  %v3174_v53 = vld [vmem:[#allocation2 + $0x160] ss:$16 sps:$4 sm:$0xff]  }
  0x71   :  { %1753 = vmatpush1.bf16.msra.mxu0 %v3139_v23  ;;  %1713 = vmatprep.subr.bf16.mxu1 %v3140_v24  ;;  %v3172_v51 = vld [vmem:[#allocation2 + $0x364] ss:$16 sps:$4 sm:$0xff]   ;;  %v3175_v56 = vld [vmem:[#allocation2 + $0x360] ss:$16 sps:$4 sm:$0xff]   ;;  %v3210_v23 = vld [vmem:[#allocation2 + $0x28] ss:$16 sps:$4 sm:$0xff]  }
  0x72   :  { %1754 = vmatprep.subr.bf16.mxu0 %v3142_v25  ;;  %v89_v52 = vld [vmem:[%s3957_s0] sm:$0xff]  ;;  %v3218_v25 = vld [vmem:[#allocation2 + $0x4c] ss:$16 sps:$4 sm:$0xff]  }
  0x73   :  { %v100_v54 = vrot.slane %v89_v52, %v3831_v49  ;;  %v93_v55 = vcombine.high %v89_v52, %v89_v52  ;;  %v3176_v57 = vld [vmem:[#allocation2 + $0x184] ss:$16 sps:$4 sm:$0xff]   ;;  %v3180_v61 = vld [vmem:[#allocation2 + $0x180] ss:$16 sps:$4 sm:$0xff]  }
  0x74   :  { %1714 = vmatpush1.bf16.msra.mxu1 %v3144_v26  ;;  %v3178_v58 = vld [vmem:[#allocation2 + $0x384] ss:$16 sps:$4 sm:$0xff]   ;;  %v3181_v0 = vld [vmem:[#allocation2 + $0x380] ss:$16 sps:$4 sm:$0xff]  }
  0x75   :  { %1755 = vmatpush1.bf16.msra.mxu0 %v3145_v27  ;;  %1715 = vmatprep.subr.bf16.mxu1 %v3146_v28  ;;  %v108_v59 = vcombine.high %v100_v54, %v100_v54  ;;  %v107_v60 = vrot.slane %v93_v55, %v3831_v49  ;;  %v3182_v1 = vld [vmem:[#allocation2 + $0x1a4] ss:$16 sps:$4 sm:$0xff]   ;;  %v3186_v4 = vld [vmem:[#allocation2 + $0x1a0] ss:$16 sps:$4 sm:$0xff]   ;;  %v3841_v16 = vpack.c.bf16 %v100_v54, %v100_v54  ;;  %v3216_v27 = vld [vmem:[#allocation2 + $0x48] ss:$16 sps:$4 sm:$0xff]  }
  0x76   :  { %1756 = vmatprep.subr.bf16.mxu0 %v3148_v29  ;;  %v3184_v2 = vld [vmem:[#allocation2 + $0x3a4] ss:$16 sps:$4 sm:$0xff]   ;;  %v3187_v5 = vld [vmem:[#allocation2 + $0x3a0] ss:$16 sps:$4 sm:$0xff]   ;;  %v3224_v29 = vld [vmem:[#allocation2 + $0x6c] ss:$16 sps:$4 sm:$0xff]  }
  0x77   :  { %v136_v62 = vpack.c.bf16 %v108_v59, %v108_v59  ;;  %v109_v63 = vcombine.high %v107_v60, %v107_v60  ;;  %v3188_v6 = vld [vmem:[#allocation2 + $0x1c4] ss:$16 sps:$4 sm:$0xff]   ;;  %v3192_v8 = vld [vmem:[#allocation2 + $0x1c0] ss:$16 sps:$4 sm:$0xff]   ;;  %v3843_v18 = vpack.c.bf16 %v107_v60, %v107_v60  ;;  %v3254_v55 = vld [vmem:[#allocation2 + $0x10c] ss:$16 sps:$4 sm:$0xff]  }
  0x78   :  { %1716 = vmatpush1.bf16.msra.mxu1 %v3150_v30  ;;  %v3190_v7 = vld [vmem:[#allocation2 + $0x3c4] ss:$16 sps:$4 sm:$0xff]   ;;  %v3193_v9 = vld [vmem:[#allocation2 + $0x3c0] ss:$16 sps:$4 sm:$0xff]   ;;  %v3260_v59 = vld [vmem:[#allocation2 + $0x12c] ss:$16 sps:$4 sm:$0xff]  }
  0x79   :  { %1757 = vmatpush1.bf16.msra.mxu0 %v3151_v31  ;;  %1717 = vmatprep.subr.bf16.mxu1 %v3152_v32  ;;  %v3838_v3 = vpack.c.bf16 %v109_v63, %v109_v63  ;;  %v3194_v10 = vld [vmem:[#allocation2 + $0x1e4] ss:$16 sps:$4 sm:$0xff]   ;;  %v3198_v12 = vld [vmem:[#allocation2 + $0x1e0] ss:$16 sps:$4 sm:$0xff]   ;;  %v3222_v31 = vld [vmem:[#allocation2 + $0x68] ss:$16 sps:$4 sm:$0xff]  }
  0x7a   :  { %1758 = vmatprep.subr.bf16.mxu0 %v3154_v33  ;;  %1733 = vmatprep.mubr.bf16.mxu1 %v136_v62  ;;  %v3196_v11 = vld [vmem:[#allocation2 + $0x3e4] ss:$16 sps:$4 sm:$0xff]   ;;  %v3199_v13 = vld [vmem:[#allocation2 + $0x3e0] ss:$16 sps:$4 sm:$0xff]   ;;  %v3230_v33 = vld [vmem:[#allocation2 + $0x8c] ss:$16 sps:$4 sm:$0xff]  }
  0x7b   :  { %1774 = vmatprep.mubr.bf16.mxu0 %v3838_v3  ;;  %v3203_v14 = vld [vmem:[#allocation2 + $0x404] ss:$16 sps:$4 sm:$0xff]   ;;  %v3201_v17 = vld [vmem:[#allocation2 + $0x400] ss:$16 sps:$4 sm:$0xff]   ;;  %v3266_v63 = vld [vmem:[#allocation2 + $0x14c] ss:$16 sps:$4 sm:$0xff]  }
  0x7c   :  { %1718 = vmatpush1.bf16.msra.mxu1 %v3156_v34  ;;  %v3209_v20 = vld [vmem:[#allocation2 + $0x424] ss:$16 sps:$4 sm:$0xff]   ;;  %v3207_v22 = vld [vmem:[#allocation2 + $0x420] ss:$16 sps:$4 sm:$0xff]  }
  0x7d   :  { %1759 = vmatpush1.bf16.msra.mxu0 %v3157_v35  ;;  %1719 = vmatprep.subr.bf16.mxu1 %v3158_v39  ;;  %v3215_v24 = vld [vmem:[#allocation2 + $0x444] ss:$16 sps:$4 sm:$0xff]   ;;  %v3213_v26 = vld [vmem:[#allocation2 + $0x440] ss:$16 sps:$4 sm:$0xff]   ;;  %v3228_v35 = vld [vmem:[#allocation2 + $0x88] ss:$16 sps:$4 sm:$0xff]  }
  0x7e   :  { %1760 = vmatprep.subr.bf16.mxu0 %v3160_v40  ;;  %v3221_v28 = vld [vmem:[#allocation2 + $0x464] ss:$16 sps:$4 sm:$0xff]   ;;  %v3219_v30 = vld [vmem:[#allocation2 + $0x460] ss:$16 sps:$4 sm:$0xff]   ;;  %v3234_v39 = vld [vmem:[#allocation2 + $0xa8] ss:$16 sps:$4 sm:$0xff]  }
  0x7f   :  { %v3227_v32 = vld [vmem:[#allocation2 + $0x484] ss:$16 sps:$4 sm:$0xff]   ;;  %v3225_v34 = vld [vmem:[#allocation2 + $0x480] ss:$16 sps:$4 sm:$0xff]  }
  0x80   :  { %1720 = vmatpush1.bf16.msra.mxu1 %v3162_v41  ;;  %v3233_v36 = vld [vmem:[#allocation2 + $0x4a4] ss:$16 sps:$4 sm:$0xff]   ;;  %v3231_v38 = vld [vmem:[#allocation2 + $0x4a0] ss:$16 sps:$4 sm:$0xff]   ;;  %v3242_v41 = vld [vmem:[#allocation2 + $0xcc] ss:$16 sps:$4 sm:$0xff]  }
  0x81   :  { %1761 = vmatpush1.bf16.msra.mxu0 %v3163_v44  ;;  %1721 = vmatprep.subr.bf16.mxu1 %v3164_v45  ;;  %v3239_v40 = vld [vmem:[#allocation2 + $0x4c4] ss:$16 sps:$4 sm:$0xff]   ;;  %v3854_v44 = vrot.slane %v3850_v42, %v3831_v49  ;;  %v3237_v45 = vld [vmem:[#allocation2 + $0x4c0] ss:$16 sps:$4 sm:$0xff]  }
  0x82   :  { %1762 = vmatprep.subr.bf16.mxu0 %v3166_v46  ;;  %v3240_v46 = vld [vmem:[#allocation2 + $0xc8] ss:$16 sps:$4 sm:$0xff]   ;;  %v3243_v52 = vld [vmem:[#allocation2 + $0x4e0] ss:$16 sps:$4 sm:$0xff]   ;;  %v3251_v54 = vld [vmem:[#allocation2 + $0x504] ss:$16 sps:$4 sm:$0xff]  }
  0x83   :  { %v3255_v60 = vld [vmem:[#allocation2 + $0x520] ss:$16 sps:$4 sm:$0xff]  }
  0x84   :  { %1722 = vmatpush1.bf16.msra.mxu1 %v3168_v47  ;;  %v125_v47 = vcombine.high %v3854_v44, %v3854_v44 }
  0x85   :  { %1763 = vmatpush1.bf16.msra.mxu0 %v3169_v48  ;;  %1723 = vmatprep.subr.bf16.mxu1 %v3170_v50  ;;  %v3245_v48 = vld [vmem:[#allocation2 + $0x4e4] ss:$16 sps:$4 sm:$0xff]   ;;  %v3248_v50 = vld [vmem:[#allocation2 + $0xec] ss:$16 sps:$4 sm:$0xff]  }
  0x86   :  { %1764 = vmatprep.subr.bf16.mxu0 %v3172_v51  ;;  %v3858_v51 = vpack.c.bf16 %v125_v47, %v125_v47  ;;  %v3321_v47 = vld [vmem:[#allocation2 + $0x680] ss:$16 sps:$4 sm:$0xff]  }
  0x88   :  { %1724 = vmatpush1.bf16.msra.mxu1 %v3174_v53  ;;  %v3246_v53 = vld [vmem:[#allocation2 + $0xe8] ss:$16 sps:$4 sm:$0xff]  }
  0x89   :  { %1765 = vmatpush1.bf16.msra.mxu0 %v3175_v56  ;;  %1725 = vmatprep.subr.bf16.mxu1 %v3176_v57  ;;  %v3249_v56 = vld [vmem:[#allocation2 + $0x500] ss:$16 sps:$4 sm:$0xff]   ;;  %v3252_v57 = vld [vmem:[#allocation2 + $0x108] ss:$16 sps:$4 sm:$0xff]  }
  0x8a   :  { %1766 = vmatprep.subr.bf16.mxu0 %v3178_v58  ;;  %v3257_v58 = vld [vmem:[#allocation2 + $0x524] ss:$16 sps:$4 sm:$0xff]  }
  0x8c   :  { %1726 = vmatpush1.bf16.msra.mxu1 %v3180_v61  ;;  %v3258_v61 = vld [vmem:[#allocation2 + $0x128] ss:$16 sps:$4 sm:$0xff]  }
  0x8d   :  { %1767 = vmatpush1.bf16.msra.mxu0 %v3181_v0  ;;  %1727 = vmatprep.subr.bf16.mxu1 %v3182_v1  ;;  %v3261_v0 = vld [vmem:[#allocation2 + $0x540] ss:$16 sps:$4 sm:$0xff]   ;;  %v3264_v1 = vld [vmem:[#allocation2 + $0x148] ss:$16 sps:$4 sm:$0xff]  }
  0x8e   :  { %1768 = vmatprep.subr.bf16.mxu0 %v3184_v2  ;;  %v3269_v2 = vld [vmem:[#allocation2 + $0x564] ss:$16 sps:$4 sm:$0xff]  }
  0x90   :  { %1728 = vmatpush1.bf16.msra.mxu1 %v3186_v4  ;;  %v3272_v4 = vld [vmem:[#allocation2 + $0x16c] ss:$16 sps:$4 sm:$0xff]  }
  0x91   :  { %1769 = vmatpush1.bf16.msra.mxu0 %v3187_v5  ;;  %1729 = vmatprep.subr.bf16.mxu1 %v3188_v6  ;;  %v3267_v5 = vld [vmem:[#allocation2 + $0x560] ss:$16 sps:$4 sm:$0xff]   ;;  %v3270_v6 = vld [vmem:[#allocation2 + $0x168] ss:$16 sps:$4 sm:$0xff]  }
  0x92   :  { %1770 = vmatprep.subr.bf16.mxu0 %v3190_v7  ;;  %v3275_v7 = vld [vmem:[#allocation2 + $0x584] ss:$16 sps:$4 sm:$0xff]  }
  0x94   :  { %1730 = vmatpush1.bf16.msra.mxu1 %v3192_v8  ;;  %v3278_v8 = vld [vmem:[#allocation2 + $0x18c] ss:$16 sps:$4 sm:$0xff]  }
  0x95   :  { %1771 = vmatpush1.bf16.msra.mxu0 %v3193_v9  ;;  %1731 = vmatprep.subr.bf16.mxu1 %v3194_v10  ;;  %v3273_v9 = vld [vmem:[#allocation2 + $0x580] ss:$16 sps:$4 sm:$0xff]   ;;  %v3276_v10 = vld [vmem:[#allocation2 + $0x188] ss:$16 sps:$4 sm:$0xff]  }
  0x96   :  { %1772 = vmatprep.subr.bf16.mxu0 %v3196_v11  ;;  %v3281_v11 = vld [vmem:[#allocation2 + $0x5a4] ss:$16 sps:$4 sm:$0xff]  }
  0x98   :  { %1732 = vmatpush1.bf16.msra.mxu1 %v3198_v12  ;;  %v3284_v12 = vld [vmem:[#allocation2 + $0x1ac] ss:$16 sps:$4 sm:$0xff]  }
  0x99   :  { %1773 = vmatpush1.bf16.msra.mxu0 %v3199_v13  ;;  %1865 = vmatprep.subr.bf16.mxu1 %v3206_v15  ;;  %v3279_v13 = vld [vmem:[#allocation2 + $0x5a0] ss:$16 sps:$4 sm:$0xff]   ;;  %v3287_v15 = vld [vmem:[#allocation2 + $0x5c4] ss:$16 sps:$4 sm:$0xff]  }
  0x9a   :  { %1783 = vmatprep.subr.bf16.mxu0 %v3203_v14  ;;  %v3282_v14 = vld [vmem:[#allocation2 + $0x1a8] ss:$16 sps:$4 sm:$0xff]  }
  0x9b   :  { %1734 = vmatmul.mubr.bf16.vlgmr.msra.gmra.mrb[0].mxu1 %v3841_v16 }
  0x9c   :  { %1775 = vmatmul.mubr.bf16.vlgmr.msra.gmra.mrb[0].mxu0 %v3843_v18  ;;  %1866 = vmatpush1.bf16.msra.mxu1 %v3204_v19  ;;  %v110_v19 = vcombine.high %v3850_v42, %v3850_v42  ;;  %v3315_v42 = vld [vmem:[#allocation2 + $0x660] ss:$16 sps:$4 sm:$0xff]  }
  0x9d   :  { %1784 = vmatpush1.bf16.msra.mxu0 %v3201_v17  ;;  %1867 = vmatprep.subr.bf16.mxu1 %v3212_v21  ;;  %v3290_v17 = vld [vmem:[#allocation2 + $0x1cc] ss:$16 sps:$4 sm:$0xff]   ;;  %v3288_v21 = vld [vmem:[#allocation2 + $0x1c8] ss:$16 sps:$4 sm:$0xff]  }
  0x9e   :  { %1785 = vmatprep.subr.bf16.mxu0 %v3209_v20  ;;  %1897 = vmatprep.mubr.bf16.mxu1 %v136_v62  ;;  %v3263_v62 = vld [vmem:[#allocation2 + $0x544] ss:$16 sps:$4 sm:$0xff]   ;;  %v3285_v20 = vld [vmem:[#allocation2 + $0x5c0] ss:$16 sps:$4 sm:$0xff]  }
  0x9f   :  { %1815 = vmatprep.mubr.bf16.mxu0 %v3858_v51 }
  0xa0   :  { %1868 = vmatpush1.bf16.msra.mxu1 %v3210_v23  ;;  %v3296_v23 = vld [vmem:[#allocation2 + $0x1ec] ss:$16 sps:$4 sm:$0xff]  }
  0xa1   :  { %1786 = vmatpush1.bf16.msra.mxu0 %v3207_v22  ;;  %1869 = vmatprep.subr.bf16.mxu1 %v3218_v25  ;;  %v3293_v22 = vld [vmem:[#allocation2 + $0x5e4] ss:$16 sps:$4 sm:$0xff]   ;;  %v3291_v25 = vld [vmem:[#allocation2 + $0x5e0] ss:$16 sps:$4 sm:$0xff]  }
  0xa2   :  { %1787 = vmatprep.subr.bf16.mxu0 %v3215_v24  ;;  %v3864_v24 = vrot.slane %v110_v19, %v3831_v49  ;;  %v3300_v49 = vld [vmem:[#allocation2 + $0x208] ss:$16 sps:$4 sm:$0xff]   ;;  %v3369_v19 = vld [vmem:[#allocation2 + $0x780] ss:$16 sps:$4 sm:$0xff]  }
  0xa4   :  { %1870 = vmatpush1.bf16.msra.mxu1 %v3216_v27  ;;  %v3299_v27 = vld [vmem:[#allocation2 + $0x604] ss:$16 sps:$4 sm:$0xff]  }
  0xa5   :  { %1788 = vmatpush1.bf16.msra.mxu0 %v3213_v26  ;;  %1871 = vmatprep.subr.bf16.mxu1 %v3224_v29  ;;  %v3294_v26 = vld [vmem:[#allocation2 + $0x1e8] ss:$16 sps:$4 sm:$0xff]   ;;  %v126_v29 = vcombine.high %v3864_v24, %v3864_v24 }
  0xa6   :  { %1789 = vmatprep.subr.bf16.mxu0 %v3221_v28  ;;  %v3302_v28 = vld [vmem:[#allocation2 + $0x20c] ss:$16 sps:$4 sm:$0xff]  }
  0xa8   :  { %1872 = vmatpush1.bf16.msra.mxu1 %v3222_v31  ;;  %v3297_v31 = vld [vmem:[#allocation2 + $0x600] ss:$16 sps:$4 sm:$0xff]  }
  0xa9   :  { %1790 = vmatpush1.bf16.msra.mxu0 %v3219_v30  ;;  %1873 = vmatprep.subr.bf16.mxu1 %v3230_v33  ;;  %v3870_v30 = vpack.c.bf16 %v3854_v44, %v3854_v44  ;;  %v3308_v33 = vld [vmem:[#allocation2 + $0x22c] ss:$16 sps:$4 sm:$0xff]   ;;  %v3318_v44 = vld [vmem:[#allocation2 + $0x268] ss:$16 sps:$4 sm:$0xff]  }
  0xaa   :  { %1791 = vmatprep.subr.bf16.mxu0 %v3227_v32  ;;  %v3305_v32 = vld [vmem:[#allocation2 + $0x624] ss:$16 sps:$4 sm:$0xff]  }
  0xac   :  { %1874 = vmatpush1.bf16.msra.mxu1 %v3228_v35  ;;  %v3303_v35 = vld [vmem:[#allocation2 + $0x620] ss:$16 sps:$4 sm:$0xff]  }
  0xad   :  { %1792 = vmatpush1.bf16.msra.mxu0 %v3225_v34  ;;  %1875 = vmatprep.subr.bf16.mxu1 %v3236_v37  ;;  %v3872_v34 = vpack.c.bf16 %v126_v29, %v126_v29  ;;  %v3311_v37 = vld [vmem:[#allocation2 + $0x644] ss:$16 sps:$4 sm:$0xff]   ;;  %v3384_v29 = vld [vmem:[#allocation2 + $0x3c8] ss:$16 sps:$4 sm:$0xff]  }
  0xae   :  { %1793 = vmatprep.subr.bf16.mxu0 %v3233_v36  ;;  %v3306_v36 = vld [vmem:[#allocation2 + $0x228] ss:$16 sps:$4 sm:$0xff]  }
  0xb0   :  { %1876 = vmatpush1.bf16.msra.mxu1 %v3234_v39  ;;  %v3309_v39 = vld [vmem:[#allocation2 + $0x640] ss:$16 sps:$4 sm:$0xff]  }
  0xb1   :  { %1794 = vmatpush1.bf16.msra.mxu0 %v3231_v38  ;;  %1877 = vmatprep.subr.bf16.mxu1 %v3242_v41  ;;  %v3314_v38 = vld [vmem:[#allocation2 + $0x24c] ss:$16 sps:$4 sm:$0xff]   ;;  %v3317_v41 = vld [vmem:[#allocation2 + $0x664] ss:$16 sps:$4 sm:$0xff]  }
  0xb2   :  { %1795 = vmatprep.subr.bf16.mxu0 %v3239_v40  ;;  %v3312_v40 = vld [vmem:[#allocation2 + $0x248] ss:$16 sps:$4 sm:$0xff]  }
  0xb4   :  { %1878 = vmatpush1.bf16.msra.mxu1 %v3240_v46  ;;  %v3326_v46 = vld [vmem:[#allocation2 + $0x28c] ss:$16 sps:$4 sm:$0xff]  }
  0xb5   :  { %1796 = vmatpush1.bf16.msra.mxu0 %v3237_v45  ;;  %1879 = vmatprep.subr.bf16.mxu1 %v3248_v50  ;;  %v3323_v45 = vld [vmem:[#allocation2 + $0x684] ss:$16 sps:$4 sm:$0xff]   ;;  %v3332_v50 = vld [vmem:[#allocation2 + $0x2ac] ss:$16 sps:$4 sm:$0xff]  }
  0xb6   :  { %1797 = vmatprep.subr.bf16.mxu0 %v3245_v48  ;;  %v3329_v48 = vld [vmem:[#allocation2 + $0x6a4] ss:$16 sps:$4 sm:$0xff]  }
  0xb8   :  { %1880 = vmatpush1.bf16.msra.mxu1 %v3246_v53  ;;  %v3330_v53 = vld [vmem:[#allocation2 + $0x2a8] ss:$16 sps:$4 sm:$0xff]  }
  0xb9   :  { %1798 = vmatpush1.bf16.msra.mxu0 %v3243_v52  ;;  %1881 = vmatprep.subr.bf16.mxu1 %v3254_v55  ;;  %v3327_v52 = vld [vmem:[#allocation2 + $0x6a0] ss:$16 sps:$4 sm:$0xff]   ;;  %v3338_v55 = vld [vmem:[#allocation2 + $0x2cc] ss:$16 sps:$4 sm:$0xff]  }
  0xba   :  { %1799 = vmatprep.subr.bf16.mxu0 %v3251_v54  ;;  %v3335_v54 = vld [vmem:[#allocation2 + $0x6c4] ss:$16 sps:$4 sm:$0xff]  }
  0xbc   :  { %1882 = vmatpush1.bf16.msra.mxu1 %v3252_v57  ;;  %v3336_v57 = vld [vmem:[#allocation2 + $0x2c8] ss:$16 sps:$4 sm:$0xff]  }
  0xbd   :  { %1800 = vmatpush1.bf16.msra.mxu0 %v3249_v56  ;;  %1883 = vmatprep.subr.bf16.mxu1 %v3260_v59  ;;  %v3333_v56 = vld [vmem:[#allocation2 + $0x6c0] ss:$16 sps:$4 sm:$0xff]   ;;  %v3344_v59 = vld [vmem:[#allocation2 + $0x2ec] ss:$16 sps:$4 sm:$0xff]  }
  0xbe   :  { %1801 = vmatprep.subr.bf16.mxu0 %v3257_v58  ;;  %v3341_v58 = vld [vmem:[#allocation2 + $0x6e4] ss:$16 sps:$4 sm:$0xff]  }
  0xc0   :  { %1884 = vmatpush1.bf16.msra.mxu1 %v3258_v61  ;;  %v3342_v61 = vld [vmem:[#allocation2 + $0x2e8] ss:$16 sps:$4 sm:$0xff]  }
  0xc1   :  { %1802 = vmatpush1.bf16.msra.mxu0 %v3255_v60  ;;  %1885 = vmatprep.subr.bf16.mxu1 %v3266_v63  ;;  %v3339_v60 = vld [vmem:[#allocation2 + $0x6e0] ss:$16 sps:$4 sm:$0xff]   ;;  %v3350_v63 = vld [vmem:[#allocation2 + $0x30c] ss:$16 sps:$4 sm:$0xff]  }
  0xc2   :  { %1803 = vmatprep.subr.bf16.mxu0 %v3263_v62  ;;  %v3347_v62 = vld [vmem:[#allocation2 + $0x704] ss:$16 sps:$4 sm:$0xff]  }
  0xc4   :  { %1886 = vmatpush1.bf16.msra.mxu1 %v3264_v1  ;;  %v3348_v1 = vld [vmem:[#allocation2 + $0x308] ss:$16 sps:$4 sm:$0xff]  }
  0xc5   :  { %1804 = vmatpush1.bf16.msra.mxu0 %v3261_v0  ;;  %1887 = vmatprep.subr.bf16.mxu1 %v3272_v4  ;;  %v3345_v0 = vld [vmem:[#allocation2 + $0x700] ss:$16 sps:$4 sm:$0xff]   ;;  %v3356_v4 = vld [vmem:[#allocation2 + $0x32c] ss:$16 sps:$4 sm:$0xff]  }
  0xc6   :  { %1805 = vmatprep.subr.bf16.mxu0 %v3269_v2  ;;  %v3353_v2 = vld [vmem:[#allocation2 + $0x724] ss:$16 sps:$4 sm:$0xff]  }
  0xc8   :  { %1888 = vmatpush1.bf16.msra.mxu1 %v3270_v6  ;;  %v3354_v6 = vld [vmem:[#allocation2 + $0x328] ss:$16 sps:$4 sm:$0xff]  }
  0xc9   :  { %1806 = vmatpush1.bf16.msra.mxu0 %v3267_v5  ;;  %1889 = vmatprep.subr.bf16.mxu1 %v3278_v8  ;;  %v3351_v5 = vld [vmem:[#allocation2 + $0x720] ss:$16 sps:$4 sm:$0xff]   ;;  %v3362_v8 = vld [vmem:[#allocation2 + $0x34c] ss:$16 sps:$4 sm:$0xff]  }
  0xca   :  { %1807 = vmatprep.subr.bf16.mxu0 %v3275_v7  ;;  %v3359_v7 = vld [vmem:[#allocation2 + $0x744] ss:$16 sps:$4 sm:$0xff]  }
  0xcc   :  { %1890 = vmatpush1.bf16.msra.mxu1 %v3276_v10  ;;  %v3360_v10 = vld [vmem:[#allocation2 + $0x348] ss:$16 sps:$4 sm:$0xff]  }
  0xcd   :  { %1808 = vmatpush1.bf16.msra.mxu0 %v3273_v9  ;;  %1891 = vmatprep.subr.bf16.mxu1 %v3284_v12  ;;  %v3357_v9 = vld [vmem:[#allocation2 + $0x740] ss:$16 sps:$4 sm:$0xff]   ;;  %v3368_v12 = vld [vmem:[#allocation2 + $0x36c] ss:$16 sps:$4 sm:$0xff]  }
  0xce   :  { %1809 = vmatprep.subr.bf16.mxu0 %v3281_v11  ;;  %v3365_v11 = vld [vmem:[#allocation2 + $0x764] ss:$16 sps:$4 sm:$0xff]  }
  0xd0   :  { %1892 = vmatpush1.bf16.msra.mxu1 %v3282_v14  ;;  %v3366_v14 = vld [vmem:[#allocation2 + $0x368] ss:$16 sps:$4 sm:$0xff]  }
  0xd1   :  { %1810 = vmatpush1.bf16.msra.mxu0 %v3279_v13  ;;  %1893 = vmatprep.subr.bf16.mxu1 %v3290_v17  ;;  %v3363_v13 = vld [vmem:[#allocation2 + $0x760] ss:$16 sps:$4 sm:$0xff]   ;;  %v3374_v17 = vld [vmem:[#allocation2 + $0x38c] ss:$16 sps:$4 sm:$0xff]  }
  0xd2   :  { %1811 = vmatprep.subr.bf16.mxu0 %v3287_v15  ;;  %v3371_v15 = vld [vmem:[#allocation2 + $0x784] ss:$16 sps:$4 sm:$0xff]  }
  0xd4   :  { %1894 = vmatpush1.bf16.msra.mxu1 %v3288_v21  ;;  %v3377_v21 = vld [vmem:[#allocation2 + $0x7a4] ss:$16 sps:$4 sm:$0xff]  }
  0xd5   :  { %1812 = vmatpush1.bf16.msra.mxu0 %v3285_v20  ;;  %1895 = vmatprep.subr.bf16.mxu1 %v3296_v23  ;;  %v3372_v20 = vld [vmem:[#allocation2 + $0x388] ss:$16 sps:$4 sm:$0xff]   ;;  %v3375_v23 = vld [vmem:[#allocation2 + $0x7a0] ss:$16 sps:$4 sm:$0xff]  }
  0xd6   :  { %1813 = vmatprep.subr.bf16.mxu0 %v3293_v22  ;;  %v3380_v22 = vld [vmem:[#allocation2 + $0x3ac] ss:$16 sps:$4 sm:$0xff]  }
  0xd8   :  { %1896 = vmatpush1.bf16.msra.mxu1 %v3294_v26  ;;  %v3383_v26 = vld [vmem:[#allocation2 + $0x7c4] ss:$16 sps:$4 sm:$0xff]  }
  0xd9   :  { %1814 = vmatpush1.bf16.msra.mxu0 %v3291_v25  ;;  %1906 = vmatprep.subr.bf16.mxu1 %v3302_v28  ;;  %v3378_v25 = vld [vmem:[#allocation2 + $0x3a8] ss:$16 sps:$4 sm:$0xff]   ;;  %v3381_v28 = vld [vmem:[#allocation2 + $0x7c0] ss:$16 sps:$4 sm:$0xff]  }
  0xda   :  { %1824 = vmatprep.subr.bf16.mxu0 %v3299_v27  ;;  %v3386_v27 = vld [vmem:[#allocation2 + $0x3cc] ss:$16 sps:$4 sm:$0xff]  }
  0xdb   :  { %1898 = vmatmul.mubr.bf16.vlgmr.msra.gmra.mrb[4].mxu1 %v3841_v16  ;;  %v3320_v16 = vld [vmem:[#allocation2 + $0x26c] ss:$16 sps:$4 sm:$0xff]  }
  0xdc   :  { %1816 = vmatmul.mubr.bf16.vlgmr.msra.gmra.mrb[0].mxu0 %v3870_v30  ;;  %1907 = vmatpush1.bf16.msra.mxu1 %v3300_v49  ;;  %v3392_v49 = vld [vmem:[#allocation2 + $0x3ec] ss:$16 sps:$4 sm:$0xff]  }
  0xdd   :  { %1825 = vmatpush1.bf16.msra.mxu0 %v3297_v31  ;;  %1908 = vmatprep.subr.bf16.mxu1 %v3308_v33  ;;  %v3389_v31 = vld [vmem:[#allocation2 + $0x7e4] ss:$16 sps:$4 sm:$0xff]   ;;  %v3390_v33 = vld [vmem:[#allocation2 + $0x3e8] ss:$16 sps:$4 sm:$0xff]  }
  0xde   :  { %1826 = vmatprep.subr.bf16.mxu0 %v3305_v32  ;;  %1856 = vmatprep.mubr.bf16.mxu0 %v3872_v34  ;;  %v3387_v32 = vld [vmem:[#allocation2 + $0x7e0] ss:$16 sps:$4 sm:$0xff]  }
  0xdf   :  { %1938 = vmatprep.mubr.bf16.mxu1 %v3838_v3  ;;  %v3324_v3 = vld [vmem:[#allocation2 + $0x288] ss:$16 sps:$4 sm:$0xff]  }
  0xe0   :  { %1909 = vmatpush1.bf16.msra.mxu1 %v3306_v36  ;;  %v3394_v36 = vld [vmem:[#allocation2 + $0x408] ss:$16 sps:$4 sm:$0xff]  }
  0xe1   :  { %1827 = vmatpush1.bf16.msra.mxu0 %v3303_v35  ;;  %1910 = vmatprep.subr.bf16.mxu1 %v3314_v38  ;;  %v3396_v35 = vld [vmem:[#allocation2 + $0x40c] ss:$16 sps:$4 sm:$0xff]  }
  0xe2   :  { %1828 = vmatprep.subr.bf16.mxu0 %v3311_v37  ;;  %v3880_v37 = vpack.c.bf16 %v3864_v24, %v3864_v24  ;;  %v3399_v38 = vld [vmem:[#allocation2 + $0x42c] ss:$16 sps:$4 sm:$0xff]  }
  0xe3   :  { %v3493_v24 = vld [vmem:[#allocation6 + $0x10] ss:$8 sps:$4 sm:$0xff]  }
  0xe4   :  { %1911 = vmatpush1.bf16.msra.mxu1 %v3312_v40  ;;  %v3492_v40 = vld [vmem:[#allocation6 + $0x4] ss:$8 sps:$4 sm:$0xff]  }
  0xe5   :  { %1829 = vmatpush1.bf16.msra.mxu0 %v3309_v39  ;;  %1912 = vmatprep.subr.bf16.mxu1 %v3320_v16  ;;  %v3490_v39 = vld [vmem:[#allocation6] ss:$8 sps:$4 sm:$0xff]   ;;  %v3495_v16 = vld [vmem:[#allocation6 + $0x14] ss:$8 sps:$4 sm:$0xff]  }
  0xe6   :  { %1830 = vmatprep.subr.bf16.mxu0 %v3317_v41  ;;  %v3397_v41 = vld [vmem:[#allocation2 + $0x428] ss:$16 sps:$4 sm:$0xff]  }
  0xe8   :  { %1913 = vmatpush1.bf16.msra.mxu1 %v3318_v44  ;;  %v3498_v44 = vld [vmem:[#allocation6 + $0x24] ss:$8 sps:$4 sm:$0xff]  }
  0xe9   :  { %1831 = vmatpush1.bf16.msra.mxu0 %v3315_v42  ;;  %1914 = vmatprep.subr.bf16.mxu1 %v3326_v46  ;;  %v3402_v42 = vld [vmem:[#allocation2 + $0x44c] ss:$16 sps:$4 sm:$0xff]  }
  0xea   :  { %1832 = vmatprep.subr.bf16.mxu0 %v3323_v45  ;;  %v3400_v45 = vld [vmem:[#allocation2 + $0x448] ss:$16 sps:$4 sm:$0xff]   ;;  %v3405_v46 = vld [vmem:[#allocation2 + $0x46c] ss:$16 sps:$4 sm:$0xff]  }
  0xec   :  { %1915 = vmatpush1.bf16.msra.mxu1 %v3324_v3  ;;  %v3408_v3 = vld [vmem:[#allocation2 + $0x48c] ss:$16 sps:$4 sm:$0xff]  }
  0xed   :  { %1833 = vmatpush1.bf16.msra.mxu0 %v3321_v47  ;;  %1916 = vmatprep.subr.bf16.mxu1 %v3332_v50  ;;  %v3403_v47 = vld [vmem:[#allocation2 + $0x468] ss:$16 sps:$4 sm:$0xff]  }
  0xee   :  { %1834 = vmatprep.subr.bf16.mxu0 %v3329_v48  ;;  %v3501_v48 = vld [vmem:[#allocation6 + $0x34] ss:$8 sps:$4 sm:$0xff]   ;;  %v3504_v50 = vld [vmem:[#allocation6 + $0x44] ss:$8 sps:$4 sm:$0xff]  }
  0xf0   :  { %1917 = vmatpush1.bf16.msra.mxu1 %v3330_v53  ;;  %v3411_v53 = vld [vmem:[#allocation2 + $0x4ac] ss:$16 sps:$4 sm:$0xff]  }
  0xf1   :  { %1835 = vmatpush1.bf16.msra.mxu0 %v3327_v52  ;;  %1918 = vmatprep.subr.bf16.mxu1 %v3338_v55  ;;  %v3406_v52 = vld [vmem:[#allocation2 + $0x488] ss:$16 sps:$4 sm:$0xff]  }
  0xf2   :  { %1836 = vmatprep.subr.bf16.mxu0 %v3335_v54  ;;  %v3502_v54 = vld [vmem:[#allocation6 + $0x40] ss:$8 sps:$4 sm:$0xff]   ;;  %v3507_v55 = vld [vmem:[#allocation6 + $0x54] ss:$8 sps:$4 sm:$0xff]  }
  0xf4   :  { %1919 = vmatpush1.bf16.msra.mxu1 %v3336_v57  ;;  %v3414_v57 = vld [vmem:[#allocation2 + $0x4cc] ss:$16 sps:$4 sm:$0xff]  }
  0xf5   :  { %1837 = vmatpush1.bf16.msra.mxu0 %v3333_v56  ;;  %1920 = vmatprep.subr.bf16.mxu1 %v3344_v59  ;;  %v3409_v56 = vld [vmem:[#allocation2 + $0x4a8] ss:$16 sps:$4 sm:$0xff]  }
  0xf6   :  { %1838 = vmatprep.subr.bf16.mxu0 %v3341_v58  ;;  %v3505_v58 = vld [vmem:[#allocation6 + $0x50] ss:$8 sps:$4 sm:$0xff]   ;;  %v3510_v59 = vld [vmem:[#allocation6 + $0x64] ss:$8 sps:$4 sm:$0xff]  }
  0xf8   :  { %1921 = vmatpush1.bf16.msra.mxu1 %v3342_v61  ;;  %v3417_v61 = vld [vmem:[#allocation2 + $0x4ec] ss:$16 sps:$4 sm:$0xff]  }
  0xf9   :  { %1839 = vmatpush1.bf16.msra.mxu0 %v3339_v60  ;;  %1922 = vmatprep.subr.bf16.mxu1 %v3350_v63  ;;  %v3412_v60 = vld [vmem:[#allocation2 + $0x4c8] ss:$16 sps:$4 sm:$0xff]  }
  0xfa   :  { %1840 = vmatprep.subr.bf16.mxu0 %v3347_v62  ;;  %v3508_v62 = vld [vmem:[#allocation6 + $0x60] ss:$8 sps:$4 sm:$0xff]   ;;  %v3513_v63 = vld [vmem:[#allocation6 + $0x74] ss:$8 sps:$4 sm:$0xff]  }
  0xfc   :  { %1923 = vmatpush1.bf16.msra.mxu1 %v3348_v1  ;;  %v3420_v1 = vld [vmem:[#allocation2 + $0x50c] ss:$16 sps:$4 sm:$0xff]  }
  0xfd   :  { %1841 = vmatpush1.bf16.msra.mxu0 %v3345_v0  ;;  %1924 = vmatprep.subr.bf16.mxu1 %v3356_v4  ;;  %v3415_v0 = vld [vmem:[#allocation2 + $0x4e8] ss:$16 sps:$4 sm:$0xff]  }
  0xfe   :  { %1842 = vmatprep.subr.bf16.mxu0 %v3353_v2  ;;  %v3511_v2 = vld [vmem:[#allocation6 + $0x70] ss:$8 sps:$4 sm:$0xff]   ;;  %v3516_v4 = vld [vmem:[#allocation6 + $0x84] ss:$8 sps:$4 sm:$0xff]  }
 0x100   :  { %1925 = vmatpush1.bf16.msra.mxu1 %v3354_v6  ;;  %v3423_v6 = vld [vmem:[#allocation2 + $0x52c] ss:$16 sps:$4 sm:$0xff]  }
 0x101   :  { %1843 = vmatpush1.bf16.msra.mxu0 %v3351_v5  ;;  %1926 = vmatprep.subr.bf16.mxu1 %v3362_v8  ;;  %v3418_v5 = vld [vmem:[#allocation2 + $0x508] ss:$16 sps:$4 sm:$0xff]  }
 0x102   :  { %1844 = vmatprep.subr.bf16.mxu0 %v3359_v7  ;;  %v3514_v7 = vld [vmem:[#allocation6 + $0x80] ss:$8 sps:$4 sm:$0xff]   ;;  %v3519_v8 = vld [vmem:[#allocation6 + $0x94] ss:$8 sps:$4 sm:$0xff]  }
 0x104   :  { %1927 = vmatpush1.bf16.msra.mxu1 %v3360_v10  ;;  %v3426_v10 = vld [vmem:[#allocation2 + $0x54c] ss:$16 sps:$4 sm:$0xff]  }
 0x105   :  { %1845 = vmatpush1.bf16.msra.mxu0 %v3357_v9  ;;  %1928 = vmatprep.subr.bf16.mxu1 %v3368_v12  ;;  %v3421_v9 = vld [vmem:[#allocation2 + $0x528] ss:$16 sps:$4 sm:$0xff]  }
 0x106   :  { %1846 = vmatprep.subr.bf16.mxu0 %v3365_v11  ;;  %v3517_v11 = vld [vmem:[#allocation6 + $0x90] ss:$8 sps:$4 sm:$0xff]   ;;  %v3522_v12 = vld [vmem:[#allocation6 + $0xa4] ss:$8 sps:$4 sm:$0xff]  }
 0x108   :  { %1929 = vmatpush1.bf16.msra.mxu1 %v3366_v14  ;;  %v3429_v14 = vld [vmem:[#allocation2 + $0x56c] ss:$16 sps:$4 sm:$0xff]  }
 0x109   :  { %1847 = vmatpush1.bf16.msra.mxu0 %v3363_v13  ;;  %1930 = vmatprep.subr.bf16.mxu1 %v3374_v17  ;;  %v3424_v13 = vld [vmem:[#allocation2 + $0x548] ss:$16 sps:$4 sm:$0xff]  }
 0x10a   :  { %1848 = vmatprep.subr.bf16.mxu0 %v3371_v15  ;;  %v3520_v15 = vld [vmem:[#allocation6 + $0xa0] ss:$8 sps:$4 sm:$0xff]   ;;  %v3525_v17 = vld [vmem:[#allocation6 + $0xb4] ss:$8 sps:$4 sm:$0xff]  }
 0x10c   :  { %1931 = vmatpush1.bf16.msra.mxu1 %v3372_v20  ;;  %v3432_v20 = vld [vmem:[#allocation2 + $0x58c] ss:$16 sps:$4 sm:$0xff]  }
 0x10d   :  { %1849 = vmatpush1.bf16.msra.mxu0 %v3369_v19  ;;  %1932 = vmatprep.subr.bf16.mxu1 %v3380_v22  ;;  %v3427_v19 = vld [vmem:[#allocation2 + $0x568] ss:$16 sps:$4 sm:$0xff]  }
 0x10e   :  { %1850 = vmatprep.subr.bf16.mxu0 %v3377_v21  ;;  %v3523_v21 = vld [vmem:[#allocation6 + $0xb0] ss:$8 sps:$4 sm:$0xff]   ;;  %v3528_v22 = vld [vmem:[#allocation6 + $0xc4] ss:$8 sps:$4 sm:$0xff]  }
 0x110   :  { %1933 = vmatpush1.bf16.msra.mxu1 %v3378_v25  ;;  %v3435_v25 = vld [vmem:[#allocation2 + $0x5ac] ss:$16 sps:$4 sm:$0xff]  }
 0x111   :  { %1851 = vmatpush1.bf16.msra.mxu0 %v3375_v23  ;;  %1934 = vmatprep.subr.bf16.mxu1 %v3386_v27  ;;  %v3430_v23 = vld [vmem:[#allocation2 + $0x588] ss:$16 sps:$4 sm:$0xff]  }
 0x112   :  { %1852 = vmatprep.subr.bf16.mxu0 %v3383_v26  ;;  %v3526_v26 = vld [vmem:[#allocation6 + $0xc0] ss:$8 sps:$4 sm:$0xff]   ;;  %v3531_v27 = vld [vmem:[#allocation6 + $0xd4] ss:$8 sps:$4 sm:$0xff]  }
 0x114   :  { %1935 = vmatpush1.bf16.msra.mxu1 %v3384_v29  ;;  %v3438_v29 = vld [vmem:[#allocation2 + $0x5cc] ss:$16 sps:$4 sm:$0xff]  }
 0x115   :  { %1853 = vmatpush1.bf16.msra.mxu0 %v3381_v28  ;;  %1936 = vmatprep.subr.bf16.mxu1 %v3392_v49  ;;  %v3433_v28 = vld [vmem:[#allocation2 + $0x5a8] ss:$16 sps:$4 sm:$0xff]  }
 0x116   :  { %1854 = vmatprep.subr.bf16.mxu0 %v3389_v31  ;;  %v3529_v31 = vld [vmem:[#allocation6 + $0xd0] ss:$8 sps:$4 sm:$0xff]   ;;  %v3436_v49 = vld [vmem:[#allocation2 + $0x5c8] ss:$16 sps:$4 sm:$0xff]  }
 0x118   :  { %1937 = vmatpush1.bf16.msra.mxu1 %v3390_v33  ;;  %v3439_v33 = vld [vmem:[#allocation2 + $0x5e8] ss:$16 sps:$4 sm:$0xff]  }
 0x119   :  { %1855 = vmatpush1.bf16.msra.mxu0 %v3387_v32  ;;  %1947 = vmatprep.subr.bf16.mxu1 %v3396_v35  ;;  %v3441_v32 = vld [vmem:[#allocation2 + $0x5ec] ss:$16 sps:$4 sm:$0xff]  }
 0x11a   :  { %2433 = vmatprep.subr.bf16.mxu0 %v3492_v40  ;;  %v3444_v35 = vld [vmem:[#allocation2 + $0x60c] ss:$16 sps:$4 sm:$0xff]  }
 0x11b   :  { %1939 = vmatmul.mubr.bf16.vlgmr.msra.gmra.mrb[4].mxu1 %v3843_v18  ;;  %v3496_v18 = vld [vmem:[#allocation6 + $0x20] ss:$8 sps:$4 sm:$0xff]  }
 0x11c   :  { %1857 = vmatmul.mubr.bf16.vlgmr.msra.gmra.mrb[0].mxu0 %v3880_v37  ;;  %1948 = vmatpush1.bf16.msra.mxu1 %v3394_v36  ;;  %v3442_v36 = vld [vmem:[#allocation2 + $0x608] ss:$16 sps:$4 sm:$0xff]   ;;  %v3450_v40 = vld [vmem:[#allocation2 + $0x64c] ss:$16 sps:$4 sm:$0xff]  }
 0x11d   :  { %1979 = vmatprep.mubr.bf16.mxu1 %v3858_v51  ;;  %1949 = vmatprep.subr.bf16.mxu1 %v3399_v38  ;;  %v3499_v51 = vld [vmem:[#allocation6 + $0x30] ss:$8 sps:$4 sm:$0xff]  }
 0x11e   :  { %2434 = vmatpush1.bf16.msra.mxu0 %v3490_v39  ;;  %v3447_v38 = vld [vmem:[#allocation2 + $0x62c] ss:$16 sps:$4 sm:$0xff]   ;;  %v3445_v39 = vld [vmem:[#allocation2 + $0x628] ss:$16 sps:$4 sm:$0xff]  }
 0x11f   :  { %2435 = vmatprep.subr.bf16.mxu0 %v3495_v16  ;;  %v3453_v16 = vld [vmem:[#allocation2 + $0x66c] ss:$16 sps:$4 sm:$0xff]  }
 0x120   :  { %1950 = vmatpush1.bf16.msra.mxu1 %v3397_v41  ;;  %v3448_v41 = vld [vmem:[#allocation2 + $0x648] ss:$16 sps:$4 sm:$0xff]  }
 0x121   :  { %1951 = vmatprep.subr.bf16.mxu1 %v3402_v42  ;;  %v3451_v42 = vld [vmem:[#allocation2 + $0x668] ss:$16 sps:$4 sm:$0xff]  }
 0x122   :  { %2436 = vmatpush1.bf16.msra.mxu0 %v3493_v24  ;;  %v3456_v24 = vld [vmem:[#allocation2 + $0x68c] ss:$16 sps:$4 sm:$0xff]  }
 0x123   :  { %2437 = vmatprep.subr.bf16.mxu0 %v3498_v44  ;;  %v3454_v44 = vld [vmem:[#allocation2 + $0x688] ss:$16 sps:$4 sm:$0xff]  }
 0x124   :  { %1952 = vmatpush1.bf16.msra.mxu1 %v3400_v45  ;;  %v3459_v45 = vld [vmem:[#allocation2 + $0x6ac] ss:$16 sps:$4 sm:$0xff]  }
 0x125   :  { %1953 = vmatprep.subr.bf16.mxu1 %v3405_v46  ;;  %v3462_v46 = vld [vmem:[#allocation2 + $0x6cc] ss:$16 sps:$4 sm:$0xff]  }
 0x126   :  { %2438 = vmatpush1.bf16.msra.mxu0 %v3496_v18  ;;  %v3534_v18 = vld [vmem:[#allocation6 + $0xe4] ss:$8 sps:$4 sm:$0xff]  }
 0x127   :  { %2439 = vmatprep.subr.bf16.mxu0 %v3501_v48 }
 0x128   :  { %1954 = vmatpush1.bf16.msra.mxu1 %v3403_v47  ;;  %v3532_v47 = vld [vmem:[#allocation6 + $0xe0] ss:$8 sps:$4 sm:$0xff]  }
 0x129   :  { %1955 = vmatprep.subr.bf16.mxu1 %v3408_v3 }
 0x12a   :  { %2440 = vmatpush1.bf16.msra.mxu0 %v3499_v51  ;;  %v3460_v51 = vld [vmem:[#allocation2 + $0x6c8] ss:$16 sps:$4 sm:$0xff]  }
 0x12b   :  { %2441 = vmatprep.subr.bf16.mxu0 %v3504_v50 }
 0x12c   :  { %1956 = vmatpush1.bf16.msra.mxu1 %v3406_v52  ;;  %v3465_v52 = vld [vmem:[#allocation2 + $0x6ec] ss:$16 sps:$4 sm:$0xff]  }
 0x12d   :  { %1957 = vmatprep.subr.bf16.mxu1 %v3411_v53  ;;  %v3537_v53 = vld [vmem:[#allocation6 + $0xf4] ss:$8 sps:$4 sm:$0xff]  }
 0x12e   :  { %2442 = vmatpush1.bf16.msra.mxu0 %v3502_v54  ;;  %v3535_v54 = vld [vmem:[#allocation6 + $0xf0] ss:$8 sps:$4 sm:$0xff]  }
 0x12f   :  { %2443 = vmatprep.subr.bf16.mxu0 %v3507_v55  ;;  %v3463_v55 = vld [vmem:[#allocation2 + $0x6e8] ss:$16 sps:$4 sm:$0xff]  }
 0x130   :  { %1958 = vmatpush1.bf16.msra.mxu1 %v3409_v56  ;;  %v3468_v56 = vld [vmem:[#allocation2 + $0x70c] ss:$16 sps:$4 sm:$0xff]  }
 0x131   :  { %1959 = vmatprep.subr.bf16.mxu1 %v3414_v57  ;;  %v3540_v57 = vld [vmem:[#allocation6 + $0x104] ss:$8 sps:$4 sm:$0xff]  }
 0x132   :  { %2444 = vmatpush1.bf16.msra.mxu0 %v3505_v58  ;;  %v3466_v58 = vld [vmem:[#allocation2 + $0x708] ss:$16 sps:$4 sm:$0xff]  }
 0x133   :  { %2445 = vmatprep.subr.bf16.mxu0 %v3510_v59  ;;  %v3471_v59 = vld [vmem:[#allocation2 + $0x72c] ss:$16 sps:$4 sm:$0xff]  }
 0x134   :  { %1960 = vmatpush1.bf16.msra.mxu1 %v3412_v60  ;;  %v3469_v60 = vld [vmem:[#allocation2 + $0x728] ss:$16 sps:$4 sm:$0xff]  }
 0x135   :  { %1961 = vmatprep.subr.bf16.mxu1 %v3417_v61  ;;  %v3474_v61 = vld [vmem:[#allocation2 + $0x74c] ss:$16 sps:$4 sm:$0xff]  }
 0x136   :  { %2446 = vmatpush1.bf16.msra.mxu0 %v3508_v62  ;;  %v3472_v62 = vld [vmem:[#allocation2 + $0x748] ss:$16 sps:$4 sm:$0xff]  }
 0x137   :  { %2447 = vmatprep.subr.bf16.mxu0 %v3513_v63  ;;  %v3477_v63 = vld [vmem:[#allocation2 + $0x76c] ss:$16 sps:$4 sm:$0xff]  }
 0x138   :  { %1962 = vmatpush1.bf16.msra.mxu1 %v3415_v0  ;;  %v3475_v0 = vld [vmem:[#allocation2 + $0x768] ss:$16 sps:$4 sm:$0xff]  }
 0x139   :  { %1963 = vmatprep.subr.bf16.mxu1 %v3420_v1  ;;  %v3480_v1 = vld [vmem:[#allocation2 + $0x78c] ss:$16 sps:$4 sm:$0xff]  }
 0x13a   :  { %2448 = vmatpush1.bf16.msra.mxu0 %v3511_v2  ;;  %v3478_v2 = vld [vmem:[#allocation2 + $0x788] ss:$16 sps:$4 sm:$0xff]  }
 0x13b   :  { %2449 = vmatprep.subr.bf16.mxu0 %v3516_v4  ;;  %v3483_v4 = vld [vmem:[#allocation2 + $0x7ac] ss:$16 sps:$4 sm:$0xff]  }
 0x13c   :  { %1964 = vmatpush1.bf16.msra.mxu1 %v3418_v5  ;;  %v3481_v5 = vld [vmem:[#allocation2 + $0x7a8] ss:$16 sps:$4 sm:$0xff]  }
 0x13d   :  { %1965 = vmatprep.subr.bf16.mxu1 %v3423_v6  ;;  %v3486_v6 = vld [vmem:[#allocation2 + $0x7cc] ss:$16 sps:$4 sm:$0xff]  }
 0x13e   :  { %2450 = vmatpush1.bf16.msra.mxu0 %v3514_v7  ;;  %v3484_v7 = vld [vmem:[#allocation2 + $0x7c8] ss:$16 sps:$4 sm:$0xff]  }
 0x13f   :  { %2451 = vmatprep.subr.bf16.mxu0 %v3519_v8  ;;  %v3489_v8 = vld [vmem:[#allocation2 + $0x7ec] ss:$16 sps:$4 sm:$0xff]  }
 0x140   :  { %1966 = vmatpush1.bf16.msra.mxu1 %v3421_v9  ;;  %v3487_v9 = vld [vmem:[#allocation2 + $0x7e8] ss:$16 sps:$4 sm:$0xff]  }
 0x141   :  { %1967 = vmatprep.subr.bf16.mxu1 %v3426_v10  ;;  %v403_v10 = vsub.s32 0, %v3828_v43 }
 0x142   :  { %2452 = vmatpush1.bf16.msra.mxu0 %v3517_v11  ;;  %v3889_v11 = vld [vmem:[#allocation4] sm:$0xf] }
 0x143   :  { %2453 = vmatprep.subr.bf16.mxu0 %v3522_v12  ;;  %v407_v12 = vsub.s32 1, %v3828_v43 }
 0x144   :  { %1968 = vmatpush1.bf16.msra.mxu1 %v3424_v13  ;;  %v404_v13 = vrot.slane %v3889_v11, %v403_v10 }
 0x145   :  { %1969 = vmatprep.subr.bf16.mxu1 %v3429_v14  ;;  %v408_v14 = vrot.slane %v3889_v11, %v407_v12 }
 0x146   :  { %2454 = vmatpush1.bf16.msra.mxu0 %v3520_v15 }
 0x147   :  { %2455 = vmatprep.subr.bf16.mxu0 %v3525_v17 }
 0x148   :  { %1970 = vmatpush1.bf16.msra.mxu1 %v3427_v19 }
 0x149   :  { %1971 = vmatprep.subr.bf16.mxu1 %v3432_v20 }
 0x14a   :  { %2456 = vmatpush1.bf16.msra.mxu0 %v3523_v21 }
 0x14b   :  { %2457 = vmatprep.subr.bf16.mxu0 %v3528_v22 }
 0x14c   :  { %1972 = vmatpush1.bf16.msra.mxu1 %v3430_v23 }
 0x14d   :  { %1973 = vmatprep.subr.bf16.mxu1 %v3435_v25 }
 0x14e   :  { %2458 = vmatpush1.bf16.msra.mxu0 %v3526_v26 }
 0x14f   :  { %2459 = vmatprep.subr.bf16.mxu0 %v3531_v27 }
 0x150   :  { %1974 = vmatpush1.bf16.msra.mxu1 %v3433_v28  ;;  %v3538_v28 = vld [vmem:[#allocation6 + $0x100] ss:$8 sps:$4 sm:$0xff]  }
 0x151   :  { %1975 = vmatprep.subr.bf16.mxu1 %v3438_v29 }
 0x152   :  { %2460 = vmatpush1.bf16.msra.mxu0 %v3529_v31  ;;  %v3543_v31 = vld [vmem:[#allocation6 + $0x114] ss:$8 sps:$4 sm:$0xff]  }
 0x153   :  { %2461 = vmatprep.subr.bf16.mxu0 %v3534_v18  ;;  %v3555_v18 = vld [vmem:[#allocation6 + $0x154] ss:$8 sps:$4 sm:$0xff]  }
 0x154   :  { %1976 = vmatpush1.bf16.msra.mxu1 %v3436_v49  ;;  %v3586_v49 = vld [vmem:[%s3962_s5 + $0x40] sm:$0xff]  }
 0x155   :  { %1977 = vmatprep.subr.bf16.mxu1 %v3441_v32  ;;  %v3587_v32 = vld [vmem:[%s3962_s5] sm:$0xff]  }
 0x156   :  { %2462 = vmatpush1.bf16.msra.mxu0 %v3532_v47  ;;  %v3596_v47 = vld [vmem:[%s3962_s5 + $0x68] sm:$0xff]  }
 0x157   :  { %2463 = vmatprep.subr.bf16.mxu0 %v3537_v53  ;;  %v3559_v53 = vld [vmem:[#allocation6 + $0x170] ss:$8 sps:$4 sm:$0xff]  }
 0x158   :  { %1978 = vmatpush1.bf16.msra.mxu1 %v3439_v33  ;;  %v3588_v33 = vld [vmem:[%s3962_s5 + $0x48] sm:$0xff]  }
 0x159   :  { %1988 = vmatprep.subr.bf16.mxu1 %v3444_v35  ;;  %v3541_v35 = vld [vmem:[#allocation6 + $0x110] ss:$8 sps:$4 sm:$0xff]  }
 0x15a   :  { %2464 = vmatpush1.bf16.msra.mxu0 %v3535_v54  ;;  %v3564_v54 = vld [vmem:[#allocation6 + $0x184] ss:$8 sps:$4 sm:$0xff]  }
 0x15b   :  { %1980 = vmatmul.mubr.bf16.vlgmr.msra.gmra.mrb[4].mxu1 %v3870_v30  ;;  %v3457_v30 = vld [vmem:[#allocation2 + $0x6a8] ss:$16 sps:$4 sm:$0xff]   ;;  %2474 = vmatprep.subr.bf16.mxu0 %v3540_v57  ;;  %v3565_v57 = vld [vmem:[#allocation6 + $0x190] ss:$8 sps:$4 sm:$0xff]  }
 0x15c   :  { %1989 = vmatpush1.bf16.msra.mxu1 %v3442_v36  ;;  %2020 = vmatprep.mubr.bf16.mxu1 %v3872_v34  ;;  %v3546_v36 = vld [vmem:[#allocation6 + $0x124] ss:$8 sps:$4 sm:$0xff]  }
 0x15d   :  { %1990 = vmatprep.subr.bf16.mxu1 %v3447_v38  ;;  %v3589_v38 = vld [vmem:[%s3962_s5 + $0x8] sm:$0xff]  }
 0x160   :  { %1991 = vmatpush1.bf16.msra.mxu1 %v3445_v39  ;;  %v3590_v39 = vld [vmem:[%s3962_s5 + $0x50] sm:$0xff]  }
 0x161   :  { %1992 = vmatprep.subr.bf16.mxu1 %v3450_v40  ;;  %v3544_v40 = vld [vmem:[#allocation6 + $0x120] ss:$8 sps:$4 sm:$0xff]  }
 0x164   :  { %1993 = vmatpush1.bf16.msra.mxu1 %v3448_v41  ;;  %v3549_v41 = vld [vmem:[#allocation6 + $0x134] ss:$8 sps:$4 sm:$0xff]  }
 0x165   :  { %1994 = vmatprep.subr.bf16.mxu1 %v3453_v16  ;;  %v3591_v16 = vld [vmem:[%s3962_s5 + $0x10] sm:$0xff]  }
 0x168   :  { %1995 = vmatpush1.bf16.msra.mxu1 %v3451_v42  ;;  %v3592_v42 = vld [vmem:[%s3962_s5 + $0x58] sm:$0xff]  }
 0x169   :  { %1996 = vmatprep.subr.bf16.mxu1 %v3456_v24  ;;  %v3547_v24 = vld [vmem:[#allocation6 + $0x130] ss:$8 sps:$4 sm:$0xff]  }
 0x16c   :  { %1997 = vmatpush1.bf16.msra.mxu1 %v3454_v44  ;;  %v3552_v44 = vld [vmem:[#allocation6 + $0x144] ss:$8 sps:$4 sm:$0xff]  }
 0x16d   :  { %1998 = vmatprep.subr.bf16.mxu1 %v3459_v45  ;;  %v3593_v45 = vld [vmem:[%s3962_s5 + $0x18] sm:$0xff]  }
 0x16e   :  { %v1735_v34 = vpop.f32.mrb[0].mxu1 }
 0x16f   :  { %v1737_v3 = vpop.f32.mrb[1].mxu1  ;;  %v1736_v15 = vadd.f32 %v1735_v34, %v404_v13  ;;  %v3595_v34 = vld [vmem:[%s3962_s5 + $0x20] sm:$0xff]  }
 0x170   :  { %v1739_v48 = vpop.f32.mrb[2].mxu1  ;;  %1999 = vmatpush1.bf16.msra.mxu1 %v3457_v30  ;;  %v1738_v17 = vadd.f32 %v1737_v3, %v408_v14  ;;  %v3594_v30 = vld [vmem:[%s3962_s5 + $0x60] sm:$0xff]   ;;  %v3553_v3 = vld [vmem:[#allocation6 + $0x150] ss:$8 sps:$4 sm:$0xff]  }
 0x171   :  { %v1740_v50 = vpop.f32.mrb[3].mxu1  ;;  %2000 = vmatprep.subr.bf16.mxu1 %v3462_v46  ;;  %v3550_v46 = vld [vmem:[#allocation6 + $0x140] ss:$8 sps:$4 sm:$0xff]   ;;  %v3558_v48 = vld [vmem:[#allocation6 + $0x164] ss:$8 sps:$4 sm:$0xff]  }
 0x172   :  { %v3556_v50 = vld [vmem:[#allocation6 + $0x160] ss:$8 sps:$4 sm:$0xff]  }
 0x174   :  { %2001 = vmatpush1.bf16.msra.mxu1 %v3460_v51  ;;  %v3597_v51 = vld [vmem:[%s3962_s5 + $0x28] sm:$0xff]  }
 0x175   :  { %2002 = vmatprep.subr.bf16.mxu1 %v3465_v52  ;;  %v3561_v52 = vld [vmem:[#allocation6 + $0x174] ss:$8 sps:$4 sm:$0xff]  }
 0x178   :  { %2003 = vmatpush1.bf16.msra.mxu1 %v3463_v55  ;;  %v3562_v55 = vld [vmem:[#allocation6 + $0x180] ss:$8 sps:$4 sm:$0xff]  }
 0x179   :  { %2004 = vmatprep.subr.bf16.mxu1 %v3468_v56  ;;  %v3567_v56 = vld [vmem:[#allocation6 + $0x194] ss:$8 sps:$4 sm:$0xff]  }
 0x17c   :  { %2005 = vmatpush1.bf16.msra.mxu1 %v3466_v58  ;;  %v3570_v58 = vld [vmem:[#allocation6 + $0x1a4] ss:$8 sps:$4 sm:$0xff]  }
 0x17d   :  { %2006 = vmatprep.subr.bf16.mxu1 %v3471_v59  ;;  %v3568_v59 = vld [vmem:[#allocation6 + $0x1a0] ss:$8 sps:$4 sm:$0xff]  }
 0x180   :  { %2007 = vmatpush1.bf16.msra.mxu1 %v3469_v60  ;;  %v3573_v60 = vld [vmem:[#allocation6 + $0x1b4] ss:$8 sps:$4 sm:$0xff]  }
 0x181   :  { %2008 = vmatprep.subr.bf16.mxu1 %v3474_v61  ;;  %v3571_v61 = vld [vmem:[#allocation6 + $0x1b0] ss:$8 sps:$4 sm:$0xff]  }
 0x184   :  { %2009 = vmatpush1.bf16.msra.mxu1 %v3472_v62  ;;  %v3576_v62 = vld [vmem:[#allocation6 + $0x1c4] ss:$8 sps:$4 sm:$0xff]  }
 0x185   :  { %2010 = vmatprep.subr.bf16.mxu1 %v3477_v63  ;;  %v3574_v63 = vld [vmem:[#allocation6 + $0x1c0] ss:$8 sps:$4 sm:$0xff]  }
 0x188   :  { %2011 = vmatpush1.bf16.msra.mxu1 %v3475_v0  ;;  %v3579_v0 = vld [vmem:[#allocation6 + $0x1d4] ss:$8 sps:$4 sm:$0xff]  }
 0x189   :  { %2012 = vmatprep.subr.bf16.mxu1 %v3480_v1  ;;  %v3577_v1 = vld [vmem:[#allocation6 + $0x1d0] ss:$8 sps:$4 sm:$0xff]  }
 0x18c   :  { %2013 = vmatpush1.bf16.msra.mxu1 %v3478_v2  ;;  %v3582_v2 = vld [vmem:[#allocation6 + $0x1e4] ss:$8 sps:$4 sm:$0xff]  }
 0x18d   :  { %2014 = vmatprep.subr.bf16.mxu1 %v3483_v4  ;;  %v3580_v4 = vld [vmem:[#allocation6 + $0x1e0] ss:$8 sps:$4 sm:$0xff]  }
 0x190   :  { %2015 = vmatpush1.bf16.msra.mxu1 %v3481_v5  ;;  %v3585_v5 = vld [vmem:[#allocation6 + $0x1f4] ss:$8 sps:$4 sm:$0xff]  }
 0x191   :  { %2016 = vmatprep.subr.bf16.mxu1 %v3486_v6  ;;  %v3583_v6 = vld [vmem:[#allocation6 + $0x1f0] ss:$8 sps:$4 sm:$0xff]  }
 0x194   :  { %2017 = vmatpush1.bf16.msra.mxu1 %v3484_v7  ;;  %v411_v7 = vsub.s32 2, %v3828_v43 }
 0x195   :  { %2018 = vmatprep.subr.bf16.mxu1 %v3489_v8  ;;  %v415_v8 = vsub.s32 3, %v3828_v43 }
 0x197   :  { %v416_v13 = vrot.slane %v3889_v11, %v415_v8 }
 0x198   :  { %2019 = vmatpush1.bf16.msra.mxu1 %v3487_v9  ;;  %v412_v9 = vrot.slane %v3889_v11, %v411_v7  ;;  %v3599_v11 = vld [vmem:[%s3962_s5 + $0x30] sm:$0xff]  }
 0x199   :  { %3040 = vmatprep.subr.bf16.mxu1 %v3586_v49 }
 0x19b   :  { %2021 = vmatmul.mubr.bf16.vlgmr.msra.gmra.mrb[4].mxu1 %v3880_v37 }
 0x19c   :  { %3041 = vmatpush3.bf16.msra.mxu1 %v3587_v32 }
 0x19d   :  { %3042 = vmatprep.subr.bf16.mxu1 %v3588_v33 }
 0x1a0   :  { %3043 = vmatpush3.bf16.msra.mxu1 %v3589_v38 }
 0x1a1   :  { %3044 = vmatprep.subr.bf16.mxu1 %v3590_v39 }
 0x1a4   :  { %3045 = vmatpush3.bf16.msra.mxu1 %v3591_v16 }
 0x1a5   :  { %3046 = vmatprep.subr.bf16.mxu1 %v3592_v42 }
 0x1a8   :  { %3047 = vmatpush3.bf16.msra.mxu1 %v3593_v45 }
 0x1a9   :  { %3048 = vmatprep.subr.bf16.mxu1 %v3594_v30 }
 0x1ac   :  { %3049 = vmatpush3.bf16.msra.mxu1 %v3595_v34 }
 0x1ad   :  { %3050 = vmatprep.subr.bf16.mxu1 %v3596_v47 }
 0x1b0   :  { %3051 = vmatpush3.bf16.msra.mxu1 %v3597_v51 }
 0x1ef   :  { %v1858_v19 = vpop.f32.mrb[0].mxu0 }
 0x1f0   :  { %v3063_v20 = vadd.f32 %v1858_v19, %v1736_v15  ;;  %v1860_v21 = vpop.f32.mrb[1].mxu0 }
 0x1f1   :  { %v3065_v37 = vadd.f32 %v1860_v21, %v1738_v17  ;;  %v1862_v22 = vpop.f32.mrb[2].mxu0 }
 0x1f2   :  { %v2029_v23 = vmax.f32 %v3063_v20, 0.0  ;;  %v1863_v25 = vpop.f32.mrb[3].mxu0 }
 0x1f3   :  { %v2030_v26 = vmax.f32 %v3065_v37, 0.0 }
 0x1f4   :  { %v2033_v29 = vpack.c.bf16 %v2029_v23, %v2029_v23 }
 0x1f5   :  { %v2034_v27 = vpack.c.bf16 %v2030_v26, %v2030_v26  ;;  %v3598_v26 = vld [vmem:[%s3962_s5 + $0x70] sm:$0xff]  }
 0x1f6   :  { %3052 = vmatprep.subr.bf16.mxu1 %v3598_v26 }
 0x1f7   :  { %2465 = vmatprep.mubr.bf16.mxu0 %v2034_v27  ;;  %3053 = vmatpush3.bf16.msra.mxu1 %v3599_v11  ;;  %v3600_v27 = vld [vmem:[%s3962_s5 + $0x78] sm:$0xff]  }
 0x1f8   :  { %2466 = vmatmul.mubr.bf16.vlgmr.msra.gmra.mrb[4].mxu0 %v2033_v29  ;;  %3054 = vmatprep.subr.bf16.mxu1 %v3600_v27  ;;  %v2101_v29 = vld [vmem:[#allocation7] sm:$0x3] }
 0x1f9   :  { %2475 = vmatpush1.bf16.msra.mxu0 %v3538_v28  ;;  %v3601_v28 = vld [vmem:[%s3962_s5 + $0x38] sm:$0xff]   ;;  %v2110_v49 = vrot.slane %v2101_v29, %v407_v12 }
 0x1fa   :  { %2476 = vmatprep.subr.bf16.mxu0 %v3543_v31  ;;  %v2106_v31 = vrot.slane %v2101_v29, %v403_v10 }
 0x1fb   :  { %3055 = vmatpush3.bf16.msra.mxu1 %v3601_v28 }
 0x1fd   :  { %2477 = vmatpush1.bf16.msra.mxu0 %v3541_v35 }
 0x1fe   :  { %2478 = vmatprep.subr.bf16.mxu0 %v3546_v36 }
 0x201   :  { %2479 = vmatpush1.bf16.msra.mxu0 %v3544_v40 }
 0x202   :  { %2480 = vmatprep.subr.bf16.mxu0 %v3549_v41 }
 0x205   :  { %2481 = vmatpush1.bf16.msra.mxu0 %v3547_v24 }
 0x206   :  { %2482 = vmatprep.subr.bf16.mxu0 %v3552_v44  ;;  %v3023_v44 = vld [vmem:[#allocation9] ss:$0 sm:$0xff] }
 0x209   :  { %2483 = vmatpush1.bf16.msra.mxu0 %v3550_v46 }
 0x20a   :  { %2484 = vmatprep.subr.bf16.mxu0 %v3555_v18 }
 0x20d   :  { %2485 = vmatpush1.bf16.msra.mxu0 %v3553_v3 }
 0x20e   :  { %2486 = vmatprep.subr.bf16.mxu0 %v3558_v48 }
 0x211   :  { %2487 = vmatpush1.bf16.msra.mxu0 %v3556_v50 }
 0x212   :  { %2488 = vmatprep.subr.bf16.mxu0 %v3561_v52 }
 0x215   :  { %2489 = vmatpush1.bf16.msra.mxu0 %v3559_v53 }
 0x216   :  { %2490 = vmatprep.subr.bf16.mxu0 %v3564_v54 }
 0x219   :  { %2491 = vmatpush1.bf16.msra.mxu0 %v3562_v55 }
 0x21a   :  { %2492 = vmatprep.subr.bf16.mxu0 %v3567_v56 }
 0x21d   :  { %2493 = vmatpush1.bf16.msra.mxu0 %v3565_v57 }
 0x21e   :  { %2494 = vmatprep.subr.bf16.mxu0 %v3570_v58 }
 0x221   :  { %2495 = vmatpush1.bf16.msra.mxu0 %v3568_v59 }
 0x222   :  { %2496 = vmatprep.subr.bf16.mxu0 %v3573_v60 }
 0x225   :  { %2497 = vmatpush1.bf16.msra.mxu0 %v3571_v61 }
 0x226   :  { %2498 = vmatprep.subr.bf16.mxu0 %v3576_v62 }
 0x229   :  { %2499 = vmatpush1.bf16.msra.mxu0 %v3574_v63 }
 0x22a   :  { %2500 = vmatprep.subr.bf16.mxu0 %v3579_v0 }
 0x22d   :  { %2501 = vmatpush1.bf16.msra.mxu0 %v3577_v1 }
 0x22e   :  { %2502 = vmatprep.subr.bf16.mxu0 %v3582_v2 }
 0x231   :  { %2503 = vmatpush1.bf16.msra.mxu0 %v3580_v4 }
 0x232   :  { %2504 = vmatprep.subr.bf16.mxu0 %v3585_v5 }
 0x235   :  { %2505 = vmatpush1.bf16.msra.mxu0 %v3583_v6 }
 0x26e   :  { %v2022_v14 = vpop.f32.mrb[4].mxu1 }
 0x26f   :  { %v3066_v15 = vadd.f32 %v2022_v14, %v412_v9  ;;  %v2024_v17 = vpop.f32.mrb[5].mxu1 }
 0x270   :  { %v3067_v19 = vadd.f32 %v2024_v17, %v416_v13  ;;  %v2026_v20 = vpop.f32.mrb[6].mxu1 }
 0x271   :  { %v2031_v21 = vmax.f32 %v3066_v15, 0.0  ;;  %v2027_v37 = vpop.f32.mrb[7].mxu1 }
 0x272   :  { %v2032_v22 = vmax.f32 %v3067_v19, 0.0 }
 0x273   :  { %v2035_v25 = vpack.c.bf16 %v2031_v21, %v2031_v21 }
 0x274   :  { %v2036_v23 = vpack.c.bf16 %v2032_v22, %v2032_v22 }
 0x276   :  { %2506 = vmatprep.mubr.bf16.mxu0 %v2036_v23 }
 0x277   :  { %2507 = vmatmul.mubr.bf16.vlgmr.msra.gmra.mrb[4].mxu0 %v2035_v25 }
 0x34a   :  { %v2508_v32 = vpop.f32.mrb[4].mxu0 }
 0x34b   :  { %v3068_v33 = vadd.f32 %v2508_v32, %v2106_v31  ;;  %v2510_v35 = vpop.f32.mrb[5].mxu0 }
 0x34c   :  { %v3069_v36 = vadd.f32 %v2510_v35, %v2110_v49  ;;  %v2512_v38 = vpop.f32.mrb[6].mxu0 }
 0x34d   :  { %v2515_v39 = vmax.f32 %v3068_v33, 0.0  ;;  %v2513_v40 = vpop.f32.mrb[7].mxu0 }
 0x34e   :  { %v2516_v41 = vmax.f32 %v3069_v36, 0.0 }
 0x34f   :  { %v2517_v42 = vpack.c.bf16 %v2515_v39, %v2515_v39 }
 0x350   :  { %v2518_v16 = vpack.c.bf16 %v2516_v41, %v2516_v41 }
 0x352   :  { %2686 = vmatprep.mubr.bf16.mxu1 %v2518_v16 }
 0x353   :  { %2687 = vmatmul.mubr.bf16.vlgmr.msra.gmra.mrb[8].mxu1 %v2517_v42 }
 0x426   :  { %v3056_v24 = vpop.f32.mrb[8].mxu1 }
 0x427   :  { %v3057_v45 = vpop.f32.mrb[9].mxu1 }
 0x428   :  { %v3058_v30 = vadd.f32 %v3057_v45, %v3056_v24  ;;  %v3059_v10 = vpop.f32.mrb[10].mxu1 }
 0x429   :  { %v3060_v43 = vpop.f32.mrb[11].mxu1 }
 0x42a   :  { %v2689_v12 = vadd.f32 %v3058_v30, %v3023_v44 }
 0x42c   :  { %2695 = vst.msk [vmem:[%s3964_s7] sm:$0x3] %vm2694_vm0, %v2689_v12 }
 0x42d   :  { %2700 = vsyncpa [#allocation3], 1 }
 0x42e   :  { %2701 = vsyncpa [#allocation5], 1 }
 0x42f   :  { %2702 = vsyncpa [#allocation8], 1 }

// kernel: pointnet_base_forward.11
= control target key start
LH: loop header
LB: loop body
LE: loop exit
PB: predicated region body
PF: predicated region fallthrough
CT: control target
= control target key end

     0   :  { %s4607_s30 = smov 0   ;;  %s4609_s10 = smov 0   ;;  %s6621_s0 = inlined_call_operand.vmem [shape: bf16[2,16,128], index: 0, kind: input, shape index: {}]   ;;  %s6622_s1 = inlined_call_operand.vmem [shape: f32[2,64,64], index: 1, kind: input, shape index: {}]   ;;  %s6623_s2 = inlined_call_operand.vmem [shape: bf16[64,64], index: 2, kind: input, shape index: {}]   ;;  %s6624_s3 = inlined_call_operand.vmem [shape: f32[1,64], index: 3, kind: input, shape index: {}]   ;;  %s6625_s4 = inlined_call_operand.vmem [shape: bf16[64,128], index: 4, kind: input, shape index: {}]   ;;  %s6626_s5 = inlined_call_operand.vmem [shape: f32[1,128], index: 5, kind: input, shape index: {}]   ;;  %s6627_s6 = inlined_call_operand.vmem [shape: bf16[1024,128], index: 6, kind: input, shape index: {}]   ;;  %s6628_s7 = inlined_call_operand.vmem [shape: f32[1024,1], index: 7, kind: input, shape index: {}]   ;;  %s6629_s8 = inlined_call_operand.vmem [shape: f32[2,16,128], index: 8, kind: output, shape index: {0}]   ;;  %s6630_s9 = inlined_call_operand.vmem [shape: f32[2,1024,16], index: 9, kind: output, shape index: {1}]  }
   0x1   :  { %s4611_s11 = smov 0  }
   0x2 LB: > { %s32_s12 = sadd.s32 1, %s4547_s10  ;;  %p3838_p0 = scmp.ge.s32.totalorder %s4551_s11, 1  ;;  %s4551_s11 = sphi %s4611_s11, %s20_s11   ;;  %s4547_s10 = sphi %s4609_s10, %s6906_s10   ;;  %s4543_s30 = sphi %s4607_s30, %s6905_s30  }
   0x3   : > { %p34_p1 = scmp.ge.s32.totalorder %s32_s12, 2  ;;  %p323_p2 = scmp.lt.s32.totalorder %s4551_s11, 3 }
   0x5   : > { %s6908_s12 = smov (%p34_p1, %s32_s12), 0  ;;  %p324_p3 = pnand %p3838_p0, %p323_p2 }
   0x7   : > { %327 = sbr.rel (%p324_p3) target bundleno = 1269 (0x4f5), region = 52 }
   0xe   : > { %p381_p4 = scmp.lt.s32.totalorder %s4543_s30, 1  ;;  %v2535_v0 = vld [vmem:[%s6628_s7] sm:$0xff]  ;;  %v4553_v1 = vmov 0   ;;  %v6631_v2 = vmov 0.0   ;;  %v2537_v3 = vld [vmem:[%s6628_s7 + $0x10] sm:$0xff]  ;;  %vm4555_vm0 = vmmov 0  }
   0xf   : > { %4454 = vset.pattern.permute.xlu1 %v4553_v1  ;;  %4455 = vset.pattern.permute.xlu0 %v4553_v1  ;;  %v2538_v5 = vld [vmem:[%s6628_s7 + $0x18] sm:$0xff]  ;;  %s4556_s27 = smov 64   ;;  %v2536_v9 = vld [vmem:[%s6628_s7 + $0x8] sm:$0xff]  ;;  %v2539_v16 = vld [vmem:[%s6628_s7 + $0x20] sm:$0xff]  ;;  %vm433_vm1 = vcmask 523264   ;;  %vm534_vm2 = vcmask 1048064  }
  0x10   : > { %s6910_s30 = smov (!%p381_p4, %s4543_s30), 1  ;;  %2665 = vperm.xlu1 %4454, %v2535_v0   ;;  %4094 = vmatprep.subr.bf16.mxu0 %v6631_v2  ;;  %v2540_v12 = vld [vmem:[%s6628_s7 + $0x28] sm:$0xff]  ;;  %v2542_v17 = vld [vmem:[%s6628_s7 + $0x38] sm:$0xff]  ;;  %v2541_v21 = vld [vmem:[%s6628_s7 + $0x30] sm:$0xff]  ;;  %vm3559_vm3 = vcmask 130048  }
  0x11   : > { %4102 = vmatprep.mubr.msk.bf16.mxu0 %vm4555_vm0, %v6631_v2  ;;  %4106 = vmatprep.subr.bf16.mxu1 %v6631_v2  ;;  %s3930_s17 = sshll.u32 %s6910_s30, 3  ;;  %s3931_s21 = sshll.u32 %s6910_s30, 6  ;;  %v2544_v22 = vld [vmem:[%s6628_s7 + $0x48] sm:$0xff]  ;;  %v2543_v24 = vld [vmem:[%s6628_s7 + $0x40] sm:$0xff]  ;;  %v2546_v25 = vld [vmem:[%s6628_s7 + $0x58] sm:$0xff] }
  0x12   : > { %4114 = vmatprep.mubr.msk.bf16.mxu1 %vm4555_vm0, %v6631_v2  ;;  %s388_s20 = scalar_lea.vmem %s6621_s0, %s3930_s17  ;;  %s394_s26 = scalar_lea.vmem %s6622_s1, %s3931_s21  ;;  %v2545_v26 = vld [vmem:[%s6628_s7 + $0x50] sm:$0xff]  ;;  %v2548_v27 = vld [vmem:[%s6628_s7 + $0x68] sm:$0xff]  ;;  %v2547_v28 = vld [vmem:[%s6628_s7 + $0x60] sm:$0xff] }
  0x13   : > { %v4456_v4 = vld [vmem:[%s388_s20] sm:$0xff]   ;;  %v417_v7 = vld [vmem:[%s394_s26 + $0x8] sm:$0xff]  ;;  %v418_v8 = vld [vmem:[%s394_s26 + $0x10] sm:$0xff]  ;;  %s3932_s19 = sshll.u32 %s6910_s30, 4 }
  0x14   : > { %2675 = vperm.xlu1 %4454, %v2537_v3   ;;  %478 = vrot.lane.b32.xlu0 %v4456_v4, %s4556_s27  ;;  %v416_v6 = vld [vmem:[%s394_s26] sm:$0xff]  ;;  %v419_v11 = vld [vmem:[%s394_s26 + $0x18] sm:$0xff]  ;;  %v421_v15 = vld [vmem:[%s394_s26 + $0x28] sm:$0xff] }
  0x15   : > { %v424_v10 = vpack.c.bf16 %v417_v7, %v416_v6  ;;  %v425_v13 = vpack.c.bf16 %v419_v11, %v418_v8  ;;  %v420_v14 = vld [vmem:[%s394_s26 + $0x20] sm:$0xff]  ;;  %v422_v19 = vld [vmem:[%s394_s26 + $0x30] sm:$0xff]  ;;  %v423_v20 = vld [vmem:[%s394_s26 + $0x38] sm:$0xff]  ;;  %s5143_s26 = scalar_lea.vmem %s6629_s8, %s3932_s19 }
  0x16   : > { %v426_v18 = vpack.c.bf16 %v421_v15, %v420_v14  ;;  %v427_v23 = vpack.c.bf16 %v423_v20, %v422_v19  ;;  %v2550_v29 = vld [vmem:[%s6628_s7 + $0x78] sm:$0xff]  ;;  %v2549_v30 = vld [vmem:[%s6628_s7 + $0x70] sm:$0xff]  ;;  %v2552_v31 = vld [vmem:[%s6628_s7 + $0x88] sm:$0xff] }
  0x17   : > { %4095 = vmatpush3.bf16.msra.mxu0 %v424_v10  ;;  %4107 = vmatpush3.bf16.msra.mxu1 %v424_v10  ;;  %v2551_v32 = vld [vmem:[%s6628_s7 + $0x80] sm:$0xff]  ;;  %v2554_v33 = vld [vmem:[%s6628_s7 + $0x98] sm:$0xff]  ;;  %v2553_v34 = vld [vmem:[%s6628_s7 + $0x90] sm:$0xff] }
  0x18   : > { %2680 = vperm.xlu1 %4454, %v2538_v5   ;;  %2670 = vperm.xlu0 %4455, %v2536_v9   ;;  %v2556_v35 = vld [vmem:[%s6628_s7 + $0xa8] sm:$0xff]  ;;  %v2555_v36 = vld [vmem:[%s6628_s7 + $0xa0] sm:$0xff]  ;;  %v2558_v37 = vld [vmem:[%s6628_s7 + $0xb8] sm:$0xff] }
  0x19   : > { %4096 = vmatprep.subr.bf16.mxu0 %v6631_v2  ;;  %4108 = vmatprep.subr.bf16.mxu1 %v6631_v2  ;;  %v2557_v38 = vld [vmem:[%s6628_s7 + $0xb0] sm:$0xff]  ;;  %v2560_v39 = vld [vmem:[%s6628_s7 + $0xc8] sm:$0xff]  ;;  %v2559_v40 = vld [vmem:[%s6628_s7 + $0xc0] sm:$0xff] }
  0x1a   : > { %v2562_v41 = vld [vmem:[%s6628_s7 + $0xd8] sm:$0xff]  ;;  %v2561_v42 = vld [vmem:[%s6628_s7 + $0xd0] sm:$0xff]  ;;  %v2564_v43 = vld [vmem:[%s6628_s7 + $0xe8] sm:$0xff] }
  0x1b   : > { %4097 = vmatpush3.bf16.msra.mxu0 %v425_v13  ;;  %4109 = vmatpush3.bf16.msra.mxu1 %v425_v13  ;;  %v2563_v44 = vld [vmem:[%s6628_s7 + $0xe0] sm:$0xff]  ;;  %v2566_v45 = vld [vmem:[%s6628_s7 + $0xf8] sm:$0xff]  ;;  %v2565_v46 = vld [vmem:[%s6628_s7 + $0xf0] sm:$0xff] }
  0x1c   : > { %2690 = vperm.xlu1 %4454, %v2540_v12   ;;  %2685 = vperm.xlu0 %4455, %v2539_v16   ;;  %v2568_v47 = vld [vmem:[%s6628_s7 + $0x108] sm:$0xff]  ;;  %v2567_v48 = vld [vmem:[%s6628_s7 + $0x100] sm:$0xff]  ;;  %v2570_v49 = vld [vmem:[%s6628_s7 + $0x118] sm:$0xff] }
  0x1d   : > { %4098 = vmatprep.subr.bf16.mxu0 %v6631_v2  ;;  %4110 = vmatprep.subr.bf16.mxu1 %v6631_v2  ;;  %v2569_v50 = vld [vmem:[%s6628_s7 + $0x110] sm:$0xff]  ;;  %v2572_v51 = vld [vmem:[%s6628_s7 + $0x128] sm:$0xff]  ;;  %v2571_v52 = vld [vmem:[%s6628_s7 + $0x120] sm:$0xff] }
  0x1e   : > { %v2574_v53 = vld [vmem:[%s6628_s7 + $0x138] sm:$0xff]  ;;  %v2573_v54 = vld [vmem:[%s6628_s7 + $0x130] sm:$0xff]  ;;  %v2576_v55 = vld [vmem:[%s6628_s7 + $0x148] sm:$0xff] }
  0x1f   : > { %4099 = vmatpush3.bf16.msra.mxu0 %v426_v18  ;;  %4111 = vmatpush3.bf16.msra.mxu1 %v426_v18  ;;  %v2575_v56 = vld [vmem:[%s6628_s7 + $0x140] sm:$0xff]  ;;  %v2578_v57 = vld [vmem:[%s6628_s7 + $0x158] sm:$0xff]  ;;  %v2577_v58 = vld [vmem:[%s6628_s7 + $0x150] sm:$0xff] }
  0x20   : > { %2700 = vperm.xlu1 %4454, %v2542_v17   ;;  %2695 = vperm.xlu0 %4455, %v2541_v21   ;;  %v2580_v59 = vld [vmem:[%s6628_s7 + $0x168] sm:$0xff]  ;;  %v2579_v60 = vld [vmem:[%s6628_s7 + $0x160] sm:$0xff]  ;;  %v2582_v61 = vld [vmem:[%s6628_s7 + $0x178] sm:$0xff] }
  0x21   : > { %4100 = vmatprep.subr.bf16.mxu0 %v6631_v2  ;;  %4112 = vmatprep.subr.bf16.mxu1 %v6631_v2  ;;  %v2581_v62 = vld [vmem:[%s6628_s7 + $0x170] sm:$0xff]  ;;  %v2584_v63 = vld [vmem:[%s6628_s7 + $0x188] sm:$0xff]  ;;  %v2583_v0 = vld [vmem:[%s6628_s7 + $0x180] sm:$0xff] }
  0x22   : > { %v2586_v1 = vld [vmem:[%s6628_s7 + $0x198] sm:$0xff]  ;;  %v2585_v3 = vld [vmem:[%s6628_s7 + $0x190] sm:$0xff]  ;;  %v2587_v5 = vld [vmem:[%s6628_s7 + $0x1a0] sm:$0xff] }
  0x23   : > { %4101 = vmatpush3.bf16.msra.mxu0 %v427_v23  ;;  %4113 = vmatpush3.bf16.msra.mxu1 %v427_v23  ;;  %v2590_v6 = vld [vmem:[%s6628_s7 + $0x1b8] sm:$0xff]  ;;  %v4821_v7 = vld [vmem:[%s6623_s2] sm:$0xff]   ;;  %v2589_v8 = vld [vmem:[%s6628_s7 + $0x1b0] sm:$0xff] }
  0x24   : > { %2710 = vperm.xlu1 %4454, %v2544_v22   ;;  %2705 = vperm.xlu0 %4455, %v2543_v24   ;;  %v2592_v9 = vld [vmem:[%s6628_s7 + $0x1c8] sm:$0xff]  ;;  %v2591_v11 = vld [vmem:[%s6628_s7 + $0x1c0] sm:$0xff]  ;;  %v2594_v12 = vld [vmem:[%s6628_s7 + $0x1d8] sm:$0xff] }
  0x25   : > { %4118 = vmatprep.subr.bf16.mxu0 %v6631_v2  ;;  %4130 = vmatprep.subr.bf16.mxu1 %v6631_v2  ;;  %v4834_v10 = vld [vmem:[%s6623_s2 + $0x8] sm:$0xff]   ;;  %v4847_v13 = vld [vmem:[%s6623_s2 + $0x10] sm:$0xff]   ;;  %v4861_v17 = vld [vmem:[%s6623_s2 + $0x18] sm:$0xff]  }
  0x26   : > { %4103 = vmatmul.mubr.msk.bf16.vlgmr.msra.gmra.mrb[0].mxu0 %vm433_vm1, %v4456_v4  ;;  %v2588_v4 = vld [vmem:[%s6628_s7 + $0x1a8] sm:$0xff]  ;;  %v2593_v14 = vld [vmem:[%s6628_s7 + $0x1d0] sm:$0xff]  ;;  %v2595_v18 = vld [vmem:[%s6628_s7 + $0x1e0] sm:$0xff] }
  0x27   : > { %4126 = vmatprep.mubr.msk.bf16.mxu0 %vm4555_vm0, %v6631_v2  ;;  %4119 = vmatpush3.bf16.msra.mxu0 %v4821_v7  ;;  %v2596_v16 = vld [vmem:[%s6628_s7 + $0x1e8] sm:$0xff]  ;;  %v2598_v19 = vld [vmem:[%s6628_s7 + $0x1f8] sm:$0xff]  ;;  %v2597_v20 = vld [vmem:[%s6628_s7 + $0x1f0] sm:$0xff] }
  0x28   : > { %2720 = vperm.xlu1 %4454, %v2546_v25   ;;  %2715 = vperm.xlu0 %4455, %v2545_v26   ;;  %v2600_v22 = vld [vmem:[%s6628_s7 + $0x208] sm:$0xff]  ;;  %v2599_v23 = vld [vmem:[%s6628_s7 + $0x200] sm:$0xff]  ;;  %v2602_v25 = vld [vmem:[%s6628_s7 + $0x218] sm:$0xff] }
  0x29   : > { %4120 = vmatprep.subr.bf16.mxu0 %v6631_v2  ;;  %v2601_v26 = vld [vmem:[%s6628_s7 + $0x210] sm:$0xff] }
  0x2b   : > { %4121 = vmatpush3.bf16.msra.mxu0 %v4834_v10 }
  0x2c   : > { %2730 = vperm.xlu1 %4454, %v2548_v27   ;;  %2725 = vperm.xlu0 %4455, %v2547_v28  }
  0x2d   : > { %4122 = vmatprep.subr.bf16.mxu0 %v6631_v2 }
  0x2f   : > { %4123 = vmatpush3.bf16.msra.mxu0 %v4847_v13 }
  0x30   : > { %2740 = vperm.xlu1 %4454, %v2550_v29   ;;  %2735 = vperm.xlu0 %4455, %v2549_v30   ;;  %v2604_v29 = vld [vmem:[%s6628_s7 + $0x228] sm:$0xff]  ;;  %v2603_v30 = vld [vmem:[%s6628_s7 + $0x220] sm:$0xff] }
  0x31   : > { %4124 = vmatprep.subr.bf16.mxu0 %v6631_v2 }
  0x33   : > { %4125 = vmatpush3.bf16.msra.mxu0 %v4861_v17 }
  0x34   : > { %2750 = vperm.xlu1 %4454, %v2552_v31   ;;  %2745 = vperm.xlu0 %4455, %v2551_v32  }
  0x35   : > { %4142 = vmatprep.subr.bf16.mxu0 %v6631_v2 }
  0x38   : > { %2760 = vperm.xlu1 %4454, %v2554_v33   ;;  %2755 = vperm.xlu0 %4455, %v2553_v34   ;;  %v2606_v33 = vld [vmem:[%s6628_s7 + $0x238] sm:$0xff]  ;;  %v2605_v34 = vld [vmem:[%s6628_s7 + $0x230] sm:$0xff] }
  0x3c   : > { %2770 = vperm.xlu1 %4454, %v2556_v35   ;;  %2765 = vperm.xlu0 %4455, %v2555_v36  }
  0x40   : > { %2780 = vperm.xlu1 %4454, %v2558_v37   ;;  %2775 = vperm.xlu0 %4455, %v2557_v38   ;;  %v2608_v37 = vld [vmem:[%s6628_s7 + $0x248] sm:$0xff]  ;;  %v2607_v38 = vld [vmem:[%s6628_s7 + $0x240] sm:$0xff] }
  0x44   : > { %2790 = vperm.xlu1 %4454, %v2560_v39   ;;  %2785 = vperm.xlu0 %4455, %v2559_v40  }
  0x48   : > { %2800 = vperm.xlu1 %4454, %v2562_v41   ;;  %2795 = vperm.xlu0 %4455, %v2561_v42   ;;  %v2610_v41 = vld [vmem:[%s6628_s7 + $0x258] sm:$0xff]  ;;  %v2609_v42 = vld [vmem:[%s6628_s7 + $0x250] sm:$0xff] }
  0x4c   : > { %2810 = vperm.xlu1 %4454, %v2564_v43   ;;  %2805 = vperm.xlu0 %4455, %v2563_v44  }
  0x50   : > { %2820 = vperm.xlu1 %4454, %v2566_v45   ;;  %2815 = vperm.xlu0 %4455, %v2565_v46   ;;  %v2612_v45 = vld [vmem:[%s6628_s7 + $0x268] sm:$0xff]  ;;  %v2611_v46 = vld [vmem:[%s6628_s7 + $0x260] sm:$0xff] }
  0x54   : > { %2830 = vperm.xlu1 %4454, %v2568_v47   ;;  %2825 = vperm.xlu0 %4455, %v2567_v48  }
  0x58   : > { %2840 = vperm.xlu1 %4454, %v2570_v49   ;;  %2835 = vperm.xlu0 %4455, %v2569_v50   ;;  %v2614_v49 = vld [vmem:[%s6628_s7 + $0x278] sm:$0xff]  ;;  %v2613_v50 = vld [vmem:[%s6628_s7 + $0x270] sm:$0xff] }
  0x5c   : > { %2850 = vperm.xlu1 %4454, %v2572_v51   ;;  %2845 = vperm.xlu0 %4455, %v2571_v52  }
  0x60   : > { %2860 = vperm.xlu1 %4454, %v2574_v53   ;;  %2855 = vperm.xlu0 %4455, %v2573_v54   ;;  %v2616_v53 = vld [vmem:[%s6628_s7 + $0x288] sm:$0xff]  ;;  %v2615_v54 = vld [vmem:[%s6628_s7 + $0x280] sm:$0xff] }
  0x64   : > { %2870 = vperm.xlu1 %4454, %v2576_v55   ;;  %2865 = vperm.xlu0 %4455, %v2575_v56  }
  0x68   : > { %2880 = vperm.xlu1 %4454, %v2578_v57   ;;  %2875 = vperm.xlu0 %4455, %v2577_v58   ;;  %v2618_v57 = vld [vmem:[%s6628_s7 + $0x298] sm:$0xff]  ;;  %v2617_v58 = vld [vmem:[%s6628_s7 + $0x290] sm:$0xff] }
  0x6c   : > { %2890 = vperm.xlu1 %4454, %v2580_v59   ;;  %2885 = vperm.xlu0 %4455, %v2579_v60  }
  0x70   : > { %2900 = vperm.xlu1 %4454, %v2582_v61   ;;  %2895 = vperm.xlu0 %4455, %v2581_v62   ;;  %v2620_v61 = vld [vmem:[%s6628_s7 + $0x2a8] sm:$0xff]  ;;  %v2619_v62 = vld [vmem:[%s6628_s7 + $0x2a0] sm:$0xff] }
  0x74   : > { %2910 = vperm.xlu1 %4454, %v2584_v63   ;;  %2905 = vperm.xlu0 %4455, %v2583_v0  }
  0x78   : > { %2920 = vperm.xlu1 %4454, %v2586_v1   ;;  %2915 = vperm.xlu0 %4455, %v2585_v3   ;;  %v2622_v1 = vld [vmem:[%s6628_s7 + $0x2b8] sm:$0xff]  ;;  %v2621_v3 = vld [vmem:[%s6628_s7 + $0x2b0] sm:$0xff] }
  0x7c   : > { %2930 = vperm.xlu1 %4454, %v2588_v4   ;;  %2925 = vperm.xlu0 %4455, %v2587_v5  }
  0x80   : > { %2940 = vperm.xlu1 %4454, %v2590_v6   ;;  %2935 = vperm.xlu0 %4455, %v2589_v8   ;;  %v2624_v6 = vld [vmem:[%s6628_s7 + $0x2c8] sm:$0xff]  ;;  %v2623_v8 = vld [vmem:[%s6628_s7 + $0x2c0] sm:$0xff] }
  0x84   : > { %2950 = vperm.xlu1 %4454, %v2592_v9   ;;  %2945 = vperm.xlu0 %4455, %v2591_v11  }
  0x86   : > { %v479_v15 = vpop.permute.xlu0 %478 }
  0x87   : > { %4115 = vmatmul.mubr.msk.bf16.vlgmr.msra.gmra.mrb[0].mxu1 %vm433_vm1, %v479_v15 }
  0x88   : > { %2960 = vperm.xlu1 %4454, %v2594_v12   ;;  %2955 = vperm.xlu0 %4455, %v2593_v14   ;;  %v2626_v12 = vld [vmem:[%s6628_s7 + $0x2d8] sm:$0xff]  ;;  %v2625_v14 = vld [vmem:[%s6628_s7 + $0x2d0] sm:$0xff] }
  0x89   : > { %4138 = vmatprep.mubr.msk.bf16.mxu1 %vm4555_vm0, %v6631_v2  ;;  %v2654_v2 = vld [vmem:[%s6628_s7 + $0x3b8] sm:$0xff] }
  0x8c   : > { %2970 = vperm.xlu1 %4454, %v2596_v16   ;;  %2965 = vperm.xlu0 %4455, %v2595_v18   ;;  %v2628_v18 = vld [vmem:[%s6628_s7 + $0x2e8] sm:$0xff] }
  0x8f   : > { %v4876_v21 = vpop.permute.xlu1 %2665 }
  0x90   : > { %2980 = vperm.xlu1 %4454, %v2598_v19   ;;  %2975 = vperm.xlu0 %4455, %v2597_v20   ;;  %v2627_v19 = vld [vmem:[%s6628_s7 + $0x2e0] sm:$0xff] }
  0x93   : > { %v4884_v24 = vpop.permute.xlu1 %2675 }
  0x94   : > { %2990 = vperm.xlu1 %4454, %v2600_v22   ;;  %2985 = vperm.xlu0 %4455, %v2599_v23   ;;  %v2630_v23 = vld [vmem:[%s6628_s7 + $0x2f8] sm:$0xff] }
  0x97   : > { %v4892_v27 = vpop.permute.xlu1 %2680  ;;  %v4894_v28 = vpop.permute.xlu0 %2670 }
  0x98   : > { %3000 = vperm.xlu1 %4454, %v2602_v25   ;;  %2995 = vperm.xlu0 %4455, %v2601_v26   ;;  %v2629_v25 = vld [vmem:[%s6628_s7 + $0x2f0] sm:$0xff] }
  0x9b   : > { %v4902_v31 = vpop.permute.xlu1 %2690  ;;  %v4904_v32 = vpop.permute.xlu0 %2685 }
  0x9c   : > { %3010 = vperm.xlu1 %4454, %v2604_v29   ;;  %3005 = vperm.xlu0 %4455, %v2603_v30   ;;  %v2632_v30 = vld [vmem:[%s6628_s7 + $0x308] sm:$0xff] }
  0x9f   : > { %v4912_v35 = vpop.permute.xlu1 %2700  ;;  %v4914_v36 = vpop.permute.xlu0 %2695 }
  0xa0   : > { %3020 = vperm.xlu1 %4454, %v2606_v33   ;;  %3015 = vperm.xlu0 %4455, %v2605_v34   ;;  %v2631_v33 = vld [vmem:[%s6628_s7 + $0x300] sm:$0xff] }
  0xa3   : > { %v4922_v39 = vpop.permute.xlu1 %2710  ;;  %v4924_v40 = vpop.permute.xlu0 %2705 }
  0xa4   : > { %3030 = vperm.xlu1 %4454, %v2608_v37   ;;  %3025 = vperm.xlu0 %4455, %v2607_v38   ;;  %v2634_v38 = vld [vmem:[%s6628_s7 + $0x318] sm:$0xff] }
  0xa7   : > { %v4932_v43 = vpop.permute.xlu1 %2720  ;;  %v4934_v44 = vpop.permute.xlu0 %2715 }
  0xa8   : > { %3040 = vperm.xlu1 %4454, %v2610_v41   ;;  %3035 = vperm.xlu0 %4455, %v2609_v42   ;;  %v2633_v41 = vld [vmem:[%s6628_s7 + $0x310] sm:$0xff] }
  0xab   : > { %v4942_v47 = vpop.permute.xlu1 %2730  ;;  %v4944_v48 = vpop.permute.xlu0 %2725 }
  0xac   : > { %3050 = vperm.xlu1 %4454, %v2612_v45   ;;  %3045 = vperm.xlu0 %4455, %v2611_v46   ;;  %v2636_v46 = vld [vmem:[%s6628_s7 + $0x328] sm:$0xff] }
  0xaf   : > { %v4952_v51 = vpop.permute.xlu1 %2740  ;;  %v4954_v52 = vpop.permute.xlu0 %2735 }
  0xb0   : > { %3060 = vperm.xlu1 %4454, %v2614_v49   ;;  %3055 = vperm.xlu0 %4455, %v2613_v50   ;;  %v2635_v49 = vld [vmem:[%s6628_s7 + $0x320] sm:$0xff] }
  0xb3   : > { %v4962_v55 = vpop.permute.xlu1 %2750  ;;  %v4964_v56 = vpop.permute.xlu0 %2745 }
  0xb4   : > { %6634 = vst [vmem:[#allocation2_spill] sm:$0xff] %v4962_v55  ;;  %3070 = vperm.xlu1 %4454, %v2616_v53   ;;  %6635 = vst [vmem:[#allocation3_spill] sm:$0xff] %v4964_v56  ;;  %3065 = vperm.xlu0 %4455, %v2615_v54   ;;  %v2638_v54 = vld [vmem:[%s6628_s7 + $0x338] sm:$0xff] }
  0xb5   : > { %v5848_v55 = vld [vmem:[%s6627_s6 + $0x1f8] sm:$0xff]  }
  0xb6   : > { %6746 = vst [vmem:[#allocation113_spill] sm:$0xff] %v5848_v55 }
  0xb7   : > { %v4972_v59 = vpop.permute.xlu1 %2760  ;;  %v4974_v60 = vpop.permute.xlu0 %2755 }
  0xb8   : > { %6636 = vst [vmem:[#allocation4_spill] sm:$0xff] %v4972_v59  ;;  %3080 = vperm.xlu1 %4454, %v2618_v57   ;;  %6637 = vst [vmem:[#allocation5_spill] sm:$0xff] %v4974_v60  ;;  %3075 = vperm.xlu0 %4455, %v2617_v58   ;;  %v2637_v57 = vld [vmem:[%s6628_s7 + $0x330] sm:$0xff] }
  0xbb   : > { %v4982_v63 = vpop.permute.xlu1 %2770  ;;  %v4984_v0 = vpop.permute.xlu0 %2765 }
  0xbc   : > { %6638 = vst [vmem:[#allocation6_spill] sm:$0xff] %v4982_v63  ;;  %3090 = vperm.xlu1 %4454, %v2620_v61   ;;  %6639 = vst [vmem:[#allocation7_spill] sm:$0xff] %v4984_v0  ;;  %3085 = vperm.xlu0 %4455, %v2619_v62   ;;  %v2640_v62 = vld [vmem:[%s6628_s7 + $0x348] sm:$0xff]  ;;  %v5833_v0 = vld [vmem:[%s6627_s6 + $0x1f0] sm:$0xff]  }
  0xbd   : > { %v5826_v63 = vld [vmem:[%s6627_s6 + $0x1e8] sm:$0xff]  }
  0xbf   : > { %v4992_v4 = vpop.permute.xlu1 %2780  ;;  %v4994_v5 = vpop.permute.xlu0 %2775 }
  0xc0   : > { %6640 = vst [vmem:[#allocation8_spill] sm:$0xff] %v4992_v4  ;;  %3100 = vperm.xlu1 %4454, %v2622_v1   ;;  %6641 = vst [vmem:[#allocation9_spill] sm:$0xff] %v4994_v5  ;;  %3095 = vperm.xlu0 %4455, %v2621_v3   ;;  %v2639_v1 = vld [vmem:[%s6628_s7 + $0x340] sm:$0xff] }
  0xc3   : > { %v5002_v9 = vpop.permute.xlu1 %2790  ;;  %v5004_v11 = vpop.permute.xlu0 %2785 }
  0xc4   : > { %6642 = vst [vmem:[#allocation10_spill] sm:$0xff] %v5002_v9  ;;  %3110 = vperm.xlu1 %4454, %v2624_v6   ;;  %6643 = vst [vmem:[#allocation11_spill] sm:$0xff] %v5004_v11  ;;  %3105 = vperm.xlu0 %4455, %v2623_v8   ;;  %v2642_v8 = vld [vmem:[%s6628_s7 + $0x358] sm:$0xff]  ;;  %v5811_v11 = vld [vmem:[%s6627_s6 + $0x1e0] sm:$0xff]  }
  0xc5   : > { %v5804_v9 = vld [vmem:[%s6627_s6 + $0x1d8] sm:$0xff]  }
  0xc7   : > { %v5012_v15 = vpop.permute.xlu1 %2800  ;;  %v5014_v16 = vpop.permute.xlu0 %2795 }
  0xc8   : > { %6644 = vst [vmem:[#allocation12_spill] sm:$0xff] %v5012_v15  ;;  %3120 = vperm.xlu1 %4454, %v2626_v12   ;;  %6645 = vst [vmem:[#allocation13_spill] sm:$0xff] %v5014_v16  ;;  %3115 = vperm.xlu0 %4455, %v2625_v14   ;;  %v2641_v12 = vld [vmem:[%s6628_s7 + $0x350] sm:$0xff] }
  0xcb   : > { %v5022_v20 = vpop.permute.xlu1 %2810  ;;  %v5024_v22 = vpop.permute.xlu0 %2805 }
  0xcc   : > { %6646 = vst [vmem:[#allocation14_spill] sm:$0xff] %v5022_v20  ;;  %3130 = vperm.xlu1 %4454, %v2628_v18   ;;  %6647 = vst [vmem:[#allocation15_spill] sm:$0xff] %v5024_v22  ;;  %3125 = vperm.xlu0 %4455, %v2627_v19   ;;  %v2644_v19 = vld [vmem:[%s6628_s7 + $0x368] sm:$0xff]  ;;  %v5539_v20 = vld [vmem:[%s6627_s6 + $0xc0] sm:$0xff]  }
  0xcd   : > { %v5789_v22 = vld [vmem:[%s6627_s6 + $0x1d0] sm:$0xff]  }
  0xcf   : > { %v5032_v26 = vpop.permute.xlu1 %2820  ;;  %v5034_v29 = vpop.permute.xlu0 %2815 }
  0xd0   : > { %6648 = vst [vmem:[#allocation16_spill] sm:$0xff] %v5032_v26  ;;  %3140 = vperm.xlu1 %4454, %v2630_v23   ;;  %6649 = vst [vmem:[#allocation17_spill] sm:$0xff] %v5034_v29  ;;  %3135 = vperm.xlu0 %4455, %v2629_v25   ;;  %v2643_v23 = vld [vmem:[%s6628_s7 + $0x360] sm:$0xff] }
  0xd3   : > { %v5042_v34 = vpop.permute.xlu1 %2830  ;;  %v5044_v37 = vpop.permute.xlu0 %2825 }
  0xd4   : > { %6650 = vst [vmem:[#allocation18_spill] sm:$0xff] %v5042_v34  ;;  %3150 = vperm.xlu1 %4454, %v2632_v30   ;;  %6651 = vst [vmem:[#allocation19_spill] sm:$0xff] %v5044_v37  ;;  %3145 = vperm.xlu0 %4455, %v2631_v33   ;;  %v2646_v33 = vld [vmem:[%s6628_s7 + $0x378] sm:$0xff] }
  0xd7   : > { %v5052_v42 = vpop.permute.xlu1 %2840  ;;  %v5054_v45 = vpop.permute.xlu0 %2835 }
  0xd8   : > { %6652 = vst [vmem:[#allocation20_spill] sm:$0xff] %v5052_v42  ;;  %3160 = vperm.xlu1 %4454, %v2634_v38   ;;  %6653 = vst [vmem:[#allocation21_spill] sm:$0xff] %v5054_v45  ;;  %3155 = vperm.xlu0 %4455, %v2633_v41   ;;  %v2645_v38 = vld [vmem:[%s6628_s7 + $0x370] sm:$0xff]  ;;  %v5534_v42 = vld [vmem:[%s6627_s6 + $0xb8] sm:$0xff]  }
  0xdb   : > { %v5062_v50 = vpop.permute.xlu1 %2850  ;;  %v5064_v53 = vpop.permute.xlu0 %2845 }
  0xdc   : > { %6654 = vst [vmem:[#allocation22_spill] sm:$0xff] %v5062_v50  ;;  %3170 = vperm.xlu1 %4454, %v2636_v46   ;;  %6655 = vst [vmem:[#allocation23_spill] sm:$0xff] %v5064_v53  ;;  %3165 = vperm.xlu0 %4455, %v2635_v49   ;;  %v2648_v49 = vld [vmem:[%s6628_s7 + $0x388] sm:$0xff] }
  0xdf   : > { %v5072_v58 = vpop.permute.xlu1 %2860  ;;  %v5074_v61 = vpop.permute.xlu0 %2855 }
  0xe0   : > { %6656 = vst [vmem:[#allocation24_spill] sm:$0xff] %v5072_v58  ;;  %3180 = vperm.xlu1 %4454, %v2638_v54   ;;  %6657 = vst [vmem:[#allocation25_spill] sm:$0xff] %v5074_v61  ;;  %3175 = vperm.xlu0 %4455, %v2637_v57   ;;  %v2647_v54 = vld [vmem:[%s6628_s7 + $0x380] sm:$0xff] }
  0xe3   : > { %v5082_v3 = vpop.permute.xlu1 %2870  ;;  %v5084_v6 = vpop.permute.xlu0 %2865 }
  0xe4   : > { %6658 = vst [vmem:[#allocation26_spill] sm:$0xff] %v5082_v3  ;;  %3190 = vperm.xlu1 %4454, %v2640_v62   ;;  %6659 = vst [vmem:[#allocation27_spill] sm:$0xff] %v5084_v6  ;;  %3185 = vperm.xlu0 %4455, %v2639_v1   ;;  %v2650_v1 = vld [vmem:[%s6628_s7 + $0x398] sm:$0xff]  ;;  %v5513_v3 = vld [vmem:[%s6627_s6 + $0xa0] sm:$0xff]  }
  0xe5   : > { %v5525_v6 = vld [vmem:[%s6627_s6 + $0xb0] sm:$0xff]  }
  0xe7   : > { %v5092_v14 = vpop.permute.xlu1 %2880  ;;  %v5094_v18 = vpop.permute.xlu0 %2875 }
  0xe8   : > { %6660 = vst [vmem:[#allocation28_spill] sm:$0xff] %v5092_v14  ;;  %3200 = vperm.xlu1 %4454, %v2642_v8   ;;  %6661 = vst [vmem:[#allocation29_spill] sm:$0xff] %v5094_v18  ;;  %3195 = vperm.xlu0 %4455, %v2641_v12   ;;  %v2649_v8 = vld [vmem:[%s6628_s7 + $0x390] sm:$0xff]  ;;  %v5520_v14 = vld [vmem:[%s6627_s6 + $0xa8] sm:$0xff]  }
  0xeb   : > { %v5102_v25 = vpop.permute.xlu1 %2890  ;;  %v5104_v30 = vpop.permute.xlu0 %2885 }
  0xec   : > { %6662 = vst [vmem:[#allocation30_spill] sm:$0xff] %v5102_v25  ;;  %3210 = vperm.xlu1 %4454, %v2644_v19   ;;  %6663 = vst [vmem:[#allocation31_spill] sm:$0xff] %v5104_v30  ;;  %3205 = vperm.xlu0 %4455, %v2643_v23   ;;  %v2652_v23 = vld [vmem:[%s6628_s7 + $0x3a8] sm:$0xff] }
  0xed   : > { %v5496_v30 = vld [vmem:[%s6627_s6 + $0x88] sm:$0xff]  }
  0xef   : > { %v5112_v41 = vpop.permute.xlu1 %2900  ;;  %v5114_v46 = vpop.permute.xlu0 %2895 }
  0xf0   : > { %6664 = vst [vmem:[#allocation32_spill] sm:$0xff] %v5112_v41  ;;  %3220 = vperm.xlu1 %4454, %v2646_v33   ;;  %6665 = vst [vmem:[#allocation33_spill] sm:$0xff] %v5114_v46  ;;  %3215 = vperm.xlu0 %4455, %v2645_v38   ;;  %v2651_v33 = vld [vmem:[%s6628_s7 + $0x3a0] sm:$0xff]  ;;  %v5508_v46 = vld [vmem:[%s6627_s6 + $0x98] sm:$0xff]  }
  0xf3   : > { %v5122_v57 = vpop.permute.xlu1 %2910  ;;  %v5124_v62 = vpop.permute.xlu0 %2905 }
  0xf4   : > { %6666 = vst [vmem:[#allocation34_spill] sm:$0xff] %v5122_v57  ;;  %3230 = vperm.xlu1 %4454, %v2648_v49   ;;  %6667 = vst [vmem:[#allocation35_spill] sm:$0xff] %v5124_v62  ;;  %3225 = vperm.xlu0 %4455, %v2647_v54  }
  0xf7   : > { %v5133_v12 = vpop.permute.xlu1 %2920  ;;  %v5135_v19 = vpop.permute.xlu0 %2915 }
  0xf8   : > { %6668 = vst [vmem:[#allocation36_spill] sm:$0xff] %v5133_v12  ;;  %3240 = vperm.xlu1 %4454, %v2650_v1   ;;  %6669 = vst [vmem:[#allocation37_spill] sm:$0xff] %v5135_v19  ;;  %3235 = vperm.xlu0 %4455, %v2649_v8  }
  0xf9   : > { %v471_v49 = vpop.f32.mrb[0].mxu0 }
  0xfa   : > { %524 = vst.msk [vmem:[%s5143_s26] sm:$0xff] %vm433_vm1, %v471_v49  ;;  %v4104_v54 = vpop.f32.mrb[1].mxu0 }
  0xfb   : > { %v5148_v38 = vpop.permute.xlu1 %2930  ;;  %v5152_v1 = vpop.permute.xlu0 %2925 }
  0xfc   : > { %6670 = vst [vmem:[#allocation38_spill] sm:$0xff] %v5148_v38  ;;  %3250 = vperm.xlu1 %4454, %v2652_v23   ;;  %6671 = vst [vmem:[#allocation39_spill] sm:$0xff] %v5152_v1  ;;  %v474_v57 = vpop.f32.mrb[2].mxu0  ;;  %3245 = vperm.xlu0 %4455, %v2651_v33   ;;  %v2653_v38 = vld [vmem:[%s6628_s7 + $0x3b0] sm:$0xff]  ;;  %v2656_v1 = vld [vmem:[%s6628_s7 + $0x3c8] sm:$0xff]  ;;  %v6674_v33 = vmov 0.0  }
  0xfd   : > { %525 = vst.msk [vmem:[%s5143_s26 + $0x8] sm:$0xff] %vm433_vm1, %v474_v57  ;;  %v537_v8 = vpack.c.bf16 %v474_v57, %v471_v49  ;;  %v4105_v12 = vpop.f32.mrb[3].mxu0  ;;  %v2658_v49 = vld [vmem:[%s6628_s7 + $0x3d8] sm:$0xff] }
  0xff   : > { %v5162_v23 = vpop.permute.xlu1 %2940  ;;  %4127 = vmatmul.mubr.msk.bf16.vlgmr.msra.gmra.mrb[4].mxu0 %vm433_vm1, %v537_v8  ;;  %v5165_v54 = vpop.permute.xlu0 %2935 }
 0x100   : > { %6672 = vst [vmem:[#allocation40_spill] sm:$0xff] %v5162_v23  ;;  %3260 = vperm.xlu1 %4454, %v2654_v2   ;;  %6673 = vst [vmem:[#allocation41_spill] sm:$0xff] %v5165_v54  ;;  %4143 = vmatpush3.bf16.msra.mxu0 %v4821_v7  ;;  %v2655_v2 = vld [vmem:[%s6628_s7 + $0x3c0] sm:$0xff]  ;;  %v2657_v7 = vld [vmem:[%s6628_s7 + $0x3d0] sm:$0xff] }
 0x101   : > { %4150 = vmatprep.mubr.msk.bf16.mxu0 %vm4555_vm0, %v6674_v33  ;;  %3255 = vperm.xlu0 %4455, %v2653_v38  }
 0x102   : > { %4144 = vmatprep.subr.bf16.mxu0 %v6674_v33 }
 0x103   : > { %v5177_v57 = vpop.permute.xlu1 %2950  ;;  %v5179_v12 = vpop.permute.xlu0 %2945 }
 0x104   : > { %6675 = vst [vmem:[#allocation42_spill] sm:$0xff] %v5177_v57  ;;  %3270 = vperm.xlu1 %4454, %v2656_v1   ;;  %6676 = vst [vmem:[#allocation43_spill] sm:$0xff] %v5179_v12  ;;  %4145 = vmatpush3.bf16.msra.mxu0 %v4834_v10  ;;  %v2660_v1 = vld [vmem:[%s6628_s7 + $0x3e8] sm:$0xff]  ;;  %v2659_v10 = vld [vmem:[%s6628_s7 + $0x3e0] sm:$0xff] }
 0x105   : > { %3265 = vperm.xlu0 %4455, %v2655_v2   ;;  %4146 = vmatprep.subr.bf16.mxu0 %v6674_v33 }
 0x107   : > { %v5189_v38 = vpop.permute.xlu1 %2960  ;;  %v5191_v8 = vpop.permute.xlu0 %2955 }
 0x108   : > { %6677 = vst [vmem:[#allocation44_spill] sm:$0xff] %v5189_v38  ;;  %3280 = vperm.xlu1 %4454, %v2658_v49   ;;  %6678 = vst [vmem:[#allocation45_spill] sm:$0xff] %v5191_v8  ;;  %4147 = vmatpush3.bf16.msra.mxu0 %v4847_v13 }
 0x109   : > { %3275 = vperm.xlu0 %4455, %v2657_v7   ;;  %4148 = vmatprep.subr.bf16.mxu0 %v6674_v33 }
 0x10b   : > { %v5201_v2 = vpop.permute.xlu1 %2970  ;;  %v5203_v57 = vpop.permute.xlu0 %2965 }
 0x10c   : > { %6679 = vst [vmem:[#allocation46_spill] sm:$0xff] %v5201_v2  ;;  %3290 = vperm.xlu1 %4454, %v2660_v1   ;;  %6680 = vst [vmem:[#allocation47_spill] sm:$0xff] %v5203_v57  ;;  %4149 = vmatpush3.bf16.msra.mxu0 %v4861_v17 }
 0x10d   : > { %3285 = vperm.xlu0 %4455, %v2659_v10  }
 0x10f   : > { %v5206_v49 = vpop.permute.xlu0 %2975  ;;  %v5208_v38 = vpop.permute.xlu1 %2980 }
 0x110   : > { %6681 = vst [vmem:[#allocation48_spill] sm:$0xff] %v5206_v49  ;;  %6682 = vst [vmem:[#allocation49_spill] sm:$0xff] %v5208_v38 }
 0x113   : > { %v5210_v13 = vpop.permute.xlu0 %2985  ;;  %v5212_v7 = vpop.permute.xlu1 %2990 }
 0x114   : > { %6683 = vst [vmem:[#allocation50_spill] sm:$0xff] %v5210_v13  ;;  %6684 = vst [vmem:[#allocation51_spill] sm:$0xff] %v5212_v7 }
 0x117   : > { %v5214_v12 = vpop.permute.xlu0 %2995  ;;  %v5216_v8 = vpop.permute.xlu1 %3000 }
 0x118   : > { %6685 = vst [vmem:[#allocation52_spill] sm:$0xff] %v5214_v12  ;;  %6686 = vst [vmem:[#allocation53_spill] sm:$0xff] %v5216_v8 }
 0x11b   : > { %v5218_v23 = vpop.permute.xlu0 %3005  ;;  %v5220_v1 = vpop.permute.xlu1 %3010 }
 0x11c   : > { %6687 = vst [vmem:[#allocation54_spill] sm:$0xff] %v5218_v23  ;;  %6688 = vst [vmem:[#allocation55_spill] sm:$0xff] %v5220_v1 }
 0x11f   : > { %v5222_v2 = vpop.permute.xlu0 %3015  ;;  %v5224_v17 = vpop.permute.xlu1 %3020 }
 0x120   : > { %6689 = vst [vmem:[#allocation56_spill] sm:$0xff] %v5222_v2  ;;  %6690 = vst [vmem:[#allocation57_spill] sm:$0xff] %v5224_v17 }
 0x123   : > { %v5226_v10 = vpop.permute.xlu0 %3025  ;;  %v5228_v57 = vpop.permute.xlu1 %3030 }
 0x124   : > { %6691 = vst [vmem:[#allocation58_spill] sm:$0xff] %v5226_v10  ;;  %6692 = vst [vmem:[#allocation59_spill] sm:$0xff] %v5228_v57 }
 0x127   : > { %v5230_v38 = vpop.permute.xlu0 %3035  ;;  %v5232_v13 = vpop.permute.xlu1 %3040 }
 0x128   : > { %6693 = vst [vmem:[#allocation60_spill] sm:$0xff] %v5230_v38  ;;  %6694 = vst [vmem:[#allocation61_spill] sm:$0xff] %v5232_v13 }
 0x12b   : > { %v5234_v7 = vpop.permute.xlu0 %3045  ;;  %v5236_v12 = vpop.permute.xlu1 %3050 }
 0x12c   : > { %6695 = vst [vmem:[#allocation62_spill] sm:$0xff] %v5234_v7  ;;  %6696 = vst [vmem:[#allocation63_spill] sm:$0xff] %v5236_v12  ;;  %v5255_v7 = vld [vmem:[%s6625_s4] sm:$0xff]  }
 0x12d   : > { %4131 = vmatpush3.bf16.msra.mxu1 %v5255_v7 }
 0x12e   : > { %4132 = vmatprep.subr.bf16.mxu1 %v6674_v33 }
 0x12f   : > { %v5238_v8 = vpop.permute.xlu0 %3055  ;;  %v5240_v23 = vpop.permute.xlu1 %3060 }
 0x130   : > { %6697 = vst [vmem:[#allocation64_spill] sm:$0xff] %v5238_v8  ;;  %6698 = vst [vmem:[#allocation65_spill] sm:$0xff] %v5240_v23 }
 0x133   : > { %v5242_v1 = vpop.permute.xlu0 %3065  ;;  %v5244_v2 = vpop.permute.xlu1 %3070 }
 0x134   : > { %6699 = vst [vmem:[#allocation66_spill] sm:$0xff] %v5242_v1  ;;  %6700 = vst [vmem:[#allocation67_spill] sm:$0xff] %v5244_v2  ;;  %v5263_v1 = vld [vmem:[%s6625_s4 + $0x8] sm:$0xff]  }
 0x135   : > { %4133 = vmatpush3.bf16.msra.mxu1 %v5263_v1 }
 0x136   : > { %4134 = vmatprep.subr.bf16.mxu1 %v6674_v33 }
 0x137   : > { %v5246_v17 = vpop.permute.xlu0 %3075  ;;  %v5248_v10 = vpop.permute.xlu1 %3080 }
 0x138   : > { %6701 = vst [vmem:[#allocation68_spill] sm:$0xff] %v5246_v17  ;;  %6702 = vst [vmem:[#allocation69_spill] sm:$0xff] %v5248_v10  ;;  %v5281_v17 = vld [vmem:[%s6625_s4 + $0x18] sm:$0xff]  }
 0x13b   : > { %v5250_v57 = vpop.permute.xlu0 %3085  ;;  %v5257_v12 = vpop.permute.xlu1 %3090 }
 0x13c   : > { %6703 = vst [vmem:[#allocation70_spill] sm:$0xff] %v5250_v57  ;;  %6704 = vst [vmem:[#allocation71_spill] sm:$0xff] %v5257_v12  ;;  %v5275_v12 = vld [vmem:[%s6625_s4 + $0x10] sm:$0xff]  }
 0x13d   : > { %4135 = vmatpush3.bf16.msra.mxu1 %v5275_v12 }
 0x13e   : > { %4136 = vmatprep.subr.bf16.mxu1 %v6674_v33 }
 0x13f   : > { %v5266_v2 = vpop.permute.xlu0 %3095  ;;  %v5269_v57 = vpop.permute.xlu1 %3100 }
 0x140   : > { %6705 = vst [vmem:[#allocation72_spill] sm:$0xff] %v5266_v2  ;;  %6706 = vst [vmem:[#allocation73_spill] sm:$0xff] %v5269_v57 }
 0x141   : > { %4137 = vmatpush3.bf16.msra.mxu1 %v5281_v17 }
 0x142   : > { %4154 = vmatprep.subr.bf16.mxu1 %v6674_v33 }
 0x143   : > { %v5284_v23 = vpop.permute.xlu0 %3105  ;;  %v5288_v38 = vpop.permute.xlu1 %3110 }
 0x144   : > { %6707 = vst [vmem:[#allocation74_spill] sm:$0xff] %v5284_v23  ;;  %6708 = vst [vmem:[#allocation75_spill] sm:$0xff] %v5288_v38 }
 0x147   : > { %v5295_v49 = vpop.permute.xlu1 %3120 }
 0x148   : > { %6710 = vst [vmem:[#allocation77_spill] sm:$0xff] %v5295_v49 }
 0x14b   : > { %v5299_v54 = vpop.permute.xlu1 %3130 }
 0x14c   : > { %6712 = vst [vmem:[#allocation79_spill] sm:$0xff] %v5299_v54 }
 0x15a   : > { %v517_v10 = vpop.f32.mrb[0].mxu1 }
 0x15b   : > { %v4116_v2 = vpop.f32.mrb[1].mxu1  ;;  %528 = vrot.lane.b32.xlu0 %v517_v10, %s4556_s27 }
 0x15c   : > { %v520_v57 = vpop.f32.mrb[2].mxu1  ;;  %v5293_v2 = vpop.permute.xlu0 %3115 }
 0x15d   : > { %v709_v8 = vpack.c.bf16 %v520_v57, %v517_v10  ;;  %530 = vrot.lane.b32.xlu1 %v520_v57, %s4556_s27  ;;  %v4117_v13 = vpop.f32.mrb[3].mxu1  ;;  %6709 = vst [vmem:[#allocation76_spill] sm:$0xff] %v5293_v2  ;;  %v5303_v57 = vpop.permute.xlu1 %3140  ;;  %s3933_s27 = sshll.u32 %s6910_s30, 10 }
 0x15e   : > { %6714 = vst [vmem:[#allocation81_spill] sm:$0xff] %v5303_v57  ;;  %s5943_s23 = scalar_lea.vmem %s6630_s9, %s3933_s27 }
 0x15f   : > { %4151 = vmatmul.mubr.msk.bf16.vlgmr.msra.gmra.mrb[8].mxu0 %vm433_vm1, %v709_v8 }
 0x160   : > { %v5297_v23 = vpop.permute.xlu0 %3125 }
 0x161   : > { %6711 = vst [vmem:[#allocation78_spill] sm:$0xff] %v5297_v23  ;;  %v5307_v38 = vpop.permute.xlu1 %3150 }
 0x162   : > { %6716 = vst [vmem:[#allocation83_spill] sm:$0xff] %v5307_v38 }
 0x164   : > { %v5301_v10 = vpop.permute.xlu0 %3135 }
 0x165   : > { %6713 = vst [vmem:[#allocation80_spill] sm:$0xff] %v5301_v10  ;;  %v5311_v8 = vpop.permute.xlu1 %3160 }
 0x166   : > { %6718 = vst [vmem:[#allocation85_spill] sm:$0xff] %v5311_v8 }
 0x168   : > { %v5305_v13 = vpop.permute.xlu0 %3145 }
 0x169   : > { %6715 = vst [vmem:[#allocation82_spill] sm:$0xff] %v5305_v13  ;;  %v5315_v2 = vpop.permute.xlu1 %3170 }
 0x16a   : > { %6720 = vst [vmem:[#allocation87_spill] sm:$0xff] %v5315_v2 }
 0x16c   : > { %v5309_v62 = vpop.permute.xlu0 %3155 }
 0x16d   : > { %6717 = vst [vmem:[#allocation84_spill] sm:$0xff] %v5309_v62  ;;  %v5319_v23 = vpop.permute.xlu1 %3180 }
 0x16e   : > { %6722 = vst [vmem:[#allocation89_spill] sm:$0xff] %v5319_v23 }
 0x170   : > { %v5313_v19 = vpop.permute.xlu0 %3165 }
 0x171   : > { %6719 = vst [vmem:[#allocation86_spill] sm:$0xff] %v5313_v19  ;;  %v5323_v10 = vpop.permute.xlu1 %3190 }
 0x172   : > { %6724 = vst [vmem:[#allocation91_spill] sm:$0xff] %v5323_v10 }
 0x174   : > { %v5317_v49 = vpop.permute.xlu0 %3175 }
 0x175   : > { %6721 = vst [vmem:[#allocation88_spill] sm:$0xff] %v5317_v49  ;;  %v5327_v13 = vpop.permute.xlu1 %3200 }
 0x176   : > { %6726 = vst [vmem:[#allocation93_spill] sm:$0xff] %v5327_v13 }
 0x178   : > { %v5321_v54 = vpop.permute.xlu0 %3185 }
 0x179   : > { %6723 = vst [vmem:[#allocation90_spill] sm:$0xff] %v5321_v54  ;;  %v5331_v62 = vpop.permute.xlu1 %3210 }
 0x17a   : > { %6728 = vst [vmem:[#allocation95_spill] sm:$0xff] %v5331_v62 }
 0x17c   : > { %v5325_v57 = vpop.permute.xlu0 %3195 }
 0x17d   : > { %6725 = vst [vmem:[#allocation92_spill] sm:$0xff] %v5325_v57  ;;  %v5335_v19 = vpop.permute.xlu1 %3220 }
 0x17e   : > { %6730 = vst [vmem:[#allocation97_spill] sm:$0xff] %v5335_v19 }
 0x180   : > { %v5329_v38 = vpop.permute.xlu0 %3205 }
 0x181   : > { %6727 = vst [vmem:[#allocation94_spill] sm:$0xff] %v5329_v38  ;;  %v5339_v23 = vpop.permute.xlu1 %3230 }
 0x182   : > { %6732 = vst [vmem:[#allocation99_spill] sm:$0xff] %v5339_v23 }
 0x184   : > { %v5333_v8 = vpop.permute.xlu0 %3215 }
 0x185   : > { %6729 = vst [vmem:[#allocation96_spill] sm:$0xff] %v5333_v8  ;;  %v5343_v10 = vpop.permute.xlu1 %3240 }
 0x186   : > { %6734 = vst [vmem:[#allocation101_spill] sm:$0xff] %v5343_v10 }
 0x188   : > { %v5337_v2 = vpop.permute.xlu0 %3225 }
 0x189   : > { %6731 = vst [vmem:[#allocation98_spill] sm:$0xff] %v5337_v2  ;;  %v5347_v13 = vpop.permute.xlu1 %3250 }
 0x18a   : > { %6736 = vst [vmem:[#allocation103_spill] sm:$0xff] %v5347_v13 }
 0x18c   : > { %v5341_v54 = vpop.permute.xlu0 %3235 }
 0x18d   : > { %6733 = vst [vmem:[#allocation100_spill] sm:$0xff] %v5341_v54  ;;  %v5351_v62 = vpop.permute.xlu1 %3260 }
 0x18e   : > { %6738 = vst [vmem:[#allocation105_spill] sm:$0xff] %v5351_v62  ;;  %v3850_v62 = vld [vmem:[%s6624_s3] ss:$0 sm:$0xff] }
 0x190   : > { %v5345_v57 = vpop.permute.xlu0 %3245 }
 0x191   : > { %6735 = vst [vmem:[#allocation102_spill] sm:$0xff] %v5345_v57  ;;  %v5355_v19 = vpop.permute.xlu1 %3270 }
 0x192   : > { %6740 = vst [vmem:[#allocation107_spill] sm:$0xff] %v5355_v19 }
 0x194   : > { %v5349_v38 = vpop.permute.xlu0 %3255 }
 0x195   : > { %6737 = vst [vmem:[#allocation104_spill] sm:$0xff] %v5349_v38  ;;  %v5359_v23 = vpop.permute.xlu1 %3280 }
 0x196   : > { %6742 = vst [vmem:[#allocation109_spill] sm:$0xff] %v5359_v23 }
 0x198   : > { %v5353_v8 = vpop.permute.xlu0 %3265 }
 0x199   : > { %6739 = vst [vmem:[#allocation106_spill] sm:$0xff] %v5353_v8  ;;  %v5363_v10 = vpop.permute.xlu1 %3290 }
 0x19a   : > { %6744 = vst [vmem:[#allocation111_spill] sm:$0xff] %v5363_v10  ;;  %v5489_v10 = vld [vmem:[%s6627_s6 + $0x80] sm:$0xff]  }
 0x19c   : > { %v5357_v2 = vpop.permute.xlu0 %3275 }
 0x19d   : > { %6741 = vst [vmem:[#allocation108_spill] sm:$0xff] %v5357_v2 }
 0x1a0   : > { %v5361_v54 = vpop.permute.xlu0 %3285 }
 0x1a1   : > { %6743 = vst [vmem:[#allocation110_spill] sm:$0xff] %v5361_v54 }
 0x1cd   : > { %v529_v57 = vpop.permute.xlu0 %528 }
 0x1ce   : > { %535 = vst.msk [vmem:[%s5143_s26] sm:$0xff] %vm534_vm2, %v529_v57 }
 0x1cf   : > { %v531_v13 = vpop.permute.xlu1 %530 }
 0x1d0   : > { %536 = vst.msk [vmem:[%s5143_s26 + $0x8] sm:$0xff] %vm534_vm2, %v531_v13 }
 0x1d2   : > { %v614_v8 = vpop.f32.mrb[4].mxu0 }
 0x1d3   : > { %v615_v38 = vadd.f32 %v3850_v62, %v614_v8  ;;  %v4128_v19 = vpop.f32.mrb[5].mxu0 }
 0x1d4   : > { %v617_v49 = vpop.f32.mrb[6].mxu0 }
 0x1d5   : > { %v621_v2 = vmax.f32 %v615_v38, 0.0  ;;  %v618_v25 = vadd.f32 %v3850_v62, %v617_v49  ;;  %v4129_v23 = vpop.f32.mrb[7].mxu0 }
 0x1d7   : > { %v622_v41 = vmax.f32 %v618_v25, 0.0 }
 0x1d9   : > { %v623_v54 = vpack.c.bf16 %v622_v41, %v621_v2 }
 0x1db   : > { %4139 = vmatmul.mubr.msk.bf16.vlgmr.msra.gmra.mrb[4].mxu1 %vm433_vm1, %v623_v54 }
 0x1dc   : > { %4155 = vmatpush3.bf16.msra.mxu1 %v5255_v7  ;;  %4162 = vmatprep.mubr.msk.bf16.mxu1 %vm4555_vm0, %v6674_v33 }
 0x1dd   : > { %4156 = vmatprep.subr.bf16.mxu1 %v6674_v33 }
 0x1e0   : > { %4157 = vmatpush3.bf16.msra.mxu1 %v5263_v1  ;;  %v4465_v1 = vld [vmem:[%s6627_s6] sm:$0xff]  }
 0x1e1   : > { %4158 = vmatprep.subr.bf16.mxu1 %v6674_v33  ;;  %4168 = vmatprep.mubr.bf16.mxu0 %v4465_v1 }
 0x1e4   : > { %4159 = vmatpush3.bf16.msra.mxu1 %v5275_v12 }
 0x1e5   : > { %4160 = vmatprep.subr.bf16.mxu1 %v6674_v33  ;;  %v5387_v33 = vld [vmem:[%s6626_s5] ss:$0 sm:$0xff] }
 0x1e8   : > { %4161 = vmatpush3.bf16.msra.mxu1 %v5281_v17 }
 0x232   : > { %v747_v25 = vpop.f32.mrb[8].mxu0 }
 0x233   : > { %v748_v41 = vadd.f32 %v3850_v62, %v747_v25  ;;  %v4152_v19 = vpop.f32.mrb[9].mxu0 }
 0x234   : > { %v750_v23 = vpop.f32.mrb[10].mxu0 }
 0x235   : > { %v751_v54 = vadd.f32 %v3850_v62, %v750_v23  ;;  %v4153_v38 = vpop.f32.mrb[11].mxu0  ;;  %v754_v49 = vmax.f32 %v748_v41, 0.0  ;;  %v5394_v23 = vld [vmem:[%s6627_s6 + $0x8] sm:$0xff]  }
 0x236   : > { %v5406_v38 = vld [vmem:[%s6627_s6 + $0x18] sm:$0xff]  }
 0x237   : > { %v755_v7 = vmax.f32 %v751_v54, 0.0  ;;  %v5399_v54 = vld [vmem:[%s6627_s6 + $0x10] sm:$0xff]  }
 0x239   : > { %v756_v2 = vpack.c.bf16 %v755_v7, %v754_v49  ;;  %v5411_v49 = vld [vmem:[%s6627_s6 + $0x20] sm:$0xff]   ;;  %v5418_v7 = vld [vmem:[%s6627_s6 + $0x28] sm:$0xff]  }
 0x23b   : > { %4163 = vmatmul.mubr.msk.bf16.vlgmr.msra.gmra.mrb[8].mxu1 %vm433_vm1, %v756_v2  ;;  %v5423_v2 = vld [vmem:[%s6627_s6 + $0x30] sm:$0xff]  }
 0x23c   : > { %4298 = vmatprep.mubr.bf16.mxu1 %v4465_v1  ;;  %v5430_v1 = vld [vmem:[%s6627_s6 + $0x38] sm:$0xff]  }
 0x2ae   : > { %v700_v12 = vpop.f32.mrb[4].mxu1 }
 0x2af   : > { %v701_v62 = vadd.f32 %v5387_v33, %v700_v12  ;;  %v4140_v17 = vpop.f32.mrb[5].mxu1  ;;  %v5435_v12 = vld [vmem:[%s6627_s6 + $0x40] sm:$0xff]  }
 0x2b0   : > { %v703_v57 = vpop.f32.mrb[6].mxu1  ;;  %v5447_v17 = vld [vmem:[%s6627_s6 + $0x50] sm:$0xff]  }
 0x2b1   : > { %v707_v13 = vmax.f32 %v701_v62, 0.0  ;;  %v704_v8 = vadd.f32 %v5387_v33, %v703_v57  ;;  %v4141_v25 = vpop.f32.mrb[7].mxu1  ;;  %v5442_v62 = vld [vmem:[%s6627_s6 + $0x48] sm:$0xff]   ;;  %v5454_v57 = vld [vmem:[%s6627_s6 + $0x58] sm:$0xff]  }
 0x2b2   : > { %v5469_v25 = vld [vmem:[%s6627_s6 + $0x68] sm:$0xff]  }
 0x2b3   : > { %v708_v41 = vmax.f32 %v704_v8, 0.0  ;;  %v2662_v8 = vld [vmem:[%s6628_s7 + $0x3f8] sm:$0xff] }
 0x2b4   : > { %3300 = vperm.xlu1 %4454, %v2662_v8   ;;  %v5484_v8 = vld [vmem:[%s6627_s6 + $0x78] sm:$0xff]  }
 0x2b5   : > { %v931_v19 = vpack.c.bf16 %v708_v41, %v707_v13  ;;  %v5459_v13 = vld [vmem:[%s6627_s6 + $0x60] sm:$0xff]   ;;  %v5474_v41 = vld [vmem:[%s6627_s6 + $0x70] sm:$0xff]  }
 0x2b7   : > { %4166 = vmatprep.subr.bf16.mxu0 %v931_v19 }
 0x2b8   : > { %4167 = vmatpush3.bf16.xpose.msra.mxu0 %v931_v19  ;;  %v2661_v19 = vld [vmem:[%s6628_s7 + $0x3f0] sm:$0xff] }
 0x2b9   : > { %3295 = vperm.xlu0 %4455, %v2661_v19   ;;  %v5501_v19 = vld [vmem:[%s6627_s6 + $0x90] sm:$0xff]  }
 0x2bf   : > { %4169 = vmatmul.mubr.bf16.vlgmr.msra.gmra.mrb[12].mxu0 %v5394_v23 }
 0x2c0   : > { %4172 = vmatprep.mubr.bf16.mxu0 %v5399_v54 }
 0x2c7   : > { %4173 = vmatmul.mubr.bf16.gmra.mrb[16].mxu0 %v5406_v38 }
 0x2c8   : > { %4176 = vmatprep.mubr.bf16.mxu0 %v5411_v49 }
 0x2cf   : > { %4177 = vmatmul.mubr.bf16.gmra.mrb[20].mxu0 %v5418_v7 }
 0x2d0   : > { %4180 = vmatprep.mubr.bf16.mxu0 %v5423_v2 }
 0x2d7   : > { %4181 = vmatmul.mubr.bf16.gmra.mrb[24].mxu0 %v5430_v1 }
 0x2d8   : > { %4184 = vmatprep.mubr.bf16.mxu0 %v5435_v12 }
 0x2df   : > { %4185 = vmatmul.mubr.bf16.gmra.mrb[28].mxu0 %v5442_v62 }
 0x2e0   : > { %4188 = vmatprep.mubr.bf16.mxu0 %v5447_v17 }
 0x2e7   : > { %4189 = vmatmul.mubr.bf16.gmra.mrb[32].mxu0 %v5454_v57 }
 0x2e8   : > { %4192 = vmatprep.mubr.bf16.mxu0 %v5459_v13 }
 0x2ef   : > { %4193 = vmatmul.mubr.bf16.gmra.mrb[36].mxu0 %v5469_v25 }
 0x2f0   : > { %4196 = vmatprep.mubr.bf16.mxu0 %v5474_v41 }
 0x2f7   : > { %4197 = vmatmul.mubr.bf16.gmra.mrb[40].mxu0 %v5484_v8 }
 0x2f8   : > { %4200 = vmatprep.mubr.bf16.mxu0 %v5489_v10 }
 0x2ff   : > { %4201 = vmatmul.mubr.bf16.gmra.mrb[44].mxu0 %v5496_v30 }
 0x300   : > { %4204 = vmatprep.mubr.bf16.mxu0 %v5501_v19 }
 0x307   : > { %4205 = vmatmul.mubr.bf16.gmra.mrb[48].mxu0 %v5508_v46 }
 0x308   : > { %4208 = vmatprep.mubr.bf16.mxu0 %v5513_v3 }
 0x30e   : > { %v794_v18 = vpop.f32.mrb[8].mxu1 }
 0x30f   : > { %4209 = vmatmul.mubr.bf16.gmra.mrb[52].mxu0 %v5520_v14  ;;  %v795_v50 = vadd.f32 %v5387_v33, %v794_v18  ;;  %v4164_v58 = vpop.f32.mrb[9].mxu1 }
 0x310   : > { %4212 = vmatprep.mubr.bf16.mxu0 %v5525_v6  ;;  %v797_v53 = vpop.f32.mrb[10].mxu1  ;;  %v5579_v58 = vld [vmem:[%s6627_s6 + $0xf0] sm:$0xff]  }
 0x311   : > { %v798_v61 = vadd.f32 %v5387_v33, %v797_v53  ;;  %v4165_v34 = vpop.f32.mrb[11].mxu1  ;;  %v801_v37 = vmax.f32 %v795_v50, 0.0  ;;  %v5551_v50 = vld [vmem:[%s6627_s6 + $0xd0] sm:$0xff]   ;;  %v5574_v53 = vld [vmem:[%s6627_s6 + $0xe8] sm:$0xff]   ;;  %v5593_v33 = vld [vmem:[%s6627_s6 + $0x100] sm:$0xff]  }
 0x312   : > { %v5546_v34 = vld [vmem:[%s6627_s6 + $0xc8] sm:$0xff]  }
 0x313   : > { %v802_v45 = vmax.f32 %v798_v61, 0.0  ;;  %v5588_v61 = vld [vmem:[%s6627_s6 + $0xf8] sm:$0xff]  }
 0x315   : > { %v1861_v18 = vpack.c.bf16 %v802_v45, %v801_v37  ;;  %v5560_v37 = vld [vmem:[%s6627_s6 + $0xd8] sm:$0xff]   ;;  %v5565_v45 = vld [vmem:[%s6627_s6 + $0xe0] sm:$0xff]  }
 0x317   : > { %4213 = vmatmul.mubr.bf16.gmra.mrb[56].mxu0 %v5534_v42  ;;  %4296 = vmatprep.subr.bf16.mxu1 %v1861_v18 }
 0x318   : > { %4216 = vmatprep.mubr.bf16.mxu0 %v5539_v20  ;;  %4297 = vmatpush3.bf16.xpose.msra.mxu1 %v1861_v18  ;;  %v5760_v18 = vld [vmem:[%s6627_s6 + $0x1b8] sm:$0xff]  }
 0x31f   : > { %4217 = vmatmul.mubr.bf16.gmra.mrb[60].mxu0 %v5546_v34  ;;  %4299 = vmatmul.mubr.bf16.vlgmr.msra.gmra.mrb[12].mxu1 %v5394_v23  ;;  %v5602_v23 = vld [vmem:[%s6627_s6 + $0x108] sm:$0xff]  }
 0x320   : > { %4220 = vmatprep.mubr.bf16.mxu0 %v5551_v50  ;;  %4302 = vmatprep.mubr.bf16.mxu1 %v5399_v54  ;;  %v5607_v54 = vld [vmem:[%s6627_s6 + $0x110] sm:$0xff]  }
 0x327   : > { %4221 = vmatmul.mubr.bf16.gmra.mrb[64].mxu0 %v5560_v37  ;;  %4303 = vmatmul.mubr.bf16.gmra.mrb[16].mxu1 %v5406_v38  ;;  %v5616_v38 = vld [vmem:[%s6627_s6 + $0x118] sm:$0xff]  }
 0x328   : > { %4224 = vmatprep.mubr.bf16.mxu0 %v5565_v45  ;;  %4306 = vmatprep.mubr.bf16.mxu1 %v5411_v49  ;;  %v5621_v49 = vld [vmem:[%s6627_s6 + $0x120] sm:$0xff]  }
 0x32f   : > { %4225 = vmatmul.mubr.bf16.gmra.mrb[68].mxu0 %v5574_v53  ;;  %4307 = vmatmul.mubr.bf16.gmra.mrb[20].mxu1 %v5418_v7  ;;  %v5630_v7 = vld [vmem:[%s6627_s6 + $0x128] sm:$0xff]  }
 0x330   : > { %4228 = vmatprep.mubr.bf16.mxu0 %v5579_v58  ;;  %4310 = vmatprep.mubr.bf16.mxu1 %v5423_v2  ;;  %v5635_v2 = vld [vmem:[%s6627_s6 + $0x130] sm:$0xff]  }
 0x337   : > { %4229 = vmatmul.mubr.bf16.gmra.mrb[72].mxu0 %v5588_v61  ;;  %4311 = vmatmul.mubr.bf16.gmra.mrb[24].mxu1 %v5430_v1  ;;  %v5644_v1 = vld [vmem:[%s6627_s6 + $0x138] sm:$0xff]  }
 0x338   : > { %4232 = vmatprep.mubr.bf16.mxu0 %v5593_v33  ;;  %4314 = vmatprep.mubr.bf16.mxu1 %v5435_v12  ;;  %v5649_v12 = vld [vmem:[%s6627_s6 + $0x140] sm:$0xff]  }
 0x33f   : > { %4233 = vmatmul.mubr.bf16.gmra.mrb[76].mxu0 %v5602_v23  ;;  %4315 = vmatmul.mubr.bf16.gmra.mrb[28].mxu1 %v5442_v62  ;;  %v5658_v62 = vld [vmem:[%s6627_s6 + $0x148] sm:$0xff]  }
 0x340   : > { %4236 = vmatprep.mubr.bf16.mxu0 %v5607_v54  ;;  %4318 = vmatprep.mubr.bf16.mxu1 %v5447_v17  ;;  %v5663_v17 = vld [vmem:[%s6627_s6 + $0x150] sm:$0xff]  }
 0x347   : > { %4237 = vmatmul.mubr.bf16.gmra.mrb[80].mxu0 %v5616_v38  ;;  %4319 = vmatmul.mubr.bf16.gmra.mrb[32].mxu1 %v5454_v57  ;;  %v5677_v57 = vld [vmem:[%s6627_s6 + $0x160] sm:$0xff]  }
 0x348   : > { %4240 = vmatprep.mubr.bf16.mxu0 %v5621_v49  ;;  %4322 = vmatprep.mubr.bf16.mxu1 %v5459_v13  ;;  %v5691_v13 = vld [vmem:[%s6627_s6 + $0x170] sm:$0xff]  }
 0x34f   : > { %4241 = vmatmul.mubr.bf16.gmra.mrb[84].mxu0 %v5630_v7  ;;  %4323 = vmatmul.mubr.bf16.gmra.mrb[36].mxu1 %v5469_v25  ;;  %v5742_v25 = vld [vmem:[%s6627_s6 + $0x1a8] sm:$0xff]  }
 0x350   : > { %4244 = vmatprep.mubr.bf16.mxu0 %v5635_v2  ;;  %4326 = vmatprep.mubr.bf16.mxu1 %v5474_v41  ;;  %v5747_v41 = vld [vmem:[%s6627_s6 + $0x1b0] sm:$0xff]  }
 0x357   : > { %4245 = vmatmul.mubr.bf16.gmra.mrb[88].mxu0 %v5644_v1  ;;  %4327 = vmatmul.mubr.bf16.gmra.mrb[40].mxu1 %v5484_v8 }
 0x358   : > { %4248 = vmatprep.mubr.bf16.mxu0 %v5649_v12  ;;  %4330 = vmatprep.mubr.bf16.mxu1 %v5489_v10  ;;  %v5672_v10 = vld [vmem:[%s6627_s6 + $0x158] sm:$0xff]  }
 0x35f   : > { %4249 = vmatmul.mubr.bf16.gmra.mrb[92].mxu0 %v5658_v62  ;;  %4331 = vmatmul.mubr.bf16.gmra.mrb[44].mxu1 %v5496_v30  ;;  %v5686_v30 = vld [vmem:[%s6627_s6 + $0x168] sm:$0xff]  }
 0x360   : > { %4252 = vmatprep.mubr.bf16.mxu0 %v5663_v17  ;;  %4334 = vmatprep.mubr.bf16.mxu1 %v5501_v19 }
 0x367   : > { %4253 = vmatmul.mubr.bf16.gmra.mrb[96].mxu0 %v5672_v10  ;;  %4335 = vmatmul.mubr.bf16.gmra.mrb[48].mxu1 %v5508_v46  ;;  %v5705_v46 = vld [vmem:[%s6627_s6 + $0x180] sm:$0xff]  }
 0x368   : > { %4256 = vmatprep.mubr.bf16.mxu0 %v5677_v57  ;;  %4338 = vmatprep.mubr.bf16.mxu1 %v5513_v3  ;;  %v5700_v3 = vld [vmem:[%s6627_s6 + $0x178] sm:$0xff]  }
 0x36f   : > { %4257 = vmatmul.mubr.bf16.gmra.mrb[100].mxu0 %v5686_v30  ;;  %4339 = vmatmul.mubr.bf16.gmra.mrb[52].mxu1 %v5520_v14  ;;  %v5719_v14 = vld [vmem:[%s6627_s6 + $0x190] sm:$0xff]  }
 0x370   : > { %4260 = vmatprep.mubr.bf16.mxu0 %v5691_v13  ;;  %4342 = vmatprep.mubr.bf16.mxu1 %v5525_v6  ;;  %v5714_v6 = vld [vmem:[%s6627_s6 + $0x188] sm:$0xff]  }
 0x377   : > { %4261 = vmatmul.mubr.bf16.gmra.mrb[104].mxu0 %v5700_v3  ;;  %4343 = vmatmul.mubr.bf16.gmra.mrb[56].mxu1 %v5534_v42  ;;  %v5733_v42 = vld [vmem:[%s6627_s6 + $0x1a0] sm:$0xff]  }
 0x378   : > { %4264 = vmatprep.mubr.bf16.mxu0 %v5705_v46  ;;  %4346 = vmatprep.mubr.bf16.mxu1 %v5539_v20  ;;  %v5728_v20 = vld [vmem:[%s6627_s6 + $0x198] sm:$0xff]  }
 0x37f   : > { %4265 = vmatmul.mubr.bf16.gmra.mrb[108].mxu0 %v5714_v6  ;;  %4347 = vmatmul.mubr.bf16.gmra.mrb[60].mxu1 %v5546_v34 }
 0x380   : > { %4268 = vmatprep.mubr.bf16.mxu0 %v5719_v14  ;;  %4350 = vmatprep.mubr.bf16.mxu1 %v5551_v50  ;;  %v5767_v50 = vld [vmem:[%s6627_s6 + $0x1c0] sm:$0xff]  }
 0x387   : > { %4269 = vmatmul.mubr.bf16.gmra.mrb[112].mxu0 %v5728_v20  ;;  %4351 = vmatmul.mubr.bf16.gmra.mrb[64].mxu1 %v5560_v37 }
 0x388   : > { %4272 = vmatprep.mubr.bf16.mxu0 %v5733_v42  ;;  %4354 = vmatprep.mubr.bf16.mxu1 %v5565_v45 }
 0x38f   : > { %4273 = vmatmul.mubr.bf16.gmra.mrb[116].mxu0 %v5742_v25  ;;  %4355 = vmatmul.mubr.bf16.gmra.mrb[68].mxu1 %v5574_v53 }
 0x390   : > { %4276 = vmatprep.mubr.bf16.mxu0 %v5747_v41  ;;  %4358 = vmatprep.mubr.bf16.mxu1 %v5579_v58  ;;  %v5782_v58 = vld [vmem:[%s6627_s6 + $0x1c8] sm:$0xff]  }
 0x392   : > { %v5753_v8 = vpop.f32.mrb[12].mxu0 }
 0x393   : > { %v5755_v19 = vpop.f32.mrb[13].mxu0 }
 0x394   : > { %v5762_v34 = vpop.f32.mrb[14].mxu0 }
 0x395   : > { %v5769_v37 = vpop.f32.mrb[15].mxu0 }
 0x397   : > { %4277 = vmatmul.mubr.bf16.gmra.mrb[120].mxu0 %v5760_v18  ;;  %4359 = vmatmul.mubr.bf16.gmra.mrb[72].mxu1 %v5588_v61 }
 0x398   : > { %4280 = vmatprep.mubr.bf16.mxu0 %v5767_v50  ;;  %4362 = vmatprep.mubr.bf16.mxu1 %v5593_v33 }
 0x39a   : > { %v5775_v45 = vpop.f32.mrb[16].mxu0 }
 0x39b   : > { %v5777_v53 = vpop.f32.mrb[17].mxu0 }
 0x39c   : > { %v5784_v26 = vpop.f32.mrb[18].mxu0 }
 0x39d   : > { %v5791_v61 = vpop.f32.mrb[19].mxu0 }
 0x39f   : > { %4281 = vmatmul.mubr.bf16.gmra.mrb[124].mxu0 %v5782_v58  ;;  %4363 = vmatmul.mubr.bf16.gmra.mrb[76].mxu1 %v5602_v23 }
 0x3a0   : > { %4284 = vmatprep.mubr.bf16.mxu0 %v5789_v22  ;;  %4366 = vmatprep.mubr.bf16.mxu1 %v5607_v54 }
 0x3a2   : > { %v5797_v33 = vpop.f32.mrb[20].mxu0 }
 0x3a3   : > { %v5799_v29 = vpop.f32.mrb[21].mxu0 }
 0x3a4   : > { %v5806_v15 = vpop.f32.mrb[22].mxu0 }
 0x3a5   : > { %v5813_v23 = vpop.f32.mrb[23].mxu0 }
 0x3a7   : > { %4285 = vmatmul.mubr.bf16.gmra.mrb[128].mxu0 %v5804_v9  ;;  %4367 = vmatmul.mubr.bf16.gmra.mrb[80].mxu1 %v5616_v38 }
 0x3a8   : > { %4288 = vmatprep.mubr.bf16.mxu0 %v5811_v11  ;;  %4370 = vmatprep.mubr.bf16.mxu1 %v5621_v49 }
 0x3aa   : > { %v5819_v54 = vpop.f32.mrb[24].mxu0 }
 0x3ab   : > { %v5821_v16 = vpop.f32.mrb[25].mxu0 }
 0x3ac   : > { %v5828_v4 = vpop.f32.mrb[26].mxu0 }
 0x3ad   : > { %v5835_v38 = vpop.f32.mrb[27].mxu0 }
 0x3af   : > { %4289 = vmatmul.mubr.bf16.gmra.mrb[132].mxu0 %v5826_v63  ;;  %4371 = vmatmul.mubr.bf16.gmra.mrb[84].mxu1 %v5630_v7 }
 0x3b0   : > { %4292 = vmatprep.mubr.bf16.mxu0 %v5833_v0  ;;  %4374 = vmatprep.mubr.bf16.mxu1 %v5635_v2 }
 0x3b2   : > { %v5841_v49 = vpop.f32.mrb[28].mxu0 }
 0x3b3   : > { %v5843_v5 = vpop.f32.mrb[29].mxu0 }
 0x3b4   : > { %6745 = vst [vmem:[#allocation112_spill] sm:$0xff] %v5843_v5  ;;  %v5850_v59 = vpop.f32.mrb[30].mxu0 }
 0x3b5   : > { %6747 = vst [vmem:[#allocation114_spill] sm:$0xff] %v5850_v59  ;;  %v5852_v56 = vpop.f32.mrb[31].mxu0 }
 0x3b6   : > { %6748 = vst [vmem:[#allocation115_spill] sm:$0xff] %v5852_v56 }
 0x3b7   : > { %4293 = vmatmul.mubr.bf16.gmra.mrb[136].mxu0 %v5848_v55  ;;  %4375 = vmatmul.mubr.bf16.gmra.mrb[88].mxu1 %v5644_v1 }
 0x3b8   : > { %4378 = vmatprep.mubr.bf16.mxu1 %v5649_v12 }
 0x3ba   : > { %v5857_v7 = vpop.f32.mrb[32].mxu0 }
 0x3bb   : > { %v5859_v2 = vpop.f32.mrb[33].mxu0 }
 0x3bc   : > { %v5861_v60 = vpop.f32.mrb[34].mxu0 }
 0x3bd   : > { %6749 = vst [vmem:[#allocation116_spill] sm:$0xff] %v5861_v60  ;;  %v5863_v5 = vpop.f32.mrb[35].mxu0 }
 0x3be   : > { %6750 = vst [vmem:[#allocation117_spill] sm:$0xff] %v5863_v5 }
 0x3bf   : > { %4379 = vmatmul.mubr.bf16.gmra.mrb[92].mxu1 %v5658_v62 }
 0x3c0   : > { %4382 = vmatprep.mubr.bf16.mxu1 %v5663_v17 }
 0x3c2   : > { %v5867_v59 = vpop.f32.mrb[36].mxu0 }
 0x3c3   : > { %v5869_v56 = vpop.f32.mrb[37].mxu0 }
 0x3c4   : > { %v5871_v55 = vpop.f32.mrb[38].mxu0 }
 0x3c5   : > { %6751 = vst [vmem:[#allocation118_spill] sm:$0xff] %v5871_v55  ;;  %v5873_v1 = vpop.f32.mrb[39].mxu0 }
 0x3c6   : > { %6752 = vst [vmem:[#allocation119_spill] sm:$0xff] %v5873_v1 }
 0x3c7   : > { %4383 = vmatmul.mubr.bf16.gmra.mrb[96].mxu1 %v5672_v10 }
 0x3c8   : > { %4386 = vmatprep.mubr.bf16.mxu1 %v5677_v57 }
 0x3ca   : > { %v5877_v12 = vpop.f32.mrb[40].mxu0 }
 0x3cb   : > { %v5879_v60 = vpop.f32.mrb[41].mxu0 }
 0x3cc   : > { %v5881_v5 = vpop.f32.mrb[42].mxu0 }
 0x3cd   : > { %6753 = vst [vmem:[#allocation120_spill] sm:$0xff] %v5881_v5  ;;  %v5883_v62 = vpop.f32.mrb[43].mxu0 }
 0x3ce   : > { %6754 = vst [vmem:[#allocation121_spill] sm:$0xff] %v5883_v62 }
 0x3cf   : > { %4387 = vmatmul.mubr.bf16.gmra.mrb[100].mxu1 %v5686_v30 }
 0x3d0   : > { %4390 = vmatprep.mubr.bf16.mxu1 %v5691_v13 }
 0x3d2   : > { %v5887_v17 = vpop.f32.mrb[44].mxu0 }
 0x3d3   : > { %v5889_v55 = vpop.f32.mrb[45].mxu0 }
 0x3d4   : > { %v5891_v1 = vpop.f32.mrb[46].mxu0 }
 0x3d5   : > { %v5893_v10 = vpop.f32.mrb[47].mxu0 }
 0x3d6   : > { %6755 = vst [vmem:[#allocation122_spill] sm:$0xff] %v5893_v10 }
 0x3d7   : > { %4391 = vmatmul.mubr.bf16.gmra.mrb[104].mxu1 %v5700_v3 }
 0x3d8   : > { %4394 = vmatprep.mubr.bf16.mxu1 %v5705_v46 }
 0x3da   : > { %v5897_v57 = vpop.f32.mrb[48].mxu0 }
 0x3db   : > { %v5899_v5 = vpop.f32.mrb[49].mxu0 }
 0x3dc   : > { %v5901_v62 = vpop.f32.mrb[50].mxu0 }
 0x3dd   : > { %6756 = vst [vmem:[#allocation123_spill] sm:$0xff] %v5901_v62  ;;  %v5903_v30 = vpop.f32.mrb[51].mxu0 }
 0x3de   : > { %6757 = vst [vmem:[#allocation124_spill] sm:$0xff] %v5903_v30 }
 0x3df   : > { %4395 = vmatmul.mubr.bf16.gmra.mrb[108].mxu1 %v5714_v6 }
 0x3e0   : > { %4398 = vmatprep.mubr.bf16.mxu1 %v5719_v14 }
 0x3e2   : > { %v5907_v13 = vpop.f32.mrb[52].mxu0 }
 0x3e3   : > { %6758 = vst [vmem:[#allocation125_spill] sm:$0xff] %v5907_v13  ;;  %v5909_v10 = vpop.f32.mrb[53].mxu0 }
 0x3e4   : > { %6759 = vst [vmem:[#allocation126_spill] sm:$0xff] %v5909_v10  ;;  %v5911_v3 = vpop.f32.mrb[54].mxu0 }
 0x3e5   : > { %6760 = vst [vmem:[#allocation127_spill] sm:$0xff] %v5911_v3  ;;  %v5913_v46 = vpop.f32.mrb[55].mxu0 }
 0x3e6   : > { %6761 = vst [vmem:[#allocation128_spill] sm:$0xff] %v5913_v46 }
 0x3e7   : > { %4399 = vmatmul.mubr.bf16.gmra.mrb[112].mxu1 %v5728_v20 }
 0x3e8   : > { %4402 = vmatprep.mubr.bf16.mxu1 %v5733_v42 }
 0x3ea   : > { %v5917_v62 = vpop.f32.mrb[56].mxu0 }
 0x3eb   : > { %6762 = vst [vmem:[#allocation129_spill] sm:$0xff] %v5917_v62  ;;  %v5919_v30 = vpop.f32.mrb[57].mxu0 }
 0x3ec   : > { %6763 = vst [vmem:[#allocation130_spill] sm:$0xff] %v5919_v30  ;;  %v5921_v6 = vpop.f32.mrb[58].mxu0 }
 0x3ed   : > { %6764 = vst [vmem:[#allocation131_spill] sm:$0xff] %v5921_v6  ;;  %v5923_v14 = vpop.f32.mrb[59].mxu0 }
 0x3ee   : > { %6765 = vst [vmem:[#allocation132_spill] sm:$0xff] %v5923_v14 }
 0x3ef   : > { %4403 = vmatmul.mubr.bf16.gmra.mrb[116].mxu1 %v5742_v25 }
 0x3f0   : > { %4406 = vmatprep.mubr.bf16.mxu1 %v5747_v41 }
 0x3f2   : > { %v5927_v10 = vpop.f32.mrb[60].mxu0  ;;  %v4300_v3 = vpop.f32.mrb[12].mxu1 }
 0x3f3   : > { %v5929_v46 = vpop.f32.mrb[61].mxu0  ;;  %v2409_v20 = vmax.f32 %v5753_v8, %v4300_v3  ;;  %v1896_v42 = vpop.f32.mrb[13].mxu1 }
 0x3f4   : > { %v5933_v62 = vpop.f32.mrb[62].mxu0  ;;  %v2407_v30 = vmax.f32 %v5755_v19, %v1896_v42  ;;  %v4301_v6 = vpop.f32.mrb[14].mxu1 }
 0x3f5   : > { %v5936_v13 = vpop.f32.mrb[63].mxu0  ;;  %v3305_v25 = vadd.f32 %v4884_v24, %v2409_v20  ;;  %v2410_v41 = vmax.f32 %v5762_v34, %v4301_v6  ;;  %v1899_v14 = vpop.f32.mrb[15].mxu1 }
 0x3f6   : > { %v3303_v8 = vadd.f32 %v4876_v21, %v2407_v30  ;;  %v2408_v19 = vmax.f32 %v5769_v37, %v1899_v14 }
 0x3f7   : > { %v3433_v3 = vmax.f32 %v3305_v25, 0.0  ;;  %v3306_v42 = vadd.f32 %v4892_v27, %v2410_v41  ;;  %4407 = vmatmul.mubr.bf16.gmra.mrb[120].mxu1 %v5760_v18 }
 0x3f8   : > { %v3431_v24 = vmax.f32 %v3303_v8, 0.0  ;;  %v3304_v34 = vadd.f32 %v4894_v28, %v2408_v19  ;;  %4410 = vmatprep.mubr.bf16.mxu1 %v5767_v50 }
 0x3f9   : > { %3562 = vst.msk [vmem:[%s5943_s23 + $0x10] sm:$0xff] %vm3559_vm3, %v3433_v3  ;;  %v3434_v6 = vmax.f32 %v3306_v42, 0.0 }
 0x3fa   : > { %v5953_v20 = vpop.f32.mrb[64].mxu0  ;;  %3560 = vst.msk [vmem:[%s5943_s23] sm:$0xff] %vm3559_vm3, %v3431_v24  ;;  %v3432_v21 = vmax.f32 %v3304_v34, 0.0  ;;  %v4304_v37 = vpop.f32.mrb[16].mxu1 }
 0x3fb   : > { %v5957_v30 = vpop.f32.mrb[65].mxu0  ;;  %3563 = vst.msk [vmem:[%s5943_s23 + $0x18] sm:$0xff] %vm3559_vm3, %v3434_v6  ;;  %v2413_v27 = vmax.f32 %v5775_v45, %v4304_v37  ;;  %v1912_v18 = vpop.f32.mrb[17].mxu1 }
 0x3fc   : > { %v5962_v14 = vpop.f32.mrb[66].mxu0  ;;  %3561 = vst.msk [vmem:[%s5943_s23 + $0x8] sm:$0xff] %vm3559_vm3, %v3432_v21  ;;  %v2411_v28 = vmax.f32 %v5777_v53, %v1912_v18  ;;  %v4305_v50 = vpop.f32.mrb[18].mxu1 }
 0x3fd   : > { %v5967_v25 = vpop.f32.mrb[67].mxu0  ;;  %v3309_v41 = vadd.f32 %v4914_v36, %v2413_v27  ;;  %v2414_v8 = vmax.f32 %v5784_v26, %v4305_v50  ;;  %v1915_v19 = vpop.f32.mrb[19].mxu1 }
 0x3fe   : > { %v3307_v45 = vadd.f32 %v4904_v32, %v2411_v28  ;;  %v2412_v3 = vmax.f32 %v5791_v61, %v1915_v19 }
 0x3ff   : > { %v3437_v42 = vmax.f32 %v3309_v41, 0.0  ;;  %v3310_v24 = vadd.f32 %v4912_v35, %v2414_v8  ;;  %4411 = vmatmul.mubr.bf16.gmra.mrb[124].mxu1 %v5782_v58 }
 0x400   : > { %v3435_v53 = vmax.f32 %v3307_v45, 0.0  ;;  %v3308_v34 = vadd.f32 %v4902_v31, %v2412_v3  ;;  %4414 = vmatprep.mubr.bf16.mxu1 %v5789_v22 }
 0x401   : > { %3566 = vst.msk [vmem:[%s5943_s23 + $0x30] sm:$0xff] %vm3559_vm3, %v3437_v42  ;;  %v3438_v36 = vmax.f32 %v3310_v24, 0.0 }
 0x402   : > { %v5979_v26 = vpop.f32.mrb[68].mxu0  ;;  %3564 = vst.msk [vmem:[%s5943_s23 + $0x20] sm:$0xff] %vm3559_vm3, %v3435_v53  ;;  %v3436_v32 = vmax.f32 %v3308_v34, 0.0  ;;  %v4308_v61 = vpop.f32.mrb[20].mxu1 }
 0x403   : > { %v5983_v6 = vpop.f32.mrb[69].mxu0  ;;  %3567 = vst.msk [vmem:[%s5943_s23 + $0x38] sm:$0xff] %vm3559_vm3, %v3438_v36  ;;  %v2417_v35 = vmax.f32 %v5797_v33, %v4308_v61  ;;  %v1928_v58 = vpop.f32.mrb[21].mxu1 }
 0x404   : > { %v5988_v21 = vpop.f32.mrb[70].mxu0  ;;  %3565 = vst.msk [vmem:[%s5943_s23 + $0x28] sm:$0xff] %vm3559_vm3, %v3436_v32  ;;  %v2415_v31 = vmax.f32 %v5799_v29, %v1928_v58  ;;  %v4309_v22 = vpop.f32.mrb[22].mxu1 }
 0x405   : > { %v5993_v37 = vpop.f32.mrb[71].mxu0  ;;  %v3313_v27 = vadd.f32 %v4934_v44, %v2417_v35  ;;  %v2418_v18 = vmax.f32 %v5806_v15, %v4309_v22  ;;  %v1931_v28 = vpop.f32.mrb[23].mxu1 }
 0x406   : > { %v3311_v33 = vadd.f32 %v4924_v40, %v2415_v31  ;;  %v2416_v50 = vmax.f32 %v5813_v23, %v1931_v28 }
 0x407   : > { %v3441_v41 = vmax.f32 %v3313_v27, 0.0  ;;  %v3314_v8 = vadd.f32 %v4932_v43, %v2418_v18  ;;  %4415 = vmatmul.mubr.bf16.gmra.mrb[128].mxu1 %v5804_v9  ;;  %v6767_v18 = vld [vmem:[#allocation5_spill] sm:$0xff] }
 0x408   : > { %v3439_v29 = vmax.f32 %v3311_v33, 0.0  ;;  %v3312_v19 = vadd.f32 %v4922_v39, %v2416_v50  ;;  %4418 = vmatprep.mubr.bf16.mxu1 %v5811_v11  ;;  %v6768_v33 = vld [vmem:[#allocation114_spill] sm:$0xff] }
 0x409   : > { %3570 = vst.msk [vmem:[%s5943_s23 + $0x50] sm:$0xff] %vm3559_vm3, %v3441_v41  ;;  %v3442_v44 = vmax.f32 %v3314_v8, 0.0  ;;  %v6769_v8 = vld [vmem:[#allocation3_spill] sm:$0xff] }
 0x40a   : > { %v6005_v15 = vpop.f32.mrb[72].mxu0  ;;  %3568 = vst.msk [vmem:[%s5943_s23 + $0x40] sm:$0xff] %vm3559_vm3, %v3439_v29  ;;  %v3440_v40 = vmax.f32 %v3312_v19, 0.0  ;;  %v4312_v23 = vpop.f32.mrb[24].mxu1  ;;  %v6770_v29 = vld [vmem:[#allocation115_spill] sm:$0xff] }
 0x40b   : > { %v6009_v45 = vpop.f32.mrb[73].mxu0  ;;  %3571 = vst.msk [vmem:[%s5943_s23 + $0x58] sm:$0xff] %vm3559_vm3, %v3442_v44  ;;  %v2421_v43 = vmax.f32 %v5819_v54, %v4312_v23  ;;  %v1944_v9 = vpop.f32.mrb[25].mxu1 }
 0x40c   : > { %v6014_v3 = vpop.f32.mrb[74].mxu0  ;;  %3569 = vst.msk [vmem:[%s5943_s23 + $0x48] sm:$0xff] %vm3559_vm3, %v3440_v40  ;;  %v2419_v39 = vmax.f32 %v5821_v16, %v1944_v9  ;;  %v4313_v11 = vpop.f32.mrb[26].mxu1  ;;  %v6771_v40 = vld [vmem:[#allocation4_spill] sm:$0xff] }
 0x40d   : > { %v6019_v42 = vpop.f32.mrb[75].mxu0  ;;  %v3317_v24 = vadd.f32 %v4954_v52, %v2421_v43  ;;  %v2422_v53 = vmax.f32 %v5828_v4, %v4313_v11  ;;  %v1947_v34 = vpop.f32.mrb[27].mxu1  ;;  %v6772_v43 = vld [vmem:[#allocation113_spill] sm:$0xff] }
 0x40e   : > { %v3315_v54 = vadd.f32 %v4944_v48, %v2419_v39  ;;  %v2420_v36 = vmax.f32 %v5835_v38, %v1947_v34  ;;  %v6773_v39 = vld [vmem:[#allocation2_spill] sm:$0xff] }
 0x40f   : > { %v3445_v32 = vmax.f32 %v3317_v24, 0.0  ;;  %v3318_v61 = vadd.f32 %v4952_v51, %v2422_v53  ;;  %4419 = vmatmul.mubr.bf16.gmra.mrb[132].mxu1 %v5826_v63 }
 0x410   : > { %v3443_v16 = vmax.f32 %v3315_v54, 0.0  ;;  %v3316_v35 = vadd.f32 %v4942_v47, %v2420_v36  ;;  %4422 = vmatprep.mubr.bf16.mxu1 %v5833_v0  ;;  %v6766_v0 = vld [vmem:[#allocation112_spill] sm:$0xff] }
 0x411   : > { %3574 = vst.msk [vmem:[%s5943_s23 + $0x70] sm:$0xff] %vm3559_vm3, %v3445_v32  ;;  %v3446_v52 = vmax.f32 %v3318_v61, 0.0 }
 0x412   : > { %v6031_v4 = vpop.f32.mrb[76].mxu0  ;;  %3572 = vst.msk [vmem:[%s5943_s23 + $0x60] sm:$0xff] %vm3559_vm3, %v3443_v16  ;;  %v3444_v48 = vmax.f32 %v3316_v35, 0.0  ;;  %v4316_v38 = vpop.f32.mrb[28].mxu1 }
 0x413   : > { %v6035_v58 = vpop.f32.mrb[77].mxu0  ;;  %3575 = vst.msk [vmem:[%s5943_s23 + $0x78] sm:$0xff] %vm3559_vm3, %v3446_v52  ;;  %v2425_v51 = vmax.f32 %v5841_v49, %v4316_v38  ;;  %v1960_v63 = vpop.f32.mrb[29].mxu1  ;;  %v6774_v38 = vld [vmem:[#allocation9_spill] sm:$0xff] }
 0x414   : > { %v6040_v47 = vpop.f32.mrb[78].mxu0  ;;  %3573 = vst.msk [vmem:[%s5943_s23 + $0x68] sm:$0xff] %vm3559_vm3, %v3444_v48  ;;  %v2423_v31 = vmax.f32 %v6766_v0, %v1960_v63  ;;  %v4317_v22 = vpop.f32.mrb[30].mxu1  ;;  %v6775_v63 = vld [vmem:[#allocation116_spill] sm:$0xff] }
 0x415   : > { %v6045_v27 = vpop.f32.mrb[79].mxu0  ;;  %v3321_v28 = vadd.f32 %v6767_v18, %v2425_v51  ;;  %v2426_v50 = vmax.f32 %v6768_v33, %v4317_v22  ;;  %v1963_v41 = vpop.f32.mrb[31].mxu1  ;;  %v6776_v22 = vld [vmem:[#allocation7_spill] sm:$0xff]  ;;  %v6777_v18 = vld [vmem:[#allocation117_spill] sm:$0xff] }
 0x416   : > { %v3319_v49 = vadd.f32 %v6769_v8, %v2423_v31  ;;  %v2424_v19 = vmax.f32 %v6770_v29, %v1963_v41 }
 0x417   : > { %v3449_v44 = vmax.f32 %v3321_v28, 0.0  ;;  %v3322_v23 = vadd.f32 %v6771_v40, %v2426_v50  ;;  %4423 = vmatmul.mubr.bf16.gmra.mrb[136].mxu1 %v6772_v43  ;;  %v6778_v50 = vld [vmem:[#allocation8_spill] sm:$0xff] }
 0x418   : > { %v3447_v9 = vmax.f32 %v3319_v49, 0.0  ;;  %v3320_v11 = vadd.f32 %v6773_v39, %v2424_v19  ;;  %v6779_v49 = vld [vmem:[#allocation6_spill] sm:$0xff] }
 0x419   : > { %3578 = vst.msk [vmem:[%s5943_s23 + $0x90] sm:$0xff] %vm3559_vm3, %v3449_v44  ;;  %v3450_v24 = vmax.f32 %v3322_v23, 0.0 }
 0x41a   : > { %v6056_v53 = vpop.f32.mrb[80].mxu0  ;;  %3576 = vst.msk [vmem:[%s5943_s23 + $0x80] sm:$0xff] %vm3559_vm3, %v3447_v9  ;;  %v3448_v34 = vmax.f32 %v3320_v11, 0.0  ;;  %v4320_v54 = vpop.f32.mrb[32].mxu1 }
 0x41b   : > { %v6060_v36 = vpop.f32.mrb[81].mxu0  ;;  %3579 = vst.msk [vmem:[%s5943_s23 + $0x98] sm:$0xff] %vm3559_vm3, %v3450_v24  ;;  %v2429_v32 = vmax.f32 %v5857_v7, %v4320_v54  ;;  %v1976_v61 = vpop.f32.mrb[33].mxu1  ;;  %v6780_v54 = vld [vmem:[#allocation13_spill] sm:$0xff] }
 0x41c   : > { %v6065_v16 = vpop.f32.mrb[82].mxu0  ;;  %3577 = vst.msk [vmem:[%s5943_s23 + $0x88] sm:$0xff] %vm3559_vm3, %v3448_v34  ;;  %v2427_v35 = vmax.f32 %v5859_v2, %v1976_v61  ;;  %v4321_v52 = vpop.f32.mrb[34].mxu1  ;;  %v6781_v61 = vld [vmem:[#allocation118_spill] sm:$0xff] }
 0x41d   : > { %v6070_v48 = vpop.f32.mrb[83].mxu0  ;;  %v3325_v51 = vadd.f32 %v6774_v38, %v2429_v32  ;;  %v2430_v0 = vmax.f32 %v6775_v63, %v4321_v52  ;;  %v1979_v31 = vpop.f32.mrb[35].mxu1  ;;  %v6782_v38 = vld [vmem:[#allocation11_spill] sm:$0xff] }
 0x41e   : > { %v3323_v7 = vadd.f32 %v6776_v22, %v2427_v35  ;;  %v2428_v28 = vmax.f32 %v6777_v18, %v1979_v31  ;;  %v6784_v31 = vld [vmem:[#allocation12_spill] sm:$0xff]  ;;  %v6785_v18 = vld [vmem:[#allocation10_spill] sm:$0xff] }
 0x41f   : > { %v3453_v33 = vmax.f32 %v3325_v51, 0.0  ;;  %v3326_v41 = vadd.f32 %v6778_v50, %v2430_v0  ;;  %v6783_v51 = vld [vmem:[#allocation119_spill] sm:$0xff] }
 0x420   : > { %v3451_v8 = vmax.f32 %v3323_v7, 0.0  ;;  %v3324_v2 = vadd.f32 %v6779_v49, %v2428_v28 }
 0x421   : > { %3582 = vst.msk [vmem:[%s5943_s23 + $0xb0] sm:$0xff] %vm3559_vm3, %v3453_v33  ;;  %v3454_v29 = vmax.f32 %v3326_v41, 0.0 }
 0x422   : > { %v6080_v19 = vpop.f32.mrb[84].mxu0  ;;  %3580 = vst.msk [vmem:[%s5943_s23 + $0xa0] sm:$0xff] %vm3559_vm3, %v3451_v8  ;;  %v3452_v44 = vmax.f32 %v3324_v2, 0.0  ;;  %v4324_v40 = vpop.f32.mrb[36].mxu1 }
 0x423   : > { %v6084_v23 = vpop.f32.mrb[85].mxu0  ;;  %3583 = vst.msk [vmem:[%s5943_s23 + $0xb8] sm:$0xff] %vm3559_vm3, %v3454_v29  ;;  %v2433_v43 = vmax.f32 %v5867_v59, %v4324_v40  ;;  %v1992_v9 = vpop.f32.mrb[37].mxu1 }
 0x424   : > { %v6089_v39 = vpop.f32.mrb[86].mxu0  ;;  %3581 = vst.msk [vmem:[%s5943_s23 + $0xa8] sm:$0xff] %vm3559_vm3, %v3452_v44  ;;  %v2431_v11 = vmax.f32 %v5869_v56, %v1992_v9  ;;  %v4325_v24 = vpop.f32.mrb[38].mxu1  ;;  %v6786_v9 = vld [vmem:[#allocation17_spill] sm:$0xff] }
 0x425   : > { %v6094_v34 = vpop.f32.mrb[87].mxu0  ;;  %v3329_v32 = vadd.f32 %v6780_v54, %v2433_v43  ;;  %v2434_v35 = vmax.f32 %v6781_v61, %v4325_v24  ;;  %v1995_v52 = vpop.f32.mrb[39].mxu1  ;;  %v6787_v24 = vld [vmem:[#allocation120_spill] sm:$0xff]  ;;  %v6788_v61 = vld [vmem:[#allocation15_spill] sm:$0xff] }
 0x426   : > { %v3327_v59 = vadd.f32 %v6782_v38, %v2431_v11  ;;  %v2432_v63 = vmax.f32 %v6783_v51, %v1995_v52 }
 0x427   : > { %v3457_v0 = vmax.f32 %v3329_v32, 0.0  ;;  %v3330_v22 = vadd.f32 %v6784_v31, %v2434_v35  ;;  %v6789_v35 = vld [vmem:[#allocation121_spill] sm:$0xff] }
 0x428   : > { %v3455_v7 = vmax.f32 %v3327_v59, 0.0  ;;  %v3328_v56 = vadd.f32 %v6785_v18, %v2432_v63  ;;  %v6790_v59 = vld [vmem:[#allocation16_spill] sm:$0xff] }
 0x429   : > { %3586 = vst.msk [vmem:[%s5943_s23 + $0xd0] sm:$0xff] %vm3559_vm3, %v3457_v0  ;;  %v3458_v28 = vmax.f32 %v3330_v22, 0.0  ;;  %v6791_v0 = vld [vmem:[#allocation14_spill] sm:$0xff] }
 0x42a   : > { %v6104_v33 = vpop.f32.mrb[88].mxu0  ;;  %3584 = vst.msk [vmem:[%s5943_s23 + $0xc0] sm:$0xff] %vm3559_vm3, %v3455_v7  ;;  %v3456_v50 = vmax.f32 %v3328_v56, 0.0  ;;  %v4328_v41 = vpop.f32.mrb[40].mxu1 }
 0x42b   : > { %v6108_v8 = vpop.f32.mrb[89].mxu0  ;;  %3587 = vst.msk [vmem:[%s5943_s23 + $0xd8] sm:$0xff] %vm3559_vm3, %v3458_v28  ;;  %v2437_v49 = vmax.f32 %v5877_v12, %v4328_v41  ;;  %v2008_v2 = vpop.f32.mrb[41].mxu1 }
 0x42c   : > { %v6113_v29 = vpop.f32.mrb[90].mxu0  ;;  %3585 = vst.msk [vmem:[%s5943_s23 + $0xc8] sm:$0xff] %vm3559_vm3, %v3456_v50  ;;  %v2435_v44 = vmax.f32 %v5879_v60, %v2008_v2  ;;  %v4329_v40 = vpop.f32.mrb[42].mxu1 }
 0x42d   : > { %v6118_v43 = vpop.f32.mrb[91].mxu0  ;;  %v3333_v11 = vadd.f32 %v6786_v9, %v2437_v49  ;;  %v2438_v54 = vmax.f32 %v6787_v24, %v4329_v40  ;;  %v2011_v32 = vpop.f32.mrb[43].mxu1  ;;  %v6792_v40 = vld [vmem:[#allocation21_spill] sm:$0xff] }
 0x42e   : > { %v3331_v12 = vadd.f32 %v6788_v61, %v2435_v44  ;;  %v2436_v52 = vmax.f32 %v6789_v35, %v2011_v32  ;;  %v6794_v32 = vld [vmem:[#allocation122_spill] sm:$0xff]  ;;  %v6795_v35 = vld [vmem:[#allocation20_spill] sm:$0xff] }
 0x42f   : > { %v3461_v38 = vmax.f32 %v3333_v11, 0.0  ;;  %v3334_v51 = vadd.f32 %v6790_v59, %v2438_v54  ;;  %v6793_v54 = vld [vmem:[#allocation19_spill] sm:$0xff]  ;;  %v6796_v59 = vld [vmem:[#allocation18_spill] sm:$0xff] }
 0x430   : > { %v3459_v63 = vmax.f32 %v3331_v12, 0.0  ;;  %v3332_v60 = vadd.f32 %v6791_v0, %v2436_v52 }
 0x431   : > { %3590 = vst.msk [vmem:[%s5943_s23 + $0xf0] sm:$0xff] %vm3559_vm3, %v3461_v38  ;;  %v3462_v31 = vmax.f32 %v3334_v51, 0.0 }
 0x432   : > { %v6128_v22 = vpop.f32.mrb[92].mxu0  ;;  %3588 = vst.msk [vmem:[%s5943_s23 + $0xe0] sm:$0xff] %vm3559_vm3, %v3459_v63  ;;  %v3460_v7 = vmax.f32 %v3332_v60, 0.0  ;;  %v4332_v18 = vpop.f32.mrb[44].mxu1 }
 0x433   : > { %v6132_v56 = vpop.f32.mrb[93].mxu0  ;;  %3591 = vst.msk [vmem:[%s5943_s23 + $0xf8] sm:$0xff] %vm3559_vm3, %v3462_v31  ;;  %v2441_v28 = vmax.f32 %v5887_v17, %v4332_v18  ;;  %v2024_v50 = vpop.f32.mrb[45].mxu1 }
 0x434   : > { %v6137_v41 = vpop.f32.mrb[94].mxu0  ;;  %3589 = vst.msk [vmem:[%s5943_s23 + $0xe8] sm:$0xff] %vm3559_vm3, %v3460_v7  ;;  %v2439_v49 = vmax.f32 %v5889_v55, %v2024_v50  ;;  %v4333_v2 = vpop.f32.mrb[46].mxu1 }
 0x435   : > { %v6142_v44 = vpop.f32.mrb[95].mxu0  ;;  %v3337_v9 = vadd.f32 %v6792_v40, %v2441_v28  ;;  %v2442_v11 = vmax.f32 %v5891_v1, %v4333_v2  ;;  %v2027_v24 = vpop.f32.mrb[47].mxu1  ;;  %v6797_v2 = vld [vmem:[#allocation25_spill] sm:$0xff] }
 0x436   : > { %v3335_v17 = vadd.f32 %v6793_v54, %v2439_v49  ;;  %v2440_v61 = vmax.f32 %v6794_v32, %v2027_v24  ;;  %v6799_v54 = vld [vmem:[#allocation23_spill] sm:$0xff] }
 0x437   : > { %v3465_v12 = vmax.f32 %v3337_v9, 0.0  ;;  %v3338_v52 = vadd.f32 %v6795_v35, %v2442_v11  ;;  %v6798_v9 = vld [vmem:[#allocation123_spill] sm:$0xff] }
 0x438   : > { %v3463_v38 = vmax.f32 %v3335_v17, 0.0  ;;  %v3336_v55 = vadd.f32 %v6796_v59, %v2440_v61  ;;  %v6800_v17 = vld [vmem:[#allocation124_spill] sm:$0xff] }
 0x439   : > { %3594 = vst.msk [vmem:[%s5943_s23 + $0x110] sm:$0xff] %vm3559_vm3, %v3465_v12  ;;  %v3466_v51 = vmax.f32 %v3338_v52, 0.0  ;;  %v6801_v12 = vld [vmem:[#allocation24_spill] sm:$0xff] }
 0x43a   : > { %v6152_v63 = vpop.f32.mrb[96].mxu0  ;;  %3592 = vst.msk [vmem:[%s5943_s23 + $0x100] sm:$0xff] %vm3559_vm3, %v3463_v38  ;;  %v3464_v1 = vmax.f32 %v3336_v55, 0.0  ;;  %v4336_v0 = vpop.f32.mrb[48].mxu1  ;;  %v6802_v38 = vld [vmem:[#allocation22_spill] sm:$0xff] }
 0x43b   : > { %v6156_v60 = vpop.f32.mrb[97].mxu0  ;;  %3595 = vst.msk [vmem:[%s5943_s23 + $0x118] sm:$0xff] %vm3559_vm3, %v3466_v51  ;;  %v2445_v31 = vmax.f32 %v5897_v57, %v4336_v0  ;;  %v2040_v7 = vpop.f32.mrb[49].mxu1 }
 0x43c   : > { %v6161_v18 = vpop.f32.mrb[98].mxu0  ;;  %3593 = vst.msk [vmem:[%s5943_s23 + $0x108] sm:$0xff] %vm3559_vm3, %v3464_v1  ;;  %v2443_v28 = vmax.f32 %v5899_v5, %v2040_v7  ;;  %v4337_v50 = vpop.f32.mrb[50].mxu1 }
 0x43d   : > { %v6166_v49 = vpop.f32.mrb[99].mxu0  ;;  %v3341_v40 = vadd.f32 %v6797_v2, %v2445_v31  ;;  %v2446_v11 = vmax.f32 %v6798_v9, %v4337_v50  ;;  %v2043_v24 = vpop.f32.mrb[51].mxu1  ;;  %v6803_v31 = vld [vmem:[#allocation125_spill] sm:$0xff]  ;;  %v6804_v2 = vld [vmem:[#allocation126_spill] sm:$0xff] }
 0x43e   : > { %v3339_v57 = vadd.f32 %v6799_v54, %v2443_v28  ;;  %v2444_v32 = vmax.f32 %v6800_v17, %v2043_v24  ;;  %v6805_v24 = vld [vmem:[#allocation29_spill] sm:$0xff] }
 0x43f   : > { %v3469_v61 = vmax.f32 %v3341_v40, 0.0  ;;  %v3342_v35 = vadd.f32 %v6801_v12, %v2446_v11 }
 0x440   : > { %v3467_v52 = vmax.f32 %v3339_v57, 0.0  ;;  %v3340_v5 = vadd.f32 %v6802_v38, %v2444_v32  ;;  %v6806_v57 = vld [vmem:[#allocation127_spill] sm:$0xff] }
 0x441   : > { %3598 = vst.msk [vmem:[%s5943_s23 + $0x130] sm:$0xff] %vm3559_vm3, %v3469_v61  ;;  %v3470_v59 = vmax.f32 %v3342_v35, 0.0  ;;  %v6807_v61 = vld [vmem:[#allocation27_spill] sm:$0xff]  ;;  %v6808_v35 = vld [vmem:[#allocation128_spill] sm:$0xff] }
 0x442   : > { %v6176_v55 = vpop.f32.mrb[100].mxu0  ;;  %3596 = vst.msk [vmem:[%s5943_s23 + $0x120] sm:$0xff] %vm3559_vm3, %v3467_v52  ;;  %v3468_v51 = vmax.f32 %v3340_v5, 0.0  ;;  %v4340_v1 = vpop.f32.mrb[52].mxu1  ;;  %v6809_v5 = vld [vmem:[#allocation28_spill] sm:$0xff] }
 0x443   : > { %v6180_v0 = vpop.f32.mrb[101].mxu0  ;;  %3599 = vst.msk [vmem:[%s5943_s23 + $0x138] sm:$0xff] %vm3559_vm3, %v3470_v59  ;;  %v2449_v7 = vmax.f32 %v6803_v31, %v4340_v1  ;;  %v2056_v28 = vpop.f32.mrb[53].mxu1  ;;  %v6810_v1 = vld [vmem:[#allocation26_spill] sm:$0xff] }
 0x444   : > { %v6185_v50 = vpop.f32.mrb[102].mxu0  ;;  %3597 = vst.msk [vmem:[%s5943_s23 + $0x128] sm:$0xff] %vm3559_vm3, %v3468_v51  ;;  %v2447_v40 = vmax.f32 %v6804_v2, %v2056_v28  ;;  %v4341_v9 = vpop.f32.mrb[54].mxu1 }
 0x445   : > { %v6190_v11 = vpop.f32.mrb[103].mxu0  ;;  %v3345_v54 = vadd.f32 %v6805_v24, %v2449_v7  ;;  %v2450_v17 = vmax.f32 %v6806_v57, %v4341_v9  ;;  %v2059_v32 = vpop.f32.mrb[55].mxu1 }
 0x446   : > { %v3343_v12 = vadd.f32 %v6807_v61, %v2447_v40  ;;  %v2448_v52 = vmax.f32 %v6808_v35, %v2059_v32  ;;  %v6813_v40 = vld [vmem:[#allocation129_spill] sm:$0xff]  ;;  %v6815_v32 = vld [vmem:[#allocation130_spill] sm:$0xff] }
 0x447   : > { %v3473_v38 = vmax.f32 %v3345_v54, 0.0  ;;  %v3346_v59 = vadd.f32 %v6809_v5, %v2450_v17  ;;  %v6818_v5 = vld [vmem:[#allocation131_spill] sm:$0xff] }
 0x448   : > { %v3471_v51 = vmax.f32 %v3343_v12, 0.0  ;;  %v3344_v31 = vadd.f32 %v6810_v1, %v2448_v52  ;;  %v6817_v52 = vld [vmem:[#allocation33_spill] sm:$0xff]  ;;  %v6819_v1 = vld [vmem:[#allocation31_spill] sm:$0xff] }
 0x449   : > { %3602 = vst.msk [vmem:[%s5943_s23 + $0x150] sm:$0xff] %vm3559_vm3, %v3473_v38  ;;  %v3474_v28 = vmax.f32 %v3346_v59, 0.0 }
 0x44a   : > { %v6200_v2 = vpop.f32.mrb[104].mxu0  ;;  %3600 = vst.msk [vmem:[%s5943_s23 + $0x140] sm:$0xff] %vm3559_vm3, %v3471_v51  ;;  %v3472_v7 = vmax.f32 %v3344_v31, 0.0  ;;  %v4344_v9 = vpop.f32.mrb[56].mxu1 }
 0x44b   : > { %6811 = vst [vmem:[#allocation112_spill] sm:$0xff] %v6200_v2  ;;  %v6204_v24 = vpop.f32.mrb[105].mxu0  ;;  %3603 = vst.msk [vmem:[%s5943_s23 + $0x158] sm:$0xff] %vm3559_vm3, %v3474_v28  ;;  %v2453_v54 = vmax.f32 %v6813_v40, %v4344_v9  ;;  %v2072_v57 = vpop.f32.mrb[57].mxu1  ;;  %v6820_v28 = vld [vmem:[#allocation132_spill] sm:$0xff]  ;;  %v6822_v2 = vld [vmem:[#allocation30_spill] sm:$0xff] }
 0x44c   : > { %6812 = vst [vmem:[#allocation5_spill] sm:$0xff] %v6204_v24  ;;  %v6209_v17 = vpop.f32.mrb[106].mxu0  ;;  %3601 = vst.msk [vmem:[%s5943_s23 + $0x148] sm:$0xff] %vm3559_vm3, %v3472_v7  ;;  %v2451_v61 = vmax.f32 %v6815_v32, %v2072_v57  ;;  %v4345_v12 = vpop.f32.mrb[58].mxu1 }
 0x44d   : > { %6814 = vst [vmem:[#allocation114_spill] sm:$0xff] %v6209_v17  ;;  %v6214_v35 = vpop.f32.mrb[107].mxu0  ;;  %v3349_v38 = vadd.f32 %v6817_v52, %v2453_v54  ;;  %v2454_v59 = vmax.f32 %v6818_v5, %v4345_v12  ;;  %v2075_v51 = vpop.f32.mrb[59].mxu1  ;;  %v6821_v17 = vld [vmem:[#allocation32_spill] sm:$0xff] }
 0x44e   : > { %6816 = vst [vmem:[#allocation3_spill] sm:$0xff] %v6214_v35  ;;  %v3347_v31 = vadd.f32 %v6819_v1, %v2451_v61  ;;  %v2452_v9 = vmax.f32 %v6820_v28, %v2075_v51  ;;  %v6824_v28 = vld [vmem:[#allocation35_spill] sm:$0xff] }
 0x44f   : > { %v3477_v40 = vmax.f32 %v3349_v38, 0.0  ;;  %v3350_v7 = vadd.f32 %v6821_v17, %v2454_v59 }
 0x450   : > { %v3475_v24 = vmax.f32 %v3347_v31, 0.0  ;;  %v3348_v57 = vadd.f32 %v6822_v2, %v2452_v9 }
 0x451   : > { %3606 = vst.msk [vmem:[%s5943_s23 + $0x170] sm:$0xff] %vm3559_vm3, %v3477_v40  ;;  %v3478_v32 = vmax.f32 %v3350_v7, 0.0  ;;  %v6825_v7 = vld [vmem:[#allocation36_spill] sm:$0xff] }
 0x452   : > { %v6224_v35 = vpop.f32.mrb[108].mxu0  ;;  %3604 = vst.msk [vmem:[%s5943_s23 + $0x160] sm:$0xff] %vm3559_vm3, %v3475_v24  ;;  %v3476_v54 = vmax.f32 %v3348_v57, 0.0  ;;  %v4348_v12 = vpop.f32.mrb[60].mxu1  ;;  %v6823_v24 = vld [vmem:[#allocation37_spill] sm:$0xff] }
 0x453   : > { %v6228_v52 = vpop.f32.mrb[109].mxu0  ;;  %3607 = vst.msk [vmem:[%s5943_s23 + $0x178] sm:$0xff] %vm3559_vm3, %v3478_v32  ;;  %v2457_v61 = vmax.f32 %v5927_v10, %v4348_v12  ;;  %v2088_v17 = vpop.f32.mrb[61].mxu1 }
 0x454   : > { %v6233_v38 = vpop.f32.mrb[110].mxu0  ;;  %3605 = vst.msk [vmem:[%s5943_s23 + $0x168] sm:$0xff] %vm3559_vm3, %v3476_v54  ;;  %v2455_v2 = vmax.f32 %v5929_v46, %v2088_v17  ;;  %v4349_v5 = vpop.f32.mrb[62].mxu1  ;;  %v6826_v54 = vld [vmem:[#allocation34_spill] sm:$0xff] }
 0x455   : > { %v6238_v59 = vpop.f32.mrb[111].mxu0  ;;  %v3353_v51 = vadd.f32 %v6823_v24, %v2457_v61  ;;  %v2458_v1 = vmax.f32 %v5933_v62, %v4349_v5  ;;  %v2091_v31 = vpop.f32.mrb[63].mxu1 }
 0x456   : > { %v3351_v10 = vadd.f32 %v6824_v28, %v2455_v2  ;;  %v2456_v9 = vmax.f32 %v5936_v13, %v2091_v31  ;;  %v6827_v28 = vld [vmem:[#allocation41_spill] sm:$0xff] }
 0x457   : > { %v3481_v40 = vmax.f32 %v3353_v51, 0.0  ;;  %v3354_v57 = vadd.f32 %v6825_v7, %v2458_v1  ;;  %v6828_v7 = vld [vmem:[#allocation39_spill] sm:$0xff] }
 0x458   : > { %v3479_v32 = vmax.f32 %v3351_v10, 0.0  ;;  %v3352_v46 = vadd.f32 %v6826_v54, %v2456_v9  ;;  %v6829_v54 = vld [vmem:[#allocation40_spill] sm:$0xff] }
 0x459   : > { %3610 = vst.msk [vmem:[%s5943_s23 + $0x190] sm:$0xff] %vm3559_vm3, %v3481_v40  ;;  %v3482_v12 = vmax.f32 %v3354_v57, 0.0 }
 0x45a   : > { %v6248_v17 = vpop.f32.mrb[112].mxu0  ;;  %3608 = vst.msk [vmem:[%s5943_s23 + $0x180] sm:$0xff] %vm3559_vm3, %v3479_v32  ;;  %v3480_v62 = vmax.f32 %v3352_v46, 0.0  ;;  %v4352_v61 = vpop.f32.mrb[64].mxu1 }
 0x45b   : > { %v6252_v5 = vpop.f32.mrb[113].mxu0  ;;  %3611 = vst.msk [vmem:[%s5943_s23 + $0x198] sm:$0xff] %vm3559_vm3, %v3482_v12  ;;  %v2461_v13 = vmax.f32 %v5953_v20, %v4352_v61  ;;  %v2104_v2 = vpop.f32.mrb[65].mxu1 }
 0x45c   : > { %v6257_v24 = vpop.f32.mrb[114].mxu0  ;;  %3609 = vst.msk [vmem:[%s5943_s23 + $0x188] sm:$0xff] %vm3559_vm3, %v3480_v62  ;;  %v2459_v51 = vmax.f32 %v5957_v30, %v2104_v2  ;;  %v4353_v1 = vpop.f32.mrb[66].mxu1  ;;  %v6830_v62 = vld [vmem:[#allocation38_spill] sm:$0xff] }
 0x45d   : > { %v6262_v31 = vpop.f32.mrb[115].mxu0  ;;  %v3357_v10 = vadd.f32 %v6827_v28, %v2461_v13  ;;  %v2462_v9 = vmax.f32 %v5962_v14, %v4353_v1  ;;  %v2107_v40 = vpop.f32.mrb[67].mxu1 }
 0x45e   : > { %v3355_v20 = vadd.f32 %v6828_v7, %v2459_v51  ;;  %v2460_v57 = vmax.f32 %v5967_v25, %v2107_v40  ;;  %v6831_v7 = vld [vmem:[#allocation45_spill] sm:$0xff] }
 0x45f   : > { %v3485_v32 = vmax.f32 %v3357_v10, 0.0  ;;  %v3358_v46 = vadd.f32 %v6829_v54, %v2462_v9  ;;  %v6832_v54 = vld [vmem:[#allocation43_spill] sm:$0xff] }
 0x460   : > { %v3483_v12 = vmax.f32 %v3355_v20, 0.0  ;;  %v3356_v30 = vadd.f32 %v6830_v62, %v2460_v57  ;;  %v6833_v62 = vld [vmem:[#allocation44_spill] sm:$0xff] }
 0x461   : > { %3614 = vst.msk [vmem:[%s5943_s23 + $0x1b0] sm:$0xff] %vm3559_vm3, %v3485_v32  ;;  %v3486_v61 = vmax.f32 %v3358_v46, 0.0 }
 0x462   : > { %v6272_v2 = vpop.f32.mrb[116].mxu0  ;;  %3612 = vst.msk [vmem:[%s5943_s23 + $0x1a0] sm:$0xff] %vm3559_vm3, %v3483_v12  ;;  %v3484_v14 = vmax.f32 %v3356_v30, 0.0  ;;  %v4356_v13 = vpop.f32.mrb[68].mxu1 }
 0x463   : > { %v6276_v1 = vpop.f32.mrb[117].mxu0  ;;  %3615 = vst.msk [vmem:[%s5943_s23 + $0x1b8] sm:$0xff] %vm3559_vm3, %v3486_v61  ;;  %v2465_v25 = vmax.f32 %v5979_v26, %v4356_v13  ;;  %v2120_v51 = vpop.f32.mrb[69].mxu1 }
 0x464   : > { %v6281_v28 = vpop.f32.mrb[118].mxu0  ;;  %3613 = vst.msk [vmem:[%s5943_s23 + $0x1a8] sm:$0xff] %vm3559_vm3, %v3484_v14  ;;  %v2463_v10 = vmax.f32 %v5983_v6, %v2120_v51  ;;  %v4357_v9 = vpop.f32.mrb[70].mxu1  ;;  %v6834_v14 = vld [vmem:[#allocation42_spill] sm:$0xff] }
 0x465   : > { %v6286_v40 = vpop.f32.mrb[119].mxu0  ;;  %v3361_v20 = vadd.f32 %v6831_v7, %v2465_v25  ;;  %v2466_v57 = vmax.f32 %v5988_v21, %v4357_v9  ;;  %v2123_v32 = vpop.f32.mrb[71].mxu1 }
 0x466   : > { %v3359_v26 = vadd.f32 %v6832_v54, %v2463_v10  ;;  %v2464_v46 = vmax.f32 %v5993_v37, %v2123_v32  ;;  %v6835_v54 = vld [vmem:[#allocation48_spill] sm:$0xff] }
 0x467   : > { %v3489_v12 = vmax.f32 %v3361_v20, 0.0  ;;  %v3362_v30 = vadd.f32 %v6833_v62, %v2466_v57  ;;  %v6836_v62 = vld [vmem:[#allocation47_spill] sm:$0xff] }
 0x468   : > { %v3487_v61 = vmax.f32 %v3359_v26, 0.0  ;;  %v3360_v6 = vadd.f32 %v6834_v14, %v2464_v46  ;;  %v6837_v14 = vld [vmem:[#allocation49_spill] sm:$0xff] }
 0x469   : > { %3618 = vst.msk [vmem:[%s5943_s23 + $0x1d0] sm:$0xff] %vm3559_vm3, %v3489_v12  ;;  %v3490_v13 = vmax.f32 %v3362_v30, 0.0 }
 0x46a   : > { %v6296_v51 = vpop.f32.mrb[120].mxu0  ;;  %3616 = vst.msk [vmem:[%s5943_s23 + $0x1c0] sm:$0xff] %vm3559_vm3, %v3487_v61  ;;  %v3488_v21 = vmax.f32 %v3360_v6, 0.0  ;;  %v4360_v25 = vpop.f32.mrb[72].mxu1 }
 0x46b   : > { %v6300_v9 = vpop.f32.mrb[121].mxu0  ;;  %3619 = vst.msk [vmem:[%s5943_s23 + $0x1d8] sm:$0xff] %vm3559_vm3, %v3490_v13  ;;  %v2469_v37 = vmax.f32 %v6005_v15, %v4360_v25  ;;  %v2136_v10 = vpop.f32.mrb[73].mxu1 }
 0x46c   : > { %v6305_v7 = vpop.f32.mrb[122].mxu0  ;;  %3617 = vst.msk [vmem:[%s5943_s23 + $0x1c8] sm:$0xff] %vm3559_vm3, %v3488_v21  ;;  %v2467_v20 = vmax.f32 %v6009_v45, %v2136_v10  ;;  %v4361_v57 = vpop.f32.mrb[74].mxu1  ;;  %v6838_v21 = vld [vmem:[#allocation46_spill] sm:$0xff] }
 0x46d   : > { %v6310_v32 = vpop.f32.mrb[123].mxu0  ;;  %v3365_v26 = vadd.f32 %v6835_v54, %v2469_v37  ;;  %v2470_v46 = vmax.f32 %v6014_v3, %v4361_v57  ;;  %v2139_v12 = vpop.f32.mrb[75].mxu1 }
 0x46e   : > { %v3363_v15 = vadd.f32 %v6836_v62, %v2467_v20  ;;  %v2468_v30 = vmax.f32 %v6019_v42, %v2139_v12  ;;  %v6839_v62 = vld [vmem:[#allocation52_spill] sm:$0xff] }
 0x46f   : > { %v3493_v61 = vmax.f32 %v3365_v26, 0.0  ;;  %v3366_v6 = vadd.f32 %v6837_v14, %v2470_v46  ;;  %v6840_v14 = vld [vmem:[#allocation50_spill] sm:$0xff] }
 0x470   : > { %v3491_v13 = vmax.f32 %v3363_v15, 0.0  ;;  %v3364_v45 = vadd.f32 %v6838_v21, %v2468_v30  ;;  %v6841_v21 = vld [vmem:[#allocation53_spill] sm:$0xff] }
 0x471   : > { %3622 = vst.msk [vmem:[%s5943_s23 + $0x1f0] sm:$0xff] %vm3559_vm3, %v3493_v61  ;;  %v3494_v25 = vmax.f32 %v3366_v6, 0.0 }
 0x472   : > { %v6320_v10 = vpop.f32.mrb[124].mxu0  ;;  %3620 = vst.msk [vmem:[%s5943_s23 + $0x1e0] sm:$0xff] %vm3559_vm3, %v3491_v13  ;;  %v3492_v3 = vmax.f32 %v3364_v45, 0.0  ;;  %v4364_v37 = vpop.f32.mrb[76].mxu1 }
 0x473   : > { %v6324_v57 = vpop.f32.mrb[125].mxu0  ;;  %3623 = vst.msk [vmem:[%s5943_s23 + $0x1f8] sm:$0xff] %vm3559_vm3, %v3494_v25  ;;  %v2473_v42 = vmax.f32 %v6031_v4, %v4364_v37  ;;  %v2152_v20 = vpop.f32.mrb[77].mxu1 }
 0x474   : > { %v6329_v54 = vpop.f32.mrb[126].mxu0  ;;  %3621 = vst.msk [vmem:[%s5943_s23 + $0x1e8] sm:$0xff] %vm3559_vm3, %v3492_v3  ;;  %v2471_v26 = vmax.f32 %v6035_v58, %v2152_v20  ;;  %v4365_v46 = vpop.f32.mrb[78].mxu1  ;;  %v6842_v3 = vld [vmem:[#allocation51_spill] sm:$0xff] }
 0x475   : > { %v6334_v12 = vpop.f32.mrb[127].mxu0  ;;  %v3369_v15 = vadd.f32 %v6839_v62, %v2473_v42  ;;  %v2474_v30 = vmax.f32 %v6040_v47, %v4365_v46  ;;  %v2155_v61 = vpop.f32.mrb[79].mxu1 }
 0x476   : > { %v3367_v4 = vadd.f32 %v6840_v14, %v2471_v26  ;;  %v2472_v6 = vmax.f32 %v6045_v27, %v2155_v61  ;;  %v6843_v14 = vld [vmem:[#allocation56_spill] sm:$0xff] }
 0x477   : > { %v3497_v13 = vmax.f32 %v3369_v15, 0.0  ;;  %v3370_v45 = vadd.f32 %v6841_v21, %v2474_v30  ;;  %v6844_v21 = vld [vmem:[#allocation54_spill] sm:$0xff] }
 0x478   : > { %v3495_v25 = vmax.f32 %v3367_v4, 0.0  ;;  %v3368_v58 = vadd.f32 %v6842_v3, %v2472_v6  ;;  %v6845_v3 = vld [vmem:[#allocation57_spill] sm:$0xff] }
 0x479   : > { %3626 = vst.msk [vmem:[%s5943_s23 + $0x210] sm:$0xff] %vm3559_vm3, %v3497_v13  ;;  %v3498_v37 = vmax.f32 %v3370_v45, 0.0 }
 0x47a   : > { %v6344_v20 = vpop.f32.mrb[128].mxu0  ;;  %3624 = vst.msk [vmem:[%s5943_s23 + $0x200] sm:$0xff] %vm3559_vm3, %v3495_v25  ;;  %v3496_v47 = vmax.f32 %v3368_v58, 0.0  ;;  %v4368_v42 = vpop.f32.mrb[80].mxu1 }
 0x47b   : > { %v6348_v46 = vpop.f32.mrb[129].mxu0  ;;  %3627 = vst.msk [vmem:[%s5943_s23 + $0x218] sm:$0xff] %vm3559_vm3, %v3498_v37  ;;  %v2477_v27 = vmax.f32 %v6056_v53, %v4368_v42  ;;  %v2168_v26 = vpop.f32.mrb[81].mxu1 }
 0x47c   : > { %v6353_v62 = vpop.f32.mrb[130].mxu0  ;;  %3625 = vst.msk [vmem:[%s5943_s23 + $0x208] sm:$0xff] %vm3559_vm3, %v3496_v47  ;;  %v2475_v15 = vmax.f32 %v6060_v36, %v2168_v26  ;;  %v4369_v30 = vpop.f32.mrb[82].mxu1  ;;  %v6846_v47 = vld [vmem:[#allocation55_spill] sm:$0xff] }
 0x47d   : > { %v6358_v61 = vpop.f32.mrb[131].mxu0  ;;  %v3373_v4 = vadd.f32 %v6843_v14, %v2477_v27  ;;  %v2478_v6 = vmax.f32 %v6065_v16, %v4369_v30  ;;  %v2171_v13 = vpop.f32.mrb[83].mxu1 }
 0x47e   : > { %v3371_v53 = vadd.f32 %v6844_v21, %v2475_v15  ;;  %v2476_v45 = vmax.f32 %v6070_v48, %v2171_v13  ;;  %v6847_v21 = vld [vmem:[#allocation60_spill] sm:$0xff] }
 0x47f   : > { %v3501_v25 = vmax.f32 %v3373_v4, 0.0  ;;  %v3374_v58 = vadd.f32 %v6845_v3, %v2478_v6  ;;  %v6848_v3 = vld [vmem:[#allocation58_spill] sm:$0xff] }
 0x480   : > { %v3499_v37 = vmax.f32 %v3371_v53, 0.0  ;;  %v3372_v36 = vadd.f32 %v6846_v47, %v2476_v45  ;;  %v6849_v47 = vld [vmem:[#allocation61_spill] sm:$0xff] }
 0x481   : > { %3630 = vst.msk [vmem:[%s5943_s23 + $0x230] sm:$0xff] %vm3559_vm3, %v3501_v25  ;;  %v3502_v42 = vmax.f32 %v3374_v58, 0.0 }
 0x482   : > { %v6368_v26 = vpop.f32.mrb[132].mxu0  ;;  %3628 = vst.msk [vmem:[%s5943_s23 + $0x220] sm:$0xff] %vm3559_vm3, %v3499_v37  ;;  %v3500_v16 = vmax.f32 %v3372_v36, 0.0  ;;  %v4372_v27 = vpop.f32.mrb[84].mxu1 }
 0x483   : > { %v6372_v30 = vpop.f32.mrb[133].mxu0  ;;  %3631 = vst.msk [vmem:[%s5943_s23 + $0x238] sm:$0xff] %vm3559_vm3, %v3502_v42  ;;  %v2481_v48 = vmax.f32 %v6080_v19, %v4372_v27  ;;  %v2184_v15 = vpop.f32.mrb[85].mxu1 }
 0x484   : > { %v6377_v14 = vpop.f32.mrb[134].mxu0  ;;  %3629 = vst.msk [vmem:[%s5943_s23 + $0x228] sm:$0xff] %vm3559_vm3, %v3500_v16  ;;  %v2479_v4 = vmax.f32 %v6084_v23, %v2184_v15  ;;  %v4373_v6 = vpop.f32.mrb[86].mxu1  ;;  %v6850_v16 = vld [vmem:[#allocation59_spill] sm:$0xff] }
 0x485   : > { %v6382_v13 = vpop.f32.mrb[135].mxu0  ;;  %v3377_v53 = vadd.f32 %v6847_v21, %v2481_v48  ;;  %v2482_v45 = vmax.f32 %v6089_v39, %v4373_v6  ;;  %v2187_v25 = vpop.f32.mrb[87].mxu1 }
 0x486   : > { %v3375_v19 = vadd.f32 %v6848_v3, %v2479_v4  ;;  %v2480_v58 = vmax.f32 %v6094_v34, %v2187_v25  ;;  %v6851_v3 = vld [vmem:[#allocation64_spill] sm:$0xff] }
 0x487   : > { %v3505_v37 = vmax.f32 %v3377_v53, 0.0  ;;  %v3378_v36 = vadd.f32 %v6849_v47, %v2482_v45 }
 0x488   : > { %v3503_v42 = vmax.f32 %v3375_v19, 0.0  ;;  %v3376_v23 = vadd.f32 %v6850_v16, %v2480_v58  ;;  %v6853_v16 = vld [vmem:[#allocation65_spill] sm:$0xff] }
 0x489   : > { %3634 = vst.msk [vmem:[%s5943_s23 + $0x250] sm:$0xff] %vm3559_vm3, %v3505_v37  ;;  %v3506_v27 = vmax.f32 %v3378_v36, 0.0 }
 0x48a   : > { %v6392_v15 = vpop.f32.mrb[136].mxu0  ;;  %3632 = vst.msk [vmem:[%s5943_s23 + $0x240] sm:$0xff] %vm3559_vm3, %v3503_v42  ;;  %v3504_v39 = vmax.f32 %v3376_v23, 0.0  ;;  %v4376_v48 = vpop.f32.mrb[88].mxu1 }
 0x48b   : > { %v6396_v6 = vpop.f32.mrb[137].mxu0  ;;  %3635 = vst.msk [vmem:[%s5943_s23 + $0x258] sm:$0xff] %vm3559_vm3, %v3506_v27  ;;  %v2485_v34 = vmax.f32 %v6104_v33, %v4376_v48  ;;  %v2200_v4 = vpop.f32.mrb[89].mxu1  ;;  %v6852_v33 = vld [vmem:[#allocation62_spill] sm:$0xff] }
 0x48c   : > { %v6401_v21 = vpop.f32.mrb[138].mxu0  ;;  %3633 = vst.msk [vmem:[%s5943_s23 + $0x248] sm:$0xff] %vm3559_vm3, %v3504_v39  ;;  %v2483_v53 = vmax.f32 %v6108_v8, %v2200_v4  ;;  %v4377_v45 = vpop.f32.mrb[90].mxu1  ;;  %v6854_v39 = vld [vmem:[#allocation63_spill] sm:$0xff] }
 0x48d   : > { %v6406_v25 = vpop.f32.mrb[139].mxu0  ;;  %v3381_v19 = vadd.f32 %v6851_v3, %v2485_v34  ;;  %v2486_v58 = vmax.f32 %v6113_v29, %v4377_v45  ;;  %v2203_v37 = vpop.f32.mrb[91].mxu1  ;;  %v6855_v3 = vld [vmem:[#allocation68_spill] sm:$0xff] }
 0x48e   : > { %v3379_v47 = vadd.f32 %v6852_v33, %v2483_v53  ;;  %v2484_v36 = vmax.f32 %v6118_v43, %v2203_v37  ;;  %v6856_v33 = vld [vmem:[#allocation66_spill] sm:$0xff] }
 0x48f   : > { %v3509_v42 = vmax.f32 %v3381_v19, 0.0  ;;  %v3382_v23 = vadd.f32 %v6853_v16, %v2486_v58 }
 0x490   : > { %v3507_v27 = vmax.f32 %v3379_v47, 0.0  ;;  %v3380_v8 = vadd.f32 %v6854_v39, %v2484_v36 }
 0x491   : > { %3638 = vst.msk [vmem:[%s5943_s23 + $0x270] sm:$0xff] %vm3559_vm3, %v3509_v42  ;;  %v3510_v48 = vmax.f32 %v3382_v23, 0.0 }
 0x492   : > { %3636 = vst.msk [vmem:[%s5943_s23 + $0x260] sm:$0xff] %vm3559_vm3, %v3507_v27  ;;  %v3508_v34 = vmax.f32 %v3380_v8, 0.0  ;;  %v4380_v4 = vpop.f32.mrb[92].mxu1  ;;  %v6858_v27 = vld [vmem:[#allocation67_spill] sm:$0xff] }
 0x493   : > { %3639 = vst.msk [vmem:[%s5943_s23 + $0x278] sm:$0xff] %vm3559_vm3, %v3510_v48  ;;  %v2489_v29 = vmax.f32 %v6128_v22, %v4380_v4  ;;  %v2216_v43 = vpop.f32.mrb[93].mxu1  ;;  %v6857_v22 = vld [vmem:[#allocation69_spill] sm:$0xff] }
 0x494   : > { %3637 = vst.msk [vmem:[%s5943_s23 + $0x268] sm:$0xff] %vm3559_vm3, %v3508_v34  ;;  %v2487_v53 = vmax.f32 %v6132_v56, %v2216_v43  ;;  %v4381_v45 = vpop.f32.mrb[94].mxu1 }
 0x495   : > { %v3385_v19 = vadd.f32 %v6855_v3, %v2489_v29  ;;  %v2490_v58 = vmax.f32 %v6137_v41, %v4381_v45  ;;  %v2219_v37 = vpop.f32.mrb[95].mxu1  ;;  %v6859_v29 = vld [vmem:[#allocation72_spill] sm:$0xff]  ;;  %v6860_v3 = vld [vmem:[#allocation70_spill] sm:$0xff] }
 0x496   : > { %v3383_v47 = vadd.f32 %v6856_v33, %v2487_v53  ;;  %v2488_v36 = vmax.f32 %v6142_v44, %v2219_v37 }
 0x497   : > { %v3513_v42 = vmax.f32 %v3385_v19, 0.0  ;;  %v3386_v16 = vadd.f32 %v6857_v22, %v2490_v58 }
 0x498   : > { %v3511_v23 = vmax.f32 %v3383_v47, 0.0  ;;  %v3384_v39 = vadd.f32 %v6858_v27, %v2488_v36  ;;  %v6862_v36 = vld [vmem:[#allocation71_spill] sm:$0xff] }
 0x499   : > { %3642 = vst.msk [vmem:[%s5943_s23 + $0x290] sm:$0xff] %vm3559_vm3, %v3513_v42  ;;  %v3514_v56 = vmax.f32 %v3386_v16, 0.0 }
 0x49a   : > { %3640 = vst.msk [vmem:[%s5943_s23 + $0x280] sm:$0xff] %vm3559_vm3, %v3511_v23  ;;  %v3512_v8 = vmax.f32 %v3384_v39, 0.0  ;;  %v4384_v48 = vpop.f32.mrb[96].mxu1  ;;  %v6863_v39 = vld [vmem:[#allocation76_spill] sm:$0xff] }
 0x49b   : > { %3643 = vst.msk [vmem:[%s5943_s23 + $0x298] sm:$0xff] %vm3559_vm3, %v3514_v56  ;;  %v2493_v41 = vmax.f32 %v6152_v63, %v4384_v48  ;;  %v2232_v44 = vpop.f32.mrb[97].mxu1  ;;  %v6861_v63 = vld [vmem:[#allocation73_spill] sm:$0xff] }
 0x49c   : > { %3641 = vst.msk [vmem:[%s5943_s23 + $0x288] sm:$0xff] %vm3559_vm3, %v3512_v8  ;;  %v2491_v34 = vmax.f32 %v6156_v60, %v2232_v44  ;;  %v4385_v4 = vpop.f32.mrb[98].mxu1 }
 0x49d   : > { %v3389_v43 = vadd.f32 %v6859_v29, %v2493_v41  ;;  %v2494_v53 = vmax.f32 %v6161_v18, %v4385_v4  ;;  %v2235_v45 = vpop.f32.mrb[99].mxu1  ;;  %v6864_v41 = vld [vmem:[#allocation74_spill] sm:$0xff] }
 0x49e   : > { %v3387_v19 = vadd.f32 %v6860_v3, %v2491_v34  ;;  %v2492_v58 = vmax.f32 %v6166_v49, %v2235_v45 }
 0x49f   : > { %v3517_v37 = vmax.f32 %v3389_v43, 0.0  ;;  %v3390_v33 = vadd.f32 %v6861_v63, %v2494_v53  ;;  %v6866_v53 = vld [vmem:[#allocation75_spill] sm:$0xff] }
 0x4a0   : > { %v3515_v47 = vmax.f32 %v3387_v19, 0.0  ;;  %v3388_v42 = vadd.f32 %v6862_v36, %v2492_v58 }
 0x4a1   : > { %3646 = vst.msk [vmem:[%s5943_s23 + $0x2b0] sm:$0xff] %vm3559_vm3, %v3517_v37  ;;  %v3518_v60 = vmax.f32 %v3390_v33, 0.0  ;;  %v6868_v37 = vld [vmem:[#allocation5_spill] sm:$0xff] }
 0x4a2   : > { %3644 = vst.msk [vmem:[%s5943_s23 + $0x2a0] sm:$0xff] %vm3559_vm3, %v3515_v47  ;;  %v3516_v22 = vmax.f32 %v3388_v42, 0.0  ;;  %v4388_v16 = vpop.f32.mrb[100].mxu1  ;;  %v6869_v47 = vld [vmem:[#allocation80_spill] sm:$0xff]  ;;  %v6870_v42 = vld [vmem:[#allocation114_spill] sm:$0xff] }
 0x4a3   : > { %3647 = vst.msk [vmem:[%s5943_s23 + $0x2b8] sm:$0xff] %vm3559_vm3, %v3518_v60  ;;  %v2497_v18 = vmax.f32 %v6176_v55, %v4388_v16  ;;  %v2248_v49 = vpop.f32.mrb[101].mxu1  ;;  %v6865_v55 = vld [vmem:[#allocation77_spill] sm:$0xff]  ;;  %v6871_v16 = vld [vmem:[#allocation78_spill] sm:$0xff] }
 0x4a4   : > { %3645 = vst.msk [vmem:[%s5943_s23 + $0x2a8] sm:$0xff] %vm3559_vm3, %v3516_v22  ;;  %v2495_v23 = vmax.f32 %v6180_v0, %v2248_v49  ;;  %v4389_v27 = vpop.f32.mrb[102].mxu1  ;;  %v6872_v49 = vld [vmem:[#allocation3_spill] sm:$0xff] }
 0x4a5   : > { %v3393_v56 = vadd.f32 %v6863_v39, %v2497_v18  ;;  %v2498_v8 = vmax.f32 %v6185_v50, %v4389_v27  ;;  %v2251_v48 = vpop.f32.mrb[103].mxu1  ;;  %v6867_v50 = vld [vmem:[#allocation112_spill] sm:$0xff]  ;;  %v6873_v39 = vld [vmem:[#allocation81_spill] sm:$0xff] }
 0x4a6   : > { %v3391_v44 = vadd.f32 %v6864_v41, %v2495_v23  ;;  %v2496_v34 = vmax.f32 %v6190_v11, %v2251_v48  ;;  %v6874_v48 = vld [vmem:[#allocation79_spill] sm:$0xff] }
 0x4a7   : > { %v3521_v4 = vmax.f32 %v3393_v56, 0.0  ;;  %v3394_v29 = vadd.f32 %v6865_v55, %v2498_v8 }
 0x4a8   : > { %v3519_v43 = vmax.f32 %v3391_v44, 0.0  ;;  %v3392_v45 = vadd.f32 %v6866_v53, %v2496_v34 }
 0x4a9   : > { %3650 = vst.msk [vmem:[%s5943_s23 + $0x2d0] sm:$0xff] %vm3559_vm3, %v3521_v4  ;;  %v3522_v0 = vmax.f32 %v3394_v29, 0.0 }
 0x4aa   : > { %3648 = vst.msk [vmem:[%s5943_s23 + $0x2c0] sm:$0xff] %vm3559_vm3, %v3519_v43  ;;  %v3520_v3 = vmax.f32 %v3392_v45, 0.0  ;;  %v4392_v19 = vpop.f32.mrb[104].mxu1  ;;  %v6875_v45 = vld [vmem:[#allocation84_spill] sm:$0xff] }
 0x4ab   : > { %3651 = vst.msk [vmem:[%s5943_s23 + $0x2d8] sm:$0xff] %vm3559_vm3, %v3522_v0  ;;  %v2501_v58 = vmax.f32 %v6867_v50, %v4392_v19  ;;  %v2264_v11 = vpop.f32.mrb[105].mxu1  ;;  %v6876_v50 = vld [vmem:[#allocation82_spill] sm:$0xff] }
 0x4ac   : > { %3649 = vst.msk [vmem:[%s5943_s23 + $0x2c8] sm:$0xff] %vm3559_vm3, %v3520_v3  ;;  %v2499_v63 = vmax.f32 %v6868_v37, %v2264_v11  ;;  %v4393_v33 = vpop.f32.mrb[106].mxu1 }
 0x4ad   : > { %v3397_v36 = vadd.f32 %v6869_v47, %v2501_v58  ;;  %v2502_v60 = vmax.f32 %v6870_v42, %v4393_v33  ;;  %v2267_v22 = vpop.f32.mrb[107].mxu1  ;;  %v6878_v47 = vld [vmem:[#allocation83_spill] sm:$0xff] }
 0x4ae   : > { %v3395_v18 = vadd.f32 %v6871_v16, %v2499_v63  ;;  %v2500_v23 = vmax.f32 %v6872_v49, %v2267_v22 }
 0x4af   : > { %v3525_v27 = vmax.f32 %v3397_v36, 0.0  ;;  %v3398_v56 = vadd.f32 %v6873_v39, %v2502_v60  ;;  %v6880_v39 = vld [vmem:[#allocation86_spill] sm:$0xff] }
 0x4b0   : > { %v3523_v8 = vmax.f32 %v3395_v18, 0.0  ;;  %v3396_v41 = vadd.f32 %v6874_v48, %v2500_v23  ;;  %v6879_v18 = vld [vmem:[#allocation88_spill] sm:$0xff] }
 0x4b1   : > { %3654 = vst.msk [vmem:[%s5943_s23 + $0x2f0] sm:$0xff] %vm3559_vm3, %v3525_v27  ;;  %v3526_v44 = vmax.f32 %v3398_v56, 0.0 }
 0x4b2   : > { %3652 = vst.msk [vmem:[%s5943_s23 + $0x2e0] sm:$0xff] %vm3559_vm3, %v3523_v8  ;;  %v3524_v34 = vmax.f32 %v3396_v41, 0.0  ;;  %v4396_v4 = vpop.f32.mrb[108].mxu1 }
 0x4b3   : > { %3655 = vst.msk [vmem:[%s5943_s23 + $0x2f8] sm:$0xff] %vm3559_vm3, %v3526_v44  ;;  %v2505_v55 = vmax.f32 %v6224_v35, %v4396_v4  ;;  %v2280_v29 = vpop.f32.mrb[109].mxu1  ;;  %v6877_v35 = vld [vmem:[#allocation85_spill] sm:$0xff] }
 0x4b4   : > { %3653 = vst.msk [vmem:[%s5943_s23 + $0x2e8] sm:$0xff] %vm3559_vm3, %v3524_v34  ;;  %v2503_v43 = vmax.f32 %v6228_v52, %v2280_v29  ;;  %v4397_v53 = vpop.f32.mrb[110].mxu1  ;;  %v6882_v34 = vld [vmem:[#allocation87_spill] sm:$0xff] }
 0x4b5   : > { %v3401_v0 = vadd.f32 %v6875_v45, %v2505_v55  ;;  %v2506_v3 = vmax.f32 %v6233_v38, %v4397_v53  ;;  %v2283_v19 = vpop.f32.mrb[111].mxu1  ;;  %v6883_v45 = vld [vmem:[#allocation92_spill] sm:$0xff] }
 0x4b6   : > { %v3399_v58 = vadd.f32 %v6876_v50, %v2503_v43  ;;  %v2504_v11 = vmax.f32 %v6238_v59, %v2283_v19  ;;  %v6884_v50 = vld [vmem:[#allocation90_spill] sm:$0xff] }
 0x4b7   : > { %v3529_v37 = vmax.f32 %v3401_v0, 0.0  ;;  %v3402_v63 = vadd.f32 %v6877_v35, %v2506_v3 }
 0x4b8   : > { %v3527_v33 = vmax.f32 %v3399_v58, 0.0  ;;  %v3400_v36 = vadd.f32 %v6878_v47, %v2504_v11 }
 0x4b9   : > { %3658 = vst.msk [vmem:[%s5943_s23 + $0x310] sm:$0xff] %vm3559_vm3, %v3529_v37  ;;  %v3530_v52 = vmax.f32 %v3402_v63, 0.0 }
 0x4ba   : > { %3656 = vst.msk [vmem:[%s5943_s23 + $0x300] sm:$0xff] %vm3559_vm3, %v3527_v33  ;;  %v3528_v42 = vmax.f32 %v3400_v36, 0.0  ;;  %v4400_v60 = vpop.f32.mrb[112].mxu1  ;;  %v6886_v33 = vld [vmem:[#allocation91_spill] sm:$0xff] }
 0x4bb   : > { %3659 = vst.msk [vmem:[%s5943_s23 + $0x318] sm:$0xff] %vm3559_vm3, %v3530_v52  ;;  %v2509_v38 = vmax.f32 %v6248_v17, %v4400_v60  ;;  %v2296_v59 = vpop.f32.mrb[113].mxu1  ;;  %v6881_v17 = vld [vmem:[#allocation89_spill] sm:$0xff] }
 0x4bc   : > { %3657 = vst.msk [vmem:[%s5943_s23 + $0x308] sm:$0xff] %vm3559_vm3, %v3528_v42  ;;  %v2507_v22 = vmax.f32 %v6252_v5, %v2296_v59  ;;  %v4401_v16 = vpop.f32.mrb[114].mxu1 }
 0x4bd   : > { %v3405_v49 = vadd.f32 %v6879_v18, %v2509_v38  ;;  %v2510_v23 = vmax.f32 %v6257_v24, %v4401_v16  ;;  %v2299_v27 = vpop.f32.mrb[115].mxu1  ;;  %v6887_v38 = vld [vmem:[#allocation96_spill] sm:$0xff]  ;;  %v6888_v18 = vld [vmem:[#allocation94_spill] sm:$0xff] }
 0x4be   : > { %v3403_v56 = vadd.f32 %v6880_v39, %v2507_v22  ;;  %v2508_v8 = vmax.f32 %v6262_v31, %v2299_v27 }
 0x4bf   : > { %v3533_v48 = vmax.f32 %v3405_v49, 0.0  ;;  %v3406_v41 = vadd.f32 %v6881_v17, %v2510_v23 }
 0x4c0   : > { %v3531_v44 = vmax.f32 %v3403_v56, 0.0  ;;  %v3404_v4 = vadd.f32 %v6882_v34, %v2508_v8  ;;  %v6890_v8 = vld [vmem:[#allocation95_spill] sm:$0xff] }
 0x4c1   : > { %3662 = vst.msk [vmem:[%s5943_s23 + $0x330] sm:$0xff] %vm3559_vm3, %v3533_v48  ;;  %v3534_v5 = vmax.f32 %v3406_v41, 0.0 }
 0x4c2   : > { %3660 = vst.msk [vmem:[%s5943_s23 + $0x320] sm:$0xff] %vm3559_vm3, %v3531_v44  ;;  %v3532_v55 = vmax.f32 %v3404_v4, 0.0  ;;  %v4404_v29 = vpop.f32.mrb[116].mxu1  ;;  %v6891_v4 = vld [vmem:[#allocation100_spill] sm:$0xff] }
 0x4c3   : > { %3663 = vst.msk [vmem:[%s5943_s23 + $0x338] sm:$0xff] %vm3559_vm3, %v3534_v5  ;;  %v2513_v24 = vmax.f32 %v6272_v2, %v4404_v29  ;;  %v2312_v31 = vpop.f32.mrb[117].mxu1  ;;  %v6885_v2 = vld [vmem:[#allocation93_spill] sm:$0xff] }
 0x4c4   : > { %3661 = vst.msk [vmem:[%s5943_s23 + $0x328] sm:$0xff] %vm3559_vm3, %v3532_v55  ;;  %v2511_v43 = vmax.f32 %v6276_v1, %v2312_v31  ;;  %v4405_v53 = vpop.f32.mrb[118].mxu1 }
 0x4c5   : > { %v3409_v0 = vadd.f32 %v6883_v45, %v2513_v24  ;;  %v2514_v3 = vmax.f32 %v6281_v28, %v4405_v53  ;;  %v2315_v19 = vpop.f32.mrb[119].mxu1  ;;  %v6892_v24 = vld [vmem:[#allocation98_spill] sm:$0xff] }
 0x4c6   : > { %v3407_v58 = vadd.f32 %v6884_v50, %v2511_v43  ;;  %v2512_v11 = vmax.f32 %v6286_v40, %v2315_v19 }
 0x4c7   : > { %v3537_v37 = vmax.f32 %v3409_v0, 0.0  ;;  %v3410_v35 = vadd.f32 %v6885_v2, %v2514_v3  ;;  %v6894_v3 = vld [vmem:[#allocation99_spill] sm:$0xff]  ;;  %v6895_v2 = vld [vmem:[#allocation104_spill] sm:$0xff] }
 0x4c8   : > { %v3535_v63 = vmax.f32 %v3407_v58, 0.0  ;;  %v3408_v47 = vadd.f32 %v6886_v33, %v2512_v11 }
 0x4c9   : > { %3666 = vst.msk [vmem:[%s5943_s23 + $0x350] sm:$0xff] %vm3559_vm3, %v3537_v37  ;;  %v3538_v1 = vmax.f32 %v3410_v35, 0.0 }
 0x4ca   : > { %3664 = vst.msk [vmem:[%s5943_s23 + $0x340] sm:$0xff] %vm3559_vm3, %v3535_v63  ;;  %v3536_v36 = vmax.f32 %v3408_v47, 0.0  ;;  %v4408_v52 = vpop.f32.mrb[120].mxu1  ;;  %v6896_v47 = vld [vmem:[#allocation102_spill] sm:$0xff] }
 0x4cb   : > { %3667 = vst.msk [vmem:[%s5943_s23 + $0x358] sm:$0xff] %vm3559_vm3, %v3538_v1  ;;  %v2517_v28 = vmax.f32 %v6296_v51, %v4408_v52  ;;  %v2328_v40 = vpop.f32.mrb[121].mxu1  ;;  %v6889_v51 = vld [vmem:[#allocation97_spill] sm:$0xff] }
 0x4cc   : > { %3665 = vst.msk [vmem:[%s5943_s23 + $0x348] sm:$0xff] %vm3559_vm3, %v3536_v36  ;;  %v2515_v42 = vmax.f32 %v6300_v9, %v2328_v40  ;;  %v4409_v60 = vpop.f32.mrb[122].mxu1 }
 0x4cd   : > { %v3413_v59 = vadd.f32 %v6887_v38, %v2517_v28  ;;  %v2518_v22 = vmax.f32 %v6305_v7, %v4409_v60  ;;  %v2331_v16 = vpop.f32.mrb[123].mxu1 }
 0x4ce   : > { %v3411_v49 = vadd.f32 %v6888_v18, %v2515_v42  ;;  %v2516_v23 = vmax.f32 %v6310_v32, %v2331_v16  ;;  %v6898_v42 = vld [vmem:[#allocation103_spill] sm:$0xff]  ;;  %v6899_v18 = vld [vmem:[#allocation108_spill] sm:$0xff] }
 0x4cf   : > { %v3541_v27 = vmax.f32 %v3413_v59, 0.0  ;;  %v3414_v39 = vadd.f32 %v6889_v51, %v2518_v22  ;;  %v6900_v51 = vld [vmem:[#allocation106_spill] sm:$0xff] }
 0x4d0   : > { %v3539_v56 = vmax.f32 %v3411_v49, 0.0  ;;  %v3412_v48 = vadd.f32 %v6890_v8, %v2516_v23 }
 0x4d1   : > { %3670 = vst.msk [vmem:[%s5943_s23 + $0x370] sm:$0xff] %vm3559_vm3, %v3541_v27  ;;  %v3542_v9 = vmax.f32 %v3414_v39, 0.0 }
 0x4d2   : > { %3668 = vst.msk [vmem:[%s5943_s23 + $0x360] sm:$0xff] %vm3559_vm3, %v3539_v56  ;;  %v3540_v17 = vmax.f32 %v3412_v48, 0.0  ;;  %v4412_v41 = vpop.f32.mrb[124].mxu1 }
 0x4d3   : > { %3671 = vst.msk [vmem:[%s5943_s23 + $0x378] sm:$0xff] %vm3559_vm3, %v3542_v9  ;;  %v2521_v7 = vmax.f32 %v6320_v10, %v4412_v41  ;;  %v2344_v32 = vpop.f32.mrb[125].mxu1  ;;  %v6893_v10 = vld [vmem:[#allocation101_spill] sm:$0xff] }
 0x4d4   : > { %3669 = vst.msk [vmem:[%s5943_s23 + $0x368] sm:$0xff] %vm3559_vm3, %v3540_v17  ;;  %v2519_v44 = vmax.f32 %v6324_v57, %v2344_v32  ;;  %v4413_v34 = vpop.f32.mrb[126].mxu1  ;;  %v6902_v17 = vld [vmem:[#allocation107_spill] sm:$0xff] }
 0x4d5   : > { %v3417_v5 = vadd.f32 %v6891_v4, %v2521_v7  ;;  %v2522_v55 = vmax.f32 %v6329_v54, %v4413_v34  ;;  %v2347_v29 = vpop.f32.mrb[127].mxu1 }
 0x4d6   : > { %v3415_v31 = vadd.f32 %v6892_v24, %v2519_v44  ;;  %v2520_v43 = vmax.f32 %v6334_v12, %v2347_v29  ;;  %v3301_v24 = vpop.permute.xlu1 %3300 }
 0x4d7   : > { %v3545_v53 = vmax.f32 %v3417_v5, 0.0  ;;  %v3418_v45 = vadd.f32 %v6893_v10, %v2522_v55 }
 0x4d8   : > { %v3543_v0 = vmax.f32 %v3415_v31, 0.0  ;;  %v3416_v19 = vadd.f32 %v6894_v3, %v2520_v43  ;;  %v6903_v31 = vld [vmem:[#allocation110_spill] sm:$0xff] }
 0x4d9   : > { %3674 = vst.msk [vmem:[%s5943_s23 + $0x390] sm:$0xff] %vm3559_vm3, %v3545_v53  ;;  %v3546_v57 = vmax.f32 %v3418_v45, 0.0 }
 0x4da   : > { %3672 = vst.msk [vmem:[%s5943_s23 + $0x380] sm:$0xff] %vm3559_vm3, %v3543_v0  ;;  %v3544_v50 = vmax.f32 %v3416_v19, 0.0  ;;  %v4416_v58 = vpop.f32.mrb[128].mxu1  ;;  %v6904_v0 = vld [vmem:[#allocation111_spill] sm:$0xff] }
 0x4db   : > { %3675 = vst.msk [vmem:[%s5943_s23 + $0x398] sm:$0xff] %vm3559_vm3, %v3546_v57  ;;  %v2525_v54 = vmax.f32 %v6344_v20, %v4416_v58  ;;  %v2360_v12 = vpop.f32.mrb[129].mxu1  ;;  %v6897_v20 = vld [vmem:[#allocation105_spill] sm:$0xff] }
 0x4dc   : > { %3673 = vst.msk [vmem:[%s5943_s23 + $0x388] sm:$0xff] %vm3559_vm3, %v3544_v50  ;;  %v2523_v11 = vmax.f32 %v6348_v46, %v2360_v12  ;;  %v4417_v37 = vpop.f32.mrb[130].mxu1 }
 0x4dd   : > { %v3421_v35 = vadd.f32 %v6895_v2, %v2525_v54  ;;  %v2526_v63 = vmax.f32 %v6353_v62, %v4417_v37  ;;  %v2363_v33 = vpop.f32.mrb[131].mxu1 }
 0x4de   : > { %v3419_v1 = vadd.f32 %v6896_v47, %v2523_v11  ;;  %v2524_v36 = vmax.f32 %v6358_v61, %v2363_v33 }
 0x4df   : > { %v3549_v52 = vmax.f32 %v3421_v35, 0.0  ;;  %v3422_v28 = vadd.f32 %v6897_v20, %v2526_v63 }
 0x4e0   : > { %v3547_v40 = vmax.f32 %v3419_v1, 0.0  ;;  %v3420_v60 = vadd.f32 %v6898_v42, %v2524_v36 }
 0x4e1   : > { %3678 = vst.msk [vmem:[%s5943_s23 + $0x3b0] sm:$0xff] %vm3559_vm3, %v3549_v52  ;;  %v3550_v46 = vmax.f32 %v3422_v28, 0.0 }
 0x4e2   : > { %3676 = vst.msk [vmem:[%s5943_s23 + $0x3a0] sm:$0xff] %vm3559_vm3, %v3547_v40  ;;  %v3548_v38 = vmax.f32 %v3420_v60, 0.0  ;;  %v4420_v59 = vpop.f32.mrb[132].mxu1 }
 0x4e3   : > { %3679 = vst.msk [vmem:[%s5943_s23 + $0x3b8] sm:$0xff] %vm3559_vm3, %v3550_v46  ;;  %v2529_v62 = vmax.f32 %v6368_v26, %v4420_v59  ;;  %v2376_v61 = vpop.f32.mrb[133].mxu1  ;;  %v6901_v26 = vld [vmem:[#allocation109_spill] sm:$0xff] }
 0x4e4   : > { %3677 = vst.msk [vmem:[%s5943_s23 + $0x3a8] sm:$0xff] %vm3559_vm3, %v3548_v38  ;;  %v2527_v22 = vmax.f32 %v6372_v30, %v2376_v61  ;;  %v4421_v16 = vpop.f32.mrb[134].mxu1 }
 0x4e5   : > { %v3425_v49 = vadd.f32 %v6899_v18, %v2529_v62  ;;  %v2530_v23 = vmax.f32 %v6377_v14, %v4421_v16  ;;  %v2379_v27 = vpop.f32.mrb[135].mxu1 }
 0x4e6   : > { %v3423_v39 = vadd.f32 %v6900_v51, %v2527_v22  ;;  %v2528_v56 = vmax.f32 %v6382_v13, %v2379_v27  ;;  %v3296_v13 = vpop.permute.xlu0 %3295 }
 0x4e7   : > { %v3553_v8 = vmax.f32 %v3425_v49, 0.0  ;;  %v3426_v48 = vadd.f32 %v6901_v26, %v2530_v23 }
 0x4e8   : > { %v3551_v9 = vmax.f32 %v3423_v39, 0.0  ;;  %v3424_v41 = vadd.f32 %v6902_v17, %v2528_v56 }
 0x4e9   : > { %3682 = vst.msk [vmem:[%s5943_s23 + $0x3d0] sm:$0xff] %vm3559_vm3, %v3553_v8  ;;  %v3554_v30 = vmax.f32 %v3426_v48, 0.0 }
 0x4ea   : > { %3680 = vst.msk [vmem:[%s5943_s23 + $0x3c0] sm:$0xff] %vm3559_vm3, %v3551_v9  ;;  %v3552_v7 = vmax.f32 %v3424_v41, 0.0  ;;  %v4424_v32 = vpop.f32.mrb[136].mxu1 }
 0x4eb   : > { %3683 = vst.msk [vmem:[%s5943_s23 + $0x3d8] sm:$0xff] %vm3559_vm3, %v3554_v30  ;;  %v2533_v14 = vmax.f32 %v6392_v15, %v4424_v32  ;;  %v2392_v44 = vpop.f32.mrb[137].mxu1 }
 0x4ec   : > { %3681 = vst.msk [vmem:[%s5943_s23 + $0x3c8] sm:$0xff] %vm3559_vm3, %v3552_v7  ;;  %v2531_v34 = vmax.f32 %v6396_v6, %v2392_v44  ;;  %v4425_v4 = vpop.f32.mrb[138].mxu1 }
 0x4ed   : > { %v3429_v5 = vadd.f32 %v3296_v13, %v2533_v14  ;;  %v2534_v55 = vmax.f32 %v6401_v21, %v4425_v4  ;;  %v2395_v29 = vpop.f32.mrb[139].mxu1 }
 0x4ee   : > { %v3427_v43 = vadd.f32 %v6903_v31, %v2531_v34  ;;  %v2532_v15 = vmax.f32 %v6406_v25, %v2395_v29 }
 0x4ef   : > { %v3557_v53 = vmax.f32 %v3429_v5, 0.0  ;;  %v3430_v10 = vadd.f32 %v3301_v24, %v2534_v55 }
 0x4f0   : > { %v3555_v45 = vmax.f32 %v3427_v43, 0.0  ;;  %v3428_v3 = vadd.f32 %v6904_v0, %v2532_v15 }
 0x4f1   : > { %3686 = vst.msk [vmem:[%s5943_s23 + $0x3f0] sm:$0xff] %vm3559_vm3, %v3557_v53  ;;  %v3558_v6 = vmax.f32 %v3430_v10, 0.0 }
 0x4f2   : > { %3684 = vst.msk [vmem:[%s5943_s23 + $0x3e0] sm:$0xff] %vm3559_vm3, %v3555_v45  ;;  %v3556_v19 = vmax.f32 %v3428_v3, 0.0 }
 0x4f3   : > { %3687 = vst.msk [vmem:[%s5943_s23 + $0x3f8] sm:$0xff] %vm3559_vm3, %v3558_v6 }
 0x4f4   : > { %3685 = vst.msk [vmem:[%s5943_s23 + $0x3e8] sm:$0xff] %vm3559_vm3, %v3556_v19 }
 0x4f5 PF: > { %s20_s11 = sadd.s32 1, %s4551_s11   ;;  %s6905_s30 = smov %s4547_s10 }
 0x4f6   : > { %p17_p5 = scmp.ge.s32.totalorder %s20_s11, 4   ;;  %s6906_s10 = smov %s6908_s12 }
 0x4f8   :  { %19 = sbr.rel (!%p17_p5) target bundleno = 2 (0x2), region = 97 }

// kernel: pointnet_base_forward.10
= control target key start
LH: loop header
LB: loop body
LE: loop exit
PB: predicated region body
PF: predicated region fallthrough
CT: control target
= control target key end

     0   :  { %12 = vsyncpa [#allocation3], 0  ;;  %s9879_s0 = inlined_call_operand.vmem [shape: f32[2,1024], index: 0, kind: input, shape index: {}]   ;;  %s9880_s1 = inlined_call_operand.hbm [shape: bf16[1024,512], index: 1, kind: input, shape index: {}]   ;;  %s9881_s2 = inlined_call_operand.vmem [shape: f32[1,512], index: 2, kind: input, shape index: {}]   ;;  %s9882_s3 = inlined_call_operand.hbm [shape: bf16[512,256], index: 3, kind: input, shape index: {}]   ;;  %s9883_s4 = inlined_call_operand.vmem [shape: f32[1,256], index: 4, kind: input, shape index: {}]   ;;  %s9884_s5 = inlined_call_operand.vmem [shape: bf16[256,4096], index: 5, kind: input, shape index: {}]   ;;  %s9885_s6 = inlined_call_operand.vmem [shape: f32[1,4096], index: 6, kind: input, shape index: {}]   ;;  %s9886_s7 = inlined_call_operand.vmem [shape: f32[2,4096], index: 7, kind: output, shape index: {}]  }
   0x1   :  { %13 = vsyncpa [#allocation5], 0  ;;  %s7974_s24 = smov [#allocation2]   ;;  %s7926_s28 = scalar_lea.hbm %s9880_s1, 32768 }
   0x2   :  { %s21_s25 = sshll.u32 %s7974_s24, 4  ;;  %p7927_p0 = scmp.ne.s32.totalorder %s9880_s1, %s7926_s28  ;;  %s22_s25 = int_to_ptr.vmem [resolvable:$true] %s21_s25 }
   0x3   :  { %p7930_p1 = scmp.lt.u32.totalorder %s7926_s28, %s9880_s1 }
   0x5   :  { %p7932_p2 = pnand %p7930_p1, %p7927_p0 }
   0x7   :  { %7935 = shalt.err (!%p7932_p2)
}
   0x8   :  { %s7936_s10 = scalar_lea.vmem %s22_s25, 32768  ;;  %p7941_p4 = scmp.lt.s32.totalorder %s22_s25, %s22_s25 }
   0x9   :  { %p7937_p3 = scmp.ne.s32.totalorder %s22_s25, %s7936_s10  ;;  %p7942_p5 = scmp.lt.s32.totalorder %s7936_s10, %s7936_s10 }
   0xb   :  { %p7943_p6 = por %p7942_p5, %p7941_p4 }
   0xd   :  { %p7944_p7 = pnand %p7943_p6, %p7937_p3 }
   0xf   :  { %7947 = shalt.err (!%p7944_p7)
}
  0x10   :  { %s7975_s11 = smov 256   ;;  %s7976_s12 = smov 16  }
  0x11   :  { %27 = dma.hbm_to_vmem [thread:$0]  %s9880_s1, 32768, %s22_s25, [#allocation3], %s7975_s11, %s7975_s11, %s7976_s12  }
  0x12   :  { %s7977_s15 = smov [#allocation4]   ;;  %s7948_s19 = scalar_lea.hbm %s9882_s3, 8192 }
  0x13   :  { %s35_s16 = sshll.u32 %s7977_s15, 4  ;;  %p7949_p8 = scmp.ne.s32.totalorder %s9882_s3, %s7948_s19  ;;  %s36_s16 = int_to_ptr.vmem [resolvable:$true] %s35_s16 }
  0x14   :  { %p7952_p9 = scmp.lt.u32.totalorder %s7948_s19, %s9882_s3 }
  0x16   :  { %p7954_p10 = pnand %p7952_p9, %p7949_p8 }
  0x18   :  { %7957 = shalt.err (!%p7954_p10)
}
  0x19   :  { %s7958_s24 = scalar_lea.vmem %s36_s16, 8192  ;;  %p7963_p12 = scmp.lt.s32.totalorder %s36_s16, %s36_s16 }
  0x1a   :  { %p7959_p11 = scmp.ne.s32.totalorder %s36_s16, %s7958_s24  ;;  %p7964_p13 = scmp.lt.s32.totalorder %s7958_s24, %s7958_s24 }
  0x1c   :  { %p7965_p0 = por %p7964_p13, %p7963_p12 }
  0x1e   :  { %p7966_p1 = pnand %p7965_p0, %p7959_p11 }
  0x20   :  { %7969 = shalt.err (!%p7966_p1)
}
  0x21   :  { %s7978_s1 = smov 128   ;;  %s7979_s25 = smov 8  }
  0x22   :  { %41 = dma.hbm_to_vmem [thread:$0]  %s9882_s3, 8192, %s36_s16, [#allocation5], %s7978_s1, %s7978_s1, %s7979_s25  }
  0x23   :  { %7970 = dma.done.wait [#allocation3], 32768  }
  0x24   :  { %7971 = vsyncadd [#allocation3], 4294934528 }
  0x25   :  { %7972 = dma.done.wait [#allocation5], 8192  }
  0x26   :  { %7973 = vsyncadd [#allocation5], 4294959104  ;;  %v7443_v0 = vld [vmem:[#allocation2 + $0x4] ss:$16 sps:$4 sm:$0xff]   ;;  %v7445_v1 = vld [vmem:[#allocation2 + $0xc] ss:$16 sps:$4 sm:$0xff]   ;;  %v62_v38 = vlaneseq }
  0x27   :  { %1666 = vmatprep.subr.bf16.mxu0 %v7443_v0  ;;  %v7447_v2 = vld [vmem:[#allocation2] ss:$16 sps:$4 sm:$0xff]   ;;  %v7448_v3 = vld [vmem:[#allocation2 + $0x8] ss:$16 sps:$4 sm:$0xff]   ;;  %1830 = vmatprep.subr.bf16.mxu1 %v7445_v1  ;;  %v7449_v4 = vld [vmem:[#allocation2 + $0x24] ss:$16 sps:$4 sm:$0xff]  }
  0x28   :  { %1667 = vmatpush1.bf16.msra.mxu0 %v7447_v2  ;;  %1831 = vmatpush1.bf16.msra.mxu1 %v7448_v3  ;;  %v7451_v5 = vld [vmem:[#allocation2 + $0x2c] ss:$16 sps:$4 sm:$0xff]   ;;  %v7453_v6 = vld [vmem:[#allocation2 + $0x20] ss:$16 sps:$4 sm:$0xff]   ;;  %v7454_v7 = vld [vmem:[#allocation2 + $0x28] ss:$16 sps:$4 sm:$0xff]  }
  0x29   :  { %1668 = vmatprep.subr.bf16.mxu0 %v7449_v4  ;;  %1832 = vmatprep.subr.bf16.mxu1 %v7451_v5  ;;  %v7455_v8 = vld [vmem:[#allocation2 + $0x44] ss:$16 sps:$4 sm:$0xff]   ;;  %v7457_v9 = vld [vmem:[#allocation2 + $0x4c] ss:$16 sps:$4 sm:$0xff]   ;;  %v7459_v10 = vld [vmem:[#allocation2 + $0x40] ss:$16 sps:$4 sm:$0xff]  }
  0x2a   :  { %v7460_v11 = vld [vmem:[#allocation2 + $0x48] ss:$16 sps:$4 sm:$0xff]   ;;  %v7461_v12 = vld [vmem:[#allocation2 + $0x64] ss:$16 sps:$4 sm:$0xff]   ;;  %v7463_v13 = vld [vmem:[#allocation2 + $0x6c] ss:$16 sps:$4 sm:$0xff]  }
  0x2b   :  { %v7465_v14 = vld [vmem:[#allocation2 + $0x60] ss:$16 sps:$4 sm:$0xff]   ;;  %v7466_v15 = vld [vmem:[#allocation2 + $0x68] ss:$16 sps:$4 sm:$0xff]   ;;  %v7467_v16 = vld [vmem:[#allocation2 + $0x84] ss:$16 sps:$4 sm:$0xff]  }
  0x2c   :  { %1669 = vmatpush1.bf16.msra.mxu0 %v7453_v6  ;;  %1833 = vmatpush1.bf16.msra.mxu1 %v7454_v7  ;;  %v7469_v17 = vld [vmem:[#allocation2 + $0x8c] ss:$16 sps:$4 sm:$0xff]   ;;  %v7471_v18 = vld [vmem:[#allocation2 + $0x80] ss:$16 sps:$4 sm:$0xff]   ;;  %v7472_v19 = vld [vmem:[#allocation2 + $0x88] ss:$16 sps:$4 sm:$0xff]  }
  0x2d   :  { %1670 = vmatprep.subr.bf16.mxu0 %v7455_v8  ;;  %1834 = vmatprep.subr.bf16.mxu1 %v7457_v9  ;;  %v7473_v20 = vld [vmem:[#allocation2 + $0xa4] ss:$16 sps:$4 sm:$0xff]   ;;  %v7475_v21 = vld [vmem:[#allocation2 + $0xac] ss:$16 sps:$4 sm:$0xff]   ;;  %v7477_v22 = vld [vmem:[#allocation2 + $0xa0] ss:$16 sps:$4 sm:$0xff]  }
  0x2e   :  { %v7478_v23 = vld [vmem:[#allocation2 + $0xa8] ss:$16 sps:$4 sm:$0xff]   ;;  %v7479_v24 = vld [vmem:[#allocation2 + $0xc4] ss:$16 sps:$4 sm:$0xff]   ;;  %v7481_v25 = vld [vmem:[#allocation2 + $0xcc] ss:$16 sps:$4 sm:$0xff]  }
  0x2f   :  { %v7483_v26 = vld [vmem:[#allocation2 + $0xc0] ss:$16 sps:$4 sm:$0xff]   ;;  %v7484_v27 = vld [vmem:[#allocation2 + $0xc8] ss:$16 sps:$4 sm:$0xff]   ;;  %v7485_v28 = vld [vmem:[#allocation2 + $0xe4] ss:$16 sps:$4 sm:$0xff]  }
  0x30   :  { %1671 = vmatpush1.bf16.msra.mxu0 %v7459_v10  ;;  %1835 = vmatpush1.bf16.msra.mxu1 %v7460_v11  ;;  %v7487_v29 = vld [vmem:[#allocation2 + $0xec] ss:$16 sps:$4 sm:$0xff]   ;;  %v7489_v30 = vld [vmem:[#allocation2 + $0xe0] ss:$16 sps:$4 sm:$0xff]   ;;  %v7490_v31 = vld [vmem:[#allocation2 + $0xe8] ss:$16 sps:$4 sm:$0xff]  }
  0x31   :  { %1672 = vmatprep.subr.bf16.mxu0 %v7461_v12  ;;  %1836 = vmatprep.subr.bf16.mxu1 %v7463_v13  ;;  %v7491_v32 = vld [vmem:[#allocation2 + $0x104] ss:$16 sps:$4 sm:$0xff]   ;;  %v7493_v33 = vld [vmem:[#allocation2 + $0x10c] ss:$16 sps:$4 sm:$0xff]   ;;  %v7495_v34 = vld [vmem:[#allocation2 + $0x100] ss:$16 sps:$4 sm:$0xff]  }
  0x32   :  { %v7496_v35 = vld [vmem:[#allocation2 + $0x108] ss:$16 sps:$4 sm:$0xff]   ;;  %v7980_v36 = vmov 1983009808   ;;  %v7497_v39 = vld [vmem:[#allocation2 + $0x124] ss:$16 sps:$4 sm:$0xff]  }
  0x33   :  { %v60_v37 = vunpack.c.l.s4 %v7980_v36  ;;  %v7499_v40 = vld [vmem:[#allocation2 + $0x12c] ss:$16 sps:$4 sm:$0xff]   ;;  %v7501_v41 = vld [vmem:[#allocation2 + $0x120] ss:$16 sps:$4 sm:$0xff]   ;;  %v8045_v43 = vshrl.u32 %v62_v38, 7 }
  0x34   :  { %1673 = vmatpush1.bf16.msra.mxu0 %v7465_v14  ;;  %1837 = vmatpush1.bf16.msra.mxu1 %v7466_v15  ;;  %v7502_v44 = vld [vmem:[#allocation2 + $0x128] ss:$16 sps:$4 sm:$0xff]   ;;  %v7503_v45 = vld [vmem:[#allocation2 + $0x144] ss:$16 sps:$4 sm:$0xff]   ;;  %v7505_v46 = vld [vmem:[#allocation2 + $0x14c] ss:$16 sps:$4 sm:$0xff]  }
  0x35   :  { %1674 = vmatprep.subr.bf16.mxu0 %v7467_v16  ;;  %1838 = vmatprep.subr.bf16.mxu1 %v7469_v17  ;;  %v61_v42 = vunpack.c.0.s8 %v60_v37  ;;  %v7507_v47 = vld [vmem:[#allocation2 + $0x140] ss:$16 sps:$4 sm:$0xff]   ;;  %v7508_v48 = vld [vmem:[#allocation2 + $0x148] ss:$16 sps:$4 sm:$0xff]   ;;  %v7509_v50 = vld [vmem:[#allocation2 + $0x164] ss:$16 sps:$4 sm:$0xff]  }
  0x36   :  { %v7511_v51 = vld [vmem:[#allocation2 + $0x16c] ss:$16 sps:$4 sm:$0xff]   ;;  %v54_v52 = vld [vmem:[%s9879_s0] sm:$0xff]  ;;  %v7514_v55 = vld [vmem:[#allocation2 + $0x168] ss:$16 sps:$4 sm:$0xff]  }
  0x37   :  { %v8048_v49 = vsub.s32 %v61_v42, %v8045_v43  ;;  %v7513_v53 = vld [vmem:[#allocation2 + $0x160] ss:$16 sps:$4 sm:$0xff]   ;;  %v7515_v56 = vld [vmem:[#allocation2 + $0x184] ss:$16 sps:$4 sm:$0xff]   ;;  %v7517_v57 = vld [vmem:[#allocation2 + $0x18c] ss:$16 sps:$4 sm:$0xff]   ;;  %v58_v4 = vcombine.high %v54_v52, %v54_v52 }
  0x38   :  { %1675 = vmatpush1.bf16.msra.mxu0 %v7471_v18  ;;  %1839 = vmatpush1.bf16.msra.mxu1 %v7472_v19  ;;  %v7519_v59 = vld [vmem:[#allocation2 + $0x180] ss:$16 sps:$4 sm:$0xff]   ;;  %v7520_v61 = vld [vmem:[#allocation2 + $0x188] ss:$16 sps:$4 sm:$0xff]   ;;  %v7521_v62 = vld [vmem:[#allocation2 + $0x1a4] ss:$16 sps:$4 sm:$0xff]  }
  0x39   :  { %1676 = vmatprep.subr.bf16.mxu0 %v7473_v20  ;;  %1840 = vmatprep.subr.bf16.mxu1 %v7475_v21  ;;  %v65_v54 = vrot.slane %v54_v52, %v8048_v49  ;;  %v7523_v63 = vld [vmem:[#allocation2 + $0x1ac] ss:$16 sps:$4 sm:$0xff]   ;;  %v7525_v0 = vld [vmem:[#allocation2 + $0x1a0] ss:$16 sps:$4 sm:$0xff]   ;;  %v7526_v1 = vld [vmem:[#allocation2 + $0x1a8] ss:$16 sps:$4 sm:$0xff]   ;;  %v8055_v9 = vrot.slane %v58_v4, %v8048_v49 }
  0x3a   :  { %v7527_v2 = vld [vmem:[#allocation2 + $0x1c4] ss:$16 sps:$4 sm:$0xff]   ;;  %v7529_v3 = vld [vmem:[#allocation2 + $0x1cc] ss:$16 sps:$4 sm:$0xff]   ;;  %v7531_v5 = vld [vmem:[#allocation2 + $0x1c0] ss:$16 sps:$4 sm:$0xff]  }
  0x3b   :  { %v73_v58 = vcombine.high %v65_v54, %v65_v54  ;;  %v7532_v6 = vld [vmem:[#allocation2 + $0x1c8] ss:$16 sps:$4 sm:$0xff]   ;;  %v7533_v7 = vld [vmem:[#allocation2 + $0x1e4] ss:$16 sps:$4 sm:$0xff]   ;;  %v7535_v8 = vld [vmem:[#allocation2 + $0x1ec] ss:$16 sps:$4 sm:$0xff]   ;;  %v74_v14 = vcombine.high %v8055_v9, %v8055_v9  ;;  %v100_v16 = vpack.c.bf16 %v65_v54, %v65_v54 }
  0x3c   :  { %1677 = vmatpush1.bf16.msra.mxu0 %v7477_v22  ;;  %1841 = vmatpush1.bf16.msra.mxu1 %v7478_v23  ;;  %v7537_v10 = vld [vmem:[#allocation2 + $0x1e0] ss:$16 sps:$4 sm:$0xff]   ;;  %v7538_v11 = vld [vmem:[#allocation2 + $0x1e8] ss:$16 sps:$4 sm:$0xff]   ;;  %v7542_v12 = vld [vmem:[#allocation2 + $0x204] ss:$16 sps:$4 sm:$0xff]  }
  0x3d   :  { %1678 = vmatprep.subr.bf16.mxu0 %v7479_v24  ;;  %1842 = vmatprep.subr.bf16.mxu1 %v7481_v25  ;;  %v101_v60 = vpack.c.bf16 %v73_v58, %v73_v58  ;;  %v7545_v13 = vld [vmem:[#allocation2 + $0x20c] ss:$16 sps:$4 sm:$0xff]   ;;  %v7540_v15 = vld [vmem:[#allocation2 + $0x200] ss:$16 sps:$4 sm:$0xff]   ;;  %v7543_v17 = vld [vmem:[#allocation2 + $0x208] ss:$16 sps:$4 sm:$0xff]   ;;  %v103_v20 = vpack.c.bf16 %v74_v14, %v74_v14 }
  0x3e   :  { %v7548_v18 = vld [vmem:[#allocation2 + $0x224] ss:$16 sps:$4 sm:$0xff]   ;;  %v7551_v19 = vld [vmem:[#allocation2 + $0x22c] ss:$16 sps:$4 sm:$0xff]   ;;  %v7546_v21 = vld [vmem:[#allocation2 + $0x220] ss:$16 sps:$4 sm:$0xff]  }
  0x3f   :  { %1698 = vmatprep.mubr.bf16.mxu0 %v101_v60  ;;  %1862 = vmatprep.mubr.bf16.mxu1 %v101_v60  ;;  %v7549_v22 = vld [vmem:[#allocation2 + $0x228] ss:$16 sps:$4 sm:$0xff]   ;;  %v7554_v23 = vld [vmem:[#allocation2 + $0x244] ss:$16 sps:$4 sm:$0xff]   ;;  %v7557_v24 = vld [vmem:[#allocation2 + $0x24c] ss:$16 sps:$4 sm:$0xff]  }
  0x40   :  { %1679 = vmatpush1.bf16.msra.mxu0 %v7483_v26  ;;  %1843 = vmatpush1.bf16.msra.mxu1 %v7484_v27  ;;  %v7552_v25 = vld [vmem:[#allocation2 + $0x240] ss:$16 sps:$4 sm:$0xff]   ;;  %v7555_v26 = vld [vmem:[#allocation2 + $0x248] ss:$16 sps:$4 sm:$0xff]   ;;  %v7560_v27 = vld [vmem:[#allocation2 + $0x264] ss:$16 sps:$4 sm:$0xff]  }
  0x41   :  { %1680 = vmatprep.subr.bf16.mxu0 %v7485_v28  ;;  %1844 = vmatprep.subr.bf16.mxu1 %v7487_v29  ;;  %v7563_v28 = vld [vmem:[#allocation2 + $0x26c] ss:$16 sps:$4 sm:$0xff]   ;;  %v7558_v29 = vld [vmem:[#allocation2 + $0x260] ss:$16 sps:$4 sm:$0xff]   ;;  %v7573_v38 = vld [vmem:[#allocation2 + $0x2a8] ss:$16 sps:$4 sm:$0xff]  }
  0x42   :  { %v7575_v36 = vld [vmem:[#allocation2 + $0x2ac] ss:$16 sps:$4 sm:$0xff]   ;;  %v7570_v37 = vld [vmem:[#allocation2 + $0x2a0] ss:$16 sps:$4 sm:$0xff]   ;;  %v7579_v42 = vld [vmem:[#allocation2 + $0x2c8] ss:$16 sps:$4 sm:$0xff]  }
  0x43   :  { %v7591_v52 = vld [vmem:[#allocation2 + $0x308] ss:$16 sps:$4 sm:$0xff]   ;;  %v7599_v54 = vld [vmem:[#allocation2 + $0x32c] ss:$16 sps:$4 sm:$0xff]   ;;  %v7632_v14 = vld [vmem:[#allocation2 + $0x3e4] ss:$16 sps:$4 sm:$0xff]  }
  0x44   :  { %1681 = vmatpush1.bf16.msra.mxu0 %v7489_v30  ;;  %1845 = vmatpush1.bf16.msra.mxu1 %v7490_v31  ;;  %v7561_v30 = vld [vmem:[#allocation2 + $0x268] ss:$16 sps:$4 sm:$0xff]   ;;  %v7566_v31 = vld [vmem:[#allocation2 + $0x284] ss:$16 sps:$4 sm:$0xff]   ;;  %v7605_v58 = vld [vmem:[#allocation2 + $0x34c] ss:$16 sps:$4 sm:$0xff]  }
  0x45   :  { %1682 = vmatprep.subr.bf16.mxu0 %v7491_v32  ;;  %1846 = vmatprep.subr.bf16.mxu1 %v7493_v33  ;;  %v7569_v32 = vld [vmem:[#allocation2 + $0x28c] ss:$16 sps:$4 sm:$0xff]   ;;  %v7564_v33 = vld [vmem:[#allocation2 + $0x280] ss:$16 sps:$4 sm:$0xff]   ;;  %v7603_v60 = vld [vmem:[#allocation2 + $0x348] ss:$16 sps:$4 sm:$0xff]  }
  0x46   :  { %v7615_v4 = vld [vmem:[#allocation2 + $0x388] ss:$16 sps:$4 sm:$0xff]  }
  0x48   :  { %1683 = vmatpush1.bf16.msra.mxu0 %v7495_v34  ;;  %1847 = vmatpush1.bf16.msra.mxu1 %v7496_v35  ;;  %v7567_v34 = vld [vmem:[#allocation2 + $0x288] ss:$16 sps:$4 sm:$0xff]   ;;  %v7572_v35 = vld [vmem:[#allocation2 + $0x2a4] ss:$16 sps:$4 sm:$0xff]  }
  0x49   :  { %1684 = vmatprep.subr.bf16.mxu0 %v7497_v39  ;;  %1848 = vmatprep.subr.bf16.mxu1 %v7499_v40  ;;  %v7578_v39 = vld [vmem:[#allocation2 + $0x2c4] ss:$16 sps:$4 sm:$0xff]   ;;  %v7581_v40 = vld [vmem:[#allocation2 + $0x2cc] ss:$16 sps:$4 sm:$0xff]  }
  0x4c   :  { %1685 = vmatpush1.bf16.msra.mxu0 %v7501_v41  ;;  %1849 = vmatpush1.bf16.msra.mxu1 %v7502_v44  ;;  %v7576_v41 = vld [vmem:[#allocation2 + $0x2c0] ss:$16 sps:$4 sm:$0xff]   ;;  %v7584_v44 = vld [vmem:[#allocation2 + $0x2e4] ss:$16 sps:$4 sm:$0xff]  }
  0x4d   :  { %1686 = vmatprep.subr.bf16.mxu0 %v7503_v45  ;;  %1850 = vmatprep.subr.bf16.mxu1 %v7505_v46  ;;  %v7587_v45 = vld [vmem:[#allocation2 + $0x2ec] ss:$16 sps:$4 sm:$0xff]   ;;  %v7582_v46 = vld [vmem:[#allocation2 + $0x2e0] ss:$16 sps:$4 sm:$0xff]  }
  0x50   :  { %1687 = vmatpush1.bf16.msra.mxu0 %v7507_v47  ;;  %1851 = vmatpush1.bf16.msra.mxu1 %v7508_v48  ;;  %v7585_v47 = vld [vmem:[#allocation2 + $0x2e8] ss:$16 sps:$4 sm:$0xff]   ;;  %v7590_v48 = vld [vmem:[#allocation2 + $0x304] ss:$16 sps:$4 sm:$0xff]  }
  0x51   :  { %1688 = vmatprep.subr.bf16.mxu0 %v7509_v50  ;;  %1852 = vmatprep.subr.bf16.mxu1 %v7511_v51  ;;  %v7593_v50 = vld [vmem:[#allocation2 + $0x30c] ss:$16 sps:$4 sm:$0xff]   ;;  %v7588_v51 = vld [vmem:[#allocation2 + $0x300] ss:$16 sps:$4 sm:$0xff]  }
  0x54   :  { %1689 = vmatpush1.bf16.msra.mxu0 %v7513_v53  ;;  %1853 = vmatpush1.bf16.msra.mxu1 %v7514_v55  ;;  %v7596_v53 = vld [vmem:[#allocation2 + $0x324] ss:$16 sps:$4 sm:$0xff]   ;;  %v7594_v55 = vld [vmem:[#allocation2 + $0x320] ss:$16 sps:$4 sm:$0xff]  }
  0x55   :  { %1690 = vmatprep.subr.bf16.mxu0 %v7515_v56  ;;  %1854 = vmatprep.subr.bf16.mxu1 %v7517_v57  ;;  %v7597_v56 = vld [vmem:[#allocation2 + $0x328] ss:$16 sps:$4 sm:$0xff]   ;;  %v7602_v57 = vld [vmem:[#allocation2 + $0x344] ss:$16 sps:$4 sm:$0xff]  }
  0x58   :  { %1691 = vmatpush1.bf16.msra.mxu0 %v7519_v59  ;;  %1855 = vmatpush1.bf16.msra.mxu1 %v7520_v61  ;;  %v7600_v59 = vld [vmem:[#allocation2 + $0x340] ss:$16 sps:$4 sm:$0xff]   ;;  %v7608_v61 = vld [vmem:[#allocation2 + $0x364] ss:$16 sps:$4 sm:$0xff]  }
  0x59   :  { %1692 = vmatprep.subr.bf16.mxu0 %v7521_v62  ;;  %1856 = vmatprep.subr.bf16.mxu1 %v7523_v63  ;;  %v7611_v62 = vld [vmem:[#allocation2 + $0x36c] ss:$16 sps:$4 sm:$0xff]   ;;  %v7606_v63 = vld [vmem:[#allocation2 + $0x360] ss:$16 sps:$4 sm:$0xff]  }
  0x5c   :  { %1693 = vmatpush1.bf16.msra.mxu0 %v7525_v0  ;;  %1857 = vmatpush1.bf16.msra.mxu1 %v7526_v1  ;;  %v7609_v0 = vld [vmem:[#allocation2 + $0x368] ss:$16 sps:$4 sm:$0xff]   ;;  %v7614_v1 = vld [vmem:[#allocation2 + $0x384] ss:$16 sps:$4 sm:$0xff]  }
  0x5d   :  { %1694 = vmatprep.subr.bf16.mxu0 %v7527_v2  ;;  %1858 = vmatprep.subr.bf16.mxu1 %v7529_v3  ;;  %v7617_v2 = vld [vmem:[#allocation2 + $0x38c] ss:$16 sps:$4 sm:$0xff]   ;;  %v7612_v3 = vld [vmem:[#allocation2 + $0x380] ss:$16 sps:$4 sm:$0xff]  }
  0x60   :  { %1695 = vmatpush1.bf16.msra.mxu0 %v7531_v5  ;;  %1859 = vmatpush1.bf16.msra.mxu1 %v7532_v6  ;;  %v7620_v5 = vld [vmem:[#allocation2 + $0x3a4] ss:$16 sps:$4 sm:$0xff]   ;;  %v7623_v6 = vld [vmem:[#allocation2 + $0x3ac] ss:$16 sps:$4 sm:$0xff]  }
  0x61   :  { %1696 = vmatprep.subr.bf16.mxu0 %v7533_v7  ;;  %1860 = vmatprep.subr.bf16.mxu1 %v7535_v8  ;;  %v7618_v7 = vld [vmem:[#allocation2 + $0x3a0] ss:$16 sps:$4 sm:$0xff]   ;;  %v7621_v8 = vld [vmem:[#allocation2 + $0x3a8] ss:$16 sps:$4 sm:$0xff]  }
  0x64   :  { %1697 = vmatpush1.bf16.msra.mxu0 %v7537_v10  ;;  %1861 = vmatpush1.bf16.msra.mxu1 %v7538_v11  ;;  %v7626_v10 = vld [vmem:[#allocation2 + $0x3c4] ss:$16 sps:$4 sm:$0xff]   ;;  %v7629_v11 = vld [vmem:[#allocation2 + $0x3cc] ss:$16 sps:$4 sm:$0xff]  }
  0x65   :  { %1707 = vmatprep.subr.bf16.mxu0 %v7542_v12  ;;  %1871 = vmatprep.subr.bf16.mxu1 %v7545_v13  ;;  %v7624_v12 = vld [vmem:[#allocation2 + $0x3c0] ss:$16 sps:$4 sm:$0xff]   ;;  %v7627_v13 = vld [vmem:[#allocation2 + $0x3c8] ss:$16 sps:$4 sm:$0xff]  }
  0x67   :  { %1699 = vmatmul.mubr.bf16.vlgmr.msra.gmra.mrb[0].mxu0 %v100_v16  ;;  %1863 = vmatmul.mubr.bf16.vlgmr.msra.gmra.mrb[0].mxu1 %v100_v16  ;;  %v7630_v16 = vld [vmem:[#allocation2 + $0x3e0] ss:$16 sps:$4 sm:$0xff]  }
  0x68   :  { %1708 = vmatpush1.bf16.msra.mxu0 %v7540_v15  ;;  %1872 = vmatpush1.bf16.msra.mxu1 %v7543_v17  ;;  %v7635_v15 = vld [vmem:[#allocation2 + $0x3ec] ss:$16 sps:$4 sm:$0xff]   ;;  %v7633_v17 = vld [vmem:[#allocation2 + $0x3e8] ss:$16 sps:$4 sm:$0xff]  }
  0x69   :  { %1709 = vmatprep.subr.bf16.mxu0 %v7548_v18  ;;  %1873 = vmatprep.subr.bf16.mxu1 %v7551_v19  ;;  %v7638_v18 = vld [vmem:[#allocation2 + $0x404] ss:$16 sps:$4 sm:$0xff]   ;;  %v7641_v19 = vld [vmem:[#allocation2 + $0x40c] ss:$16 sps:$4 sm:$0xff]  }
  0x6a   :  { %1739 = vmatprep.mubr.bf16.mxu0 %v103_v20  ;;  %1903 = vmatprep.mubr.bf16.mxu1 %v103_v20  ;;  %v7636_v20 = vld [vmem:[#allocation2 + $0x400] ss:$16 sps:$4 sm:$0xff]  }
  0x6c   :  { %1710 = vmatpush1.bf16.msra.mxu0 %v7546_v21  ;;  %1874 = vmatpush1.bf16.msra.mxu1 %v7549_v22  ;;  %v102_v21 = vpack.c.bf16 %v8055_v9, %v8055_v9  ;;  %v7639_v22 = vld [vmem:[#allocation2 + $0x408] ss:$16 sps:$4 sm:$0xff]  }
  0x6d   :  { %1711 = vmatprep.subr.bf16.mxu0 %v7554_v23  ;;  %1875 = vmatprep.subr.bf16.mxu1 %v7557_v24  ;;  %v8064_v23 = vld [vmem:[%s9879_s0 + $0x8] sm:$0xff]  ;;  %v7644_v24 = vld [vmem:[#allocation2 + $0x424] ss:$16 sps:$4 sm:$0xff]  }
  0x70   :  { %1712 = vmatpush1.bf16.msra.mxu0 %v7552_v25  ;;  %1876 = vmatpush1.bf16.msra.mxu1 %v7555_v26  ;;  %v7647_v25 = vld [vmem:[#allocation2 + $0x42c] ss:$16 sps:$4 sm:$0xff]   ;;  %v8068_v26 = vrot.slane %v8064_v23, %v8048_v49 }
  0x71   :  { %1713 = vmatprep.subr.bf16.mxu0 %v7560_v27  ;;  %1877 = vmatprep.subr.bf16.mxu1 %v7563_v28  ;;  %v7642_v27 = vld [vmem:[#allocation2 + $0x420] ss:$16 sps:$4 sm:$0xff]   ;;  %v7645_v28 = vld [vmem:[#allocation2 + $0x428] ss:$16 sps:$4 sm:$0xff]  }
  0x72   :  { %v90_v9 = vcombine.high %v8068_v26, %v8068_v26 }
  0x74   :  { %1714 = vmatpush1.bf16.msra.mxu0 %v7558_v29  ;;  %1878 = vmatpush1.bf16.msra.mxu1 %v7561_v30  ;;  %v7650_v29 = vld [vmem:[#allocation2 + $0x444] ss:$16 sps:$4 sm:$0xff]   ;;  %v7653_v30 = vld [vmem:[#allocation2 + $0x44c] ss:$16 sps:$4 sm:$0xff]  }
  0x75   :  { %1715 = vmatprep.subr.bf16.mxu0 %v7566_v31  ;;  %1879 = vmatprep.subr.bf16.mxu1 %v7569_v32  ;;  %v105_v31 = vpack.c.bf16 %v90_v9, %v90_v9  ;;  %v7648_v32 = vld [vmem:[#allocation2 + $0x440] ss:$16 sps:$4 sm:$0xff]  }
  0x76   :  { %v7726_v9 = vld [vmem:[#allocation2 + $0x5e0] ss:$16 sps:$4 sm:$0xff]  }
  0x78   :  { %1716 = vmatpush1.bf16.msra.mxu0 %v7564_v33  ;;  %1880 = vmatpush1.bf16.msra.mxu1 %v7567_v34  ;;  %v7651_v33 = vld [vmem:[#allocation2 + $0x448] ss:$16 sps:$4 sm:$0xff]   ;;  %v7656_v34 = vld [vmem:[#allocation2 + $0x464] ss:$16 sps:$4 sm:$0xff]  }
  0x79   :  { %1717 = vmatprep.subr.bf16.mxu0 %v7572_v35  ;;  %1881 = vmatprep.subr.bf16.mxu1 %v7575_v36  ;;  %v7659_v35 = vld [vmem:[#allocation2 + $0x46c] ss:$16 sps:$4 sm:$0xff]   ;;  %v7654_v36 = vld [vmem:[#allocation2 + $0x460] ss:$16 sps:$4 sm:$0xff]  }
  0x7c   :  { %1718 = vmatpush1.bf16.msra.mxu0 %v7570_v37  ;;  %1882 = vmatpush1.bf16.msra.mxu1 %v7573_v38  ;;  %v7657_v37 = vld [vmem:[#allocation2 + $0x468] ss:$16 sps:$4 sm:$0xff]   ;;  %v7662_v38 = vld [vmem:[#allocation2 + $0x484] ss:$16 sps:$4 sm:$0xff]  }
  0x7d   :  { %1719 = vmatprep.subr.bf16.mxu0 %v7578_v39  ;;  %1883 = vmatprep.subr.bf16.mxu1 %v7581_v40  ;;  %v7665_v39 = vld [vmem:[#allocation2 + $0x48c] ss:$16 sps:$4 sm:$0xff]   ;;  %v7660_v40 = vld [vmem:[#allocation2 + $0x480] ss:$16 sps:$4 sm:$0xff]  }
  0x80   :  { %1720 = vmatpush1.bf16.msra.mxu0 %v7576_v41  ;;  %1884 = vmatpush1.bf16.msra.mxu1 %v7579_v42  ;;  %v7663_v41 = vld [vmem:[#allocation2 + $0x488] ss:$16 sps:$4 sm:$0xff]   ;;  %v7668_v42 = vld [vmem:[#allocation2 + $0x4a4] ss:$16 sps:$4 sm:$0xff]  }
  0x81   :  { %1721 = vmatprep.subr.bf16.mxu0 %v7584_v44  ;;  %1885 = vmatprep.subr.bf16.mxu1 %v7587_v45  ;;  %v7671_v44 = vld [vmem:[#allocation2 + $0x4ac] ss:$16 sps:$4 sm:$0xff]   ;;  %v7666_v45 = vld [vmem:[#allocation2 + $0x4a0] ss:$16 sps:$4 sm:$0xff]  }
  0x84   :  { %1722 = vmatpush1.bf16.msra.mxu0 %v7582_v46  ;;  %1886 = vmatpush1.bf16.msra.mxu1 %v7585_v47  ;;  %v7669_v46 = vld [vmem:[#allocation2 + $0x4a8] ss:$16 sps:$4 sm:$0xff]   ;;  %v7674_v47 = vld [vmem:[#allocation2 + $0x4c4] ss:$16 sps:$4 sm:$0xff]  }
  0x85   :  { %1723 = vmatprep.subr.bf16.mxu0 %v7590_v48  ;;  %1887 = vmatprep.subr.bf16.mxu1 %v7593_v50  ;;  %v7677_v48 = vld [vmem:[#allocation2 + $0x4cc] ss:$16 sps:$4 sm:$0xff]   ;;  %v7672_v50 = vld [vmem:[#allocation2 + $0x4c0] ss:$16 sps:$4 sm:$0xff]  }
  0x88   :  { %1724 = vmatpush1.bf16.msra.mxu0 %v7588_v51  ;;  %1888 = vmatpush1.bf16.msra.mxu1 %v7591_v52  ;;  %v7675_v51 = vld [vmem:[#allocation2 + $0x4c8] ss:$16 sps:$4 sm:$0xff]   ;;  %v7680_v52 = vld [vmem:[#allocation2 + $0x4e4] ss:$16 sps:$4 sm:$0xff]  }
  0x89   :  { %1725 = vmatprep.subr.bf16.mxu0 %v7596_v53  ;;  %1889 = vmatprep.subr.bf16.mxu1 %v7599_v54  ;;  %v7683_v53 = vld [vmem:[#allocation2 + $0x4ec] ss:$16 sps:$4 sm:$0xff]   ;;  %v7678_v54 = vld [vmem:[#allocation2 + $0x4e0] ss:$16 sps:$4 sm:$0xff]  }
  0x8c   :  { %1726 = vmatpush1.bf16.msra.mxu0 %v7594_v55  ;;  %1890 = vmatpush1.bf16.msra.mxu1 %v7597_v56  ;;  %v7681_v55 = vld [vmem:[#allocation2 + $0x4e8] ss:$16 sps:$4 sm:$0xff]   ;;  %v7686_v56 = vld [vmem:[#allocation2 + $0x504] ss:$16 sps:$4 sm:$0xff]  }
  0x8d   :  { %1727 = vmatprep.subr.bf16.mxu0 %v7602_v57  ;;  %1891 = vmatprep.subr.bf16.mxu1 %v7605_v58  ;;  %v7689_v57 = vld [vmem:[#allocation2 + $0x50c] ss:$16 sps:$4 sm:$0xff]   ;;  %v7684_v58 = vld [vmem:[#allocation2 + $0x500] ss:$16 sps:$4 sm:$0xff]  }
  0x90   :  { %1728 = vmatpush1.bf16.msra.mxu0 %v7600_v59  ;;  %1892 = vmatpush1.bf16.msra.mxu1 %v7603_v60  ;;  %v7687_v59 = vld [vmem:[#allocation2 + $0x508] ss:$16 sps:$4 sm:$0xff]   ;;  %v7692_v60 = vld [vmem:[#allocation2 + $0x524] ss:$16 sps:$4 sm:$0xff]  }
  0x91   :  { %1729 = vmatprep.subr.bf16.mxu0 %v7608_v61  ;;  %1893 = vmatprep.subr.bf16.mxu1 %v7611_v62  ;;  %v7695_v61 = vld [vmem:[#allocation2 + $0x52c] ss:$16 sps:$4 sm:$0xff]   ;;  %v7690_v62 = vld [vmem:[#allocation2 + $0x520] ss:$16 sps:$4 sm:$0xff]  }
  0x94   :  { %1730 = vmatpush1.bf16.msra.mxu0 %v7606_v63  ;;  %1894 = vmatpush1.bf16.msra.mxu1 %v7609_v0  ;;  %v7693_v63 = vld [vmem:[#allocation2 + $0x528] ss:$16 sps:$4 sm:$0xff]   ;;  %v7698_v0 = vld [vmem:[#allocation2 + $0x544] ss:$16 sps:$4 sm:$0xff]  }
  0x95   :  { %1731 = vmatprep.subr.bf16.mxu0 %v7614_v1  ;;  %1895 = vmatprep.subr.bf16.mxu1 %v7617_v2  ;;  %v7701_v1 = vld [vmem:[#allocation2 + $0x54c] ss:$16 sps:$4 sm:$0xff]   ;;  %v7696_v2 = vld [vmem:[#allocation2 + $0x540] ss:$16 sps:$4 sm:$0xff]  }
  0x98   :  { %1732 = vmatpush1.bf16.msra.mxu0 %v7612_v3  ;;  %1896 = vmatpush1.bf16.msra.mxu1 %v7615_v4  ;;  %v7699_v3 = vld [vmem:[#allocation2 + $0x548] ss:$16 sps:$4 sm:$0xff]   ;;  %v7704_v4 = vld [vmem:[#allocation2 + $0x564] ss:$16 sps:$4 sm:$0xff]  }
  0x99   :  { %1733 = vmatprep.subr.bf16.mxu0 %v7620_v5  ;;  %1897 = vmatprep.subr.bf16.mxu1 %v7623_v6  ;;  %v7707_v5 = vld [vmem:[#allocation2 + $0x56c] ss:$16 sps:$4 sm:$0xff]   ;;  %v7702_v6 = vld [vmem:[#allocation2 + $0x560] ss:$16 sps:$4 sm:$0xff]  }
  0x9c   :  { %1734 = vmatpush1.bf16.msra.mxu0 %v7618_v7  ;;  %1898 = vmatpush1.bf16.msra.mxu1 %v7621_v8  ;;  %v7705_v7 = vld [vmem:[#allocation2 + $0x568] ss:$16 sps:$4 sm:$0xff]   ;;  %v7710_v8 = vld [vmem:[#allocation2 + $0x584] ss:$16 sps:$4 sm:$0xff]  }
  0x9d   :  { %1735 = vmatprep.subr.bf16.mxu0 %v7626_v10  ;;  %1899 = vmatprep.subr.bf16.mxu1 %v7629_v11  ;;  %v7713_v10 = vld [vmem:[#allocation2 + $0x58c] ss:$16 sps:$4 sm:$0xff]   ;;  %v7708_v11 = vld [vmem:[#allocation2 + $0x580] ss:$16 sps:$4 sm:$0xff]  }
  0xa0   :  { %1736 = vmatpush1.bf16.msra.mxu0 %v7624_v12  ;;  %1900 = vmatpush1.bf16.msra.mxu1 %v7627_v13  ;;  %v7711_v12 = vld [vmem:[#allocation2 + $0x588] ss:$16 sps:$4 sm:$0xff]   ;;  %v7716_v13 = vld [vmem:[#allocation2 + $0x5a4] ss:$16 sps:$4 sm:$0xff]  }
  0xa1   :  { %1737 = vmatprep.subr.bf16.mxu0 %v7632_v14  ;;  %1901 = vmatprep.subr.bf16.mxu1 %v7635_v15  ;;  %v7719_v14 = vld [vmem:[#allocation2 + $0x5ac] ss:$16 sps:$4 sm:$0xff]   ;;  %v7714_v15 = vld [vmem:[#allocation2 + $0x5a0] ss:$16 sps:$4 sm:$0xff]  }
  0xa4   :  { %1738 = vmatpush1.bf16.msra.mxu0 %v7630_v16  ;;  %1902 = vmatpush1.bf16.msra.mxu1 %v7633_v17  ;;  %v7717_v16 = vld [vmem:[#allocation2 + $0x5a8] ss:$16 sps:$4 sm:$0xff]   ;;  %v7722_v17 = vld [vmem:[#allocation2 + $0x5c4] ss:$16 sps:$4 sm:$0xff]  }
  0xa5   :  { %1748 = vmatprep.subr.bf16.mxu0 %v7638_v18  ;;  %1912 = vmatprep.subr.bf16.mxu1 %v7641_v19  ;;  %v7725_v18 = vld [vmem:[#allocation2 + $0x5cc] ss:$16 sps:$4 sm:$0xff]   ;;  %v75_v19 = vcombine.high %v8064_v23, %v8064_v23  ;;  %v7732_v23 = vld [vmem:[#allocation2 + $0x600] ss:$16 sps:$4 sm:$0xff]  }
  0xa7   :  { %1740 = vmatmul.mubr.bf16.vlgmr.msra.gmra.mrb[0].mxu0 %v102_v21  ;;  %1904 = vmatmul.mubr.bf16.vlgmr.msra.gmra.mrb[0].mxu1 %v102_v21  ;;  %v7723_v21 = vld [vmem:[#allocation2 + $0x5c8] ss:$16 sps:$4 sm:$0xff]  }
  0xa8   :  { %1749 = vmatpush1.bf16.msra.mxu0 %v7636_v20  ;;  %1913 = vmatpush1.bf16.msra.mxu1 %v7639_v22  ;;  %v7720_v20 = vld [vmem:[#allocation2 + $0x5c0] ss:$16 sps:$4 sm:$0xff]   ;;  %v7728_v22 = vld [vmem:[#allocation2 + $0x5e4] ss:$16 sps:$4 sm:$0xff]  }
  0xa9   :  { %1750 = vmatprep.subr.bf16.mxu0 %v7644_v24  ;;  %1914 = vmatprep.subr.bf16.mxu1 %v7647_v25  ;;  %v7731_v24 = vld [vmem:[#allocation2 + $0x5ec] ss:$16 sps:$4 sm:$0xff]   ;;  %v8075_v25 = vrot.slane %v75_v19, %v8048_v49  ;;  %v7807_v19 = vld [vmem:[#allocation2 + $0x788] ss:$16 sps:$4 sm:$0xff]  }
  0xaa   :  { %1780 = vmatprep.mubr.bf16.mxu0 %v105_v31  ;;  %1944 = vmatprep.mubr.bf16.mxu1 %v105_v31 }
  0xab   :  { %v91_v31 = vcombine.high %v8075_v25, %v8075_v25 }
  0xac   :  { %1751 = vmatpush1.bf16.msra.mxu0 %v7642_v27  ;;  %1915 = vmatpush1.bf16.msra.mxu1 %v7645_v28  ;;  %v7729_v27 = vld [vmem:[#allocation2 + $0x5e8] ss:$16 sps:$4 sm:$0xff]   ;;  %v7734_v28 = vld [vmem:[#allocation2 + $0x604] ss:$16 sps:$4 sm:$0xff]  }
  0xad   :  { %1752 = vmatprep.subr.bf16.mxu0 %v7650_v29  ;;  %1916 = vmatprep.subr.bf16.mxu1 %v7653_v30  ;;  %v7737_v29 = vld [vmem:[#allocation2 + $0x60c] ss:$16 sps:$4 sm:$0xff]   ;;  %v7735_v30 = vld [vmem:[#allocation2 + $0x608] ss:$16 sps:$4 sm:$0xff]  }
  0xb0   :  { %1753 = vmatpush1.bf16.msra.mxu0 %v7648_v32  ;;  %1917 = vmatpush1.bf16.msra.mxu1 %v7651_v33  ;;  %v104_v32 = vpack.c.bf16 %v8068_v26, %v8068_v26  ;;  %v7740_v33 = vld [vmem:[#allocation2 + $0x624] ss:$16 sps:$4 sm:$0xff]  }
  0xb1   :  { %1754 = vmatprep.subr.bf16.mxu0 %v7656_v34  ;;  %1918 = vmatprep.subr.bf16.mxu1 %v7659_v35  ;;  %v7743_v34 = vld [vmem:[#allocation2 + $0x62c] ss:$16 sps:$4 sm:$0xff]   ;;  %v7738_v35 = vld [vmem:[#allocation2 + $0x620] ss:$16 sps:$4 sm:$0xff]   ;;  %v7752_v26 = vld [vmem:[#allocation2 + $0x664] ss:$16 sps:$4 sm:$0xff]  }
  0xb4   :  { %1755 = vmatpush1.bf16.msra.mxu0 %v7654_v36  ;;  %1919 = vmatpush1.bf16.msra.mxu1 %v7657_v37  ;;  %v7741_v36 = vld [vmem:[#allocation2 + $0x628] ss:$16 sps:$4 sm:$0xff]   ;;  %v107_v37 = vpack.c.bf16 %v91_v31, %v91_v31  ;;  %v7822_v31 = vld [vmem:[#allocation2 + $0x7e0] ss:$16 sps:$4 sm:$0xff]  }
  0xb5   :  { %1756 = vmatprep.subr.bf16.mxu0 %v7662_v38  ;;  %1920 = vmatprep.subr.bf16.mxu1 %v7665_v39  ;;  %v7746_v38 = vld [vmem:[#allocation2 + $0x644] ss:$16 sps:$4 sm:$0xff]   ;;  %v7749_v39 = vld [vmem:[#allocation2 + $0x64c] ss:$16 sps:$4 sm:$0xff]  }
  0xb8   :  { %1757 = vmatpush1.bf16.msra.mxu0 %v7660_v40  ;;  %1921 = vmatpush1.bf16.msra.mxu1 %v7663_v41  ;;  %v7744_v40 = vld [vmem:[#allocation2 + $0x640] ss:$16 sps:$4 sm:$0xff]   ;;  %v7747_v41 = vld [vmem:[#allocation2 + $0x648] ss:$16 sps:$4 sm:$0xff]  }
  0xb9   :  { %1758 = vmatprep.subr.bf16.mxu0 %v7668_v42  ;;  %1922 = vmatprep.subr.bf16.mxu1 %v7671_v44  ;;  %v7755_v42 = vld [vmem:[#allocation2 + $0x66c] ss:$16 sps:$4 sm:$0xff]   ;;  %v7750_v44 = vld [vmem:[#allocation2 + $0x660] ss:$16 sps:$4 sm:$0xff]  }
  0xbc   :  { %1759 = vmatpush1.bf16.msra.mxu0 %v7666_v45  ;;  %1923 = vmatpush1.bf16.msra.mxu1 %v7669_v46  ;;  %v7753_v45 = vld [vmem:[#allocation2 + $0x668] ss:$16 sps:$4 sm:$0xff]   ;;  %v7758_v46 = vld [vmem:[#allocation2 + $0x684] ss:$16 sps:$4 sm:$0xff]  }
  0xbd   :  { %1760 = vmatprep.subr.bf16.mxu0 %v7674_v47  ;;  %1924 = vmatprep.subr.bf16.mxu1 %v7677_v48  ;;  %v7761_v47 = vld [vmem:[#allocation2 + $0x68c] ss:$16 sps:$4 sm:$0xff]   ;;  %v7756_v48 = vld [vmem:[#allocation2 + $0x680] ss:$16 sps:$4 sm:$0xff]  }
  0xc0   :  { %1761 = vmatpush1.bf16.msra.mxu0 %v7672_v50  ;;  %1925 = vmatpush1.bf16.msra.mxu1 %v7675_v51  ;;  %v7759_v50 = vld [vmem:[#allocation2 + $0x688] ss:$16 sps:$4 sm:$0xff]   ;;  %v7764_v51 = vld [vmem:[#allocation2 + $0x6a4] ss:$16 sps:$4 sm:$0xff]  }
  0xc1   :  { %1762 = vmatprep.subr.bf16.mxu0 %v7680_v52  ;;  %1926 = vmatprep.subr.bf16.mxu1 %v7683_v53  ;;  %v7767_v52 = vld [vmem:[#allocation2 + $0x6ac] ss:$16 sps:$4 sm:$0xff]   ;;  %v7762_v53 = vld [vmem:[#allocation2 + $0x6a0] ss:$16 sps:$4 sm:$0xff]  }
  0xc4   :  { %1763 = vmatpush1.bf16.msra.mxu0 %v7678_v54  ;;  %1927 = vmatpush1.bf16.msra.mxu1 %v7681_v55  ;;  %v7765_v54 = vld [vmem:[#allocation2 + $0x6a8] ss:$16 sps:$4 sm:$0xff]   ;;  %v7770_v55 = vld [vmem:[#allocation2 + $0x6c4] ss:$16 sps:$4 sm:$0xff]  }
  0xc5   :  { %1764 = vmatprep.subr.bf16.mxu0 %v7686_v56  ;;  %1928 = vmatprep.subr.bf16.mxu1 %v7689_v57  ;;  %v7773_v56 = vld [vmem:[#allocation2 + $0x6cc] ss:$16 sps:$4 sm:$0xff]   ;;  %v7768_v57 = vld [vmem:[#allocation2 + $0x6c0] ss:$16 sps:$4 sm:$0xff]  }
  0xc8   :  { %1765 = vmatpush1.bf16.msra.mxu0 %v7684_v58  ;;  %1929 = vmatpush1.bf16.msra.mxu1 %v7687_v59  ;;  %v7771_v58 = vld [vmem:[#allocation2 + $0x6c8] ss:$16 sps:$4 sm:$0xff]   ;;  %v7776_v59 = vld [vmem:[#allocation2 + $0x6e4] ss:$16 sps:$4 sm:$0xff]  }
  0xc9   :  { %1766 = vmatprep.subr.bf16.mxu0 %v7692_v60  ;;  %1930 = vmatprep.subr.bf16.mxu1 %v7695_v61  ;;  %v7779_v60 = vld [vmem:[#allocation2 + $0x6ec] ss:$16 sps:$4 sm:$0xff]   ;;  %v7774_v61 = vld [vmem:[#allocation2 + $0x6e0] ss:$16 sps:$4 sm:$0xff]  }
  0xcc   :  { %1767 = vmatpush1.bf16.msra.mxu0 %v7690_v62  ;;  %1931 = vmatpush1.bf16.msra.mxu1 %v7693_v63  ;;  %v7777_v62 = vld [vmem:[#allocation2 + $0x6e8] ss:$16 sps:$4 sm:$0xff]   ;;  %v7782_v63 = vld [vmem:[#allocation2 + $0x704] ss:$16 sps:$4 sm:$0xff]  }
  0xcd   :  { %1768 = vmatprep.subr.bf16.mxu0 %v7698_v0  ;;  %1932 = vmatprep.subr.bf16.mxu1 %v7701_v1  ;;  %v7785_v0 = vld [vmem:[#allocation2 + $0x70c] ss:$16 sps:$4 sm:$0xff]   ;;  %v7780_v1 = vld [vmem:[#allocation2 + $0x700] ss:$16 sps:$4 sm:$0xff]  }
  0xd0   :  { %1769 = vmatpush1.bf16.msra.mxu0 %v7696_v2  ;;  %1933 = vmatpush1.bf16.msra.mxu1 %v7699_v3  ;;  %v7783_v2 = vld [vmem:[#allocation2 + $0x708] ss:$16 sps:$4 sm:$0xff]   ;;  %v7788_v3 = vld [vmem:[#allocation2 + $0x724] ss:$16 sps:$4 sm:$0xff]  }
  0xd1   :  { %1770 = vmatprep.subr.bf16.mxu0 %v7704_v4  ;;  %1934 = vmatprep.subr.bf16.mxu1 %v7707_v5  ;;  %v7791_v4 = vld [vmem:[#allocation2 + $0x72c] ss:$16 sps:$4 sm:$0xff]   ;;  %v7786_v5 = vld [vmem:[#allocation2 + $0x720] ss:$16 sps:$4 sm:$0xff]  }
  0xd4   :  { %1771 = vmatpush1.bf16.msra.mxu0 %v7702_v6  ;;  %1935 = vmatpush1.bf16.msra.mxu1 %v7705_v7  ;;  %v7789_v6 = vld [vmem:[#allocation2 + $0x728] ss:$16 sps:$4 sm:$0xff]   ;;  %v7794_v7 = vld [vmem:[#allocation2 + $0x744] ss:$16 sps:$4 sm:$0xff]  }
  0xd5   :  { %1772 = vmatprep.subr.bf16.mxu0 %v7710_v8  ;;  %1936 = vmatprep.subr.bf16.mxu1 %v7713_v10  ;;  %v7797_v8 = vld [vmem:[#allocation2 + $0x74c] ss:$16 sps:$4 sm:$0xff]   ;;  %v7792_v10 = vld [vmem:[#allocation2 + $0x740] ss:$16 sps:$4 sm:$0xff]  }
  0xd8   :  { %1773 = vmatpush1.bf16.msra.mxu0 %v7708_v11  ;;  %1937 = vmatpush1.bf16.msra.mxu1 %v7711_v12  ;;  %v7795_v11 = vld [vmem:[#allocation2 + $0x748] ss:$16 sps:$4 sm:$0xff]   ;;  %v7800_v12 = vld [vmem:[#allocation2 + $0x764] ss:$16 sps:$4 sm:$0xff]  }
  0xd9   :  { %1774 = vmatprep.subr.bf16.mxu0 %v7716_v13  ;;  %1938 = vmatprep.subr.bf16.mxu1 %v7719_v14  ;;  %v7803_v13 = vld [vmem:[#allocation2 + $0x76c] ss:$16 sps:$4 sm:$0xff]   ;;  %v7798_v14 = vld [vmem:[#allocation2 + $0x760] ss:$16 sps:$4 sm:$0xff]  }
  0xdc   :  { %1775 = vmatpush1.bf16.msra.mxu0 %v7714_v15  ;;  %1939 = vmatpush1.bf16.msra.mxu1 %v7717_v16  ;;  %v7801_v15 = vld [vmem:[#allocation2 + $0x768] ss:$16 sps:$4 sm:$0xff]   ;;  %v7806_v16 = vld [vmem:[#allocation2 + $0x784] ss:$16 sps:$4 sm:$0xff]  }
  0xdd   :  { %1776 = vmatprep.subr.bf16.mxu0 %v7722_v17  ;;  %1940 = vmatprep.subr.bf16.mxu1 %v7725_v18  ;;  %v7809_v17 = vld [vmem:[#allocation2 + $0x78c] ss:$16 sps:$4 sm:$0xff]   ;;  %v7804_v18 = vld [vmem:[#allocation2 + $0x780] ss:$16 sps:$4 sm:$0xff]  }
  0xe0   :  { %1777 = vmatpush1.bf16.msra.mxu0 %v7720_v20  ;;  %1941 = vmatpush1.bf16.msra.mxu1 %v7723_v21  ;;  %v7812_v20 = vld [vmem:[#allocation2 + $0x7a4] ss:$16 sps:$4 sm:$0xff]   ;;  %v7815_v21 = vld [vmem:[#allocation2 + $0x7ac] ss:$16 sps:$4 sm:$0xff]  }
  0xe1   :  { %1778 = vmatprep.subr.bf16.mxu0 %v7728_v22  ;;  %1942 = vmatprep.subr.bf16.mxu1 %v7731_v24  ;;  %v7810_v22 = vld [vmem:[#allocation2 + $0x7a0] ss:$16 sps:$4 sm:$0xff]   ;;  %v7813_v24 = vld [vmem:[#allocation2 + $0x7a8] ss:$16 sps:$4 sm:$0xff]  }
  0xe4   :  { %1779 = vmatpush1.bf16.msra.mxu0 %v7726_v9  ;;  %1943 = vmatpush1.bf16.msra.mxu1 %v7729_v27  ;;  %v7818_v9 = vld [vmem:[#allocation2 + $0x7c4] ss:$16 sps:$4 sm:$0xff]   ;;  %v7821_v27 = vld [vmem:[#allocation2 + $0x7cc] ss:$16 sps:$4 sm:$0xff]  }
  0xe5   :  { %1789 = vmatprep.subr.bf16.mxu0 %v7734_v28  ;;  %1953 = vmatprep.subr.bf16.mxu1 %v7737_v29  ;;  %v7816_v28 = vld [vmem:[#allocation2 + $0x7c0] ss:$16 sps:$4 sm:$0xff]   ;;  %v7819_v29 = vld [vmem:[#allocation2 + $0x7c8] ss:$16 sps:$4 sm:$0xff]  }
  0xe7   :  { %1781 = vmatmul.mubr.bf16.vlgmr.msra.gmra.mrb[0].mxu0 %v104_v32  ;;  %1945 = vmatmul.mubr.bf16.vlgmr.msra.gmra.mrb[0].mxu1 %v104_v32  ;;  %v7825_v32 = vld [vmem:[#allocation2 + $0x7e8] ss:$16 sps:$4 sm:$0xff]  }
  0xe8   :  { %1790 = vmatpush1.bf16.msra.mxu0 %v7732_v23  ;;  %1954 = vmatpush1.bf16.msra.mxu1 %v7735_v30  ;;  %v7824_v23 = vld [vmem:[#allocation2 + $0x7e4] ss:$16 sps:$4 sm:$0xff]   ;;  %v7827_v30 = vld [vmem:[#allocation2 + $0x7ec] ss:$16 sps:$4 sm:$0xff]  }
  0xe9   :  { %1791 = vmatprep.subr.bf16.mxu0 %v7740_v33  ;;  %1955 = vmatprep.subr.bf16.mxu1 %v7743_v34  ;;  %v7831_v33 = vld [vmem:[#allocation4 + $0x4] ss:$8 sps:$4 sm:$0xff]   ;;  %v106_v34 = vpack.c.bf16 %v8075_v25, %v8075_v25  ;;  %v7841_v25 = vld [vmem:[#allocation4 + $0x40] ss:$8 sps:$4 sm:$0xff]  }
  0xea   :  { %1821 = vmatprep.mubr.bf16.mxu0 %v107_v37  ;;  %1985 = vmatprep.mubr.bf16.mxu1 %v107_v37  ;;  %v7832_v37 = vld [vmem:[#allocation4 + $0x10] ss:$8 sps:$4 sm:$0xff]  }
  0xec   :  { %1792 = vmatpush1.bf16.msra.mxu0 %v7738_v35  ;;  %1956 = vmatpush1.bf16.msra.mxu1 %v7741_v36  ;;  %v7829_v35 = vld [vmem:[#allocation4] ss:$8 sps:$4 sm:$0xff]   ;;  %v7834_v36 = vld [vmem:[#allocation4 + $0x14] ss:$8 sps:$4 sm:$0xff]  }
  0xed   :  { %1793 = vmatprep.subr.bf16.mxu0 %v7746_v38  ;;  %1957 = vmatprep.subr.bf16.mxu1 %v7749_v39  ;;  %v7837_v38 = vld [vmem:[#allocation4 + $0x24] ss:$8 sps:$4 sm:$0xff]   ;;  %v7835_v39 = vld [vmem:[#allocation4 + $0x20] ss:$8 sps:$4 sm:$0xff]  }
  0xf0   :  { %1794 = vmatpush1.bf16.msra.mxu0 %v7744_v40  ;;  %1958 = vmatpush1.bf16.msra.mxu1 %v7747_v41  ;;  %v7840_v40 = vld [vmem:[#allocation4 + $0x34] ss:$8 sps:$4 sm:$0xff]   ;;  %v7838_v41 = vld [vmem:[#allocation4 + $0x30] ss:$8 sps:$4 sm:$0xff]  }
  0xf1   :  { %1795 = vmatprep.subr.bf16.mxu0 %v7752_v26  ;;  %1959 = vmatprep.subr.bf16.mxu1 %v7755_v42  ;;  %v7843_v26 = vld [vmem:[#allocation4 + $0x44] ss:$8 sps:$4 sm:$0xff]   ;;  %v7846_v42 = vld [vmem:[#allocation4 + $0x54] ss:$8 sps:$4 sm:$0xff]  }
  0xf4   :  { %1796 = vmatpush1.bf16.msra.mxu0 %v7750_v44  ;;  %1960 = vmatpush1.bf16.msra.mxu1 %v7753_v45  ;;  %v7844_v44 = vld [vmem:[#allocation4 + $0x50] ss:$8 sps:$4 sm:$0xff]   ;;  %v7849_v45 = vld [vmem:[#allocation4 + $0x64] ss:$8 sps:$4 sm:$0xff]  }
  0xf5   :  { %1797 = vmatprep.subr.bf16.mxu0 %v7758_v46  ;;  %1961 = vmatprep.subr.bf16.mxu1 %v7761_v47  ;;  %v7847_v46 = vld [vmem:[#allocation4 + $0x60] ss:$8 sps:$4 sm:$0xff]   ;;  %v7852_v47 = vld [vmem:[#allocation4 + $0x74] ss:$8 sps:$4 sm:$0xff]  }
  0xf8   :  { %1798 = vmatpush1.bf16.msra.mxu0 %v7756_v48  ;;  %1962 = vmatpush1.bf16.msra.mxu1 %v7759_v50  ;;  %v7850_v48 = vld [vmem:[#allocation4 + $0x70] ss:$8 sps:$4 sm:$0xff]   ;;  %v7855_v50 = vld [vmem:[#allocation4 + $0x84] ss:$8 sps:$4 sm:$0xff]  }
  0xf9   :  { %1799 = vmatprep.subr.bf16.mxu0 %v7764_v51  ;;  %1963 = vmatprep.subr.bf16.mxu1 %v7767_v52  ;;  %v7853_v51 = vld [vmem:[#allocation4 + $0x80] ss:$8 sps:$4 sm:$0xff]   ;;  %v7858_v52 = vld [vmem:[#allocation4 + $0x94] ss:$8 sps:$4 sm:$0xff]  }
  0xfc   :  { %1800 = vmatpush1.bf16.msra.mxu0 %v7762_v53  ;;  %1964 = vmatpush1.bf16.msra.mxu1 %v7765_v54  ;;  %v7856_v53 = vld [vmem:[#allocation4 + $0x90] ss:$8 sps:$4 sm:$0xff]   ;;  %v7861_v54 = vld [vmem:[#allocation4 + $0xa4] ss:$8 sps:$4 sm:$0xff]  }
  0xfd   :  { %1801 = vmatprep.subr.bf16.mxu0 %v7770_v55  ;;  %1965 = vmatprep.subr.bf16.mxu1 %v7773_v56  ;;  %v7859_v55 = vld [vmem:[#allocation4 + $0xa0] ss:$8 sps:$4 sm:$0xff]   ;;  %v7864_v56 = vld [vmem:[#allocation4 + $0xb4] ss:$8 sps:$4 sm:$0xff]  }
 0x100   :  { %1802 = vmatpush1.bf16.msra.mxu0 %v7768_v57  ;;  %1966 = vmatpush1.bf16.msra.mxu1 %v7771_v58  ;;  %v7862_v57 = vld [vmem:[#allocation4 + $0xb0] ss:$8 sps:$4 sm:$0xff]   ;;  %v7867_v58 = vld [vmem:[#allocation4 + $0xc4] ss:$8 sps:$4 sm:$0xff]  }
 0x101   :  { %1803 = vmatprep.subr.bf16.mxu0 %v7776_v59  ;;  %1967 = vmatprep.subr.bf16.mxu1 %v7779_v60  ;;  %v7865_v59 = vld [vmem:[#allocation4 + $0xc0] ss:$8 sps:$4 sm:$0xff]   ;;  %v7870_v60 = vld [vmem:[#allocation4 + $0xd4] ss:$8 sps:$4 sm:$0xff]  }
 0x104   :  { %1804 = vmatpush1.bf16.msra.mxu0 %v7774_v61  ;;  %1968 = vmatpush1.bf16.msra.mxu1 %v7777_v62  ;;  %v7868_v61 = vld [vmem:[#allocation4 + $0xd0] ss:$8 sps:$4 sm:$0xff]   ;;  %v7873_v62 = vld [vmem:[#allocation4 + $0xe4] ss:$8 sps:$4 sm:$0xff]  }
 0x105   :  { %1805 = vmatprep.subr.bf16.mxu0 %v7782_v63  ;;  %1969 = vmatprep.subr.bf16.mxu1 %v7785_v0  ;;  %v7871_v63 = vld [vmem:[#allocation4 + $0xe0] ss:$8 sps:$4 sm:$0xff]   ;;  %v7876_v0 = vld [vmem:[#allocation4 + $0xf4] ss:$8 sps:$4 sm:$0xff]  }
 0x108   :  { %1806 = vmatpush1.bf16.msra.mxu0 %v7780_v1  ;;  %1970 = vmatpush1.bf16.msra.mxu1 %v7783_v2  ;;  %v7874_v1 = vld [vmem:[#allocation4 + $0xf0] ss:$8 sps:$4 sm:$0xff]   ;;  %v7879_v2 = vld [vmem:[#allocation4 + $0x104] ss:$8 sps:$4 sm:$0xff]  }
 0x109   :  { %1807 = vmatprep.subr.bf16.mxu0 %v7788_v3  ;;  %1971 = vmatprep.subr.bf16.mxu1 %v7791_v4  ;;  %v2484_v3 = vld [vmem:[%s9884_s5] sm:$0xff] }
 0x10a   :  { %v2500_v4 = vld [vmem:[%s9884_s5 + $0x80] sm:$0xff] }
 0x10c   :  { %1808 = vmatpush1.bf16.msra.mxu0 %v7786_v5  ;;  %1972 = vmatpush1.bf16.msra.mxu1 %v7789_v6  ;;  %v6890_v5 = vcombine.low %v2484_v3, %v2500_v4  ;;  %v6891_v6 = vcombine.high %v2484_v3, %v2500_v4 }
 0x10d   :  { %1809 = vmatprep.subr.bf16.mxu0 %v7794_v7  ;;  %1973 = vmatprep.subr.bf16.mxu1 %v7797_v8  ;;  %v2516_v7 = vld [vmem:[%s9884_s5 + $0x100] sm:$0xff] }
 0x10e   :  { %v2532_v8 = vld [vmem:[%s9884_s5 + $0x180] sm:$0xff] }
 0x110   :  { %1810 = vmatpush1.bf16.msra.mxu0 %v7792_v10  ;;  %1974 = vmatpush1.bf16.msra.mxu1 %v7795_v11  ;;  %v6923_v10 = vcombine.high %v2516_v7, %v2532_v8  ;;  %v6922_v11 = vcombine.low %v2516_v7, %v2532_v8 }
 0x111   :  { %1811 = vmatprep.subr.bf16.mxu0 %v7800_v12  ;;  %1975 = vmatprep.subr.bf16.mxu1 %v7803_v13  ;;  %v2548_v12 = vld [vmem:[%s9884_s5 + $0x200] sm:$0xff] }
 0x112   :  { %v2564_v13 = vld [vmem:[%s9884_s5 + $0x280] sm:$0xff] }
 0x114   :  { %1812 = vmatpush1.bf16.msra.mxu0 %v7798_v14  ;;  %1976 = vmatpush1.bf16.msra.mxu1 %v7801_v15  ;;  %v6955_v14 = vcombine.high %v2548_v12, %v2564_v13  ;;  %v6954_v15 = vcombine.low %v2548_v12, %v2564_v13 }
 0x115   :  { %1813 = vmatprep.subr.bf16.mxu0 %v7806_v16  ;;  %1977 = vmatprep.subr.bf16.mxu1 %v7809_v17  ;;  %v2580_v16 = vld [vmem:[%s9884_s5 + $0x300] sm:$0xff] }
 0x116   :  { %v2596_v17 = vld [vmem:[%s9884_s5 + $0x380] sm:$0xff] }
 0x118   :  { %1814 = vmatpush1.bf16.msra.mxu0 %v7804_v18  ;;  %1978 = vmatpush1.bf16.msra.mxu1 %v7807_v19  ;;  %v6987_v18 = vcombine.high %v2580_v16, %v2596_v17  ;;  %v6986_v19 = vcombine.low %v2580_v16, %v2596_v17 }
 0x119   :  { %1815 = vmatprep.subr.bf16.mxu0 %v7812_v20  ;;  %1979 = vmatprep.subr.bf16.mxu1 %v7815_v21  ;;  %v2612_v20 = vld [vmem:[%s9884_s5 + $0x400] sm:$0xff] }
 0x11a   :  { %v2628_v21 = vld [vmem:[%s9884_s5 + $0x480] sm:$0xff] }
 0x11c   :  { %1816 = vmatpush1.bf16.msra.mxu0 %v7810_v22  ;;  %1980 = vmatpush1.bf16.msra.mxu1 %v7813_v24  ;;  %v7019_v22 = vcombine.high %v2612_v20, %v2628_v21  ;;  %v7018_v24 = vcombine.low %v2612_v20, %v2628_v21  ;;  %v7877_v20 = vld [vmem:[#allocation4 + $0x100] ss:$8 sps:$4 sm:$0xff]  }
 0x11d   :  { %1817 = vmatprep.subr.bf16.mxu0 %v7818_v9  ;;  %1981 = vmatprep.subr.bf16.mxu1 %v7821_v27  ;;  %v2644_v9 = vld [vmem:[%s9884_s5 + $0x500] sm:$0xff] }
 0x11e   :  { %v2660_v27 = vld [vmem:[%s9884_s5 + $0x580] sm:$0xff] }
 0x120   :  { %1818 = vmatpush1.bf16.msra.mxu0 %v7816_v28  ;;  %1982 = vmatpush1.bf16.msra.mxu1 %v7819_v29  ;;  %v7051_v28 = vcombine.high %v2644_v9, %v2660_v27  ;;  %v7050_v29 = vcombine.low %v2644_v9, %v2660_v27  ;;  %v7880_v9 = vld [vmem:[#allocation4 + $0x110] ss:$8 sps:$4 sm:$0xff]   ;;  %v7885_v27 = vld [vmem:[#allocation4 + $0x124] ss:$8 sps:$4 sm:$0xff]  }
 0x121   :  { %1819 = vmatprep.subr.bf16.mxu0 %v7824_v23  ;;  %1983 = vmatprep.subr.bf16.mxu1 %v7827_v30  ;;  %v2676_v23 = vld [vmem:[%s9884_s5 + $0x600] sm:$0xff] }
 0x122   :  { %v2692_v30 = vld [vmem:[%s9884_s5 + $0x680] sm:$0xff] }
 0x124   :  { %1820 = vmatpush1.bf16.msra.mxu0 %v7822_v31  ;;  %1984 = vmatpush1.bf16.msra.mxu1 %v7825_v32  ;;  %v7083_v31 = vcombine.high %v2676_v23, %v2692_v30  ;;  %v7082_v32 = vcombine.low %v2676_v23, %v2692_v30  ;;  %v7886_v23 = vld [vmem:[#allocation4 + $0x130] ss:$8 sps:$4 sm:$0xff]   ;;  %v7891_v30 = vld [vmem:[#allocation4 + $0x144] ss:$8 sps:$4 sm:$0xff]  }
 0x125   :  { %2398 = vmatprep.subr.bf16.mxu0 %v7831_v33  ;;  %5724 = vmatprep.subr.bf16.mxu1 %v6891_v6  ;;  %v2708_v33 = vld [vmem:[%s9884_s5 + $0x700] sm:$0xff] }
 0x127   :  { %1822 = vmatmul.mubr.bf16.vlgmr.msra.gmra.mrb[0].mxu0 %v106_v34  ;;  %1986 = vmatmul.mubr.bf16.vlgmr.msra.gmra.mrb[0].mxu1 %v106_v34  ;;  %v2724_v34 = vld [vmem:[%s9884_s5 + $0x780] sm:$0xff] }
 0x128   :  { %2399 = vmatpush1.bf16.msra.mxu0 %v7829_v35  ;;  %5725 = vmatpush1.bf16.msra.mxu1 %v6890_v5  ;;  %v7115_v35 = vcombine.high %v2708_v33, %v2724_v34 }
 0x129   :  { %2400 = vmatprep.subr.bf16.mxu0 %v7834_v36  ;;  %5726 = vmatprep.subr.bf16.mxu1 %v6923_v10  ;;  %v7114_v36 = vcombine.low %v2708_v33, %v2724_v34  ;;  %v7892_v33 = vld [vmem:[#allocation4 + $0x150] ss:$8 sps:$4 sm:$0xff]   ;;  %v7897_v34 = vld [vmem:[#allocation4 + $0x164] ss:$8 sps:$4 sm:$0xff]  }
 0x12c   :  { %2401 = vmatpush1.bf16.msra.mxu0 %v7832_v37  ;;  %5727 = vmatpush1.bf16.msra.mxu1 %v6922_v11  ;;  %v2740_v37 = vld [vmem:[%s9884_s5 + $0x800] sm:$0xff] }
 0x12d   :  { %2402 = vmatprep.subr.bf16.mxu0 %v7837_v38  ;;  %5728 = vmatprep.subr.bf16.mxu1 %v6955_v14  ;;  %v2756_v38 = vld [vmem:[%s9884_s5 + $0x880] sm:$0xff] }
 0x130   :  { %2403 = vmatpush1.bf16.msra.mxu0 %v7835_v39  ;;  %5729 = vmatpush1.bf16.msra.mxu1 %v6954_v15  ;;  %v7147_v39 = vcombine.high %v2740_v37, %v2756_v38 }
 0x131   :  { %2404 = vmatprep.subr.bf16.mxu0 %v7840_v40  ;;  %5730 = vmatprep.subr.bf16.mxu1 %v6987_v18  ;;  %v7146_v40 = vcombine.low %v2740_v37, %v2756_v38  ;;  %v7898_v37 = vld [vmem:[#allocation4 + $0x170] ss:$8 sps:$4 sm:$0xff]   ;;  %v7903_v38 = vld [vmem:[#allocation4 + $0x184] ss:$8 sps:$4 sm:$0xff]  }
 0x134   :  { %2405 = vmatpush1.bf16.msra.mxu0 %v7838_v41  ;;  %5731 = vmatpush1.bf16.msra.mxu1 %v6986_v19  ;;  %v2772_v41 = vld [vmem:[%s9884_s5 + $0x900] sm:$0xff] }
 0x135   :  { %2406 = vmatprep.subr.bf16.mxu0 %v7843_v26  ;;  %5732 = vmatprep.subr.bf16.mxu1 %v7019_v22  ;;  %v2788_v26 = vld [vmem:[%s9884_s5 + $0x980] sm:$0xff]  ;;  %v7882_v22 = vld [vmem:[#allocation4 + $0x114] ss:$8 sps:$4 sm:$0xff]  }
 0x138   :  { %2407 = vmatpush1.bf16.msra.mxu0 %v7841_v25  ;;  %5733 = vmatpush1.bf16.msra.mxu1 %v7018_v24  ;;  %v7179_v25 = vcombine.high %v2772_v41, %v2788_v26 }
 0x139   :  { %2408 = vmatprep.subr.bf16.mxu0 %v7846_v42  ;;  %5734 = vmatprep.subr.bf16.mxu1 %v7051_v28  ;;  %v7178_v42 = vcombine.low %v2772_v41, %v2788_v26  ;;  %v7883_v28 = vld [vmem:[#allocation4 + $0x120] ss:$8 sps:$4 sm:$0xff]   ;;  %v7904_v41 = vld [vmem:[#allocation4 + $0x190] ss:$8 sps:$4 sm:$0xff]   ;;  %v7909_v26 = vld [vmem:[#allocation4 + $0x1a4] ss:$8 sps:$4 sm:$0xff]  }
 0x13c   :  { %2409 = vmatpush1.bf16.msra.mxu0 %v7844_v44  ;;  %5735 = vmatpush1.bf16.msra.mxu1 %v7050_v29  ;;  %v2804_v44 = vld [vmem:[%s9884_s5 + $0xa00] sm:$0xff]  ;;  %v7888_v29 = vld [vmem:[#allocation4 + $0x134] ss:$8 sps:$4 sm:$0xff]  }
 0x13d   :  { %2410 = vmatprep.subr.bf16.mxu0 %v7849_v45  ;;  %5736 = vmatprep.subr.bf16.mxu1 %v7083_v31  ;;  %v2820_v45 = vld [vmem:[%s9884_s5 + $0xa80] sm:$0xff] }
 0x13e   :  { %v7889_v31 = vld [vmem:[#allocation4 + $0x140] ss:$8 sps:$4 sm:$0xff]  }
 0x140   :  { %2411 = vmatpush1.bf16.msra.mxu0 %v7847_v46  ;;  %5737 = vmatpush1.bf16.msra.mxu1 %v7082_v32  ;;  %v7211_v46 = vcombine.high %v2804_v44, %v2820_v45  ;;  %v7894_v32 = vld [vmem:[#allocation4 + $0x154] ss:$8 sps:$4 sm:$0xff]  }
 0x141   :  { %2412 = vmatprep.subr.bf16.mxu0 %v7852_v47  ;;  %5738 = vmatprep.subr.bf16.mxu1 %v7115_v35  ;;  %v7210_v47 = vcombine.low %v2804_v44, %v2820_v45  ;;  %v7895_v35 = vld [vmem:[#allocation4 + $0x160] ss:$8 sps:$4 sm:$0xff]   ;;  %v7910_v44 = vld [vmem:[#allocation4 + $0x1b0] ss:$8 sps:$4 sm:$0xff]   ;;  %v7915_v45 = vld [vmem:[#allocation4 + $0x1c4] ss:$8 sps:$4 sm:$0xff]  }
 0x144   :  { %2413 = vmatpush1.bf16.msra.mxu0 %v7850_v48  ;;  %5739 = vmatpush1.bf16.msra.mxu1 %v7114_v36  ;;  %v2836_v48 = vld [vmem:[%s9884_s5 + $0xb00] sm:$0xff]  ;;  %v7900_v36 = vld [vmem:[#allocation4 + $0x174] ss:$8 sps:$4 sm:$0xff]  }
 0x145   :  { %2414 = vmatprep.subr.bf16.mxu0 %v7855_v50  ;;  %5740 = vmatprep.subr.bf16.mxu1 %v7147_v39  ;;  %v2852_v50 = vld [vmem:[%s9884_s5 + $0xb80] sm:$0xff] }
 0x146   :  { %v7901_v39 = vld [vmem:[#allocation4 + $0x180] ss:$8 sps:$4 sm:$0xff]  }
 0x148   :  { %2415 = vmatpush1.bf16.msra.mxu0 %v7853_v51  ;;  %5741 = vmatpush1.bf16.msra.mxu1 %v7146_v40  ;;  %v7243_v51 = vcombine.high %v2836_v48, %v2852_v50  ;;  %v7906_v40 = vld [vmem:[#allocation4 + $0x194] ss:$8 sps:$4 sm:$0xff]  }
 0x149   :  { %2416 = vmatprep.subr.bf16.mxu0 %v7858_v52  ;;  %5742 = vmatprep.subr.bf16.mxu1 %v7179_v25  ;;  %v7242_v52 = vcombine.low %v2836_v48, %v2852_v50  ;;  %v7907_v25 = vld [vmem:[#allocation4 + $0x1a0] ss:$8 sps:$4 sm:$0xff]   ;;  %v7918_v48 = vld [vmem:[#allocation4 + $0x1d4] ss:$8 sps:$4 sm:$0xff]   ;;  %v7916_v50 = vld [vmem:[#allocation4 + $0x1d0] ss:$8 sps:$4 sm:$0xff]  }
 0x14c   :  { %2417 = vmatpush1.bf16.msra.mxu0 %v7856_v53  ;;  %5743 = vmatpush1.bf16.msra.mxu1 %v7178_v42  ;;  %v2868_v53 = vld [vmem:[%s9884_s5 + $0xc00] sm:$0xff]  ;;  %v7912_v42 = vld [vmem:[#allocation4 + $0x1b4] ss:$8 sps:$4 sm:$0xff]  }
 0x14d   :  { %2418 = vmatprep.subr.bf16.mxu0 %v7861_v54  ;;  %5744 = vmatprep.subr.bf16.mxu1 %v7211_v46  ;;  %v2884_v54 = vld [vmem:[%s9884_s5 + $0xc80] sm:$0xff] }
 0x14e   :  { %v7913_v46 = vld [vmem:[#allocation4 + $0x1c0] ss:$8 sps:$4 sm:$0xff]  }
 0x150   :  { %2419 = vmatpush1.bf16.msra.mxu0 %v7859_v55  ;;  %5745 = vmatpush1.bf16.msra.mxu1 %v7210_v47  ;;  %v7275_v55 = vcombine.high %v2868_v53, %v2884_v54  ;;  %v8190_v47 = vsub.s32 2, %v8045_v43 }
 0x151   :  { %2420 = vmatprep.subr.bf16.mxu0 %v7864_v56  ;;  %5746 = vmatprep.subr.bf16.mxu1 %v7243_v51  ;;  %v8162_v56 = vsub.s32 0, %v8045_v43 }
 0x154   :  { %2421 = vmatpush1.bf16.msra.mxu0 %v7862_v57  ;;  %5747 = vmatpush1.bf16.msra.mxu1 %v7242_v52  ;;  %v7274_v57 = vcombine.low %v2868_v53, %v2884_v54  ;;  %v7921_v52 = vld [vmem:[#allocation4 + $0x1e4] ss:$8 sps:$4 sm:$0xff]   ;;  %v7919_v53 = vld [vmem:[#allocation4 + $0x1e0] ss:$8 sps:$4 sm:$0xff]  }
 0x155   :  { %2422 = vmatprep.subr.bf16.mxu0 %v7867_v58  ;;  %v8167_v58 = vld [vmem:[%s9881_s2] sm:$0xf]  ;;  %5748 = vmatprep.subr.bf16.mxu1 %v7275_v55  ;;  %v7924_v55 = vld [vmem:[#allocation4 + $0x1f4] ss:$8 sps:$4 sm:$0xff]  }
 0x156   :  { %v377_v51 = vrot.slane %v8167_v58, %v8190_v47 }
 0x158   :  { %2423 = vmatpush1.bf16.msra.mxu0 %v7865_v59  ;;  %v8170_v59 = vsub.s32 1, %v8045_v43  ;;  %5749 = vmatpush1.bf16.msra.mxu1 %v7274_v57  ;;  %v2486_v57 = vld [vmem:[%s9884_s5 + $0x10] sm:$0xff] }
 0x159   :  { %2424 = vmatprep.subr.bf16.mxu0 %v7870_v60  ;;  %v8173_v60 = vsub.s32 3, %v8045_v43 }
 0x15b   :  { %v381_v3 = vrot.slane %v8167_v58, %v8173_v60 }
 0x15c   :  { %2425 = vmatpush1.bf16.msra.mxu0 %v7868_v61  ;;  %v2900_v61 = vld [vmem:[%s9884_s5 + $0xd00] sm:$0xff] }
 0x15d   :  { %2426 = vmatprep.subr.bf16.mxu0 %v7873_v62  ;;  %v2916_v62 = vld [vmem:[%s9884_s5 + $0xd80] sm:$0xff] }
 0x160   :  { %2427 = vmatpush1.bf16.msra.mxu0 %v7871_v63  ;;  %v7307_v63 = vcombine.high %v2900_v61, %v2916_v62 }
 0x161   :  { %2428 = vmatprep.subr.bf16.mxu0 %v7876_v0  ;;  %v369_v0 = vrot.slane %v8167_v58, %v8162_v56 }
 0x162   :  { %5750 = vmatprep.subr.bf16.mxu1 %v7307_v63 }
 0x164   :  { %2429 = vmatpush1.bf16.msra.mxu0 %v7874_v1  ;;  %v7306_v1 = vcombine.low %v2900_v61, %v2916_v62  ;;  %v2502_v61 = vld [vmem:[%s9884_s5 + $0x90] sm:$0xff] }
 0x165   :  { %2439 = vmatprep.subr.bf16.mxu0 %v7879_v2  ;;  %v373_v2 = vrot.slane %v8167_v58, %v8170_v59  ;;  %v7922_v62 = vld [vmem:[#allocation4 + $0x1f0] ss:$8 sps:$4 sm:$0xff]   ;;  %v6895_v58 = vcombine.high %v2486_v57, %v2502_v61 }
 0x166   :  { %5751 = vmatpush1.bf16.msra.mxu1 %v7306_v1  ;;  %v2534_v1 = vld [vmem:[%s9884_s5 + $0x190] sm:$0xff] }
 0x1fa   :  { %v1823_v4 = vpop.f32.mrb[0].mxu0  ;;  %v8187_v5 = vpop.f32.mrb[0].mxu1 }
 0x1fb   :  { %v7402_v6 = vadd.f32 %v1823_v4, %v369_v0  ;;  %v1825_v7 = vpop.f32.mrb[1].mxu0  ;;  %v1989_v8 = vpop.f32.mrb[1].mxu1  ;;  %v7404_v54 = vadd.f32 %v8187_v5, %v377_v51  ;;  %v2518_v0 = vld [vmem:[%s9884_s5 + $0x110] sm:$0xff] }
 0x1fc   :  { %v7403_v10 = vadd.f32 %v1825_v7, %v373_v2  ;;  %v7405_v11 = vadd.f32 %v1989_v8, %v381_v3  ;;  %v1827_v12 = vpop.f32.mrb[2].mxu0  ;;  %v1991_v13 = vpop.f32.mrb[2].mxu1  ;;  %v6894_v2 = vcombine.low %v2486_v57, %v2502_v61  ;;  %v6927_v4 = vcombine.high %v2518_v0, %v2534_v1  ;;  %v2550_v5 = vld [vmem:[%s9884_s5 + $0x210] sm:$0xff]  ;;  %v2932_v61 = vld [vmem:[%s9884_s5 + $0xe00] sm:$0xff] }
 0x1fd   :  { %v1994_v14 = vmax.f32 %v7402_v6, 0.0  ;;  %v1828_v15 = vpop.f32.mrb[3].mxu0  ;;  %v1992_v16 = vpop.f32.mrb[3].mxu1  ;;  %v1996_v63 = vmax.f32 %v7404_v54, 0.0  ;;  %v2566_v6 = vld [vmem:[%s9884_s5 + $0x290] sm:$0xff]  ;;  %v6926_v7 = vcombine.low %v2518_v0, %v2534_v1 }
 0x1fe   :  { %v1995_v17 = vmax.f32 %v7403_v10, 0.0  ;;  %v1997_v18 = vmax.f32 %v7405_v11, 0.0  ;;  %v6959_v8 = vcombine.high %v2550_v5, %v2566_v6  ;;  %v2582_v10 = vld [vmem:[%s9884_s5 + $0x310] sm:$0xff]  ;;  %v6958_v12 = vcombine.low %v2550_v5, %v2566_v6  ;;  %v2980_v5 = vld [vmem:[%s9884_s5 + $0xf80] sm:$0xff] }
 0x1ff   :  { %v1998_v21 = vpack.c.bf16 %v1994_v14, %v1994_v14  ;;  %v2000_v3 = vpack.c.bf16 %v1996_v63, %v1996_v63  ;;  %v2598_v11 = vld [vmem:[%s9884_s5 + $0x390] sm:$0xff] }
 0x200   :  { %v1999_v19 = vpack.c.bf16 %v1995_v17, %v1995_v17  ;;  %v2001_v24 = vpack.c.bf16 %v1997_v18, %v1997_v18  ;;  %v6991_v13 = vcombine.high %v2582_v10, %v2598_v11  ;;  %v2614_v14 = vld [vmem:[%s9884_s5 + $0x410] sm:$0xff]  ;;  %v6990_v16 = vcombine.low %v2582_v10, %v2598_v11 }
 0x201   :  { %v2630_v15 = vld [vmem:[%s9884_s5 + $0x490] sm:$0xff] }
 0x202   :  { %2430 = vmatprep.mubr.bf16.mxu0 %v1999_v19  ;;  %v7023_v17 = vcombine.high %v2614_v14, %v2630_v15  ;;  %v2646_v18 = vld [vmem:[%s9884_s5 + $0x510] sm:$0xff] }
 0x203   :  { %2431 = vmatmul.mubr.bf16.vlgmr.msra.gmra.mrb[4].mxu0 %v1998_v21  ;;  %v2662_v19 = vld [vmem:[%s9884_s5 + $0x590] sm:$0xff] }
 0x204   :  { %2440 = vmatpush1.bf16.msra.mxu0 %v7877_v20  ;;  %2471 = vmatprep.mubr.bf16.mxu0 %v2001_v24  ;;  %v7022_v20 = vcombine.low %v2614_v14, %v2630_v15  ;;  %v7055_v21 = vcombine.high %v2646_v18, %v2662_v19  ;;  %v2694_v24 = vld [vmem:[%s9884_s5 + $0x690] sm:$0xff]  ;;  %v2501_v14 = vld [vmem:[%s9884_s5 + $0x88] sm:$0xff]  ;;  %v2488_v15 = vld [vmem:[%s9884_s5 + $0x20] sm:$0xff] }
 0x205   :  { %2441 = vmatprep.subr.bf16.mxu0 %v7882_v22  ;;  %v2678_v22 = vld [vmem:[%s9884_s5 + $0x610] sm:$0xff] }
 0x206   :  { %v2934_v63 = vld [vmem:[%s9884_s5 + $0xe10] sm:$0xff] }
 0x207   :  { %v2950_v0 = vld [vmem:[%s9884_s5 + $0xe90] sm:$0xff] }
 0x208   :  { %2442 = vmatpush1.bf16.msra.mxu0 %v7880_v9  ;;  %v7054_v9 = vcombine.low %v2646_v18, %v2662_v19  ;;  %v2966_v6 = vld [vmem:[%s9884_s5 + $0xf10] sm:$0xff] }
 0x209   :  { %2443 = vmatprep.subr.bf16.mxu0 %v7885_v27  ;;  %v7087_v27 = vcombine.high %v2678_v22, %v2694_v24 }
 0x20c   :  { %2444 = vmatpush1.bf16.msra.mxu0 %v7883_v28  ;;  %v2710_v28 = vld [vmem:[%s9884_s5 + $0x710] sm:$0xff] }
 0x20d   :  { %2445 = vmatprep.subr.bf16.mxu0 %v7888_v29  ;;  %v2726_v29 = vld [vmem:[%s9884_s5 + $0x790] sm:$0xff] }
 0x210   :  { %2446 = vmatpush1.bf16.msra.mxu0 %v7886_v23  ;;  %v7086_v23 = vcombine.low %v2678_v22, %v2694_v24 }
 0x211   :  { %2447 = vmatprep.subr.bf16.mxu0 %v7891_v30  ;;  %v7119_v30 = vcombine.high %v2710_v28, %v2726_v29 }
 0x214   :  { %2448 = vmatpush1.bf16.msra.mxu0 %v7889_v31  ;;  %v2742_v31 = vld [vmem:[%s9884_s5 + $0x810] sm:$0xff] }
 0x215   :  { %2449 = vmatprep.subr.bf16.mxu0 %v7894_v32  ;;  %v2758_v32 = vld [vmem:[%s9884_s5 + $0x890] sm:$0xff] }
 0x218   :  { %2450 = vmatpush1.bf16.msra.mxu0 %v7892_v33  ;;  %v7118_v33 = vcombine.low %v2710_v28, %v2726_v29 }
 0x219   :  { %2451 = vmatprep.subr.bf16.mxu0 %v7897_v34  ;;  %v7151_v34 = vcombine.high %v2742_v31, %v2758_v32 }
 0x21c   :  { %2452 = vmatpush1.bf16.msra.mxu0 %v7895_v35  ;;  %v2774_v35 = vld [vmem:[%s9884_s5 + $0x910] sm:$0xff] }
 0x21d   :  { %2453 = vmatprep.subr.bf16.mxu0 %v7900_v36  ;;  %v2790_v36 = vld [vmem:[%s9884_s5 + $0x990] sm:$0xff] }
 0x220   :  { %2454 = vmatpush1.bf16.msra.mxu0 %v7898_v37  ;;  %v7150_v37 = vcombine.low %v2742_v31, %v2758_v32 }
 0x221   :  { %2455 = vmatprep.subr.bf16.mxu0 %v7903_v38  ;;  %v7183_v38 = vcombine.high %v2774_v35, %v2790_v36 }
 0x224   :  { %2456 = vmatpush1.bf16.msra.mxu0 %v7901_v39  ;;  %v2806_v39 = vld [vmem:[%s9884_s5 + $0xa10] sm:$0xff] }
 0x225   :  { %2457 = vmatprep.subr.bf16.mxu0 %v7906_v40  ;;  %v2822_v40 = vld [vmem:[%s9884_s5 + $0xa90] sm:$0xff] }
 0x228   :  { %2458 = vmatpush1.bf16.msra.mxu0 %v7904_v41  ;;  %v7182_v41 = vcombine.low %v2774_v35, %v2790_v36  ;;  %v2520_v35 = vld [vmem:[%s9884_s5 + $0x120] sm:$0xff] }
 0x229   :  { %2459 = vmatprep.subr.bf16.mxu0 %v7909_v26  ;;  %v7215_v26 = vcombine.high %v2806_v39, %v2822_v40  ;;  %v2536_v36 = vld [vmem:[%s9884_s5 + $0x1a0] sm:$0xff] }
 0x22c   :  { %2460 = vmatpush1.bf16.msra.mxu0 %v7907_v25  ;;  %v2838_v25 = vld [vmem:[%s9884_s5 + $0xb10] sm:$0xff] }
 0x22d   :  { %2461 = vmatprep.subr.bf16.mxu0 %v7912_v42  ;;  %v2854_v42 = vld [vmem:[%s9884_s5 + $0xb90] sm:$0xff] }
 0x230   :  { %2462 = vmatpush1.bf16.msra.mxu0 %v7910_v44  ;;  %v7214_v44 = vcombine.low %v2806_v39, %v2822_v40  ;;  %v2549_v39 = vld [vmem:[%s9884_s5 + $0x208] sm:$0xff] }
 0x231   :  { %2463 = vmatprep.subr.bf16.mxu0 %v7915_v45  ;;  %v7247_v45 = vcombine.high %v2838_v25, %v2854_v42 }
 0x234   :  { %2464 = vmatpush1.bf16.msra.mxu0 %v7913_v46  ;;  %v2870_v46 = vld [vmem:[%s9884_s5 + $0xc10] sm:$0xff] }
 0x235   :  { %2465 = vmatprep.subr.bf16.mxu0 %v7918_v48  ;;  %v2886_v48 = vld [vmem:[%s9884_s5 + $0xc90] sm:$0xff] }
 0x236   :  { %v7279_v51 = vcombine.high %v2870_v46, %v2886_v48  ;;  %v7278_v54 = vcombine.low %v2870_v46, %v2886_v48 }
 0x238   :  { %2466 = vmatpush1.bf16.msra.mxu0 %v7916_v50  ;;  %v7246_v50 = vcombine.low %v2838_v25, %v2854_v42  ;;  %v2552_v25 = vld [vmem:[%s9884_s5 + $0x220] sm:$0xff] }
 0x239   :  { %2467 = vmatprep.subr.bf16.mxu0 %v7921_v52  ;;  %v2902_v52 = vld [vmem:[%s9884_s5 + $0xd10] sm:$0xff]  ;;  %v2568_v42 = vld [vmem:[%s9884_s5 + $0x2a0] sm:$0xff] }
 0x23a   :  { %v6963_v48 = vcombine.high %v2552_v25, %v2568_v42 }
 0x23c   :  { %2468 = vmatpush1.bf16.msra.mxu0 %v7919_v53  ;;  %v2918_v53 = vld [vmem:[%s9884_s5 + $0xd90] sm:$0xff] }
 0x23d   :  { %2469 = vmatprep.subr.bf16.mxu0 %v7924_v55  ;;  %v7311_v55 = vcombine.high %v2902_v52, %v2918_v53  ;;  %v7310_v57 = vcombine.low %v2902_v52, %v2918_v53  ;;  %v2584_v52 = vld [vmem:[%s9884_s5 + $0x320] sm:$0xff] }
 0x23e   :  { %v2600_v53 = vld [vmem:[%s9884_s5 + $0x3a0] sm:$0xff] }
 0x240   :  { %2470 = vmatpush1.bf16.msra.mxu0 %v7922_v62  ;;  %v2948_v62 = vld [vmem:[%s9884_s5 + $0xe80] sm:$0xff] }
 0x241   :  { %5806 = vmatprep.subr.bf16.mxu0 %v6895_v58  ;;  %v7339_v58 = vcombine.high %v2932_v61, %v2948_v62  ;;  %v7338_v1 = vcombine.low %v2932_v61, %v2948_v62  ;;  %v6995_v61 = vcombine.high %v2584_v52, %v2600_v53  ;;  %v2613_v62 = vld [vmem:[%s9884_s5 + $0x408] sm:$0xff] }
 0x243   :  { %2472 = vmatmul.mubr.bf16.vlgmr.msra.gmra.mrb[4].mxu0 %v2000_v3  ;;  %v7343_v3 = vcombine.high %v2934_v63, %v2950_v0  ;;  %5752 = vmatprep.subr.bf16.mxu1 %v7339_v58  ;;  %v2616_v58 = vld [vmem:[%s9884_s5 + $0x420] sm:$0xff] }
 0x244   :  { %5807 = vmatpush1.bf16.msra.mxu0 %v6894_v2  ;;  %v7342_v2 = vcombine.low %v2934_v63, %v2950_v0  ;;  %5753 = vmatpush1.bf16.msra.mxu1 %v7338_v1  ;;  %v2629_v63 = vld [vmem:[%s9884_s5 + $0x488] sm:$0xff]  ;;  %v2632_v0 = vld [vmem:[%s9884_s5 + $0x4a0] sm:$0xff] }
 0x245   :  { %5808 = vmatprep.subr.bf16.mxu0 %v6927_v4  ;;  %v2964_v4 = vld [vmem:[%s9884_s5 + $0xf00] sm:$0xff] }
 0x246   :  { %v7370_v10 = vcombine.low %v2964_v4, %v2980_v5 }
 0x248   :  { %5809 = vmatpush1.bf16.msra.mxu0 %v6926_v7  ;;  %v7371_v7 = vcombine.high %v2964_v4, %v2980_v5  ;;  %v7027_v4 = vcombine.high %v2616_v58, %v2632_v0  ;;  %v2645_v5 = vld [vmem:[%s9884_s5 + $0x508] sm:$0xff] }
 0x249   :  { %5810 = vmatprep.subr.bf16.mxu0 %v6959_v8  ;;  %v2982_v8 = vld [vmem:[%s9884_s5 + $0xf90] sm:$0xff] }
 0x24a   :  { %v7374_v11 = vcombine.low %v2966_v6, %v2982_v8  ;;  %5754 = vmatprep.subr.bf16.mxu1 %v7371_v7  ;;  %v2648_v7 = vld [vmem:[%s9884_s5 + $0x520] sm:$0xff] }
 0x24b   :  { %5755 = vmatpush1.bf16.msra.mxu1 %v7370_v10  ;;  %v7020_v10 = vcombine.low %v2613_v62, %v2629_v63 }
 0x24c   :  { %5811 = vmatpush1.bf16.msra.mxu0 %v6958_v12  ;;  %v7375_v12 = vcombine.high %v2966_v6, %v2982_v8  ;;  %v2661_v6 = vld [vmem:[%s9884_s5 + $0x588] sm:$0xff]  ;;  %v2664_v8 = vld [vmem:[%s9884_s5 + $0x5a0] sm:$0xff] }
 0x24d   :  { %5812 = vmatprep.subr.bf16.mxu0 %v6991_v13  ;;  %v2485_v13 = vld [vmem:[%s9884_s5 + $0x8] sm:$0xff] }
 0x24e   :  { %v6892_v18 = vcombine.low %v2485_v13, %v2501_v14 }
 0x250   :  { %5813 = vmatpush1.bf16.msra.mxu0 %v6990_v16  ;;  %v6893_v16 = vcombine.high %v2485_v13, %v2501_v14  ;;  %v7059_v13 = vcombine.high %v2648_v7, %v2664_v8  ;;  %v2677_v14 = vld [vmem:[%s9884_s5 + $0x608] sm:$0xff] }
 0x251   :  { %5814 = vmatprep.subr.bf16.mxu0 %v7023_v17  ;;  %v2504_v17 = vld [vmem:[%s9884_s5 + $0xa0] sm:$0xff] }
 0x252   :  { %v6898_v19 = vcombine.low %v2488_v15, %v2504_v17  ;;  %5765 = vmatprep.subr.bf16.mxu1 %v6893_v16  ;;  %v2680_v16 = vld [vmem:[%s9884_s5 + $0x620] sm:$0xff] }
 0x254   :  { %5815 = vmatpush1.bf16.msra.mxu0 %v7022_v20  ;;  %v6899_v20 = vcombine.high %v2488_v15, %v2504_v17  ;;  %v2693_v15 = vld [vmem:[%s9884_s5 + $0x688] sm:$0xff]  ;;  %v2696_v17 = vld [vmem:[%s9884_s5 + $0x6a0] sm:$0xff] }
 0x255   :  { %5816 = vmatprep.subr.bf16.mxu0 %v7055_v21  ;;  %v2066_v21 = vld [vmem:[%s9883_s4] sm:$0x3] }
 0x256   :  { %v2071_v22 = vrot.slane %v2066_v21, %v8162_v56  ;;  %v2075_v24 = vrot.slane %v2066_v21, %v8170_v59  ;;  %v7091_v21 = vcombine.high %v2680_v16, %v2696_v17 }
 0x258   :  { %5817 = vmatpush1.bf16.msra.mxu0 %v7054_v9 }
 0x259   :  { %5818 = vmatprep.subr.bf16.mxu0 %v7087_v27 }
 0x25c   :  { %5819 = vmatpush1.bf16.msra.mxu0 %v7086_v23 }
 0x25d   :  { %5820 = vmatprep.subr.bf16.mxu0 %v7119_v30 }
 0x260   :  { %5821 = vmatpush1.bf16.msra.mxu0 %v7118_v33  ;;  %v2517_v33 = vld [vmem:[%s9884_s5 + $0x108] sm:$0xff] }
 0x261   :  { %5822 = vmatprep.subr.bf16.mxu0 %v7151_v34  ;;  %v2533_v34 = vld [vmem:[%s9884_s5 + $0x188] sm:$0xff] }
 0x262   :  { %v6925_v40 = vcombine.high %v2517_v33, %v2533_v34 }
 0x264   :  { %5823 = vmatpush1.bf16.msra.mxu0 %v7150_v37 }
 0x265   :  { %5824 = vmatprep.subr.bf16.mxu0 %v7183_v38 }
 0x268   :  { %5825 = vmatpush1.bf16.msra.mxu0 %v7182_v41  ;;  %v6931_v41 = vcombine.high %v2520_v35, %v2536_v36 }
 0x269   :  { %5826 = vmatprep.subr.bf16.mxu0 %v7215_v26  ;;  %v2565_v26 = vld [vmem:[%s9884_s5 + $0x288] sm:$0xff] }
 0x26a   :  { %v6957_v46 = vcombine.high %v2549_v39, %v2565_v26 }
 0x26c   :  { %5827 = vmatpush1.bf16.msra.mxu0 %v7214_v44  ;;  %v6924_v44 = vcombine.low %v2517_v33, %v2533_v34  ;;  %v2744_v33 = vld [vmem:[%s9884_s5 + $0x820] sm:$0xff] }
 0x26d   :  { %5828 = vmatprep.subr.bf16.mxu0 %v7247_v45  ;;  %v6930_v45 = vcombine.low %v2520_v35, %v2536_v36  ;;  %v2760_v34 = vld [vmem:[%s9884_s5 + $0x8a0] sm:$0xff] }
 0x270   :  { %5829 = vmatpush1.bf16.msra.mxu0 %v7246_v50  ;;  %v2581_v50 = vld [vmem:[%s9884_s5 + $0x308] sm:$0xff] }
 0x271   :  { %5830 = vmatprep.subr.bf16.mxu0 %v7279_v51  ;;  %v2597_v51 = vld [vmem:[%s9884_s5 + $0x388] sm:$0xff] }
 0x272   :  { %v6988_v1 = vcombine.low %v2581_v50, %v2597_v51 }
 0x274   :  { %5831 = vmatpush1.bf16.msra.mxu0 %v7278_v54  ;;  %v6956_v54 = vcombine.low %v2549_v39, %v2565_v26  ;;  %v2789_v26 = vld [vmem:[%s9884_s5 + $0x988] sm:$0xff] }
 0x275   :  { %5832 = vmatprep.subr.bf16.mxu0 %v7311_v55  ;;  %v6962_v55 = vcombine.low %v2552_v25, %v2568_v42  ;;  %v2776_v25 = vld [vmem:[%s9884_s5 + $0x920] sm:$0xff] }
 0x276   :  { %v2792_v42 = vld [vmem:[%s9884_s5 + $0x9a0] sm:$0xff] }
 0x278   :  { %5833 = vmatpush1.bf16.msra.mxu0 %v7310_v57  ;;  %v6989_v57 = vcombine.high %v2581_v50, %v2597_v51  ;;  %v2805_v50 = vld [vmem:[%s9884_s5 + $0xa08] sm:$0xff] }
 0x279   :  { %5834 = vmatprep.subr.bf16.mxu0 %v7343_v3  ;;  %v7021_v3 = vcombine.high %v2613_v62, %v2629_v63  ;;  %v2821_v51 = vld [vmem:[%s9884_s5 + $0xa88] sm:$0xff] }
 0x27a   :  { %v2837_v62 = vld [vmem:[%s9884_s5 + $0xb08] sm:$0xff] }
 0x27b   :  { %v2853_v63 = vld [vmem:[%s9884_s5 + $0xb88] sm:$0xff] }
 0x27c   :  { %5835 = vmatpush1.bf16.msra.mxu0 %v7342_v2  ;;  %v6994_v2 = vcombine.low %v2584_v52, %v2600_v53  ;;  %v2808_v52 = vld [vmem:[%s9884_s5 + $0xa20] sm:$0xff] }
 0x27d   :  { %5836 = vmatprep.subr.bf16.mxu0 %v7375_v12  ;;  %v7053_v12 = vcombine.high %v2645_v5, %v2661_v6  ;;  %v2824_v53 = vld [vmem:[%s9884_s5 + $0xaa0] sm:$0xff] }
 0x280   :  { %5837 = vmatpush1.bf16.msra.mxu0 %v7374_v11  ;;  %v7026_v11 = vcombine.low %v2616_v58, %v2632_v0  ;;  %v2840_v58 = vld [vmem:[%s9884_s5 + $0xb20] sm:$0xff] }
 0x281   :  { %5888 = vmatprep.subr.bf16.mxu0 %v6899_v20  ;;  %v7085_v20 = vcombine.high %v2677_v14, %v2693_v15  ;;  %v2856_v0 = vld [vmem:[%s9884_s5 + $0xba0] sm:$0xff] }
 0x316   :  { %v2473_v9 = vpop.f32.mrb[4].mxu0 }
 0x317   :  { %v7406_v27 = vadd.f32 %v2473_v9, %v2071_v22  ;;  %v2475_v28 = vpop.f32.mrb[5].mxu0  ;;  %v2709_v22 = vld [vmem:[%s9884_s5 + $0x708] sm:$0xff]  ;;  %v2712_v9 = vld [vmem:[%s9884_s5 + $0x720] sm:$0xff] }
 0x318   :  { %v7407_v29 = vadd.f32 %v2475_v28, %v2075_v24  ;;  %v2477_v23 = vpop.f32.mrb[6].mxu0  ;;  %v2725_v24 = vld [vmem:[%s9884_s5 + $0x788] sm:$0xff]  ;;  %v7084_v28 = vcombine.low %v2677_v14, %v2693_v15 }
 0x319   :  { %v2480_v30 = vmax.f32 %v7406_v27, 0.0  ;;  %v2478_v31 = vpop.f32.mrb[7].mxu0  ;;  %v2728_v27 = vld [vmem:[%s9884_s5 + $0x7a0] sm:$0xff]  ;;  %v7117_v23 = vcombine.high %v2709_v22, %v2725_v24  ;;  %v7116_v35 = vcombine.low %v2709_v22, %v2725_v24  ;;  %v2901_v14 = vld [vmem:[%s9884_s5 + $0xd08] sm:$0xff] }
 0x31a   :  { %v2481_v32 = vmax.f32 %v7407_v29, 0.0  ;;  %v7090_v29 = vcombine.low %v2680_v16, %v2696_v17  ;;  %v2741_v31 = vld [vmem:[%s9884_s5 + $0x808] sm:$0xff]  ;;  %v7122_v36 = vcombine.low %v2712_v9, %v2728_v27  ;;  %v2904_v16 = vld [vmem:[%s9884_s5 + $0xd20] sm:$0xff] }
 0x31b   :  { %v8334_v38 = vpack.c.bf16 %v2480_v30, %v2480_v30  ;;  %v7123_v30 = vcombine.high %v2712_v9, %v2728_v27  ;;  %v2917_v15 = vld [vmem:[%s9884_s5 + $0xd88] sm:$0xff]  ;;  %v2920_v17 = vld [vmem:[%s9884_s5 + $0xda0] sm:$0xff] }
 0x31c   :  { %v8332_v37 = vpack.c.bf16 %v2481_v32, %v2481_v32  ;;  %v2757_v32 = vld [vmem:[%s9884_s5 + $0x888] sm:$0xff]  ;;  %v2936_v9 = vld [vmem:[%s9884_s5 + $0xe20] sm:$0xff] }
 0x31d   :  { %v7149_v39 = vcombine.high %v2741_v31, %v2757_v32  ;;  %v2933_v22 = vld [vmem:[%s9884_s5 + $0xe08] sm:$0xff]  ;;  %v2952_v27 = vld [vmem:[%s9884_s5 + $0xea0] sm:$0xff] }
 0x31e   :  { %5756 = vmatprep.mubr.bf16.mxu1 %v8332_v37  ;;  %5838 = vmatprep.mubr.bf16.mxu0 %v8332_v37  ;;  %v2949_v24 = vld [vmem:[%s9884_s5 + $0xe88] sm:$0xff] }
 0x31f   :  { %5757 = vmatmul.mubr.bf16.vlgmr.msra.gmra.mrb[4].mxu1 %v8334_v38  ;;  %5839 = vmatmul.mubr.bf16.vlgmr.msra.gmra.mrb[8].mxu0 %v8334_v38 }
 0x320   :  { %5766 = vmatpush1.bf16.msra.mxu1 %v6892_v18  ;;  %5889 = vmatpush1.bf16.msra.mxu0 %v6898_v19  ;;  %v7052_v18 = vcombine.low %v2645_v5, %v2661_v6  ;;  %v7058_v19 = vcombine.low %v2648_v7, %v2664_v8  ;;  %v2869_v5 = vld [vmem:[%s9884_s5 + $0xc08] sm:$0xff]  ;;  %v2872_v7 = vld [vmem:[%s9884_s5 + $0xc20] sm:$0xff] }
 0x321   :  { %5797 = vmatprep.mubr.bf16.mxu1 %v8332_v37  ;;  %5920 = vmatprep.mubr.bf16.mxu0 %v8332_v37  ;;  %v2885_v6 = vld [vmem:[%s9884_s5 + $0xc88] sm:$0xff]  ;;  %v2888_v8 = vld [vmem:[%s9884_s5 + $0xca0] sm:$0xff] }
 0x322   :  { %5767 = vmatprep.subr.bf16.mxu1 %v6925_v40  ;;  %5890 = vmatprep.subr.bf16.mxu0 %v6931_v41  ;;  %v7155_v40 = vcombine.high %v2744_v33, %v2760_v34  ;;  %v2773_v41 = vld [vmem:[%s9884_s5 + $0x908] sm:$0xff] }
 0x324   :  { %5768 = vmatpush1.bf16.msra.mxu1 %v6924_v44  ;;  %5891 = vmatpush1.bf16.msra.mxu0 %v6930_v45  ;;  %v7148_v44 = vcombine.low %v2741_v31, %v2757_v32  ;;  %v7154_v45 = vcombine.low %v2744_v33, %v2760_v34  ;;  %v2965_v31 = vld [vmem:[%s9884_s5 + $0xf08] sm:$0xff]  ;;  %v2968_v33 = vld [vmem:[%s9884_s5 + $0xf20] sm:$0xff] }
 0x325   :  { %5769 = vmatprep.subr.bf16.mxu1 %v6957_v46  ;;  %5892 = vmatprep.subr.bf16.mxu0 %v6963_v48  ;;  %v7181_v46 = vcombine.high %v2773_v41, %v2789_v26  ;;  %v7187_v48 = vcombine.high %v2776_v25, %v2792_v42  ;;  %v2981_v32 = vld [vmem:[%s9884_s5 + $0xf88] sm:$0xff]  ;;  %v2984_v34 = vld [vmem:[%s9884_s5 + $0xfa0] sm:$0xff] }
 0x328   :  { %5770 = vmatpush1.bf16.msra.mxu1 %v6956_v54  ;;  %5893 = vmatpush1.bf16.msra.mxu0 %v6962_v55  ;;  %v7180_v54 = vcombine.low %v2773_v41, %v2789_v26  ;;  %v7186_v55 = vcombine.low %v2776_v25, %v2792_v42  ;;  %v2487_v41 = vld [vmem:[%s9884_s5 + $0x18] sm:$0xff]  ;;  %v2490_v25 = vld [vmem:[%s9884_s5 + $0x30] sm:$0xff] }
 0x329   :  { %5771 = vmatprep.subr.bf16.mxu1 %v6989_v57  ;;  %5894 = vmatprep.subr.bf16.mxu0 %v6995_v61  ;;  %v7213_v57 = vcombine.high %v2805_v50, %v2821_v51  ;;  %v7219_v61 = vcombine.high %v2808_v52, %v2824_v53  ;;  %v2503_v26 = vld [vmem:[%s9884_s5 + $0x98] sm:$0xff]  ;;  %v2506_v42 = vld [vmem:[%s9884_s5 + $0xb0] sm:$0xff] }
 0x32c   :  { %5772 = vmatpush1.bf16.msra.mxu1 %v6988_v1  ;;  %5895 = vmatpush1.bf16.msra.mxu0 %v6994_v2  ;;  %v7212_v1 = vcombine.low %v2805_v50, %v2821_v51  ;;  %v7218_v2 = vcombine.low %v2808_v52, %v2824_v53  ;;  %v2519_v50 = vld [vmem:[%s9884_s5 + $0x118] sm:$0xff]  ;;  %v2522_v52 = vld [vmem:[%s9884_s5 + $0x130] sm:$0xff] }
 0x32d   :  { %5773 = vmatprep.subr.bf16.mxu1 %v7021_v3  ;;  %5896 = vmatprep.subr.bf16.mxu0 %v7027_v4  ;;  %v7245_v3 = vcombine.high %v2837_v62, %v2853_v63  ;;  %v7251_v4 = vcombine.high %v2840_v58, %v2856_v0  ;;  %v2535_v51 = vld [vmem:[%s9884_s5 + $0x198] sm:$0xff]  ;;  %v2538_v53 = vld [vmem:[%s9884_s5 + $0x1b0] sm:$0xff] }
 0x330   :  { %5774 = vmatpush1.bf16.msra.mxu1 %v7020_v10  ;;  %5897 = vmatpush1.bf16.msra.mxu0 %v7026_v11  ;;  %v7244_v10 = vcombine.low %v2837_v62, %v2853_v63  ;;  %v7250_v11 = vcombine.low %v2840_v58, %v2856_v0  ;;  %v2551_v62 = vld [vmem:[%s9884_s5 + $0x218] sm:$0xff]  ;;  %v2554_v58 = vld [vmem:[%s9884_s5 + $0x230] sm:$0xff] }
 0x331   :  { %5775 = vmatprep.subr.bf16.mxu1 %v7053_v12  ;;  %5898 = vmatprep.subr.bf16.mxu0 %v7059_v13  ;;  %v7277_v12 = vcombine.high %v2869_v5, %v2885_v6  ;;  %v7283_v13 = vcombine.high %v2872_v7, %v2888_v8  ;;  %v2567_v63 = vld [vmem:[%s9884_s5 + $0x298] sm:$0xff]  ;;  %v2570_v0 = vld [vmem:[%s9884_s5 + $0x2b0] sm:$0xff] }
 0x334   :  { %5776 = vmatpush1.bf16.msra.mxu1 %v7052_v18  ;;  %5899 = vmatpush1.bf16.msra.mxu0 %v7058_v19  ;;  %v7276_v18 = vcombine.low %v2869_v5, %v2885_v6  ;;  %v7282_v19 = vcombine.low %v2872_v7, %v2888_v8  ;;  %v2583_v5 = vld [vmem:[%s9884_s5 + $0x318] sm:$0xff]  ;;  %v2586_v7 = vld [vmem:[%s9884_s5 + $0x330] sm:$0xff] }
 0x335   :  { %5777 = vmatprep.subr.bf16.mxu1 %v7085_v20  ;;  %5900 = vmatprep.subr.bf16.mxu0 %v7091_v21  ;;  %v7309_v20 = vcombine.high %v2901_v14, %v2917_v15  ;;  %v7315_v21 = vcombine.high %v2904_v16, %v2920_v17  ;;  %v2599_v6 = vld [vmem:[%s9884_s5 + $0x398] sm:$0xff]  ;;  %v2602_v8 = vld [vmem:[%s9884_s5 + $0x3b0] sm:$0xff] }
 0x338   :  { %5778 = vmatpush1.bf16.msra.mxu1 %v7084_v28  ;;  %5901 = vmatpush1.bf16.msra.mxu0 %v7090_v29  ;;  %v7308_v28 = vcombine.low %v2901_v14, %v2917_v15  ;;  %v7314_v29 = vcombine.low %v2904_v16, %v2920_v17  ;;  %v2615_v14 = vld [vmem:[%s9884_s5 + $0x418] sm:$0xff]  ;;  %v2618_v16 = vld [vmem:[%s9884_s5 + $0x430] sm:$0xff] }
 0x339   :  { %5779 = vmatprep.subr.bf16.mxu1 %v7117_v23  ;;  %5902 = vmatprep.subr.bf16.mxu0 %v7123_v30  ;;  %v7341_v23 = vcombine.high %v2933_v22, %v2949_v24  ;;  %v7347_v30 = vcombine.high %v2936_v9, %v2952_v27  ;;  %v2631_v15 = vld [vmem:[%s9884_s5 + $0x498] sm:$0xff]  ;;  %v2634_v17 = vld [vmem:[%s9884_s5 + $0x4b0] sm:$0xff] }
 0x33c   :  { %5780 = vmatpush1.bf16.msra.mxu1 %v7116_v35  ;;  %5903 = vmatpush1.bf16.msra.mxu0 %v7122_v36  ;;  %v7340_v35 = vcombine.low %v2933_v22, %v2949_v24  ;;  %v7346_v36 = vcombine.low %v2936_v9, %v2952_v27  ;;  %v2647_v22 = vld [vmem:[%s9884_s5 + $0x518] sm:$0xff]  ;;  %v2650_v9 = vld [vmem:[%s9884_s5 + $0x530] sm:$0xff] }
 0x33d   :  { %5781 = vmatprep.subr.bf16.mxu1 %v7149_v39  ;;  %5904 = vmatprep.subr.bf16.mxu0 %v7155_v40  ;;  %v7373_v39 = vcombine.high %v2965_v31, %v2981_v32  ;;  %v7379_v40 = vcombine.high %v2968_v33, %v2984_v34  ;;  %v2663_v24 = vld [vmem:[%s9884_s5 + $0x598] sm:$0xff]  ;;  %v2666_v27 = vld [vmem:[%s9884_s5 + $0x5b0] sm:$0xff] }
 0x340   :  { %5782 = vmatpush1.bf16.msra.mxu1 %v7148_v44  ;;  %5905 = vmatpush1.bf16.msra.mxu0 %v7154_v45  ;;  %v7372_v44 = vcombine.low %v2965_v31, %v2981_v32  ;;  %v7378_v45 = vcombine.low %v2968_v33, %v2984_v34  ;;  %v2679_v31 = vld [vmem:[%s9884_s5 + $0x618] sm:$0xff]  ;;  %v2682_v33 = vld [vmem:[%s9884_s5 + $0x630] sm:$0xff] }
 0x341   :  { %5783 = vmatprep.subr.bf16.mxu1 %v7181_v46  ;;  %5906 = vmatprep.subr.bf16.mxu0 %v7187_v48  ;;  %v6897_v46 = vcombine.high %v2487_v41, %v2503_v26  ;;  %v6903_v48 = vcombine.high %v2490_v25, %v2506_v42  ;;  %v2695_v32 = vld [vmem:[%s9884_s5 + $0x698] sm:$0xff]  ;;  %v2698_v34 = vld [vmem:[%s9884_s5 + $0x6b0] sm:$0xff] }
 0x344   :  { %5784 = vmatpush1.bf16.msra.mxu1 %v7180_v54  ;;  %5907 = vmatpush1.bf16.msra.mxu0 %v7186_v55  ;;  %v6896_v54 = vcombine.low %v2487_v41, %v2503_v26  ;;  %v6902_v55 = vcombine.low %v2490_v25, %v2506_v42  ;;  %v2711_v41 = vld [vmem:[%s9884_s5 + $0x718] sm:$0xff]  ;;  %v2714_v25 = vld [vmem:[%s9884_s5 + $0x730] sm:$0xff] }
 0x345   :  { %5785 = vmatprep.subr.bf16.mxu1 %v7213_v57  ;;  %5908 = vmatprep.subr.bf16.mxu0 %v7219_v61  ;;  %v6929_v57 = vcombine.high %v2519_v50, %v2535_v51  ;;  %v6935_v61 = vcombine.high %v2522_v52, %v2538_v53  ;;  %v2727_v26 = vld [vmem:[%s9884_s5 + $0x798] sm:$0xff]  ;;  %v2730_v42 = vld [vmem:[%s9884_s5 + $0x7b0] sm:$0xff] }
 0x348   :  { %5786 = vmatpush1.bf16.msra.mxu1 %v7212_v1  ;;  %5909 = vmatpush1.bf16.msra.mxu0 %v7218_v2  ;;  %v6928_v1 = vcombine.low %v2519_v50, %v2535_v51  ;;  %v6934_v2 = vcombine.low %v2522_v52, %v2538_v53  ;;  %v2743_v50 = vld [vmem:[%s9884_s5 + $0x818] sm:$0xff]  ;;  %v2746_v52 = vld [vmem:[%s9884_s5 + $0x830] sm:$0xff] }
 0x349   :  { %5787 = vmatprep.subr.bf16.mxu1 %v7245_v3  ;;  %5910 = vmatprep.subr.bf16.mxu0 %v7251_v4  ;;  %v6961_v3 = vcombine.high %v2551_v62, %v2567_v63  ;;  %v6967_v4 = vcombine.high %v2554_v58, %v2570_v0  ;;  %v2759_v51 = vld [vmem:[%s9884_s5 + $0x898] sm:$0xff]  ;;  %v2762_v53 = vld [vmem:[%s9884_s5 + $0x8b0] sm:$0xff] }
 0x34c   :  { %5788 = vmatpush1.bf16.msra.mxu1 %v7244_v10  ;;  %5911 = vmatpush1.bf16.msra.mxu0 %v7250_v11  ;;  %v6960_v10 = vcombine.low %v2551_v62, %v2567_v63  ;;  %v6966_v11 = vcombine.low %v2554_v58, %v2570_v0  ;;  %v2775_v62 = vld [vmem:[%s9884_s5 + $0x918] sm:$0xff]  ;;  %v2778_v58 = vld [vmem:[%s9884_s5 + $0x930] sm:$0xff] }
 0x34d   :  { %5789 = vmatprep.subr.bf16.mxu1 %v7277_v12  ;;  %5912 = vmatprep.subr.bf16.mxu0 %v7283_v13  ;;  %v6993_v12 = vcombine.high %v2583_v5, %v2599_v6  ;;  %v6999_v13 = vcombine.high %v2586_v7, %v2602_v8  ;;  %v2791_v63 = vld [vmem:[%s9884_s5 + $0x998] sm:$0xff]  ;;  %v2794_v0 = vld [vmem:[%s9884_s5 + $0x9b0] sm:$0xff] }
 0x350   :  { %5790 = vmatpush1.bf16.msra.mxu1 %v7276_v18  ;;  %5913 = vmatpush1.bf16.msra.mxu0 %v7282_v19  ;;  %v6992_v18 = vcombine.low %v2583_v5, %v2599_v6  ;;  %v6998_v19 = vcombine.low %v2586_v7, %v2602_v8  ;;  %v2807_v5 = vld [vmem:[%s9884_s5 + $0xa18] sm:$0xff]  ;;  %v2810_v7 = vld [vmem:[%s9884_s5 + $0xa30] sm:$0xff] }
 0x351   :  { %5791 = vmatprep.subr.bf16.mxu1 %v7309_v20  ;;  %5914 = vmatprep.subr.bf16.mxu0 %v7315_v21  ;;  %v7025_v20 = vcombine.high %v2615_v14, %v2631_v15  ;;  %v7031_v21 = vcombine.high %v2618_v16, %v2634_v17  ;;  %v2823_v6 = vld [vmem:[%s9884_s5 + $0xa98] sm:$0xff]  ;;  %v2826_v8 = vld [vmem:[%s9884_s5 + $0xab0] sm:$0xff] }
 0x354   :  { %5792 = vmatpush1.bf16.msra.mxu1 %v7308_v28  ;;  %5915 = vmatpush1.bf16.msra.mxu0 %v7314_v29  ;;  %v7024_v28 = vcombine.low %v2615_v14, %v2631_v15  ;;  %v7030_v29 = vcombine.low %v2618_v16, %v2634_v17  ;;  %v2839_v14 = vld [vmem:[%s9884_s5 + $0xb18] sm:$0xff]  ;;  %v2842_v16 = vld [vmem:[%s9884_s5 + $0xb30] sm:$0xff] }
 0x355   :  { %5793 = vmatprep.subr.bf16.mxu1 %v7341_v23  ;;  %5916 = vmatprep.subr.bf16.mxu0 %v7347_v30  ;;  %v7057_v23 = vcombine.high %v2647_v22, %v2663_v24  ;;  %v7063_v30 = vcombine.high %v2650_v9, %v2666_v27  ;;  %v2855_v15 = vld [vmem:[%s9884_s5 + $0xb98] sm:$0xff]  ;;  %v2858_v17 = vld [vmem:[%s9884_s5 + $0xbb0] sm:$0xff] }
 0x358   :  { %5794 = vmatpush1.bf16.msra.mxu1 %v7340_v35  ;;  %5917 = vmatpush1.bf16.msra.mxu0 %v7346_v36  ;;  %v7056_v35 = vcombine.low %v2647_v22, %v2663_v24  ;;  %v7062_v36 = vcombine.low %v2650_v9, %v2666_v27  ;;  %v2871_v22 = vld [vmem:[%s9884_s5 + $0xc18] sm:$0xff]  ;;  %v2874_v9 = vld [vmem:[%s9884_s5 + $0xc30] sm:$0xff] }
 0x359   :  { %5795 = vmatprep.subr.bf16.mxu1 %v7373_v39  ;;  %5918 = vmatprep.subr.bf16.mxu0 %v7379_v40  ;;  %v7089_v39 = vcombine.high %v2679_v31, %v2695_v32  ;;  %v7095_v40 = vcombine.high %v2682_v33, %v2698_v34  ;;  %v2887_v24 = vld [vmem:[%s9884_s5 + $0xc98] sm:$0xff]  ;;  %v2890_v27 = vld [vmem:[%s9884_s5 + $0xcb0] sm:$0xff] }
 0x35c   :  { %5796 = vmatpush1.bf16.msra.mxu1 %v7372_v44  ;;  %5919 = vmatpush1.bf16.msra.mxu0 %v7378_v45  ;;  %v7088_v44 = vcombine.low %v2679_v31, %v2695_v32  ;;  %v7094_v45 = vcombine.low %v2682_v33, %v2698_v34  ;;  %v2903_v31 = vld [vmem:[%s9884_s5 + $0xd18] sm:$0xff]  ;;  %v2906_v33 = vld [vmem:[%s9884_s5 + $0xd30] sm:$0xff] }
 0x35d   :  { %5847 = vmatprep.subr.bf16.mxu1 %v6897_v46  ;;  %5970 = vmatprep.subr.bf16.mxu0 %v6903_v48  ;;  %v7121_v46 = vcombine.high %v2711_v41, %v2727_v26  ;;  %v7127_v48 = vcombine.high %v2714_v25, %v2730_v42  ;;  %v2919_v32 = vld [vmem:[%s9884_s5 + $0xd98] sm:$0xff]  ;;  %v2922_v34 = vld [vmem:[%s9884_s5 + $0xdb0] sm:$0xff] }
 0x35f   :  { %5798 = vmatmul.mubr.bf16.vlgmr.msra.gmra.mrb[8].mxu1 %v8334_v38  ;;  %5921 = vmatmul.mubr.bf16.vlgmr.msra.gmra.mrb[12].mxu0 %v8334_v38 }
 0x360   :  { %5848 = vmatpush1.bf16.msra.mxu1 %v6896_v54  ;;  %5879 = vmatprep.mubr.bf16.mxu1 %v8332_v37  ;;  %v7120_v54 = vcombine.low %v2711_v41, %v2727_v26  ;;  %v2935_v41 = vld [vmem:[%s9884_s5 + $0xe18] sm:$0xff] }
 0x361   :  { %5971 = vmatpush1.bf16.msra.mxu0 %v6902_v55  ;;  %6002 = vmatprep.mubr.bf16.mxu0 %v8332_v37  ;;  %v7126_v55 = vcombine.low %v2714_v25, %v2730_v42  ;;  %v2951_v26 = vld [vmem:[%s9884_s5 + $0xe98] sm:$0xff]  ;;  %v2938_v25 = vld [vmem:[%s9884_s5 + $0xe30] sm:$0xff] }
 0x362   :  { %5849 = vmatprep.subr.bf16.mxu1 %v6929_v57  ;;  %5972 = vmatprep.subr.bf16.mxu0 %v6935_v61  ;;  %v7153_v57 = vcombine.high %v2743_v50, %v2759_v51  ;;  %v7159_v61 = vcombine.high %v2746_v52, %v2762_v53  ;;  %v2954_v42 = vld [vmem:[%s9884_s5 + $0xeb0] sm:$0xff] }
 0x364   :  { %5850 = vmatpush1.bf16.msra.mxu1 %v6928_v1  ;;  %v7152_v1 = vcombine.low %v2743_v50, %v2759_v51  ;;  %v2967_v50 = vld [vmem:[%s9884_s5 + $0xf18] sm:$0xff] }
 0x365   :  { %5973 = vmatpush1.bf16.msra.mxu0 %v6934_v2  ;;  %5851 = vmatprep.subr.bf16.mxu1 %v6961_v3  ;;  %v7158_v2 = vcombine.low %v2746_v52, %v2762_v53  ;;  %v7185_v3 = vcombine.high %v2775_v62, %v2791_v63  ;;  %v2983_v51 = vld [vmem:[%s9884_s5 + $0xf98] sm:$0xff]  ;;  %v2970_v52 = vld [vmem:[%s9884_s5 + $0xf30] sm:$0xff] }
 0x366   :  { %5974 = vmatprep.subr.bf16.mxu0 %v6967_v4  ;;  %v7191_v4 = vcombine.high %v2778_v58, %v2794_v0  ;;  %v2986_v53 = vld [vmem:[%s9884_s5 + $0xfb0] sm:$0xff] }
 0x368   :  { %5852 = vmatpush1.bf16.msra.mxu1 %v6960_v10  ;;  %v7184_v10 = vcombine.low %v2775_v62, %v2791_v63  ;;  %v2489_v62 = vld [vmem:[%s9884_s5 + $0x28] sm:$0xff] }
 0x369   :  { %5975 = vmatpush1.bf16.msra.mxu0 %v6966_v11  ;;  %5853 = vmatprep.subr.bf16.mxu1 %v6993_v12  ;;  %v7190_v11 = vcombine.low %v2778_v58, %v2794_v0  ;;  %v7217_v12 = vcombine.high %v2807_v5, %v2823_v6  ;;  %v2505_v63 = vld [vmem:[%s9884_s5 + $0xa8] sm:$0xff]  ;;  %v2492_v58 = vld [vmem:[%s9884_s5 + $0x40] sm:$0xff] }
 0x36a   :  { %5976 = vmatprep.subr.bf16.mxu0 %v6999_v13  ;;  %v7223_v13 = vcombine.high %v2810_v7, %v2826_v8  ;;  %v2508_v0 = vld [vmem:[%s9884_s5 + $0xc0] sm:$0xff] }
 0x36c   :  { %5854 = vmatpush1.bf16.msra.mxu1 %v6992_v18  ;;  %v7216_v18 = vcombine.low %v2807_v5, %v2823_v6  ;;  %v2521_v5 = vld [vmem:[%s9884_s5 + $0x128] sm:$0xff] }
 0x36d   :  { %5977 = vmatpush1.bf16.msra.mxu0 %v6998_v19  ;;  %5855 = vmatprep.subr.bf16.mxu1 %v7025_v20  ;;  %v7222_v19 = vcombine.low %v2810_v7, %v2826_v8  ;;  %v7249_v20 = vcombine.high %v2839_v14, %v2855_v15  ;;  %v2537_v6 = vld [vmem:[%s9884_s5 + $0x1a8] sm:$0xff]  ;;  %v6900_v7 = vcombine.low %v2489_v62, %v2505_v63  ;;  %v2524_v8 = vld [vmem:[%s9884_s5 + $0x140] sm:$0xff] }
 0x36e   :  { %5978 = vmatprep.subr.bf16.mxu0 %v7031_v21  ;;  %v7255_v21 = vcombine.high %v2842_v16, %v2858_v17 }
 0x370   :  { %5856 = vmatpush1.bf16.msra.mxu1 %v7024_v28  ;;  %v7248_v28 = vcombine.low %v2839_v14, %v2855_v15  ;;  %v2569_v14 = vld [vmem:[%s9884_s5 + $0x2a8] sm:$0xff] }
 0x371   :  { %5979 = vmatpush1.bf16.msra.mxu0 %v7030_v29  ;;  %5857 = vmatprep.subr.bf16.mxu1 %v7057_v23  ;;  %v7254_v29 = vcombine.low %v2842_v16, %v2858_v17  ;;  %v7281_v23 = vcombine.high %v2871_v22, %v2887_v24  ;;  %v2556_v16 = vld [vmem:[%s9884_s5 + $0x240] sm:$0xff] }
 0x372   :  { %5980 = vmatprep.subr.bf16.mxu0 %v7063_v30  ;;  %v7287_v30 = vcombine.high %v2874_v9, %v2890_v27  ;;  %v2572_v17 = vld [vmem:[%s9884_s5 + $0x2c0] sm:$0xff] }
 0x374   :  { %5858 = vmatpush1.bf16.msra.mxu1 %v7056_v35  ;;  %v7280_v35 = vcombine.low %v2871_v22, %v2887_v24  ;;  %v2585_v22 = vld [vmem:[%s9884_s5 + $0x328] sm:$0xff] }
 0x375   :  { %5981 = vmatpush1.bf16.msra.mxu0 %v7062_v36  ;;  %5859 = vmatprep.subr.bf16.mxu1 %v7089_v39  ;;  %v7286_v36 = vcombine.low %v2874_v9, %v2890_v27  ;;  %v7313_v39 = vcombine.high %v2903_v31, %v2919_v32  ;;  %v2601_v24 = vld [vmem:[%s9884_s5 + $0x3a8] sm:$0xff]  ;;  %v2588_v9 = vld [vmem:[%s9884_s5 + $0x340] sm:$0xff] }
 0x376   :  { %5982 = vmatprep.subr.bf16.mxu0 %v7095_v40  ;;  %v7319_v40 = vcombine.high %v2906_v33, %v2922_v34  ;;  %v2604_v27 = vld [vmem:[%s9884_s5 + $0x3c0] sm:$0xff] }
 0x378   :  { %5860 = vmatpush1.bf16.msra.mxu1 %v7088_v44  ;;  %v7312_v44 = vcombine.low %v2903_v31, %v2919_v32  ;;  %v2617_v31 = vld [vmem:[%s9884_s5 + $0x428] sm:$0xff] }
 0x379   :  { %5983 = vmatpush1.bf16.msra.mxu0 %v7094_v45  ;;  %5861 = vmatprep.subr.bf16.mxu1 %v7121_v46  ;;  %v7318_v45 = vcombine.low %v2906_v33, %v2922_v34  ;;  %v7345_v46 = vcombine.high %v2935_v41, %v2951_v26  ;;  %v2633_v32 = vld [vmem:[%s9884_s5 + $0x4a8] sm:$0xff]  ;;  %v2620_v33 = vld [vmem:[%s9884_s5 + $0x440] sm:$0xff] }
 0x37a   :  { %5984 = vmatprep.subr.bf16.mxu0 %v7127_v48  ;;  %v7351_v48 = vcombine.high %v2938_v25, %v2954_v42  ;;  %v2636_v34 = vld [vmem:[%s9884_s5 + $0x4c0] sm:$0xff] }
 0x37c   :  { %5862 = vmatpush1.bf16.msra.mxu1 %v7120_v54  ;;  %v7344_v54 = vcombine.low %v2935_v41, %v2951_v26  ;;  %v2649_v41 = vld [vmem:[%s9884_s5 + $0x528] sm:$0xff] }
 0x37d   :  { %5985 = vmatpush1.bf16.msra.mxu0 %v7126_v55  ;;  %5863 = vmatprep.subr.bf16.mxu1 %v7153_v57  ;;  %v7350_v55 = vcombine.low %v2938_v25, %v2954_v42  ;;  %v7377_v57 = vcombine.high %v2967_v50, %v2983_v51  ;;  %v2665_v26 = vld [vmem:[%s9884_s5 + $0x5a8] sm:$0xff]  ;;  %v2652_v25 = vld [vmem:[%s9884_s5 + $0x540] sm:$0xff] }
 0x37e   :  { %5986 = vmatprep.subr.bf16.mxu0 %v7159_v61  ;;  %v7383_v61 = vcombine.high %v2970_v52, %v2986_v53  ;;  %v2668_v42 = vld [vmem:[%s9884_s5 + $0x5c0] sm:$0xff] }
 0x380   :  { %5864 = vmatpush1.bf16.msra.mxu1 %v7152_v1  ;;  %v7376_v1 = vcombine.low %v2967_v50, %v2983_v51  ;;  %v2681_v50 = vld [vmem:[%s9884_s5 + $0x628] sm:$0xff] }
 0x381   :  { %5987 = vmatpush1.bf16.msra.mxu0 %v7158_v2  ;;  %5865 = vmatprep.subr.bf16.mxu1 %v7185_v3  ;;  %v7382_v2 = vcombine.low %v2970_v52, %v2986_v53  ;;  %v6901_v3 = vcombine.high %v2489_v62, %v2505_v63  ;;  %v2697_v51 = vld [vmem:[%s9884_s5 + $0x6a8] sm:$0xff]  ;;  %v2684_v52 = vld [vmem:[%s9884_s5 + $0x640] sm:$0xff] }
 0x382   :  { %5988 = vmatprep.subr.bf16.mxu0 %v7191_v4  ;;  %v6907_v4 = vcombine.high %v2492_v58, %v2508_v0  ;;  %v2700_v53 = vld [vmem:[%s9884_s5 + $0x6c0] sm:$0xff]  ;;  %v2713_v62 = vld [vmem:[%s9884_s5 + $0x728] sm:$0xff] }
 0x383   :  { %v2729_v63 = vld [vmem:[%s9884_s5 + $0x7a8] sm:$0xff] }
 0x384   :  { %5866 = vmatpush1.bf16.msra.mxu1 %v7184_v10  ;;  %v2540_v10 = vld [vmem:[%s9884_s5 + $0x1c0] sm:$0xff] }
 0x385   :  { %5989 = vmatpush1.bf16.msra.mxu0 %v7190_v11  ;;  %5867 = vmatprep.subr.bf16.mxu1 %v7217_v12  ;;  %v6906_v11 = vcombine.low %v2492_v58, %v2508_v0  ;;  %v6933_v12 = vcombine.high %v2521_v5, %v2537_v6  ;;  %v6939_v15 = vcombine.high %v2524_v8, %v2540_v10  ;;  %v2716_v58 = vld [vmem:[%s9884_s5 + $0x740] sm:$0xff] }
 0x386   :  { %5990 = vmatprep.subr.bf16.mxu0 %v7223_v13  ;;  %v2553_v13 = vld [vmem:[%s9884_s5 + $0x228] sm:$0xff]  ;;  %v2732_v0 = vld [vmem:[%s9884_s5 + $0x7c0] sm:$0xff] }
 0x388   :  { %5868 = vmatpush1.bf16.msra.mxu1 %v7216_v18  ;;  %v6932_v18 = vcombine.low %v2521_v5, %v2537_v6  ;;  %v2745_v5 = vld [vmem:[%s9884_s5 + $0x828] sm:$0xff] }
 0x389   :  { %5991 = vmatpush1.bf16.msra.mxu0 %v7222_v19  ;;  %5869 = vmatprep.subr.bf16.mxu1 %v7249_v20  ;;  %v6938_v19 = vcombine.low %v2524_v8, %v2540_v10  ;;  %v6965_v20 = vcombine.high %v2553_v13, %v2569_v14  ;;  %v2761_v6 = vld [vmem:[%s9884_s5 + $0x8a8] sm:$0xff]  ;;  %v2764_v8 = vld [vmem:[%s9884_s5 + $0x8c0] sm:$0xff]  ;;  %v7124_v10 = vcombine.low %v2713_v62, %v2729_v63 }
 0x38a   :  { %5992 = vmatprep.subr.bf16.mxu0 %v7255_v21  ;;  %v6971_v21 = vcombine.high %v2556_v16, %v2572_v17 }
 0x38c   :  { %5870 = vmatpush1.bf16.msra.mxu1 %v7248_v28  ;;  %v6964_v28 = vcombine.low %v2553_v13, %v2569_v14  ;;  %v2777_v14 = vld [vmem:[%s9884_s5 + $0x928] sm:$0xff] }
 0x38d   :  { %5993 = vmatpush1.bf16.msra.mxu0 %v7254_v29  ;;  %5871 = vmatprep.subr.bf16.mxu1 %v7281_v23  ;;  %v6970_v29 = vcombine.low %v2556_v16, %v2572_v17  ;;  %v6997_v23 = vcombine.high %v2585_v22, %v2601_v24  ;;  %v2780_v16 = vld [vmem:[%s9884_s5 + $0x940] sm:$0xff] }
 0x38e   :  { %5994 = vmatprep.subr.bf16.mxu0 %v7287_v30  ;;  %v7003_v30 = vcombine.high %v2588_v9, %v2604_v27  ;;  %v2796_v17 = vld [vmem:[%s9884_s5 + $0x9c0] sm:$0xff] }
 0x390   :  { %5872 = vmatpush1.bf16.msra.mxu1 %v7280_v35  ;;  %v6996_v35 = vcombine.low %v2585_v22, %v2601_v24  ;;  %v2809_v22 = vld [vmem:[%s9884_s5 + $0xa28] sm:$0xff] }
 0x391   :  { %5995 = vmatpush1.bf16.msra.mxu0 %v7286_v36  ;;  %5873 = vmatprep.subr.bf16.mxu1 %v7313_v39  ;;  %v7002_v36 = vcombine.low %v2588_v9, %v2604_v27  ;;  %v7029_v39 = vcombine.high %v2617_v31, %v2633_v32  ;;  %v2825_v24 = vld [vmem:[%s9884_s5 + $0xaa8] sm:$0xff]  ;;  %v2812_v9 = vld [vmem:[%s9884_s5 + $0xa40] sm:$0xff] }
 0x392   :  { %5996 = vmatprep.subr.bf16.mxu0 %v7319_v40  ;;  %v7035_v40 = vcombine.high %v2620_v33, %v2636_v34  ;;  %v2828_v27 = vld [vmem:[%s9884_s5 + $0xac0] sm:$0xff] }
 0x394   :  { %5874 = vmatpush1.bf16.msra.mxu1 %v7312_v44  ;;  %v7028_v44 = vcombine.low %v2617_v31, %v2633_v32  ;;  %v2841_v31 = vld [vmem:[%s9884_s5 + $0xb28] sm:$0xff] }
 0x395   :  { %5997 = vmatpush1.bf16.msra.mxu0 %v7318_v45  ;;  %5875 = vmatprep.subr.bf16.mxu1 %v7345_v46  ;;  %v7034_v45 = vcombine.low %v2620_v33, %v2636_v34  ;;  %v7061_v46 = vcombine.high %v2649_v41, %v2665_v26  ;;  %v2857_v32 = vld [vmem:[%s9884_s5 + $0xba8] sm:$0xff]  ;;  %v2844_v33 = vld [vmem:[%s9884_s5 + $0xb40] sm:$0xff] }
 0x396   :  { %5998 = vmatprep.subr.bf16.mxu0 %v7351_v48  ;;  %v7067_v48 = vcombine.high %v2652_v25, %v2668_v42  ;;  %v2860_v34 = vld [vmem:[%s9884_s5 + $0xbc0] sm:$0xff] }
 0x398   :  { %5876 = vmatpush1.bf16.msra.mxu1 %v7344_v54  ;;  %v7060_v54 = vcombine.low %v2649_v41, %v2665_v26  ;;  %v2873_v41 = vld [vmem:[%s9884_s5 + $0xc28] sm:$0xff] }
 0x399   :  { %5999 = vmatpush1.bf16.msra.mxu0 %v7350_v55  ;;  %5877 = vmatprep.subr.bf16.mxu1 %v7377_v57  ;;  %v7066_v55 = vcombine.low %v2652_v25, %v2668_v42  ;;  %v7093_v57 = vcombine.high %v2681_v50, %v2697_v51  ;;  %v2889_v26 = vld [vmem:[%s9884_s5 + $0xca8] sm:$0xff]  ;;  %v2876_v25 = vld [vmem:[%s9884_s5 + $0xc40] sm:$0xff] }
 0x39a   :  { %6000 = vmatprep.subr.bf16.mxu0 %v7383_v61  ;;  %v7099_v61 = vcombine.high %v2684_v52, %v2700_v53  ;;  %v2892_v42 = vld [vmem:[%s9884_s5 + $0xcc0] sm:$0xff] }
 0x39c   :  { %5878 = vmatpush1.bf16.msra.mxu1 %v7376_v1  ;;  %v7092_v1 = vcombine.low %v2681_v50, %v2697_v51  ;;  %v2905_v50 = vld [vmem:[%s9884_s5 + $0xd28] sm:$0xff] }
 0x39d   :  { %6001 = vmatpush1.bf16.msra.mxu0 %v7382_v2  ;;  %5929 = vmatprep.subr.bf16.mxu1 %v6901_v3  ;;  %v7098_v2 = vcombine.low %v2684_v52, %v2700_v53  ;;  %v7125_v3 = vcombine.high %v2713_v62, %v2729_v63  ;;  %v2921_v51 = vld [vmem:[%s9884_s5 + $0xda8] sm:$0xff]  ;;  %v2908_v52 = vld [vmem:[%s9884_s5 + $0xd40] sm:$0xff] }
 0x39e   :  { %6052 = vmatprep.subr.bf16.mxu0 %v6907_v4  ;;  %v7131_v4 = vcombine.high %v2716_v58, %v2732_v0  ;;  %v2924_v53 = vld [vmem:[%s9884_s5 + $0xdc0] sm:$0xff]  ;;  %v2937_v62 = vld [vmem:[%s9884_s5 + $0xe28] sm:$0xff] }
 0x39f   :  { %5880 = vmatmul.mubr.bf16.vlgmr.msra.gmra.mrb[12].mxu1 %v8334_v38  ;;  %v2953_v63 = vld [vmem:[%s9884_s5 + $0xea8] sm:$0xff] }
 0x3a0   :  { %6003 = vmatmul.mubr.bf16.vlgmr.msra.gmra.mrb[16].mxu0 %v8334_v38  ;;  %5930 = vmatpush1.bf16.msra.mxu1 %v6900_v7  ;;  %v2748_v7 = vld [vmem:[%s9884_s5 + $0x840] sm:$0xff] }
 0x3a1   :  { %5961 = vmatprep.mubr.bf16.mxu1 %v8332_v37  ;;  %6053 = vmatpush1.bf16.msra.mxu0 %v6906_v11  ;;  %v7130_v11 = vcombine.low %v2716_v58, %v2732_v0  ;;  %v7163_v13 = vcombine.high %v2748_v7, %v2764_v8  ;;  %v2940_v58 = vld [vmem:[%s9884_s5 + $0xe40] sm:$0xff] }
 0x3a2   :  { %6084 = vmatprep.mubr.bf16.mxu0 %v8332_v37  ;;  %5931 = vmatprep.subr.bf16.mxu1 %v6933_v12  ;;  %v7157_v12 = vcombine.high %v2745_v5, %v2761_v6  ;;  %v2956_v0 = vld [vmem:[%s9884_s5 + $0xec0] sm:$0xff] }
 0x3a3   :  { %6054 = vmatprep.subr.bf16.mxu0 %v6939_v15  ;;  %v2793_v15 = vld [vmem:[%s9884_s5 + $0x9a8] sm:$0xff] }
 0x3a4   :  { %5932 = vmatpush1.bf16.msra.mxu1 %v6932_v18  ;;  %v7156_v18 = vcombine.low %v2745_v5, %v2761_v6  ;;  %v2969_v5 = vld [vmem:[%s9884_s5 + $0xf28] sm:$0xff] }
 0x3a5   :  { %6055 = vmatpush1.bf16.msra.mxu0 %v6938_v19  ;;  %5933 = vmatprep.subr.bf16.mxu1 %v6965_v20  ;;  %v7162_v19 = vcombine.low %v2748_v7, %v2764_v8  ;;  %v7189_v20 = vcombine.high %v2777_v14, %v2793_v15  ;;  %v2985_v6 = vld [vmem:[%s9884_s5 + $0xfa8] sm:$0xff]  ;;  %v2972_v7 = vld [vmem:[%s9884_s5 + $0xf40] sm:$0xff] }
 0x3a6   :  { %6056 = vmatprep.subr.bf16.mxu0 %v6971_v21  ;;  %v7195_v21 = vcombine.high %v2780_v16, %v2796_v17  ;;  %v2988_v8 = vld [vmem:[%s9884_s5 + $0xfc0] sm:$0xff] }
 0x3a8   :  { %5934 = vmatpush1.bf16.msra.mxu1 %v6964_v28  ;;  %v7188_v28 = vcombine.low %v2777_v14, %v2793_v15  ;;  %v2491_v14 = vld [vmem:[%s9884_s5 + $0x38] sm:$0xff] }
 0x3a9   :  { %6057 = vmatpush1.bf16.msra.mxu0 %v6970_v29  ;;  %5935 = vmatprep.subr.bf16.mxu1 %v6997_v23  ;;  %v7194_v29 = vcombine.low %v2780_v16, %v2796_v17  ;;  %v7221_v23 = vcombine.high %v2809_v22, %v2825_v24  ;;  %v2507_v15 = vld [vmem:[%s9884_s5 + $0xb8] sm:$0xff]  ;;  %v2494_v16 = vld [vmem:[%s9884_s5 + $0x50] sm:$0xff] }
 0x3aa   :  { %6058 = vmatprep.subr.bf16.mxu0 %v7003_v30  ;;  %v7227_v30 = vcombine.high %v2812_v9, %v2828_v27  ;;  %v2510_v17 = vld [vmem:[%s9884_s5 + $0xd0] sm:$0xff] }
 0x3ac   :  { %5936 = vmatpush1.bf16.msra.mxu1 %v6996_v35  ;;  %v7220_v35 = vcombine.low %v2809_v22, %v2825_v24  ;;  %v2523_v22 = vld [vmem:[%s9884_s5 + $0x138] sm:$0xff] }
 0x3ad   :  { %6059 = vmatpush1.bf16.msra.mxu0 %v7002_v36  ;;  %5937 = vmatprep.subr.bf16.mxu1 %v7029_v39  ;;  %v7226_v36 = vcombine.low %v2812_v9, %v2828_v27  ;;  %v7253_v39 = vcombine.high %v2841_v31, %v2857_v32  ;;  %v2539_v24 = vld [vmem:[%s9884_s5 + $0x1b8] sm:$0xff]  ;;  %v6904_v9 = vcombine.low %v2491_v14, %v2507_v15  ;;  %v2526_v27 = vld [vmem:[%s9884_s5 + $0x150] sm:$0xff] }
 0x3ae   :  { %6060 = vmatprep.subr.bf16.mxu0 %v7035_v40  ;;  %v7259_v40 = vcombine.high %v2844_v33, %v2860_v34 }
 0x3b0   :  { %5938 = vmatpush1.bf16.msra.mxu1 %v7028_v44  ;;  %v7252_v44 = vcombine.low %v2841_v31, %v2857_v32  ;;  %v2571_v31 = vld [vmem:[%s9884_s5 + $0x2b8] sm:$0xff] }
 0x3b1   :  { %6061 = vmatpush1.bf16.msra.mxu0 %v7034_v45  ;;  %5939 = vmatprep.subr.bf16.mxu1 %v7061_v46  ;;  %v7258_v45 = vcombine.low %v2844_v33, %v2860_v34  ;;  %v7285_v46 = vcombine.high %v2873_v41, %v2889_v26  ;;  %v2558_v33 = vld [vmem:[%s9884_s5 + $0x250] sm:$0xff] }
 0x3b2   :  { %6062 = vmatprep.subr.bf16.mxu0 %v7067_v48  ;;  %v7291_v48 = vcombine.high %v2876_v25, %v2892_v42  ;;  %v2574_v34 = vld [vmem:[%s9884_s5 + $0x2d0] sm:$0xff] }
 0x3b4   :  { %5940 = vmatpush1.bf16.msra.mxu1 %v7060_v54  ;;  %v7284_v54 = vcombine.low %v2873_v41, %v2889_v26  ;;  %v2587_v41 = vld [vmem:[%s9884_s5 + $0x338] sm:$0xff] }
 0x3b5   :  { %6063 = vmatpush1.bf16.msra.mxu0 %v7066_v55  ;;  %5941 = vmatprep.subr.bf16.mxu1 %v7093_v57  ;;  %v7290_v55 = vcombine.low %v2876_v25, %v2892_v42  ;;  %v7317_v57 = vcombine.high %v2905_v50, %v2921_v51  ;;  %v2603_v26 = vld [vmem:[%s9884_s5 + $0x3b8] sm:$0xff]  ;;  %v2590_v25 = vld [vmem:[%s9884_s5 + $0x350] sm:$0xff] }
 0x3b6   :  { %6064 = vmatprep.subr.bf16.mxu0 %v7099_v61  ;;  %v7323_v61 = vcombine.high %v2908_v52, %v2924_v53  ;;  %v2606_v42 = vld [vmem:[%s9884_s5 + $0x3d0] sm:$0xff] }
 0x3b8   :  { %5942 = vmatpush1.bf16.msra.mxu1 %v7092_v1  ;;  %v7316_v1 = vcombine.low %v2905_v50, %v2921_v51  ;;  %v2619_v50 = vld [vmem:[%s9884_s5 + $0x438] sm:$0xff] }
 0x3b9   :  { %6065 = vmatpush1.bf16.msra.mxu0 %v7098_v2  ;;  %5943 = vmatprep.subr.bf16.mxu1 %v7125_v3  ;;  %v7322_v2 = vcombine.low %v2908_v52, %v2924_v53  ;;  %v7349_v3 = vcombine.high %v2937_v62, %v2953_v63  ;;  %v2635_v51 = vld [vmem:[%s9884_s5 + $0x4b8] sm:$0xff]  ;;  %v2622_v52 = vld [vmem:[%s9884_s5 + $0x450] sm:$0xff] }
 0x3ba   :  { %6066 = vmatprep.subr.bf16.mxu0 %v7131_v4  ;;  %v7355_v4 = vcombine.high %v2940_v58, %v2956_v0  ;;  %v2638_v53 = vld [vmem:[%s9884_s5 + $0x4d0] sm:$0xff] }
 0x3bc   :  { %5944 = vmatpush1.bf16.msra.mxu1 %v7124_v10  ;;  %v7348_v10 = vcombine.low %v2937_v62, %v2953_v63  ;;  %v2651_v62 = vld [vmem:[%s9884_s5 + $0x538] sm:$0xff] }
 0x3bd   :  { %6067 = vmatpush1.bf16.msra.mxu0 %v7130_v11  ;;  %5945 = vmatprep.subr.bf16.mxu1 %v7157_v12  ;;  %v7354_v11 = vcombine.low %v2940_v58, %v2956_v0  ;;  %v7381_v12 = vcombine.high %v2969_v5, %v2985_v6  ;;  %v2667_v63 = vld [vmem:[%s9884_s5 + $0x5b8] sm:$0xff]  ;;  %v8973_v58 = vsub.s32 4, %v8045_v43  ;;  %v2654_v0 = vld [vmem:[%s9884_s5 + $0x550] sm:$0xff] }
 0x3be   :  { %6068 = vmatprep.subr.bf16.mxu0 %v7163_v13  ;;  %v7387_v13 = vcombine.high %v2972_v7, %v2988_v8 }
 0x3c0   :  { %5946 = vmatpush1.bf16.msra.mxu1 %v7156_v18  ;;  %v7380_v18 = vcombine.low %v2969_v5, %v2985_v6  ;;  %v7038_v5 = vcombine.low %v2622_v52, %v2638_v53  ;;  %v7065_v6 = vcombine.high %v2651_v62, %v2667_v63 }
 0x3c1   :  { %6069 = vmatpush1.bf16.msra.mxu0 %v7162_v19  ;;  %5947 = vmatprep.subr.bf16.mxu1 %v7189_v20  ;;  %v7386_v19 = vcombine.low %v2972_v7, %v2988_v8  ;;  %v6905_v20 = vcombine.high %v2491_v14, %v2507_v15  ;;  %v2683_v8 = vld [vmem:[%s9884_s5 + $0x638] sm:$0xff]  ;;  %v2702_v14 = vld [vmem:[%s9884_s5 + $0x6d0] sm:$0xff]  ;;  %v7064_v15 = vcombine.low %v2651_v62, %v2667_v63 }
 0x3c2   :  { %6070 = vmatprep.subr.bf16.mxu0 %v7195_v21  ;;  %v6911_v21 = vcombine.high %v2494_v16, %v2510_v17  ;;  %v2798_v62 = vld [vmem:[%s9884_s5 + $0x9d0] sm:$0xff] }
 0x3c4   :  { %5948 = vmatpush1.bf16.msra.mxu1 %v7188_v28  ;;  %v2542_v28 = vld [vmem:[%s9884_s5 + $0x1d0] sm:$0xff] }
 0x3c5   :  { %6071 = vmatpush1.bf16.msra.mxu0 %v7194_v29  ;;  %5949 = vmatprep.subr.bf16.mxu1 %v7221_v23  ;;  %v6910_v29 = vcombine.low %v2494_v16, %v2510_v17  ;;  %v6937_v23 = vcombine.high %v2523_v22, %v2539_v24  ;;  %v6943_v32 = vcombine.high %v2526_v27, %v2542_v28 }
 0x3c6   :  { %6072 = vmatprep.subr.bf16.mxu0 %v7227_v30  ;;  %v2555_v30 = vld [vmem:[%s9884_s5 + $0x238] sm:$0xff] }
 0x3c8   :  { %5950 = vmatpush1.bf16.msra.mxu1 %v7220_v35  ;;  %v6936_v35 = vcombine.low %v2523_v22, %v2539_v24  ;;  %v2715_v24 = vld [vmem:[%s9884_s5 + $0x738] sm:$0xff] }
 0x3c9   :  { %6073 = vmatpush1.bf16.msra.mxu0 %v7226_v36  ;;  %5951 = vmatprep.subr.bf16.mxu1 %v7253_v39  ;;  %v6942_v36 = vcombine.low %v2526_v27, %v2542_v28  ;;  %v6969_v39 = vcombine.high %v2555_v30, %v2571_v31 }
 0x3ca   :  { %6074 = vmatprep.subr.bf16.mxu0 %v7259_v40  ;;  %v6975_v40 = vcombine.high %v2558_v33, %v2574_v34 }
 0x3cc   :  { %5952 = vmatpush1.bf16.msra.mxu1 %v7252_v44  ;;  %v6968_v44 = vcombine.low %v2555_v30, %v2571_v31  ;;  %v2718_v30 = vld [vmem:[%s9884_s5 + $0x750] sm:$0xff] }
 0x3cd   :  { %6075 = vmatpush1.bf16.msra.mxu0 %v7258_v45  ;;  %5953 = vmatprep.subr.bf16.mxu1 %v7285_v46  ;;  %v6974_v45 = vcombine.low %v2558_v33, %v2574_v34  ;;  %v7001_v46 = vcombine.high %v2587_v41, %v2603_v26  ;;  %v2734_v31 = vld [vmem:[%s9884_s5 + $0x7d0] sm:$0xff] }
 0x3ce   :  { %6076 = vmatprep.subr.bf16.mxu0 %v7291_v48  ;;  %v7007_v48 = vcombine.high %v2590_v25, %v2606_v42 }
 0x3d0   :  { %5954 = vmatpush1.bf16.msra.mxu1 %v7284_v54  ;;  %v7000_v54 = vcombine.low %v2587_v41, %v2603_v26 }
 0x3d1   :  { %6077 = vmatpush1.bf16.msra.mxu0 %v7290_v55  ;;  %5955 = vmatprep.subr.bf16.mxu1 %v7317_v57  ;;  %v7006_v55 = vcombine.low %v2590_v25, %v2606_v42  ;;  %v7033_v57 = vcombine.high %v2619_v50, %v2635_v51 }
 0x3d2   :  { %6078 = vmatprep.subr.bf16.mxu0 %v7323_v61  ;;  %v7039_v61 = vcombine.high %v2622_v52, %v2638_v53  ;;  %v7134_v52 = vcombine.low %v2718_v30, %v2734_v31 }
 0x3d4   :  { %5956 = vmatpush1.bf16.msra.mxu1 %v7316_v1  ;;  %v2670_v1 = vld [vmem:[%s9884_s5 + $0x5d0] sm:$0xff] }
 0x3d5   :  { %6079 = vmatpush1.bf16.msra.mxu0 %v7322_v2  ;;  %5957 = vmatprep.subr.bf16.mxu1 %v7349_v3  ;;  %v7032_v2 = vcombine.low %v2619_v50, %v2635_v51  ;;  %v8984_v3 = vld [vmem:[%s9885_s6] sm:$0xff]  ;;  %v7071_v7 = vcombine.high %v2654_v0, %v2670_v1  ;;  %v2766_v50 = vld [vmem:[%s9884_s5 + $0x8d0] sm:$0xff] }
 0x3d6   :  { %6080 = vmatprep.subr.bf16.mxu0 %v7355_v4  ;;  %v8987_v4 = vsub.s32 5, %v8045_v43  ;;  %v3011_v16 = vrot.slane %v8984_v3, %v8170_v59 }
 0x3d8   :  { %5958 = vmatpush1.bf16.msra.mxu1 %v7348_v10  ;;  %v2699_v10 = vld [vmem:[%s9884_s5 + $0x6b8] sm:$0xff]  ;;  %v3027_v17 = vrot.slane %v8984_v3, %v8987_v4 }
 0x3d9   :  { %6081 = vmatpush1.bf16.msra.mxu0 %v7354_v11  ;;  %5959 = vmatprep.subr.bf16.mxu1 %v7381_v12  ;;  %v3007_v11 = vrot.slane %v8984_v3, %v8162_v56  ;;  %v3023_v12 = vrot.slane %v8984_v3, %v8973_v58 }
 0x3da   :  { %6082 = vmatprep.subr.bf16.mxu0 %v7387_v13  ;;  %v2686_v13 = vld [vmem:[%s9884_s5 + $0x650] sm:$0xff] }
 0x3db   :  { %v7103_v22 = vcombine.high %v2686_v13, %v2702_v14  ;;  %v7102_v41 = vcombine.low %v2686_v13, %v2702_v14  ;;  %v2843_v14 = vld [vmem:[%s9884_s5 + $0xb38] sm:$0xff] }
 0x3dc   :  { %5960 = vmatpush1.bf16.msra.mxu1 %v7380_v18  ;;  %v7070_v18 = vcombine.low %v2654_v0, %v2670_v1 }
 0x3dd   :  { %6083 = vmatpush1.bf16.msra.mxu0 %v7386_v19  ;;  %6011 = vmatprep.subr.bf16.mxu1 %v6905_v20  ;;  %v7097_v19 = vcombine.high %v2683_v8, %v2699_v10 }
 0x3de   :  { %6134 = vmatprep.subr.bf16.mxu0 %v6911_v21 }
 0x3df   :  { %5962 = vmatmul.mubr.bf16.vlgmr.msra.gmra.mrb[16].mxu1 %v8334_v38 }
 0x3e0   :  { %6085 = vmatmul.mubr.bf16.vlgmr.msra.gmra.mrb[20].mxu0 %v8334_v38  ;;  %6012 = vmatpush1.bf16.msra.mxu1 %v6904_v9  ;;  %v2731_v9 = vld [vmem:[%s9884_s5 + $0x7b8] sm:$0xff] }
 0x3e1   :  { %6043 = vmatprep.mubr.bf16.mxu1 %v8332_v37  ;;  %6135 = vmatpush1.bf16.msra.mxu0 %v6910_v29  ;;  %v7129_v26 = vcombine.high %v2715_v24, %v2731_v9  ;;  %v7128_v51 = vcombine.low %v2715_v24, %v2731_v9  ;;  %v2891_v24 = vld [vmem:[%s9884_s5 + $0xcb8] sm:$0xff]  ;;  %v2878_v9 = vld [vmem:[%s9884_s5 + $0xc50] sm:$0xff] }
 0x3e2   :  { %6166 = vmatprep.mubr.bf16.mxu0 %v8332_v37  ;;  %6013 = vmatprep.subr.bf16.mxu1 %v6937_v23 }
 0x3e3   :  { %6136 = vmatprep.subr.bf16.mxu0 %v6943_v32 }
 0x3e4   :  { %6014 = vmatpush1.bf16.msra.mxu1 %v6936_v35 }
 0x3e5   :  { %6137 = vmatpush1.bf16.msra.mxu0 %v6942_v36  ;;  %6015 = vmatprep.subr.bf16.mxu1 %v6969_v39  ;;  %v7096_v36 = vcombine.low %v2683_v8, %v2699_v10  ;;  %v2830_v8 = vld [vmem:[%s9884_s5 + $0xad0] sm:$0xff] }
 0x3e6   :  { %6138 = vmatprep.subr.bf16.mxu0 %v6975_v40 }
 0x3e8   :  { %6016 = vmatpush1.bf16.msra.mxu1 %v6968_v44  ;;  %v7135_v44 = vcombine.high %v2718_v30, %v2734_v31 }
 0x3e9   :  { %6139 = vmatpush1.bf16.msra.mxu0 %v6974_v45  ;;  %6017 = vmatprep.subr.bf16.mxu1 %v7001_v46  ;;  %v2747_v45 = vld [vmem:[%s9884_s5 + $0x838] sm:$0xff] }
 0x3ea   :  { %6140 = vmatprep.subr.bf16.mxu0 %v7007_v48  ;;  %v2763_v46 = vld [vmem:[%s9884_s5 + $0x8b8] sm:$0xff]  ;;  %v2750_v48 = vld [vmem:[%s9884_s5 + $0x850] sm:$0xff] }
 0x3eb   :  { %v7161_v53 = vcombine.high %v2747_v45, %v2763_v46  ;;  %v7160_v63 = vcombine.low %v2747_v45, %v2763_v46  ;;  %v7166_v0 = vcombine.low %v2750_v48, %v2766_v50  ;;  %v2939_v46 = vld [vmem:[%s9884_s5 + $0xe38] sm:$0xff] }
 0x3ec   :  { %6018 = vmatpush1.bf16.msra.mxu1 %v7000_v54  ;;  %v7167_v54 = vcombine.high %v2750_v48, %v2766_v50  ;;  %v2955_v48 = vld [vmem:[%s9884_s5 + $0xeb8] sm:$0xff]  ;;  %v2942_v50 = vld [vmem:[%s9884_s5 + $0xe50] sm:$0xff] }
 0x3ed   :  { %6141 = vmatpush1.bf16.msra.mxu0 %v7006_v55  ;;  %6019 = vmatprep.subr.bf16.mxu1 %v7033_v57  ;;  %v2779_v55 = vld [vmem:[%s9884_s5 + $0x938] sm:$0xff] }
 0x3ee   :  { %6142 = vmatprep.subr.bf16.mxu0 %v7039_v61  ;;  %v2795_v57 = vld [vmem:[%s9884_s5 + $0x9b8] sm:$0xff]  ;;  %v2782_v61 = vld [vmem:[%s9884_s5 + $0x950] sm:$0xff] }
 0x3ef   :  { %v7193_v1 = vcombine.high %v2779_v55, %v2795_v57  ;;  %v7192_v10 = vcombine.low %v2779_v55, %v2795_v57  ;;  %v2971_v57 = vld [vmem:[%s9884_s5 + $0xf38] sm:$0xff] }
 0x3f0   :  { %6020 = vmatpush1.bf16.msra.mxu1 %v7032_v2  ;;  %v7199_v2 = vcombine.high %v2782_v61, %v2798_v62 }
 0x3f1   :  { %6143 = vmatpush1.bf16.msra.mxu0 %v7038_v5  ;;  %6021 = vmatprep.subr.bf16.mxu1 %v7065_v6  ;;  %v2811_v5 = vld [vmem:[%s9884_s5 + $0xa38] sm:$0xff] }
 0x3f2   :  { %v5758_v20 = vpop.f32.mrb[4].mxu1  ;;  %v5840_v21 = vpop.f32.mrb[8].mxu0  ;;  %6144 = vmatprep.subr.bf16.mxu0 %v7071_v7  ;;  %v2827_v6 = vld [vmem:[%s9884_s5 + $0xab8] sm:$0xff]  ;;  %v2814_v7 = vld [vmem:[%s9884_s5 + $0xa50] sm:$0xff] }
 0x3f3   :  { %v9015_v27 = vadd.f32 %v5758_v20, %v3007_v11  ;;  %v9017_v28 = vadd.f32 %v5840_v21, %v3023_v12  ;;  %v5760_v29 = vpop.f32.mrb[5].mxu1  ;;  %v5842_v23 = vpop.f32.mrb[9].mxu0  ;;  %v7198_v11 = vcombine.low %v2782_v61, %v2798_v62  ;;  %v7225_v12 = vcombine.high %v2811_v5, %v2827_v6  ;;  %v2987_v61 = vld [vmem:[%s9884_s5 + $0xfb8] sm:$0xff]  ;;  %v2974_v62 = vld [vmem:[%s9884_s5 + $0xf50] sm:$0xff] }
 0x3f4   :  { %v9025_v32 = vadd.f32 %v5760_v29, %v3011_v16  ;;  %v9027_v33 = vadd.f32 %v5842_v23, %v3027_v17  ;;  %6022 = vmatpush1.bf16.msra.mxu1 %v7064_v15  ;;  %v5762_v34 = vpop.f32.mrb[6].mxu1  ;;  %v5844_v35 = vpop.f32.mrb[10].mxu0  ;;  %v7231_v13 = vcombine.high %v2814_v7, %v2830_v8  ;;  %v2859_v15 = vld [vmem:[%s9884_s5 + $0xbb8] sm:$0xff]  ;;  %v2846_v16 = vld [vmem:[%s9884_s5 + $0xb50] sm:$0xff] }
 0x3f5   :  { %6145 = vmatpush1.bf16.msra.mxu0 %v7070_v18  ;;  %v5763_v39 = vpop.f32.mrb[7].mxu1  ;;  %v5845_v40 = vpop.f32.mrb[11].mxu0  ;;  %6023 = vmatprep.subr.bf16.mxu1 %v7097_v19  ;;  %v2862_v17 = vld [vmem:[%s9884_s5 + $0xbd0] sm:$0xff]  ;;  %v7224_v18 = vcombine.low %v2811_v5, %v2827_v6  ;;  %v7230_v19 = vcombine.low %v2814_v7, %v2830_v8  ;;  %v7257_v20 = vcombine.high %v2843_v14, %v2859_v15  ;;  %v2907_v35 = vld [vmem:[%s9884_s5 + $0xd38] sm:$0xff]  ;;  %v2493_v6 = vld [vmem:[%s9884_s5 + $0x48] sm:$0xff] }
 0x3f6   :  { %v6412_v25 = vcombine.low %v9015_v27, %v9025_v32  ;;  %v6429_v42 = vcombine.low %v9017_v28, %v9027_v33  ;;  %6146 = vmatprep.subr.bf16.mxu0 %v7103_v22  ;;  %v7263_v21 = vcombine.high %v2846_v16, %v2862_v17  ;;  %v2875_v22 = vld [vmem:[%s9884_s5 + $0xc38] sm:$0xff]  ;;  %v2894_v29 = vld [vmem:[%s9884_s5 + $0xcd0] sm:$0xff]  ;;  %v7256_v23 = vcombine.low %v2843_v14, %v2859_v15  ;;  %v2509_v7 = vld [vmem:[%s9884_s5 + $0xc8] sm:$0xff] }
 0x3f7   :  { %v7262_v30 = vcombine.low %v2846_v16, %v2862_v17  ;;  %v7289_v31 = vcombine.high %v2875_v22, %v2891_v24  ;;  %v7295_v34 = vcombine.high %v2878_v9, %v2894_v29  ;;  %v2910_v39 = vld [vmem:[%s9884_s5 + $0xd50] sm:$0xff]  ;;  %v2496_v8 = vld [vmem:[%s9884_s5 + $0x60] sm:$0xff]  ;;  %v2525_v15 = vld [vmem:[%s9884_s5 + $0x148] sm:$0xff]  ;;  %v6908_v17 = vcombine.low %v2493_v6, %v2509_v7 }
 0x3f8   :  { %6024 = vmatpush1.bf16.msra.mxu1 %v7096_v36  ;;  %v2923_v36 = vld [vmem:[%s9884_s5 + $0xdb8] sm:$0xff]  ;;  %v2926_v40 = vld [vmem:[%s9884_s5 + $0xdd0] sm:$0xff]  ;;  %v2541_v16 = vld [vmem:[%s9884_s5 + $0x1c8] sm:$0xff] }
 0x3f9   :  { %6147 = vmatpush1.bf16.msra.mxu0 %v7102_v41  ;;  %6025 = vmatprep.subr.bf16.mxu1 %v7129_v26  ;;  %v7288_v41 = vcombine.low %v2875_v22, %v2891_v24  ;;  %v7294_v26 = vcombine.low %v2878_v9, %v2894_v29  ;;  %v7327_v45 = vcombine.high %v2910_v39, %v2926_v40  ;;  %v2557_v22 = vld [vmem:[%s9884_s5 + $0x248] sm:$0xff]  ;;  %v2560_v29 = vld [vmem:[%s9884_s5 + $0x260] sm:$0xff]  ;;  %v2799_v28 = vld [vmem:[%s9884_s5 + $0x9d8] sm:$0xff] }
 0x3fa   :  { %6148 = vmatprep.subr.bf16.mxu0 %v7135_v44  ;;  %v7321_v44 = vcombine.high %v2907_v35, %v2923_v36  ;;  %v2573_v24 = vld [vmem:[%s9884_s5 + $0x2c8] sm:$0xff]  ;;  %v2784_v32 = vld [vmem:[%s9884_s5 + $0x960] sm:$0xff]  ;;  %v2786_v33 = vld [vmem:[%s9884_s5 + $0x970] sm:$0xff] }
 0x3fb   :  { %v2797_v27 = vld [vmem:[%s9884_s5 + $0x9c8] sm:$0xff] }
 0x3fc   :  { %6026 = vmatpush1.bf16.msra.mxu1 %v7128_v51  ;;  %v2958_v51 = vld [vmem:[%s9884_s5 + $0xed0] sm:$0xff] }
 0x3fd   :  { %6149 = vmatpush1.bf16.msra.mxu0 %v7134_v52  ;;  %6027 = vmatprep.subr.bf16.mxu1 %v7161_v53  ;;  %v7320_v52 = vcombine.low %v2907_v35, %v2923_v36  ;;  %v7326_v53 = vcombine.low %v2910_v39, %v2926_v40  ;;  %v7359_v55 = vcombine.high %v2942_v50, %v2958_v51  ;;  %v2589_v36 = vld [vmem:[%s9884_s5 + $0x348] sm:$0xff]  ;;  %v2592_v40 = vld [vmem:[%s9884_s5 + $0x360] sm:$0xff] }
 0x3fe   :  { %6150 = vmatprep.subr.bf16.mxu0 %v7167_v54  ;;  %v7353_v54 = vcombine.high %v2939_v46, %v2955_v48  ;;  %v2605_v39 = vld [vmem:[%s9884_s5 + $0x3c8] sm:$0xff] }
 0x400   :  { %6028 = vmatpush1.bf16.msra.mxu1 %v7160_v63  ;;  %v2990_v63 = vld [vmem:[%s9884_s5 + $0xfd0] sm:$0xff] }
 0x401   :  { %6151 = vmatpush1.bf16.msra.mxu0 %v7166_v0  ;;  %6029 = vmatprep.subr.bf16.mxu1 %v7193_v1  ;;  %v7352_v0 = vcombine.low %v2939_v46, %v2955_v48  ;;  %v7358_v1 = vcombine.low %v2942_v50, %v2958_v51  ;;  %v7391_v5 = vcombine.high %v2974_v62, %v2990_v63  ;;  %v2621_v48 = vld [vmem:[%s9884_s5 + $0x448] sm:$0xff]  ;;  %v2624_v51 = vld [vmem:[%s9884_s5 + $0x460] sm:$0xff] }
 0x402   :  { %6152 = vmatprep.subr.bf16.mxu0 %v7199_v2  ;;  %v7385_v2 = vcombine.high %v2971_v57, %v2987_v61  ;;  %v2637_v50 = vld [vmem:[%s9884_s5 + $0x4c8] sm:$0xff] }
 0x404   :  { %6030 = vmatpush1.bf16.msra.mxu1 %v7192_v10  ;;  %v2512_v10 = vld [vmem:[%s9884_s5 + $0xe0] sm:$0xff] }
 0x405   :  { %6153 = vmatpush1.bf16.msra.mxu0 %v7198_v11  ;;  %6031 = vmatprep.subr.bf16.mxu1 %v7225_v12  ;;  %v7384_v11 = vcombine.low %v2971_v57, %v2987_v61  ;;  %v7390_v12 = vcombine.low %v2974_v62, %v2990_v63  ;;  %v6915_v14 = vcombine.high %v2496_v8, %v2512_v10  ;;  %v2653_v61 = vld [vmem:[%s9884_s5 + $0x548] sm:$0xff]  ;;  %v2656_v63 = vld [vmem:[%s9884_s5 + $0x560] sm:$0xff] }
 0x406   :  { %6154 = vmatprep.subr.bf16.mxu0 %v7231_v13  ;;  %v6909_v13 = vcombine.high %v2493_v6, %v2509_v7  ;;  %v2669_v62 = vld [vmem:[%s9884_s5 + $0x5c8] sm:$0xff] }
 0x407   :  { %v7069_v6 = vcombine.high %v2653_v61, %v2669_v62 }
 0x408   :  { %6032 = vmatpush1.bf16.msra.mxu1 %v7224_v18  ;;  %v2528_v18 = vld [vmem:[%s9884_s5 + $0x160] sm:$0xff] }
 0x409   :  { %6155 = vmatpush1.bf16.msra.mxu0 %v7230_v19  ;;  %6033 = vmatprep.subr.bf16.mxu1 %v7257_v20  ;;  %v2544_v19 = vld [vmem:[%s9884_s5 + $0x1e0] sm:$0xff]  ;;  %v6914_v20 = vcombine.low %v2496_v8, %v2512_v10  ;;  %v2685_v8 = vld [vmem:[%s9884_s5 + $0x648] sm:$0xff] }
 0x40a   :  { %6156 = vmatprep.subr.bf16.mxu0 %v7263_v21  ;;  %v6941_v21 = vcombine.high %v2525_v15, %v2541_v16  ;;  %v6947_v9 = vcombine.high %v2528_v18, %v2544_v19  ;;  %v2701_v10 = vld [vmem:[%s9884_s5 + $0x6c8] sm:$0xff] }
 0x40c   :  { %6034 = vmatpush1.bf16.msra.mxu1 %v7256_v23  ;;  %v2576_v23 = vld [vmem:[%s9884_s5 + $0x2e0] sm:$0xff] }
 0x40d   :  { %6157 = vmatpush1.bf16.msra.mxu0 %v7262_v30  ;;  %6035 = vmatprep.subr.bf16.mxu1 %v7289_v31  ;;  %v6940_v30 = vcombine.low %v2525_v15, %v2541_v16  ;;  %v6946_v31 = vcombine.low %v2528_v18, %v2544_v19  ;;  %v6979_v35 = vcombine.high %v2560_v29, %v2576_v23 }
 0x40e   :  { %6158 = vmatprep.subr.bf16.mxu0 %v7295_v34  ;;  %v6973_v34 = vcombine.high %v2557_v22, %v2573_v24  ;;  %v3019_v15 = vrot.slane %v8984_v3, %v8173_v60  ;;  %v7101_v19 = vcombine.high %v2685_v8, %v2701_v10 }
 0x410   :  { %6036 = vmatpush1.bf16.msra.mxu1 %v7288_v41  ;;  %v2608_v41 = vld [vmem:[%s9884_s5 + $0x3e0] sm:$0xff] }
 0x411   :  { %6159 = vmatpush1.bf16.msra.mxu0 %v7294_v26  ;;  %6037 = vmatprep.subr.bf16.mxu1 %v7321_v44  ;;  %v6972_v26 = vcombine.low %v2557_v22, %v2573_v24  ;;  %v6978_v44 = vcombine.low %v2560_v29, %v2576_v23  ;;  %v7011_v46 = vcombine.high %v2592_v40, %v2608_v41  ;;  %v2717_v24 = vld [vmem:[%s9884_s5 + $0x748] sm:$0xff] }
 0x412   :  { %6160 = vmatprep.subr.bf16.mxu0 %v7327_v45  ;;  %v7005_v45 = vcombine.high %v2589_v36, %v2605_v39 }
 0x414   :  { %6038 = vmatpush1.bf16.msra.mxu1 %v7320_v52  ;;  %v2640_v52 = vld [vmem:[%s9884_s5 + $0x4e0] sm:$0xff] }
 0x415   :  { %6161 = vmatpush1.bf16.msra.mxu0 %v7326_v53  ;;  %6039 = vmatprep.subr.bf16.mxu1 %v7353_v54  ;;  %v7004_v53 = vcombine.low %v2589_v36, %v2605_v39  ;;  %v7010_v54 = vcombine.low %v2592_v40, %v2608_v41  ;;  %v7043_v57 = vcombine.high %v2624_v51, %v2640_v52 }
 0x416   :  { %6162 = vmatprep.subr.bf16.mxu0 %v7359_v55  ;;  %v7037_v55 = vcombine.high %v2621_v48, %v2637_v50 }
 0x418   :  { %6040 = vmatpush1.bf16.msra.mxu1 %v7352_v0  ;;  %v2672_v0 = vld [vmem:[%s9884_s5 + $0x5e0] sm:$0xff] }
 0x419   :  { %6163 = vmatpush1.bf16.msra.mxu0 %v7358_v1  ;;  %6041 = vmatprep.subr.bf16.mxu1 %v7385_v2  ;;  %v7036_v1 = vcombine.low %v2621_v48, %v2637_v50  ;;  %v9208_v2 = vld [vmem:[%s9885_s6 + $0x8] sm:$0xff]  ;;  %v7075_v7 = vcombine.high %v2656_v63, %v2672_v0  ;;  %v7074_v18 = vcombine.low %v2656_v63, %v2672_v0 }
 0x41a   :  { %6164 = vmatprep.subr.bf16.mxu0 %v7391_v5  ;;  %v7042_v5 = vcombine.low %v2624_v51, %v2640_v52  ;;  %v3043_v16 = vrot.slane %v9208_v2, %v8170_v59 }
 0x41c   :  { %6042 = vmatpush1.bf16.msra.mxu1 %v7384_v11  ;;  %v3015_v11 = vrot.slane %v8984_v3, %v8190_v47 }
 0x41d   :  { %6165 = vmatpush1.bf16.msra.mxu0 %v7390_v12  ;;  %6093 = vmatprep.subr.bf16.mxu1 %v6909_v13  ;;  %v3039_v12 = vrot.slane %v9208_v2, %v8162_v56  ;;  %v2688_v13 = vld [vmem:[%s9884_s5 + $0x660] sm:$0xff] }
 0x41e   :  { %6216 = vmatprep.subr.bf16.mxu0 %v6915_v14  ;;  %v2704_v14 = vld [vmem:[%s9884_s5 + $0x6e0] sm:$0xff] }
 0x41f   :  { %6044 = vmatmul.mubr.bf16.vlgmr.msra.gmra.mrb[20].mxu1 %v8334_v38  ;;  %v7107_v22 = vcombine.high %v2688_v13, %v2704_v14 }
 0x420   :  { %6167 = vmatmul.mubr.bf16.vlgmr.msra.gmra.mrb[24].mxu0 %v8334_v38  ;;  %6094 = vmatpush1.bf16.msra.mxu1 %v6908_v17  ;;  %v7068_v17 = vcombine.low %v2653_v61, %v2669_v62  ;;  %v6420_v61 = vrot.slane %v6412_v25, %v8048_v49  ;;  %v2800_v25 = vld [vmem:[%s9884_s5 + $0x9e0] sm:$0xff] }
 0x421   :  { %6125 = vmatprep.mubr.bf16.mxu1 %v8332_v37  ;;  %6217 = vmatpush1.bf16.msra.mxu0 %v6914_v20 }
 0x422   :  { %6248 = vmatprep.mubr.bf16.mxu0 %v8332_v37  ;;  %6095 = vmatprep.subr.bf16.mxu1 %v6941_v21 }
 0x423   :  { %6218 = vmatprep.subr.bf16.mxu0 %v6947_v9  ;;  %v2733_v9 = vld [vmem:[%s9884_s5 + $0x7c8] sm:$0xff] }
 0x424   :  { %6096 = vmatpush1.bf16.msra.mxu1 %v6940_v30  ;;  %v7133_v48 = vcombine.high %v2717_v24, %v2733_v9  ;;  %v7132_v63 = vcombine.low %v2717_v24, %v2733_v9  ;;  %v2848_v24 = vld [vmem:[%s9884_s5 + $0xb60] sm:$0xff] }
 0x425   :  { %6219 = vmatpush1.bf16.msra.mxu0 %v6946_v31  ;;  %6097 = vmatprep.subr.bf16.mxu1 %v6973_v34  ;;  %v2720_v34 = vld [vmem:[%s9884_s5 + $0x760] sm:$0xff] }
 0x426   :  { %6220 = vmatprep.subr.bf16.mxu0 %v6979_v35  ;;  %v2736_v35 = vld [vmem:[%s9884_s5 + $0x7e0] sm:$0xff] }
 0x427   :  { %v7139_v52 = vcombine.high %v2720_v34, %v2736_v35  ;;  %v7138_v0 = vcombine.low %v2720_v34, %v2736_v35  ;;  %v2864_v9 = vld [vmem:[%s9884_s5 + $0xbe0] sm:$0xff]  ;;  %v2877_v35 = vld [vmem:[%s9884_s5 + $0xc48] sm:$0xff] }
 0x428   :  { %6098 = vmatpush1.bf16.msra.mxu1 %v6972_v26  ;;  %v7100_v26 = vcombine.low %v2685_v8, %v2701_v10  ;;  %v7267_v34 = vcombine.high %v2848_v24, %v2864_v9 }
 0x429   :  { %6221 = vmatpush1.bf16.msra.mxu0 %v6978_v44  ;;  %6099 = vmatprep.subr.bf16.mxu1 %v7005_v45 }
 0x42a   :  { %6222 = vmatprep.subr.bf16.mxu0 %v7011_v46  ;;  %v7106_v46 = vcombine.low %v2688_v13, %v2704_v14  ;;  %v2813_v13 = vld [vmem:[%s9884_s5 + $0xa48] sm:$0xff] }
 0x42b   :  { %v2829_v14 = vld [vmem:[%s9884_s5 + $0xac8] sm:$0xff] }
 0x42c   :  { %6100 = vmatpush1.bf16.msra.mxu1 %v7004_v53  ;;  %v2749_v53 = vld [vmem:[%s9884_s5 + $0x848] sm:$0xff] }
 0x42d   :  { %6223 = vmatpush1.bf16.msra.mxu0 %v7010_v54  ;;  %6101 = vmatprep.subr.bf16.mxu1 %v7037_v55  ;;  %v2765_v54 = vld [vmem:[%s9884_s5 + $0x8c8] sm:$0xff]  ;;  %v2752_v55 = vld [vmem:[%s9884_s5 + $0x860] sm:$0xff] }
 0x42e   :  { %6224 = vmatprep.subr.bf16.mxu0 %v7043_v57  ;;  %v2768_v57 = vld [vmem:[%s9884_s5 + $0x8e0] sm:$0xff]  ;;  %v7164_v8 = vcombine.low %v2749_v53, %v2765_v54 }
 0x42f   :  { %v7170_v10 = vcombine.low %v2752_v55, %v2768_v57 }
 0x430   :  { %6102 = vmatpush1.bf16.msra.mxu1 %v7036_v1  ;;  %v7165_v1 = vcombine.high %v2749_v53, %v2765_v54  ;;  %v2928_v53 = vld [vmem:[%s9884_s5 + $0xde0] sm:$0xff] }
 0x431   :  { %6225 = vmatpush1.bf16.msra.mxu0 %v7042_v5  ;;  %6103 = vmatprep.subr.bf16.mxu1 %v7069_v6  ;;  %v7171_v6 = vcombine.high %v2752_v55, %v2768_v57 }
 0x432   :  { %v5799_v20 = vpop.f32.mrb[8].mxu1  ;;  %v5922_v21 = vpop.f32.mrb[12].mxu0  ;;  %6226 = vmatprep.subr.bf16.mxu0 %v7075_v7  ;;  %v2781_v7 = vld [vmem:[%s9884_s5 + $0x948] sm:$0xff] }
 0x433   :  { %v5800_v29 = vadd.f32 %v5799_v20, %v3015_v11  ;;  %v9236_v23 = vadd.f32 %v5922_v21, %v3039_v12  ;;  %v5801_v30 = vpop.f32.mrb[9].mxu1  ;;  %v5924_v31 = vpop.f32.mrb[13].mxu0  ;;  %v7197_v11 = vcombine.high %v2781_v7, %v2797_v27  ;;  %v7203_v12 = vcombine.high %v2784_v32, %v2800_v25  ;;  %v2845_v21 = vld [vmem:[%s9884_s5 + $0xb48] sm:$0xff] }
 0x434   :  { %v5802_v36 = vadd.f32 %v5801_v30, %v3019_v15  ;;  %v9244_v39 = vadd.f32 %v5924_v31, %v3043_v16  ;;  %v5803_v40 = vpop.f32.mrb[10].mxu1  ;;  %v5926_v41 = vpop.f32.mrb[14].mxu0  ;;  %6104 = vmatpush1.bf16.msra.mxu1 %v7068_v17  ;;  %v2816_v15 = vld [vmem:[%s9884_s5 + $0xa60] sm:$0xff]  ;;  %v7196_v17 = vcombine.low %v2781_v7, %v2797_v27 }
 0x435   :  { %6227 = vmatpush1.bf16.msra.mxu0 %v7074_v18  ;;  %v5804_v44 = vpop.f32.mrb[11].mxu1  ;;  %v5927_v45 = vpop.f32.mrb[15].mxu0  ;;  %6105 = vmatprep.subr.bf16.mxu1 %v7101_v19  ;;  %v2832_v16 = vld [vmem:[%s9884_s5 + $0xae0] sm:$0xff]  ;;  %v7202_v18 = vcombine.low %v2784_v32, %v2800_v25  ;;  %v7229_v19 = vcombine.high %v2813_v13, %v2829_v14  ;;  %v2973_v32 = vld [vmem:[%s9884_s5 + $0xf48] sm:$0xff] }
 0x436   :  { %v6413_v50 = vcombine.low %v5800_v29, %v5802_v36  ;;  %v6446_v51 = vcombine.low %v9236_v23, %v9244_v39  ;;  %6228 = vmatprep.subr.bf16.mxu0 %v7107_v22  ;;  %v7235_v20 = vcombine.high %v2816_v15, %v2832_v16  ;;  %v2861_v22 = vld [vmem:[%s9884_s5 + $0xbc8] sm:$0xff]  ;;  %v7228_v29 = vcombine.low %v2813_v13, %v2829_v14  ;;  %v2880_v40 = vld [vmem:[%s9884_s5 + $0xc60] sm:$0xff] }
 0x437   :  { %v7234_v30 = vcombine.low %v2816_v15, %v2832_v16  ;;  %v7261_v31 = vcombine.high %v2845_v21, %v2861_v22  ;;  %v2893_v36 = vld [vmem:[%s9884_s5 + $0xcc8] sm:$0xff]  ;;  %v2896_v41 = vld [vmem:[%s9884_s5 + $0xce0] sm:$0xff]  ;;  %v7266_v44 = vcombine.low %v2848_v24, %v2864_v9  ;;  %v2495_v15 = vld [vmem:[%s9884_s5 + $0x58] sm:$0xff] }
 0x438   :  { %v6427_v62 = vrot.slane %v6413_v50, %v8048_v49  ;;  %6106 = vmatpush1.bf16.msra.mxu1 %v7100_v26  ;;  %v7260_v26 = vcombine.low %v2845_v21, %v2861_v22  ;;  %v7293_v45 = vcombine.high %v2877_v35, %v2893_v36  ;;  %v2925_v50 = vld [vmem:[%s9884_s5 + $0xdc8] sm:$0xff]  ;;  %v7292_v54 = vcombine.low %v2877_v35, %v2893_v36  ;;  %v2511_v16 = vld [vmem:[%s9884_s5 + $0xd8] sm:$0xff] }
 0x439   :  { %6229 = vmatpush1.bf16.msra.mxu0 %v7106_v46  ;;  %6107 = vmatprep.subr.bf16.mxu1 %v7133_v48  ;;  %v7299_v46 = vcombine.high %v2880_v40, %v2896_v41  ;;  %v2909_v48 = vld [vmem:[%s9884_s5 + $0xd48] sm:$0xff]  ;;  %v7298_v55 = vcombine.low %v2880_v40, %v2896_v41  ;;  %v6913_v21 = vcombine.high %v2495_v15, %v2511_v16  ;;  %v2527_v24 = vld [vmem:[%s9884_s5 + $0x158] sm:$0xff] }
 0x43a   :  { %v6428_v5 = vcombine.low %v6420_v61, %v6427_v62  ;;  %6230 = vmatprep.subr.bf16.mxu0 %v7139_v52  ;;  %v2912_v52 = vld [vmem:[%s9884_s5 + $0xd60] sm:$0xff]  ;;  %v7325_v57 = vcombine.high %v2909_v48, %v2925_v50  ;;  %v2941_v62 = vld [vmem:[%s9884_s5 + $0xe48] sm:$0xff]  ;;  %v2543_v9 = vld [vmem:[%s9884_s5 + $0x1d8] sm:$0xff] }
 0x43b   :  { %v7331_v61 = vcombine.high %v2912_v52, %v2928_v53  ;;  %v2989_v25 = vld [vmem:[%s9884_s5 + $0xfc8] sm:$0xff]  ;;  %v6945_v35 = vcombine.high %v2527_v24, %v2543_v9  ;;  %v2559_v36 = vld [vmem:[%s9884_s5 + $0x258] sm:$0xff] }
 0x43c   :  { %6556 = vst [vmem:[%s9886_s7] sm:$0xff] %v6428_v5  ;;  %6108 = vmatpush1.bf16.msra.mxu1 %v7132_v63  ;;  %v2957_v63 = vld [vmem:[%s9884_s5 + $0xec8] sm:$0xff]  ;;  %v7324_v5 = vcombine.low %v2909_v48, %v2925_v50  ;;  %v7389_v13 = vcombine.high %v2973_v32, %v2989_v25  ;;  %v2575_v40 = vld [vmem:[%s9884_s5 + $0x2d8] sm:$0xff] }
 0x43d   :  { %6231 = vmatpush1.bf16.msra.mxu0 %v7138_v0  ;;  %6109 = vmatprep.subr.bf16.mxu1 %v7165_v1  ;;  %v2944_v0 = vld [vmem:[%s9884_s5 + $0xe60] sm:$0xff]  ;;  %v7357_v7 = vcombine.high %v2941_v62, %v2957_v63  ;;  %v6977_v48 = vcombine.high %v2559_v36, %v2575_v40 }
 0x43e   :  { %6232 = vmatprep.subr.bf16.mxu0 %v7171_v6  ;;  %v2960_v1 = vld [vmem:[%s9884_s5 + $0xee0] sm:$0xff]  ;;  %v7330_v6 = vcombine.low %v2912_v52, %v2928_v53  ;;  %v2591_v52 = vld [vmem:[%s9884_s5 + $0x358] sm:$0xff] }
 0x43f   :  { %v7363_v27 = vcombine.high %v2944_v0, %v2960_v1  ;;  %v2607_v53 = vld [vmem:[%s9884_s5 + $0x3d8] sm:$0xff] }
 0x440   :  { %6110 = vmatpush1.bf16.msra.mxu1 %v7164_v8  ;;  %v2976_v8 = vld [vmem:[%s9884_s5 + $0xf60] sm:$0xff] }
 0x441   :  { %6233 = vmatpush1.bf16.msra.mxu0 %v7170_v10  ;;  %6111 = vmatprep.subr.bf16.mxu1 %v7197_v11  ;;  %v2992_v10 = vld [vmem:[%s9884_s5 + $0xfe0] sm:$0xff]  ;;  %v7356_v11 = vcombine.low %v2941_v62, %v2957_v63  ;;  %v7009_v62 = vcombine.high %v2591_v52, %v2607_v53 }
 0x442   :  { %6234 = vmatprep.subr.bf16.mxu0 %v7203_v12  ;;  %v7362_v12 = vcombine.low %v2944_v0, %v2960_v1  ;;  %v7395_v14 = vcombine.high %v2976_v8, %v2992_v10  ;;  %v2623_v0 = vld [vmem:[%s9884_s5 + $0x458] sm:$0xff] }
 0x443   :  { %v2639_v1 = vld [vmem:[%s9884_s5 + $0x4d8] sm:$0xff] }
 0x444   :  { %6112 = vmatpush1.bf16.msra.mxu1 %v7196_v17  ;;  %v2498_v17 = vld [vmem:[%s9884_s5 + $0x70] sm:$0xff] }
 0x445   :  { %6235 = vmatpush1.bf16.msra.mxu0 %v7202_v18  ;;  %6113 = vmatprep.subr.bf16.mxu1 %v7229_v19  ;;  %v2514_v18 = vld [vmem:[%s9884_s5 + $0xf0] sm:$0xff]  ;;  %v7388_v19 = vcombine.low %v2973_v32, %v2989_v25  ;;  %v7041_v32 = vcombine.high %v2623_v0, %v2639_v1 }
 0x446   :  { %6236 = vmatprep.subr.bf16.mxu0 %v7235_v20  ;;  %v7394_v20 = vcombine.low %v2976_v8, %v2992_v10  ;;  %v6919_v22 = vcombine.high %v2498_v17, %v2514_v18  ;;  %v2655_v8 = vld [vmem:[%s9884_s5 + $0x558] sm:$0xff] }
 0x447   :  { %v2671_v10 = vld [vmem:[%s9884_s5 + $0x5d8] sm:$0xff] }
 0x448   :  { %6114 = vmatpush1.bf16.msra.mxu1 %v7228_v29  ;;  %v6912_v29 = vcombine.low %v2495_v15, %v2511_v16  ;;  %v9432_v15 = vsub.s32 7, %v8045_v43 }
 0x449   :  { %6237 = vmatpush1.bf16.msra.mxu0 %v7234_v30  ;;  %6115 = vmatprep.subr.bf16.mxu1 %v7261_v31  ;;  %v2530_v30 = vld [vmem:[%s9884_s5 + $0x170] sm:$0xff] }
 0x44a   :  { %6238 = vmatprep.subr.bf16.mxu0 %v7267_v34  ;;  %v2546_v31 = vld [vmem:[%s9884_s5 + $0x1f0] sm:$0xff]  ;;  %v6918_v34 = vcombine.low %v2498_v17, %v2514_v18  ;;  %v7073_v17 = vcombine.high %v2655_v8, %v2671_v10 }
 0x44b   :  { %v6951_v41 = vcombine.high %v2530_v30, %v2546_v31 }
 0x44c   :  { %6116 = vmatpush1.bf16.msra.mxu1 %v7260_v26  ;;  %v2562_v26 = vld [vmem:[%s9884_s5 + $0x270] sm:$0xff] }
 0x44d   :  { %6239 = vmatpush1.bf16.msra.mxu0 %v7266_v44  ;;  %6117 = vmatprep.subr.bf16.mxu1 %v7293_v45  ;;  %v2578_v44 = vld [vmem:[%s9884_s5 + $0x2f0] sm:$0xff]  ;;  %v6944_v45 = vcombine.low %v2527_v24, %v2543_v9  ;;  %v3055_v24 = vrot.slane %v9208_v2, %v8973_v58  ;;  %v3035_v9 = vrot.slane %v8984_v3, %v9432_v15 }
 0x44e   :  { %6240 = vmatprep.subr.bf16.mxu0 %v7299_v46  ;;  %v6950_v46 = vcombine.low %v2530_v30, %v2546_v31  ;;  %v6983_v50 = vcombine.high %v2562_v26, %v2578_v44  ;;  %v3059_v30 = vrot.slane %v9208_v2, %v8987_v4 }
 0x450   :  { %6118 = vmatpush1.bf16.msra.mxu1 %v7292_v54  ;;  %v2594_v54 = vld [vmem:[%s9884_s5 + $0x370] sm:$0xff] }
 0x451   :  { %6241 = vmatpush1.bf16.msra.mxu0 %v7298_v55  ;;  %6119 = vmatprep.subr.bf16.mxu1 %v7325_v57  ;;  %v2610_v55 = vld [vmem:[%s9884_s5 + $0x3f0] sm:$0xff]  ;;  %v6976_v57 = vcombine.low %v2559_v36, %v2575_v40  ;;  %v2719_v40 = vld [vmem:[%s9884_s5 + $0x758] sm:$0xff] }
 0x452   :  { %6242 = vmatprep.subr.bf16.mxu0 %v7331_v61  ;;  %v6982_v61 = vcombine.low %v2562_v26, %v2578_v44  ;;  %v7015_v63 = vcombine.high %v2594_v54, %v2610_v55 }
 0x454   :  { %6120 = vmatpush1.bf16.msra.mxu1 %v7324_v5  ;;  %v2626_v5 = vld [vmem:[%s9884_s5 + $0x470] sm:$0xff] }
 0x455   :  { %6243 = vmatpush1.bf16.msra.mxu0 %v7330_v6  ;;  %6121 = vmatprep.subr.bf16.mxu1 %v7357_v7  ;;  %v2642_v6 = vld [vmem:[%s9884_s5 + $0x4f0] sm:$0xff]  ;;  %v7008_v7 = vcombine.low %v2591_v52, %v2607_v53 }
 0x456   :  { %6244 = vmatprep.subr.bf16.mxu0 %v7363_v27  ;;  %v7014_v27 = vcombine.low %v2594_v54, %v2610_v55  ;;  %v7047_v25 = vcombine.high %v2626_v5, %v2642_v6  ;;  %v7046_v16 = vcombine.low %v2626_v5, %v2642_v6  ;;  %v2751_v6 = vld [vmem:[%s9884_s5 + $0x858] sm:$0xff] }
 0x458   :  { %6122 = vmatpush1.bf16.msra.mxu1 %v7356_v11  ;;  %v9423_v11 = vsub.s32 6, %v8045_v43  ;;  %v2690_v43 = vld [vmem:[%s9884_s5 + $0x670] sm:$0xff] }
 0x459   :  { %6245 = vmatpush1.bf16.msra.mxu0 %v7362_v12  ;;  %6123 = vmatprep.subr.bf16.mxu1 %v7389_v13  ;;  %v2658_v12 = vld [vmem:[%s9884_s5 + $0x570] sm:$0xff] }
 0x45a   :  { %6246 = vmatprep.subr.bf16.mxu0 %v7395_v14  ;;  %v2674_v13 = vld [vmem:[%s9884_s5 + $0x5f0] sm:$0xff]  ;;  %v7040_v14 = vcombine.low %v2623_v0, %v2639_v1 }
 0x45b   :  { %v7079_v18 = vcombine.high %v2658_v12, %v2674_v13  ;;  %v7078_v31 = vcombine.low %v2658_v12, %v2674_v13 }
 0x45c   :  { %6124 = vmatpush1.bf16.msra.mxu1 %v7388_v19  ;;  %v2687_v19 = vld [vmem:[%s9884_s5 + $0x658] sm:$0xff] }
 0x45d   :  { %6247 = vmatpush1.bf16.msra.mxu0 %v7394_v20  ;;  %6175 = vmatprep.subr.bf16.mxu1 %v6913_v21  ;;  %v2703_v20 = vld [vmem:[%s9884_s5 + $0x6d8] sm:$0xff]  ;;  %v3031_v21 = vrot.slane %v8984_v3, %v9423_v11 }
 0x45e   :  { %6298 = vmatprep.subr.bf16.mxu0 %v6919_v22  ;;  %v2706_v22 = vld [vmem:[%s9884_s5 + $0x6f0] sm:$0xff]  ;;  %v7104_v54 = vcombine.low %v2687_v19, %v2703_v20 }
 0x45f   :  { %6126 = vmatmul.mubr.bf16.vlgmr.msra.gmra.mrb[24].mxu1 %v8334_v38  ;;  %v7111_v36 = vcombine.high %v2690_v43, %v2706_v22 }
 0x460   :  { %6249 = vmatmul.mubr.bf16.vlgmr.msra.gmra.mrb[28].mxu0 %v8334_v38  ;;  %6176 = vmatpush1.bf16.msra.mxu1 %v6912_v29  ;;  %v7072_v29 = vcombine.low %v2655_v8, %v2671_v10  ;;  %v6437_v8 = vrot.slane %v6429_v42, %v8048_v49  ;;  %v2802_v42 = vld [vmem:[%s9884_s5 + $0x9f0] sm:$0xff] }
 0x461   :  { %6207 = vmatprep.mubr.bf16.mxu1 %v8332_v37  ;;  %6299 = vmatpush1.bf16.msra.mxu0 %v6918_v34  ;;  %v7105_v34 = vcombine.high %v2687_v19, %v2703_v20 }
 0x462   :  { %6330 = vmatprep.mubr.bf16.mxu0 %v8332_v37  ;;  %6177 = vmatprep.subr.bf16.mxu1 %v6945_v35 }
 0x463   :  { %6300 = vmatprep.subr.bf16.mxu0 %v6951_v41  ;;  %v2735_v41 = vld [vmem:[%s9884_s5 + $0x7d8] sm:$0xff] }
 0x464   :  { %6178 = vmatpush1.bf16.msra.mxu1 %v6944_v45  ;;  %v2722_v45 = vld [vmem:[%s9884_s5 + $0x770] sm:$0xff]  ;;  %v7136_v12 = vcombine.low %v2719_v40, %v2735_v41 }
 0x465   :  { %6301 = vmatpush1.bf16.msra.mxu0 %v6950_v46  ;;  %6179 = vmatprep.subr.bf16.mxu1 %v6977_v48  ;;  %v2738_v46 = vld [vmem:[%s9884_s5 + $0x7f0] sm:$0xff] }
 0x466   :  { %6302 = vmatprep.subr.bf16.mxu0 %v6983_v50  ;;  %v7143_v5 = vcombine.high %v2722_v45, %v2738_v46  ;;  %v7142_v13 = vcombine.low %v2722_v45, %v2738_v46 }
 0x468   :  { %6180 = vmatpush1.bf16.msra.mxu1 %v6976_v57 }
 0x469   :  { %6303 = vmatpush1.bf16.msra.mxu0 %v6982_v61  ;;  %6181 = vmatprep.subr.bf16.mxu1 %v7009_v62  ;;  %v7110_v62 = vcombine.low %v2690_v43, %v2706_v22  ;;  %v7207_v43 = vcombine.high %v2786_v33, %v2802_v42  ;;  %v2815_v22 = vld [vmem:[%s9884_s5 + $0xa58] sm:$0xff] }
 0x46a   :  { %6304 = vmatprep.subr.bf16.mxu0 %v7015_v63  ;;  %v7137_v63 = vcombine.high %v2719_v40, %v2735_v41  ;;  %v2863_v40 = vld [vmem:[%s9884_s5 + $0xbd8] sm:$0xff]  ;;  %v2850_v41 = vld [vmem:[%s9884_s5 + $0xb70] sm:$0xff] }
 0x46c   :  { %6182 = vmatpush1.bf16.msra.mxu1 %v7008_v7  ;;  %v2767_v7 = vld [vmem:[%s9884_s5 + $0x8d8] sm:$0xff] }
 0x46d   :  { %6305 = vmatpush1.bf16.msra.mxu0 %v7014_v27  ;;  %6183 = vmatprep.subr.bf16.mxu1 %v7041_v32  ;;  %v2754_v32 = vld [vmem:[%s9884_s5 + $0x870] sm:$0xff]  ;;  %v7168_v19 = vcombine.low %v2751_v6, %v2767_v7 }
 0x46e   :  { %6306 = vmatprep.subr.bf16.mxu0 %v7047_v25  ;;  %v2770_v25 = vld [vmem:[%s9884_s5 + $0x8f0] sm:$0xff] }
 0x46f   :  { %v7174_v20 = vcombine.low %v2754_v32, %v2770_v25 }
 0x470   :  { %6184 = vmatpush1.bf16.msra.mxu1 %v7040_v14  ;;  %v7169_v14 = vcombine.high %v2751_v6, %v2767_v7  ;;  %v2930_v6 = vld [vmem:[%s9884_s5 + $0xdf0] sm:$0xff] }
 0x471   :  { %6307 = vmatpush1.bf16.msra.mxu0 %v7046_v16  ;;  %6185 = vmatprep.subr.bf16.mxu1 %v7073_v17  ;;  %v7175_v17 = vcombine.high %v2754_v32, %v2770_v25 }
 0x472   :  { %v5881_v35 = vpop.f32.mrb[12].mxu1  ;;  %6308 = vmatprep.subr.bf16.mxu0 %v7079_v18  ;;  %v2783_v18 = vld [vmem:[%s9884_s5 + $0x958] sm:$0xff] }
 0x473   :  { %v5882_v3 = vadd.f32 %v5881_v35, %v3031_v21  ;;  %v6004_v26 = vpop.f32.mrb[16].mxu0  ;;  %v5883_v44 = vpop.f32.mrb[13].mxu1  ;;  %v7201_v21 = vcombine.high %v2783_v18, %v2799_v28 }
 0x474   :  { %v9466_v48 = vadd.f32 %v6004_v26, %v3055_v24  ;;  %v5884_v50 = vadd.f32 %v5883_v44, %v3035_v9  ;;  %v6006_v52 = vpop.f32.mrb[17].mxu0  ;;  %v5885_v53 = vpop.f32.mrb[14].mxu1  ;;  %6186 = vmatpush1.bf16.msra.mxu1 %v7072_v29  ;;  %v2831_v24 = vld [vmem:[%s9884_s5 + $0xad8] sm:$0xff]  ;;  %v2818_v9 = vld [vmem:[%s9884_s5 + $0xa70] sm:$0xff] }
 0x475   :  { %v9468_v55 = vadd.f32 %v6006_v52, %v3059_v30  ;;  %v6008_v57 = vpop.f32.mrb[18].mxu0  ;;  %6309 = vmatpush1.bf16.msra.mxu0 %v7078_v31  ;;  %v5886_v61 = vpop.f32.mrb[15].mxu1  ;;  %6187 = vmatprep.subr.bf16.mxu1 %v7105_v34  ;;  %v2834_v29 = vld [vmem:[%s9884_s5 + $0xaf0] sm:$0xff]  ;;  %v7200_v30 = vcombine.low %v2783_v18, %v2799_v28  ;;  %v7206_v31 = vcombine.low %v2786_v33, %v2802_v42  ;;  %v2895_v52 = vld [vmem:[%s9884_s5 + $0xcd8] sm:$0xff] }
 0x476   :  { %v6430_v0 = vcombine.low %v5882_v3, %v5884_v50  ;;  %v6009_v1 = vpop.f32.mrb[19].mxu0  ;;  %6310 = vmatprep.subr.bf16.mxu0 %v7111_v36  ;;  %v7233_v34 = vcombine.high %v2815_v22, %v2831_v24  ;;  %v7239_v35 = vcombine.high %v2818_v9, %v2834_v29  ;;  %v2847_v36 = vld [vmem:[%s9884_s5 + $0xb58] sm:$0xff]  ;;  %v2866_v3 = vld [vmem:[%s9884_s5 + $0xbf0] sm:$0xff]  ;;  %v7232_v26 = vcombine.low %v2815_v22, %v2831_v24 }
 0x477   :  { %v6463_v27 = vcombine.low %v9466_v48, %v9468_v55  ;;  %v7238_v44 = vcombine.low %v2818_v9, %v2834_v29  ;;  %v7265_v45 = vcombine.high %v2847_v36, %v2863_v40  ;;  %v7271_v46 = vcombine.high %v2850_v41, %v2866_v3  ;;  %v2879_v50 = vld [vmem:[%s9884_s5 + $0xc58] sm:$0xff]  ;;  %v2882_v53 = vld [vmem:[%s9884_s5 + $0xc70] sm:$0xff]  ;;  %v2497_v9 = vld [vmem:[%s9884_s5 + $0x68] sm:$0xff] }
 0x478   :  { %v6444_v10 = vrot.slane %v6430_v0, %v8048_v49  ;;  %6188 = vmatpush1.bf16.msra.mxu1 %v7104_v54  ;;  %v2898_v54 = vld [vmem:[%s9884_s5 + $0xcf0] sm:$0xff]  ;;  %v7264_v57 = vcombine.low %v2847_v36, %v2863_v40  ;;  %v7270_v61 = vcombine.low %v2850_v41, %v2866_v3  ;;  %v2911_v0 = vld [vmem:[%s9884_s5 + $0xd58] sm:$0xff]  ;;  %v7296_v7 = vcombine.low %v2879_v50, %v2895_v52  ;;  %v2513_v29 = vld [vmem:[%s9884_s5 + $0xe8] sm:$0xff] }
 0x479   :  { %6311 = vmatpush1.bf16.msra.mxu0 %v7110_v62  ;;  %6189 = vmatprep.subr.bf16.mxu1 %v7137_v63  ;;  %v7297_v62 = vcombine.high %v2879_v50, %v2895_v52  ;;  %v7303_v63 = vcombine.high %v2882_v53, %v2898_v54  ;;  %v2927_v1 = vld [vmem:[%s9884_s5 + $0xdd8] sm:$0xff]  ;;  %v7302_v32 = vcombine.low %v2882_v53, %v2898_v54  ;;  %v2545_v36 = vld [vmem:[%s9884_s5 + $0x1e8] sm:$0xff] }
 0x47a   :  { %v6445_v16 = vcombine.low %v6437_v8, %v6444_v10  ;;  %6312 = vmatprep.subr.bf16.mxu0 %v7143_v5  ;;  %v2914_v5 = vld [vmem:[%s9884_s5 + $0xd70] sm:$0xff]  ;;  %v7329_v25 = vcombine.high %v2911_v0, %v2927_v1  ;;  %v2943_v10 = vld [vmem:[%s9884_s5 + $0xe58] sm:$0xff]  ;;  %v6916_v40 = vcombine.low %v2497_v9, %v2513_v29  ;;  %v2561_v3 = vld [vmem:[%s9884_s5 + $0x268] sm:$0xff] }
 0x47b   :  { %v7335_v8 = vcombine.high %v2914_v5, %v2930_v6  ;;  %v2975_v33 = vld [vmem:[%s9884_s5 + $0xf58] sm:$0xff]  ;;  %v2609_v50 = vld [vmem:[%s9884_s5 + $0x3e8] sm:$0xff] }
 0x47c   :  { %6557 = vst [vmem:[%s9886_s7 + $0x8] sm:$0xff] %v6445_v16  ;;  %6190 = vmatpush1.bf16.msra.mxu1 %v7136_v12  ;;  %v2959_v12 = vld [vmem:[%s9884_s5 + $0xed8] sm:$0xff]  ;;  %v7328_v16 = vcombine.low %v2911_v0, %v2927_v1  ;;  %v2625_v54 = vld [vmem:[%s9884_s5 + $0x468] sm:$0xff] }
 0x47d   :  { %6313 = vmatpush1.bf16.msra.mxu0 %v7142_v13  ;;  %6191 = vmatprep.subr.bf16.mxu1 %v7169_v14  ;;  %v2946_v13 = vld [vmem:[%s9884_s5 + $0xe70] sm:$0xff]  ;;  %v7361_v18 = vcombine.high %v2943_v10, %v2959_v12  ;;  %v2991_v42 = vld [vmem:[%s9884_s5 + $0xfd8] sm:$0xff]  ;;  %v2673_v0 = vld [vmem:[%s9884_s5 + $0x5e8] sm:$0xff] }
 0x47e   :  { %6314 = vmatprep.subr.bf16.mxu0 %v7175_v17  ;;  %v2962_v14 = vld [vmem:[%s9884_s5 + $0xef0] sm:$0xff]  ;;  %v7334_v17 = vcombine.low %v2914_v5, %v2930_v6  ;;  %v7393_v22 = vcombine.high %v2975_v33, %v2991_v42 }
 0x47f   :  { %v7367_v28 = vcombine.high %v2946_v13, %v2962_v14  ;;  %v9618_v5 = vld [vmem:[%s9885_s6 + $0x10] sm:$0xff] }
 0x480   :  { %6192 = vmatpush1.bf16.msra.mxu1 %v7168_v19  ;;  %v2978_v19 = vld [vmem:[%s9884_s5 + $0xf70] sm:$0xff] }
 0x481   :  { %6315 = vmatpush1.bf16.msra.mxu0 %v7174_v20  ;;  %6193 = vmatprep.subr.bf16.mxu1 %v7201_v21  ;;  %v2994_v20 = vld [vmem:[%s9884_s5 + $0xff0] sm:$0xff]  ;;  %v7360_v21 = vcombine.low %v2943_v10, %v2959_v12  ;;  %v3051_v10 = vrot.slane %v9208_v2, %v8173_v60 }
 0x482   :  { %6316 = vmatprep.subr.bf16.mxu0 %v7207_v43  ;;  %v7366_v43 = vcombine.low %v2946_v13, %v2962_v14  ;;  %v7399_v24 = vcombine.high %v2978_v19, %v2994_v20  ;;  %v3075_v13 = vrot.slane %v9618_v5, %v8170_v59 }
 0x484   :  { %6194 = vmatpush1.bf16.msra.mxu1 %v7200_v30  ;;  %v7392_v30 = vcombine.low %v2975_v33, %v2991_v42 }
 0x485   :  { %6317 = vmatpush1.bf16.msra.mxu0 %v7206_v31  ;;  %6195 = vmatprep.subr.bf16.mxu1 %v7233_v34  ;;  %v7398_v31 = vcombine.low %v2978_v19, %v2994_v20  ;;  %v6917_v34 = vcombine.high %v2497_v9, %v2513_v29 }
 0x486   :  { %6318 = vmatprep.subr.bf16.mxu0 %v7239_v35  ;;  %v2529_v35 = vld [vmem:[%s9884_s5 + $0x168] sm:$0xff] }
 0x487   :  { %v6949_v41 = vcombine.high %v2529_v35, %v2545_v36 }
 0x488   :  { %6196 = vmatpush1.bf16.msra.mxu1 %v7232_v26  ;;  %v2577_v26 = vld [vmem:[%s9884_s5 + $0x2e8] sm:$0xff] }
 0x489   :  { %6319 = vmatpush1.bf16.msra.mxu0 %v7238_v44  ;;  %6197 = vmatprep.subr.bf16.mxu1 %v7265_v45  ;;  %v6948_v44 = vcombine.low %v2529_v35, %v2545_v36  ;;  %v6981_v45 = vcombine.high %v2561_v3, %v2577_v26  ;;  %v6980_v52 = vcombine.low %v2561_v3, %v2577_v26  ;;  %v2769_v35 = vld [vmem:[%s9884_s5 + $0x8e8] sm:$0xff] }
 0x48a   :  { %6320 = vmatprep.subr.bf16.mxu0 %v7271_v46  ;;  %v2593_v46 = vld [vmem:[%s9884_s5 + $0x368] sm:$0xff] }
 0x48b   :  { %v7013_v53 = vcombine.high %v2593_v46, %v2609_v50 }
 0x48c   :  { %6198 = vmatpush1.bf16.msra.mxu1 %v7264_v57  ;;  %v2641_v57 = vld [vmem:[%s9884_s5 + $0x4e8] sm:$0xff] }
 0x48d   :  { %6321 = vmatpush1.bf16.msra.mxu0 %v7270_v61  ;;  %6199 = vmatprep.subr.bf16.mxu1 %v7297_v62  ;;  %v7012_v61 = vcombine.low %v2593_v46, %v2609_v50  ;;  %v7045_v62 = vcombine.high %v2625_v54, %v2641_v57  ;;  %v7044_v1 = vcombine.low %v2625_v54, %v2641_v57  ;;  %v2801_v46 = vld [vmem:[%s9884_s5 + $0x9e8] sm:$0xff] }
 0x48e   :  { %6322 = vmatprep.subr.bf16.mxu0 %v7303_v63  ;;  %v2657_v63 = vld [vmem:[%s9884_s5 + $0x568] sm:$0xff] }
 0x48f   :  { %v7077_v6 = vcombine.high %v2657_v63, %v2673_v0  ;;  %v7076_v12 = vcombine.low %v2657_v63, %v2673_v0  ;;  %v2833_v50 = vld [vmem:[%s9884_s5 + $0xae8] sm:$0xff] }
 0x490   :  { %6200 = vmatpush1.bf16.msra.mxu1 %v7296_v7  ;;  %v2689_v7 = vld [vmem:[%s9884_s5 + $0x668] sm:$0xff] }
 0x491   :  { %6323 = vmatpush1.bf16.msra.mxu0 %v7302_v32  ;;  %6201 = vmatprep.subr.bf16.mxu1 %v7329_v25  ;;  %v2705_v32 = vld [vmem:[%s9884_s5 + $0x6e8] sm:$0xff]  ;;  %v3047_v25 = vrot.slane %v9208_v2, %v8190_v47 }
 0x492   :  { %6324 = vmatprep.subr.bf16.mxu0 %v7335_v8  ;;  %v3071_v8 = vrot.slane %v9618_v5, %v8162_v56  ;;  %v7109_v14 = vcombine.high %v2689_v7, %v2705_v32  ;;  %v2849_v54 = vld [vmem:[%s9884_s5 + $0xb68] sm:$0xff] }
 0x493   :  { %v2865_v57 = vld [vmem:[%s9884_s5 + $0xbe8] sm:$0xff] }
 0x494   :  { %6202 = vmatpush1.bf16.msra.mxu1 %v7328_v16  ;;  %v2881_v63 = vld [vmem:[%s9884_s5 + $0xc68] sm:$0xff] }
 0x495   :  { %6325 = vmatpush1.bf16.msra.mxu0 %v7334_v17  ;;  %6203 = vmatprep.subr.bf16.mxu1 %v7361_v18  ;;  %v2721_v17 = vld [vmem:[%s9884_s5 + $0x768] sm:$0xff] }
 0x496   :  { %6326 = vmatprep.subr.bf16.mxu0 %v7367_v28  ;;  %v2737_v18 = vld [vmem:[%s9884_s5 + $0x7e8] sm:$0xff] }
 0x497   :  { %v7141_v29 = vcombine.high %v2721_v17, %v2737_v18  ;;  %v7140_v3 = vcombine.low %v2721_v17, %v2737_v18  ;;  %v2897_v0 = vld [vmem:[%s9884_s5 + $0xce8] sm:$0xff] }
 0x498   :  { %6204 = vmatpush1.bf16.msra.mxu1 %v7360_v21  ;;  %v2993_v17 = vld [vmem:[%s9884_s5 + $0xfe8] sm:$0xff] }
 0x499   :  { %6327 = vmatpush1.bf16.msra.mxu0 %v7366_v43  ;;  %6205 = vmatprep.subr.bf16.mxu1 %v7393_v22  ;;  %v7108_v43 = vcombine.low %v2689_v7, %v2705_v32  ;;  %v2913_v7 = vld [vmem:[%s9884_s5 + $0xd68] sm:$0xff] }
 0x49a   :  { %6328 = vmatprep.subr.bf16.mxu0 %v7399_v24  ;;  %v2929_v32 = vld [vmem:[%s9884_s5 + $0xde8] sm:$0xff] }
 0x49c   :  { %6206 = vmatpush1.bf16.msra.mxu1 %v7392_v30 }
 0x49d   :  { %6329 = vmatpush1.bf16.msra.mxu0 %v7398_v31  ;;  %6257 = vmatprep.subr.bf16.mxu1 %v6917_v34  ;;  %v2753_v34 = vld [vmem:[%s9884_s5 + $0x868] sm:$0xff] }
 0x49e   :  { %v7173_v26 = vcombine.high %v2753_v34, %v2769_v35  ;;  %v7172_v23 = vcombine.low %v2753_v34, %v2769_v35  ;;  %v2595_v35 = vld [vmem:[%s9884_s5 + $0x378] sm:$0xff] }
 0x49f   :  { %6208 = vmatmul.mubr.bf16.vlgmr.msra.gmra.mrb[28].mxu1 %v8334_v38 }
 0x4a0   :  { %6331 = vmatmul.mubr.bf16.vlgmr.msra.gmra.mrb[32].mxu0 %v8334_v38  ;;  %6258 = vmatpush1.bf16.msra.mxu1 %v6916_v40  ;;  %v6454_v40 = vrot.slane %v6446_v51, %v8048_v49  ;;  %v2817_v51 = vld [vmem:[%s9884_s5 + $0xa68] sm:$0xff] }
 0x4a1   :  { %6289 = vmatprep.mubr.bf16.mxu1 %v8332_v37  ;;  %6259 = vmatprep.subr.bf16.mxu1 %v6949_v41 }
 0x4a4   :  { %6260 = vmatpush1.bf16.msra.mxu1 %v6948_v44 }
 0x4a5   :  { %6261 = vmatprep.subr.bf16.mxu1 %v6981_v45  ;;  %v2785_v45 = vld [vmem:[%s9884_s5 + $0x968] sm:$0xff] }
 0x4a6   :  { %v7205_v39 = vcombine.high %v2785_v45, %v2801_v46 }
 0x4a8   :  { %6262 = vmatpush1.bf16.msra.mxu1 %v6980_v52  ;;  %v7204_v52 = vcombine.low %v2785_v45, %v2801_v46  ;;  %v2659_v46 = vld [vmem:[%s9884_s5 + $0x578] sm:$0xff] }
 0x4a9   :  { %6263 = vmatprep.subr.bf16.mxu1 %v7013_v53  ;;  %v7237_v53 = vcombine.high %v2817_v51, %v2833_v50 }
 0x4ac   :  { %6264 = vmatpush1.bf16.msra.mxu1 %v7012_v61  ;;  %v7236_v61 = vcombine.low %v2817_v51, %v2833_v50  ;;  %v2691_v50 = vld [vmem:[%s9884_s5 + $0x678] sm:$0xff] }
 0x4ad   :  { %6265 = vmatprep.subr.bf16.mxu1 %v7045_v62  ;;  %v7269_v62 = vcombine.high %v2849_v54, %v2865_v57 }
 0x4b0   :  { %6266 = vmatpush1.bf16.msra.mxu1 %v7044_v1  ;;  %v7268_v1 = vcombine.low %v2849_v54, %v2865_v57  ;;  %v3087_v57 = vrot.slane %v9618_v5, %v8973_v58 }
 0x4b1   :  { %6267 = vmatprep.subr.bf16.mxu1 %v7077_v6  ;;  %v7301_v6 = vcombine.high %v2881_v63, %v2897_v0 }
 0x4b2   :  { %v5963_v16 = vpop.f32.mrb[16].mxu1 }
 0x4b3   :  { %v5964_v28 = vadd.f32 %v5963_v16, %v3047_v25  ;;  %v6086_v33 = vpop.f32.mrb[20].mxu0  ;;  %v5965_v42 = vpop.f32.mrb[17].mxu1  ;;  %v7300_v25 = vcombine.low %v2881_v63, %v2897_v0  ;;  %v2977_v16 = vld [vmem:[%s9884_s5 + $0xf68] sm:$0xff]  ;;  %v3091_v63 = vrot.slane %v9618_v5, %v8987_v4 }
 0x4b4   :  { %v9640_v19 = vadd.f32 %v6086_v33, %v3071_v8  ;;  %v5966_v2 = vadd.f32 %v5965_v42, %v3051_v10  ;;  %v6088_v20 = vpop.f32.mrb[21].mxu0  ;;  %v5967_v21 = vpop.f32.mrb[18].mxu1  ;;  %6268 = vmatpush1.bf16.msra.mxu1 %v7076_v12  ;;  %v7333_v8 = vcombine.high %v2913_v7, %v2929_v32  ;;  %v2945_v10 = vld [vmem:[%s9884_s5 + $0xe68] sm:$0xff]  ;;  %v2499_v33 = vld [vmem:[%s9884_s5 + $0x78] sm:$0xff] }
 0x4b5   :  { %v9642_v22 = vadd.f32 %v6088_v20, %v3075_v13  ;;  %v6090_v24 = vpop.f32.mrb[22].mxu0  ;;  %v5968_v9 = vpop.f32.mrb[19].mxu1  ;;  %6269 = vmatprep.subr.bf16.mxu1 %v7109_v14  ;;  %v2961_v12 = vld [vmem:[%s9884_s5 + $0xee8] sm:$0xff]  ;;  %v7332_v13 = vcombine.low %v2913_v7, %v2929_v32  ;;  %v2515_v42 = vld [vmem:[%s9884_s5 + $0xf8] sm:$0xff] }
 0x4b6   :  { %v6447_v30 = vcombine.low %v5964_v28, %v5966_v2  ;;  %v6091_v31 = vpop.f32.mrb[23].mxu0  ;;  %v7365_v14 = vcombine.high %v2945_v10, %v2961_v12  ;;  %v7364_v18 = vcombine.low %v2945_v10, %v2961_v12  ;;  %v7397_v28 = vcombine.high %v2977_v16, %v2993_v17  ;;  %v2531_v21 = vld [vmem:[%s9884_s5 + $0x178] sm:$0xff] }
 0x4b7   :  { %v6480_v36 = vcombine.low %v9640_v19, %v9642_v22  ;;  %v7396_v2 = vcombine.low %v2977_v16, %v2993_v17  ;;  %v6921_v20 = vcombine.high %v2499_v33, %v2515_v42  ;;  %v6920_v24 = vcombine.low %v2499_v33, %v2515_v42  ;;  %v2739_v7 = vld [vmem:[%s9884_s5 + $0x7f8] sm:$0xff] }
 0x4b8   :  { %v6461_v41 = vrot.slane %v6447_v30, %v8048_v49  ;;  %6270 = vmatpush1.bf16.msra.mxu1 %v7108_v43  ;;  %v2547_v43 = vld [vmem:[%s9884_s5 + $0x1f8] sm:$0xff] }
 0x4b9   :  { %6271 = vmatprep.subr.bf16.mxu1 %v7141_v29  ;;  %v6953_v9 = vcombine.high %v2531_v21, %v2547_v43  ;;  %v2563_v29 = vld [vmem:[%s9884_s5 + $0x278] sm:$0xff]  ;;  %v6952_v31 = vcombine.low %v2531_v21, %v2547_v43 }
 0x4ba   :  { %v6462_v44 = vcombine.low %v6454_v40, %v6461_v41  ;;  %v2579_v30 = vld [vmem:[%s9884_s5 + $0x2f8] sm:$0xff] }
 0x4bb   :  { %v6985_v34 = vcombine.high %v2563_v29, %v2579_v30  ;;  %v2611_v40 = vld [vmem:[%s9884_s5 + $0x3f8] sm:$0xff]  ;;  %v6984_v41 = vcombine.low %v2563_v29, %v2579_v30 }
 0x4bc   :  { %6558 = vst [vmem:[%s9886_s7 + $0x10] sm:$0xff] %v6462_v44  ;;  %6272 = vmatpush1.bf16.msra.mxu1 %v7140_v3  ;;  %v7017_v3 = vcombine.high %v2595_v35, %v2611_v40  ;;  %v7016_v44 = vcombine.low %v2595_v35, %v2611_v40  ;;  %v2771_v21 = vld [vmem:[%s9884_s5 + $0x8f8] sm:$0xff] }
 0x4bd   :  { %6273 = vmatprep.subr.bf16.mxu1 %v7173_v26  ;;  %v2627_v26 = vld [vmem:[%s9884_s5 + $0x478] sm:$0xff] }
 0x4be   :  { %v2803_v35 = vld [vmem:[%s9884_s5 + $0x9f8] sm:$0xff] }
 0x4bf   :  { %v2835_v40 = vld [vmem:[%s9884_s5 + $0xaf8] sm:$0xff] }
 0x4c0   :  { %6274 = vmatpush1.bf16.msra.mxu1 %v7172_v23  ;;  %v2675_v23 = vld [vmem:[%s9884_s5 + $0x5f8] sm:$0xff] }
 0x4c1   :  { %6275 = vmatprep.subr.bf16.mxu1 %v7205_v39  ;;  %v7081_v51 = vcombine.high %v2659_v46, %v2675_v23 }
 0x4c4   :  { %6276 = vmatpush1.bf16.msra.mxu1 %v7204_v52  ;;  %v2707_v52 = vld [vmem:[%s9884_s5 + $0x6f8] sm:$0xff] }
 0x4c5   :  { %6277 = vmatprep.subr.bf16.mxu1 %v7237_v53  ;;  %v7925_v53 = vld [vmem:[%s9885_s6 + $0x8] sm:$0xff]  ;;  %v7113_v0 = vcombine.high %v2691_v50, %v2707_v52  ;;  %v7112_v16 = vcombine.low %v2691_v50, %v2707_v52  ;;  %v2915_v50 = vld [vmem:[%s9884_s5 + $0xd78] sm:$0xff] }
 0x4c6   :  { %v3063_v54 = vrot.slane %v7925_v53, %v9423_v11  ;;  %v2931_v52 = vld [vmem:[%s9884_s5 + $0xdf8] sm:$0xff] }
 0x4c8   :  { %6278 = vmatpush1.bf16.msra.mxu1 %v7236_v61  ;;  %v3067_v61 = vrot.slane %v7925_v53, %v9432_v15 }
 0x4c9   :  { %6279 = vmatprep.subr.bf16.mxu1 %v7269_v62  ;;  %v7080_v62 = vcombine.low %v2659_v46, %v2675_v23  ;;  %v2883_v46 = vld [vmem:[%s9884_s5 + $0xc78] sm:$0xff] }
 0x4ca   :  { %v2899_v23 = vld [vmem:[%s9884_s5 + $0xcf8] sm:$0xff] }
 0x4cb   :  { %v7304_v53 = vcombine.low %v2883_v46, %v2899_v23 }
 0x4cc   :  { %6280 = vmatpush1.bf16.msra.mxu1 %v7268_v1 }
 0x4cd   :  { %6281 = vmatprep.subr.bf16.mxu1 %v7301_v6  ;;  %v2723_v6 = vld [vmem:[%s9884_s5 + $0x778] sm:$0xff] }
 0x4ce   :  { %v7145_v33 = vcombine.high %v2723_v6, %v2739_v7  ;;  %v7144_v29 = vcombine.low %v2723_v6, %v2739_v7 }
 0x4d0   :  { %6282 = vmatpush1.bf16.msra.mxu1 %v7300_v25 }
 0x4d1   :  { %6283 = vmatprep.subr.bf16.mxu1 %v7333_v8 }
 0x4d4   :  { %6284 = vmatpush1.bf16.msra.mxu1 %v7332_v13 }
 0x4d5   :  { %6285 = vmatprep.subr.bf16.mxu1 %v7365_v14 }
 0x4d8   :  { %6286 = vmatpush1.bf16.msra.mxu1 %v7364_v18 }
 0x4d9   :  { %6287 = vmatprep.subr.bf16.mxu1 %v7397_v28 }
 0x4dc   :  { %6288 = vmatpush1.bf16.msra.mxu1 %v7396_v2 }
 0x4dd   :  { %6339 = vmatprep.subr.bf16.mxu1 %v6921_v20  ;;  %v2755_v20 = vld [vmem:[%s9884_s5 + $0x878] sm:$0xff] }
 0x4de   :  { %v7177_v30 = vcombine.high %v2755_v20, %v2771_v21  ;;  %v7176_v48 = vcombine.low %v2755_v20, %v2771_v21 }
 0x4df   :  { %6290 = vmatmul.mubr.bf16.vlgmr.msra.gmra.mrb[32].mxu1 %v8334_v38 }
 0x4e0   :  { %6340 = vmatpush1.bf16.msra.mxu1 %v6920_v24  ;;  %6371 = vmatprep.mubr.bf16.mxu1 %v8332_v37  ;;  %v2643_v37 = vld [vmem:[%s9884_s5 + $0x4f8] sm:$0xff]  ;;  %v6471_v24 = vrot.slane %v6463_v27, %v8048_v49 }
 0x4e1   :  { %6341 = vmatprep.subr.bf16.mxu1 %v6953_v9  ;;  %v7049_v45 = vcombine.high %v2627_v26, %v2643_v37  ;;  %v7048_v39 = vcombine.low %v2627_v26, %v2643_v37  ;;  %v2819_v27 = vld [vmem:[%s9884_s5 + $0xa78] sm:$0xff] }
 0x4e2   :  { %v2851_v26 = vld [vmem:[%s9884_s5 + $0xb78] sm:$0xff] }
 0x4e3   :  { %v2867_v37 = vld [vmem:[%s9884_s5 + $0xbf8] sm:$0xff] }
 0x4e4   :  { %6342 = vmatpush1.bf16.msra.mxu1 %v6952_v31 }
 0x4e5   :  { %6343 = vmatprep.subr.bf16.mxu1 %v6985_v34  ;;  %v2787_v34 = vld [vmem:[%s9884_s5 + $0x978] sm:$0xff] }
 0x4e6   :  { %v7209_v55 = vcombine.high %v2787_v34, %v2803_v35 }
 0x4e8   :  { %6344 = vmatpush1.bf16.msra.mxu1 %v6984_v41  ;;  %v7208_v41 = vcombine.low %v2787_v34, %v2803_v35  ;;  %v3095_v35 = vrot.slane %v9618_v5, %v9423_v11 }
 0x4e9   :  { %6345 = vmatprep.subr.bf16.mxu1 %v7017_v3  ;;  %v7241_v3 = vcombine.high %v2819_v27, %v2835_v40 }
 0x4ec   :  { %6346 = vmatpush1.bf16.msra.mxu1 %v7016_v44  ;;  %v7240_v44 = vcombine.low %v2819_v27, %v2835_v40 }
 0x4ed   :  { %6347 = vmatprep.subr.bf16.mxu1 %v7049_v45  ;;  %v7273_v45 = vcombine.high %v2851_v26, %v2867_v37 }
 0x4f0   :  { %6348 = vmatpush1.bf16.msra.mxu1 %v7048_v39  ;;  %v7272_v39 = vcombine.low %v2851_v26, %v2867_v37 }
 0x4f1   :  { %6349 = vmatprep.subr.bf16.mxu1 %v7081_v51  ;;  %v7305_v51 = vcombine.high %v2883_v46, %v2899_v23 }
 0x4f2   :  { %v6045_v1 = vpop.f32.mrb[20].mxu1 }
 0x4f3   :  { %v6046_v32 = vadd.f32 %v6045_v1, %v3063_v54  ;;  %v6168_v25 = vpop.f32.mrb[24].mxu0  ;;  %v6047_v8 = vpop.f32.mrb[21].mxu1  ;;  %v7337_v54 = vcombine.high %v2915_v50, %v2931_v52  ;;  %v2995_v1 = vld [vmem:[%s9884_s5 + $0xff8] sm:$0xff] }
 0x4f4   :  { %v9761_v10 = vadd.f32 %v6168_v25, %v3087_v57  ;;  %v6048_v12 = vadd.f32 %v6047_v8, %v3067_v61  ;;  %v6170_v13 = vpop.f32.mrb[25].mxu0  ;;  %v6049_v14 = vpop.f32.mrb[22].mxu1  ;;  %6350 = vmatpush1.bf16.msra.mxu1 %v7080_v62  ;;  %v2947_v57 = vld [vmem:[%s9884_s5 + $0xe78] sm:$0xff]  ;;  %v7336_v62 = vcombine.low %v2915_v50, %v2931_v52  ;;  %v3079_v8 = vrot.slane %v9618_v5, %v8190_v47 }
 0x4f5   :  { %v9763_v17 = vadd.f32 %v6170_v13, %v3091_v63  ;;  %v6172_v18 = vpop.f32.mrb[26].mxu0  ;;  %v6050_v28 = vpop.f32.mrb[23].mxu1  ;;  %6351 = vmatprep.subr.bf16.mxu1 %v7113_v0  ;;  %v2963_v61 = vld [vmem:[%s9884_s5 + $0xef8] sm:$0xff]  ;;  %v3083_v13 = vrot.slane %v9618_v5, %v8173_v60 }
 0x4f6   :  { %v6464_v42 = vcombine.low %v6046_v32, %v6048_v12  ;;  %v6173_v2 = vpop.f32.mrb[27].mxu0  ;;  %v7369_v63 = vcombine.high %v2947_v57, %v2963_v61  ;;  %v2979_v0 = vld [vmem:[%s9884_s5 + $0xf78] sm:$0xff]  ;;  %v7368_v6 = vcombine.low %v2947_v57, %v2963_v61 }
 0x4f7   :  { %v6497_v43 = vcombine.low %v9761_v10, %v9763_v17  ;;  %v7401_v7 = vcombine.high %v2979_v0, %v2995_v1  ;;  %v7400_v32 = vcombine.low %v2979_v0, %v2995_v1  ;;  %v9827_v25 = vld [vmem:[%s9885_s6 + $0x18] sm:$0xff] }
 0x4f8   :  { %v6478_v9 = vrot.slane %v6464_v42, %v8048_v49  ;;  %6352 = vmatpush1.bf16.msra.mxu1 %v7112_v16  ;;  %v3103_v12 = vrot.slane %v9827_v25, %v8162_v56  ;;  %v3107_v14 = vrot.slane %v9827_v25, %v8170_v59  ;;  %v3123_v19 = vrot.slane %v9827_v25, %v8987_v4 }
 0x4f9   :  { %6353 = vmatprep.subr.bf16.mxu1 %v7145_v33  ;;  %v3111_v50 = vrot.slane %v9827_v25, %v8190_v47  ;;  %v3115_v52 = vrot.slane %v9827_v25, %v8173_v60  ;;  %v3127_v47 = vrot.slane %v9827_v25, %v9423_v11  ;;  %v3131_v60 = vrot.slane %v9827_v25, %v9432_v15 }
 0x4fa   :  { %v6479_v31 = vcombine.low %v6471_v24, %v6478_v9 }
 0x4fc   :  { %6559 = vst [vmem:[%s9886_s7 + $0x18] sm:$0xff] %v6479_v31  ;;  %6354 = vmatpush1.bf16.msra.mxu1 %v7144_v29  ;;  %v6488_v31 = vrot.slane %v6480_v36, %v8048_v49 }
 0x4fd   :  { %6355 = vmatprep.subr.bf16.mxu1 %v7177_v30 }
 0x500   :  { %6356 = vmatpush1.bf16.msra.mxu1 %v7176_v48  ;;  %v3119_v48 = vrot.slane %v9827_v25, %v8973_v58 }
 0x501   :  { %6357 = vmatprep.subr.bf16.mxu1 %v7209_v55  ;;  %v3099_v55 = vrot.slane %v9618_v5, %v9432_v15  ;;  %v6505_v5 = vrot.slane %v6497_v43, %v8048_v49 }
 0x504   :  { %6358 = vmatpush1.bf16.msra.mxu1 %v7208_v41 }
 0x505   :  { %6359 = vmatprep.subr.bf16.mxu1 %v7241_v3 }
 0x508   :  { %6360 = vmatpush1.bf16.msra.mxu1 %v7240_v44 }
 0x509   :  { %6361 = vmatprep.subr.bf16.mxu1 %v7273_v45 }
 0x50c   :  { %6362 = vmatpush1.bf16.msra.mxu1 %v7272_v39 }
 0x50d   :  { %6363 = vmatprep.subr.bf16.mxu1 %v7305_v51 }
 0x510   :  { %6364 = vmatpush1.bf16.msra.mxu1 %v7304_v53 }
 0x511   :  { %6365 = vmatprep.subr.bf16.mxu1 %v7337_v54 }
 0x514   :  { %6366 = vmatpush1.bf16.msra.mxu1 %v7336_v62 }
 0x515   :  { %6367 = vmatprep.subr.bf16.mxu1 %v7369_v63 }
 0x518   :  { %6368 = vmatpush1.bf16.msra.mxu1 %v7368_v6 }
 0x519   :  { %6369 = vmatprep.subr.bf16.mxu1 %v7401_v7 }
 0x51c   :  { %6370 = vmatpush1.bf16.msra.mxu1 %v7400_v32 }
 0x51f   :  { %6372 = vmatmul.mubr.bf16.vlgmr.msra.gmra.mrb[36].mxu1 %v8334_v38 }
 0x532   :  { %v6127_v16 = vpop.f32.mrb[24].mxu1 }
 0x533   :  { %v6128_v18 = vadd.f32 %v6127_v16, %v3079_v8  ;;  %v6250_v38 = vpop.f32.mrb[28].mxu0  ;;  %v6129_v28 = vpop.f32.mrb[25].mxu1 }
 0x534   :  { %v6251_v33 = vadd.f32 %v6250_v38, %v3103_v12  ;;  %v6130_v42 = vadd.f32 %v6129_v28, %v3083_v13  ;;  %v6252_v2 = vpop.f32.mrb[29].mxu0  ;;  %v6131_v20 = vpop.f32.mrb[26].mxu1 }
 0x535   :  { %v6253_v21 = vadd.f32 %v6252_v2, %v3107_v14  ;;  %v6254_v24 = vpop.f32.mrb[30].mxu0  ;;  %v6132_v9 = vpop.f32.mrb[27].mxu1 }
 0x536   :  { %v6481_v29 = vcombine.low %v6128_v18, %v6130_v42  ;;  %v6255_v30 = vpop.f32.mrb[31].mxu0 }
 0x537   :  { %v6514_v56 = vcombine.low %v6251_v33, %v6253_v21 }
 0x538   :  { %v6495_v59 = vrot.slane %v6481_v29, %v8048_v49 }
 0x539   :  { %v6522_v43 = vrot.slane %v6514_v56, %v8048_v49 }
 0x53a   :  { %v6496_v34 = vcombine.low %v6488_v31, %v6495_v59 }
 0x53c   :  { %6560 = vst [vmem:[%s9886_s7 + $0x20] sm:$0xff] %v6496_v34 }
 0x572   :  { %v6209_v22 = vpop.f32.mrb[28].mxu1 }
 0x573   :  { %v6210_v36 = vadd.f32 %v6209_v22, %v3095_v35  ;;  %v6332_v27 = vpop.f32.mrb[32].mxu0  ;;  %v6211_v40 = vpop.f32.mrb[29].mxu1 }
 0x574   :  { %v6333_v41 = vadd.f32 %v6332_v27, %v3119_v48  ;;  %v6212_v3 = vadd.f32 %v6211_v40, %v3099_v55  ;;  %v6334_v26 = vpop.f32.mrb[33].mxu0  ;;  %v6213_v37 = vpop.f32.mrb[30].mxu1 }
 0x575   :  { %v6335_v44 = vadd.f32 %v6334_v26, %v3123_v19  ;;  %v6336_v45 = vpop.f32.mrb[34].mxu0  ;;  %v6214_v46 = vpop.f32.mrb[31].mxu1 }
 0x576   :  { %v6498_v23 = vcombine.low %v6210_v36, %v6212_v3  ;;  %v6337_v39 = vpop.f32.mrb[35].mxu0 }
 0x577   :  { %v6531_v58 = vcombine.low %v6333_v41, %v6335_v44 }
 0x578   :  { %v6512_v4 = vrot.slane %v6498_v23, %v8048_v49 }
 0x579   :  { %v6539_v14 = vrot.slane %v6531_v58, %v8048_v49 }
 0x57a   :  { %v6513_v51 = vcombine.low %v6505_v5, %v6512_v4 }
 0x57c   :  { %6561 = vst [vmem:[%s9886_s7 + $0x28] sm:$0xff] %v6513_v51 }
 0x5b2   :  { %v6291_v53 = vpop.f32.mrb[32].mxu1 }
 0x5b3   :  { %v6292_v54 = vadd.f32 %v6291_v53, %v3111_v50  ;;  %v6293_v57 = vpop.f32.mrb[33].mxu1 }
 0x5b4   :  { %v6294_v61 = vadd.f32 %v6293_v57, %v3115_v52  ;;  %v6295_v62 = vpop.f32.mrb[34].mxu1 }
 0x5b5   :  { %v6296_v10 = vpop.f32.mrb[35].mxu1 }
 0x5b6   :  { %v6515_v17 = vcombine.low %v6292_v54, %v6294_v61 }
 0x5b8   :  { %v6529_v63 = vrot.slane %v6515_v17, %v8048_v49 }
 0x5ba   :  { %v6530_v0 = vcombine.low %v6522_v43, %v6529_v63 }
 0x5bc   :  { %6562 = vst [vmem:[%s9886_s7 + $0x30] sm:$0xff] %v6530_v0 }
 0x5f2   :  { %v6373_v1 = vpop.f32.mrb[36].mxu1 }
 0x5f3   :  { %v6374_v6 = vadd.f32 %v6373_v1, %v3127_v47  ;;  %v6375_v7 = vpop.f32.mrb[37].mxu1 }
 0x5f4   :  { %v6376_v32 = vadd.f32 %v6375_v7, %v3131_v60  ;;  %v6377_v8 = vpop.f32.mrb[38].mxu1 }
 0x5f5   :  { %v6378_v12 = vpop.f32.mrb[39].mxu1 }
 0x5f6   :  { %v6532_v13 = vcombine.low %v6374_v6, %v6376_v32 }
 0x5f8   :  { %v6546_v16 = vrot.slane %v6532_v13, %v8048_v49 }
 0x5fa   :  { %v6547_v18 = vcombine.low %v6539_v14, %v6546_v16 }
 0x5fc   :  { %6563 = vst [vmem:[%s9886_s7 + $0x38] sm:$0xff] %v6547_v18 }
 0x5fd   :  { %6568 = vsyncpa [#allocation3], 1 }
 0x5fe   :  { %6569 = vsyncpa [#allocation5], 1 }

</bundles_post_ra>
